<compile_context>
chip_gen: v6e
topology: v6e:2x2x1
jax: 0.10.0
libtpu: 0.0.40
codegen_flags: <defaults>
</compile_context>

<pallas_src>
import functools

import jax
import jax.numpy as jnp
from jax import lax
from jax.experimental import pallas as pl
from jax.experimental.pallas import tpu as pltpu

LANE = 128
NUM_CLASSES = 10
WPAD = 256        # every packed matmul weight lives in a [WPAD, WPAD] slot
DROWS = 32        # packed depthwise-tap rows (k*k <= 25)
VPAD = 256        # packed folded-BN / bias vector width

# Fixed deterministic (small) subnet configuration:
#   (op,        in_c, out_c, stride, expand, ksize)
LAYER_SPEC = [
    ("conv3x3",    3,    8,     2,   None,   3),   # stem[0]: Conv3x3_BN_Act(swish)
    ("mbconv",     8,    8,     1,   1,      3),   # stem[1]: MB1_3x3_se0.25
    ("mbconv",     8,   16,     2,   6,      3),   # cell 0 : MB6_3x3_se0.25
    ("mbconv",    16,   16,     1,   6,      5),   # cell 1 : MB6_5x5_se0.25
    ("mbconv",    16,   24,     2,   6,      3),   # cell 2 : MB6_3x3_se0.25
    ("mbconv",    24,   24,     1,   6,      5),   # cell 2 : MB6_5x5_se0.25
    ("mbconv",    24,   32,     1,   6,      3),   # stern[0]: MB6_3x3_se0.25
    ("conv1x1",   32,   64,     1,   None,   1),   # stern[1]: Conv1x1_BN_Act(swish)
]


def cpad(c):
    """Pad a channel count up to a multiple of the 128-lane width."""
    return ((c + LANE - 1) // LANE) * LANE


def _swish(v):
    return v * jax.nn.sigmoid(v)


def _sel_matrix(rows, cols, stride):
    """0/1 matrix S with S[i, stride*i] = 1 : row sub-sampling as a tiny matmul."""
    r = lax.broadcasted_iota(jnp.int32, (rows, cols), 0)
    c = lax.broadcasted_iota(jnp.int32, (rows, cols), 1)
    return (c == stride * r).astype(jnp.float32)


# ----------------------------------------------------------------------------
# Static packing plan (pure Python) shared by parameter init and the kernel
# ----------------------------------------------------------------------------

def _build_plan(H0, W0):
    counters = {"w": 0, "d": 0, "v": 0}

    def nxt(kind):
        i = counters[kind]
        counters[kind] += 1
        return i

    plan = {}
    _, in_c, out_c, stride, _, k = LAYER_SPEC[0]
    plan["stem"] = dict(in_c=in_c, out_c=out_c, k=k, stride=stride,
                        out_cp=cpad(out_c), Ho=H0 // stride, Wo=W0 // stride,
                        iw=nxt("w"), iv_s=nxt("v"), iv_b=nxt("v"))
    H, W = H0 // stride, W0 // stride

    layers = []
    for (_, in_c, out_c, stride, expand, k) in LAYER_SPEC[1:-1]:
        mid = in_c * expand
        se_c = max(1, int(in_c * 0.25))
        L = dict(H=H, W=W, k=k, stride=stride,
                 in_c=in_c, out_c=out_c, mid=mid, se_c=se_c,
                 in_cp=cpad(in_c), mid_p=cpad(mid), se_p=cpad(se_c),
                 out_cp=cpad(out_c),
                 has_expand=(expand != 1),
                 residual=(stride == 1 and in_c == out_c))
        if L["has_expand"]:
            L["iw_e"], L["iv_es"], L["iv_eb"] = nxt("w"), nxt("v"), nxt("v")
        L["id_dw"], L["iv_ds"], L["iv_db"] = nxt("d"), nxt("v"), nxt("v")
        L["iw_s1"], L["iv_sb1"] = nxt("w"), nxt("v")
        L["iw_s2"], L["iv_sb2"] = nxt("w"), nxt("v")
        L["iw_p"], L["iv_ps"], L["iv_pb"] = nxt("w"), nxt("v"), nxt("v")
        layers.append(L)
        H, W = H // stride, W // stride
    plan["layers"] = layers

    _, in_c, out_c, _, _, _ = LAYER_SPEC[-1]
    plan["head"] = dict(in_c=in_c, out_c=out_c,
                        in_cp=cpad(in_c), out_cp=cpad(out_c),
                        cls_p=cpad(NUM_CLASSES),
                        iw_1=nxt("w"), iv_s1=nxt("v"), iv_b1=nxt("v"),
                        iw_l=nxt("w"), iv_lb=nxt("v"))
    plan["nw"], plan["nd"], plan["nv"] = counters["w"], counters["d"], counters["v"]
    plan["pad_h"] = max(L["H"] + 2 * (L["k"] // 2) for L in layers)
    plan["pad_w"] = max(L["W"] + 2 * (L["k"] // 2) for L in layers)
    plan["mid_max"] = max(L["mid_p"] for L in layers)
    return plan


# ----------------------------------------------------------------------------
# The single fused kernel: stem -> 6 MBConv blocks -> head, per image
# ----------------------------------------------------------------------------

def _supernet_kernel(pat_ref, wmat_ref, dww_ref, vecs_ref, o_ref, xpad_ref, *, plan):
    f32, bf16 = jnp.float32, jnp.bfloat16

    def vec(i, c):                      # folded-BN scale/bias, biases -> (1, c) f32
        return vecs_ref[i:i + 1, :c]

    def mm(a, i, r, c):                 # bf16 MXU matmul, f32 accumulation
        return jnp.dot(a.astype(bf16), wmat_ref[i, :r, :c],
                       preferred_element_type=f32)

    # ---------------- stem: ONE im2col matmul + folded BN + swish ------------
    st = plan["stem"]
    x = mm(pat_ref[...], st["iw"], LANE, st["out_cp"])
    x = _swish(x * vec(st["iv_s"], st["out_cp"]) + vec(st["iv_b"], st["out_cp"]))

    # ---------------- MBConv blocks, fully VMEM/vreg resident ----------------
    for L in plan["layers"]:
        H, W, k, stride = L["H"], L["W"], L["k"], L["stride"]
        pad = k // 2
        Ho, Wo = H // stride, W // stride
        Hp, Wp = H + 2 * pad, W + 2 * pad
        mid = L["mid_p"]

        # 1) expand 1x1 + folded BN + swish (lane-dense matmul)
        if L["has_expand"]:
            h = mm(x, L["iw_e"], L["in_cp"], mid)
            h = _swish(h * vec(L["iv_es"], mid) + vec(L["iv_eb"], mid))
        else:
            h = x

        # 2) spatial zero-pad: border-only memset + bulk interior store
        zrow = jnp.zeros((pad, Wp, mid), f32)
        zcol = jnp.zeros((H, pad, mid), f32)
        xpad_ref[0:pad, 0:Wp, :mid] = zrow
        xpad_ref[pad + H:Hp, 0:Wp, :mid] = zrow
        xpad_ref[pad:pad + H, 0:pad, :mid] = zcol
        xpad_ref[pad:pad + H, pad + W:Wp, :mid] = zcol
        if W % 8 == 0:                       # tiling-preserving bulk store
            xpad_ref[pad:pad + H, pad:pad + W, :mid] = h.reshape(H, W, mid)
        else:                                # tiny blocks (W in {4, 2})
            for r in range(H):
                xpad_ref[pad + r, pad:pad + W, :mid] = h[r * W:(r + 1) * W, :]

        dscale = vec(L["iv_ds"], mid)
        dbias = vec(L["iv_db"], mid)

        # 3) depthwise conv + folded BN + swish (per-dy slab load hoisted)
        if stride == 1:
            acc = jnp.zeros((H, W, mid), f32)
            for dy in range(k):
                slab = xpad_ref[dy:dy + H, 0:Wp, :mid]
                for dx in range(k):
                    t = dy * k + dx
                    tap = dww_ref[L["id_dw"], t:t + 1, :mid].reshape(1, 1, mid)
                    acc = acc + slab[:, dx:dx + W, :] * tap
            acc = _swish(acc * dscale.reshape(1, 1, mid) + dbias.reshape(1, 1, mid))
            if W % 8 == 0:
                hdw = acc.reshape(H * W, mid)
            else:
                hdw = jnp.concatenate([acc[r] for r in range(H)], axis=0)
        else:
            # strided depthwise only on the two tiny (<=4x4 output) blocks;
            # column sub-sampling stays a small 0/1 select matmul.
            sel = _sel_matrix(Wo, W, stride)
            rows = []
            for ho in range(Ho):
                racc = jnp.zeros((W, mid), f32)
                for dy in range(k):
                    slab = xpad_ref[stride * ho + dy, 0:Wp, :mid]
                    for dx in range(k):
                        t = dy * k + dx
                        tap = dww_ref[L["id_dw"], t:t + 1, :mid]
                        racc = racc + slab[dx:dx + W, :] * tap
                row = jnp.dot(sel, racc, preferred_element_type=f32)
                rows.append(_swish(row * dscale + dbias))
            hdw = jnp.concatenate(rows, axis=0)          # [Ho*Wo, mid]

        # 4) Squeeze-Excite (global pool + two tiny matmuls)
        pooled = jnp.mean(hdw, axis=0, keepdims=True)
        s = _swish(mm(pooled, L["iw_s1"], mid, L["se_p"])
                   + vec(L["iv_sb1"], L["se_p"]))
        s = jax.nn.sigmoid(mm(s, L["iw_s2"], L["se_p"], mid)
                           + vec(L["iv_sb2"], mid))

        # 5) project 1x1 + folded BN (+ residual), SE scale fused in
        out = mm(hdw * s, L["iw_p"], mid, L["out_cp"])
        out = out * vec(L["iv_ps"], L["out_cp"]) + vec(L["iv_pb"], L["out_cp"])
        if L["residual"]:
            out = out + x
        x = out

    # ---------------- head: Conv1x1+BN+swish, global avg pool, classifier ----
    hd = plan["head"]
    h = mm(x, hd["iw_1"], hd["in_cp"], hd["out_cp"])
    h = _swish(h * vec(hd["iv_s1"], hd["out_cp"]) + vec(hd["iv_b1"], hd["out_cp"]))
    pooled = jnp.mean(h, axis=0, keepdims=True)          # == x.mean(3).mean(2) (NCHW)
    logits = (mm(pooled, hd["iw_l"], hd["out_cp"], hd["cls_p"])
              + vec(hd["iv_lb"], hd["cls_p"]))
    o_ref[...] = logits


# ----------------------------------------------------------------------------
# Forward wrapper: layout plumbing + single pallas_call
# ----------------------------------------------------------------------------

def supernet_forward(x_nchw, params):
    wmat, dww, vecs = params
    x = jnp.transpose(x_nchw, (0, 2, 3, 1)).astype(jnp.float32)   # NCHW -> NHWC
    N, H0, W0, C = x.shape
    plan = _build_plan(H0, W0)
    st = plan["stem"]
    k, stride, pad = st["k"], st["stride"], st["k"] // 2
    Ho, Wo = st["Ho"], st["Wo"]
    assert C == st["in_c"] and k * k * C <= LANE

    # im2col for the stride-2 3x3 stem: 27 real values/patch packed lane-dense
    # to 128 so the in-kernel stem is ONE [Ho*Wo,128]x[128,128] matmul.
    xp = jnp.pad(x, ((0, 0), (pad, pad), (pad, pad), (0, 0)))
    cols = [xp[:, dy:dy + stride * Ho:stride, dx:dx + stride * Wo:stride, :]
            for dy in range(k) for dx in range(k)]
    pat = jnp.concatenate(cols, axis=-1).reshape(N, Ho * Wo, k * k * C)
    pat = jnp.pad(pat, ((0, 0), (0, 0), (0, LANE - k * k * C)))

    cls_p = plan["head"]["cls_p"]
    kernel = functools.partial(_supernet_kernel, plan=plan)
    out = pl.pallas_call(
        kernel,
        out_shape=jax.ShapeDtypeStruct((N, 1, cls_p), jnp.float32),
        grid=(N,),
        in_specs=[
            pl.BlockSpec((None, Ho * Wo, LANE), lambda n: (n, 0, 0)),
            pl.BlockSpec(wmat.shape, lambda n: (0, 0, 0)),
            pl.BlockSpec(dww.shape, lambda n: (0, 0, 0)),
            pl.BlockSpec(vecs.shape, lambda n: (0, 0)),
        ],
        out_specs=pl.BlockSpec((None, 1, cls_p), lambda n: (n, 0, 0)),
        scratch_shapes=[
            pltpu.VMEM((plan["pad_h"], plan["pad_w"], plan["mid_max"]),
                       jnp.float32),
        ],
        compiler_params=pltpu.CompilerParams(
            dimension_semantics=("parallel",),
            vmem_limit_bytes=32 * 1024 * 1024),
    )(pat, wmat, dww, vecs)
    return out[:, 0, :NUM_CLASSES]


# ----------------------------------------------------------------------------
# Deterministic parameter init, packed into 3 consolidated arrays
# ----------------------------------------------------------------------------

def _w(key, shape):
    return 0.1 * jax.random.normal(key, shape, jnp.float32)


def init_supernet(key, H0=16, W0=16):
    plan = _build_plan(H0, W0)
    wmat = jnp.zeros((plan["nw"], WPAD, WPAD), jnp.float32)
    dww = jnp.zeros((plan["nd"], DROWS, VPAD), jnp.float32)
    vecs = jnp.zeros((plan["nv"], VPAD), jnp.float32)

    keys = iter(jax.random.split(key, 128))

    def put_w(arr, i, val):
        return arr.at[i, :val.shape[0], :val.shape[1]].set(val)

    def put_v(arr, i, val):
        return arr.at[i, :val.shape[0]].set(val)

    def bn_fold(kk, c):
        k1, k2 = jax.random.split(kk)
        gamma = 1.0 + 0.1 * jax.random.normal(k1, (c,), jnp.float32)
        beta = 0.1 * jax.random.normal(k2, (c,), jnp.float32)
        # eval-mode fold: running_mean=0, running_var=1, eps=1e-5
        return gamma / jnp.sqrt(1.0 + 1e-5), beta

    st = plan["stem"]
    wmat = put_w(wmat, st["iw"],
                 _w(next(keys), (st["k"] * st["k"] * st["in_c"], st["out_c"])))
    sc, bi = bn_fold(next(keys), st["out_c"])
    vecs = put_v(vecs, st["iv_s"], sc)
    vecs = put_v(vecs, st["iv_b"], bi)

    for L in plan["layers"]:
        k, mid, se_c = L["k"], L["mid"], L["se_c"]
        if L["has_expand"]:
            wmat = put_w(wmat, L["iw_e"], _w(next(keys), (L["in_c"], mid)))
            sc, bi = bn_fold(next(keys), mid)
            vecs = put_v(vecs, L["iv_es"], sc)
            vecs = put_v(vecs, L["iv_eb"], bi)
        dww = dww.at[L["id_dw"], :k * k, :mid].set(_w(next(keys), (k * k, mid)))
        sc, bi = bn_fold(next(keys), mid)
        vecs = put_v(vecs, L["iv_ds"], sc)
        vecs = put_v(vecs, L["iv_db"], bi)
        wmat = put_w(wmat, L["iw_s1"], _w(next(keys), (mid, se_c)))
        vecs = put_v(vecs, L["iv_sb1"], _w(next(keys), (se_c,)))
        wmat = put_w(wmat, L["iw_s2"], _w(next(keys), (se_c, mid)))
        vecs = put_v(vecs, L["iv_sb2"], _w(next(keys), (mid,)))
        wmat = put_w(wmat, L["iw_p"], _w(next(keys), (mid, L["out_c"])))
        sc, bi = bn_fold(next(keys), L["out_c"])
        vecs = put_v(vecs, L["iv_ps"], sc)
        vecs = put_v(vecs, L["iv_pb"], bi)

    hd = plan["head"]
    wmat = put_w(wmat, hd["iw_1"], _w(next(keys), (hd["in_c"], hd["out_c"])))
    sc, bi = bn_fold(next(keys), hd["out_c"])
    vecs = put_v(vecs, hd["iv_s1"], sc)
    vecs = put_v(vecs, hd["iv_b1"], bi)
    wmat = put_w(wmat, hd["iw_l"], _w(next(keys), (hd["out_c"], NUM_CLASSES)))
    vecs = put_v(vecs, hd["iv_lb"], _w(next(keys), (NUM_CLASSES,)))

    # matmul operands in bf16 (f32 MXU accumulation in-kernel); elementwise
    # parameters (depthwise taps, folded BN, biases) stay f32 (v5e-safe VPU).
    return wmat.astype(jnp.bfloat16), dww, vecs


if __name__ == "__main__":
    key = jax.random.PRNGKey(0)
    kx, kp = jax.random.split(key)
    x = jax.random.normal(kx, (2, 3, 16, 16), jnp.float32)   # NCHW like PyTorch
    params = init_supernet(kp)
    fwd = jax.jit(supernet_forward)
    out = fwd(x, params)
    jax.block_until_ready(out)
    assert out.shape == (2, NUM_CLASSES)
    assert bool(jnp.all(jnp.isfinite(out)))
    print("KERNEL_OK")
</pallas_src>

<mosaic_0001>
module attributes {stable_mosaic.version = 11 : i64} {
  func.func @_supernet_kernel(%arg0: i32, %arg1: memref<1x64x128xf32, #tpu.memory_space<vmem>>, %arg2: memref<26x256x256xbf16, #tpu.memory_space<vmem>>, %arg3: memref<6x32x256xf32, #tpu.memory_space<vmem>>, %arg4: memref<51x256xf32, #tpu.memory_space<vmem>>, %arg5: memref<1x1x128xf32, #tpu.memory_space<vmem>>, %arg6: memref<10x10x256xf32, #tpu.memory_space<vmem>>) attributes {dimension_semantics = [#tpu.dimension_semantics<parallel>], iteration_bounds = array<i64: 2>, scalar_prefetch = 0 : i64, scratch_operands = 1 : i64, tpu.core_type = #tpu.core_type<tc>, window_params = [{transform_indices = @transform_0, window_bounds = array<i64: 1, 64, 128>}, {pipeline_mode = #tpu.pipeline_mode<synchronous>, transform_indices = @transform_1, window_bounds = array<i64: 26, 256, 256>}, {pipeline_mode = #tpu.pipeline_mode<synchronous>, transform_indices = @transform_2, window_bounds = array<i64: 6, 32, 256>}, {pipeline_mode = #tpu.pipeline_mode<synchronous>, transform_indices = @transform_3, window_bounds = array<i64: 51, 256>}, {transform_indices = @transform_4, window_bounds = array<i64: 1, 1, 128>}]} {
    %c0 = arith.constant 0 : index
    %c0_0 = arith.constant 0 : index
    %c0_1 = arith.constant 0 : index
    %0 = vector.load %arg1[%c0, %c0_0, %c0_1] : memref<1x64x128xf32, #tpu.memory_space<vmem>>, vector<1x64x128xf32>
    %1 = vector.shape_cast %0 : vector<1x64x128xf32> to vector<64x128xf32>
    %2 = arith.truncf %1 : vector<64x128xf32> to vector<64x128xbf16>
    %c0_2 = arith.constant 0 : index
    %c0_3 = arith.constant 0 : index
    %c0_4 = arith.constant 0 : index
    %3 = vector.load %arg2[%c0_2, %c0_3, %c0_4] : memref<26x256x256xbf16, #tpu.memory_space<vmem>>, vector<1x128x128xbf16>
    %4 = vector.shape_cast %3 : vector<1x128x128xbf16> to vector<128x128xbf16>
    %cst = arith.constant dense<0.000000e+00> : vector<64x128xf32>
    %5 = tpu.matmul %2, %4, %cst {dimension_numbers = #tpu.dot_dimension_numbers<[1], [0], [0], [1], [0, 0, 1, 1], [], []>} : vector<64x128xbf16>, vector<128x128xbf16>, vector<64x128xf32> -> vector<64x128xf32>
    %c0_5 = arith.constant 0 : index
    %c0_6 = arith.constant 0 : index
    %6 = vector.load %arg4[%c0_5, %c0_6] : memref<51x256xf32, #tpu.memory_space<vmem>>, vector<1x128xf32>
    %7 = vector.broadcast %6 : vector<1x128xf32> to vector<64x128xf32>
    %8 = arith.mulf %5, %7 : vector<64x128xf32>
    %c1 = arith.constant 1 : index
    %c0_7 = arith.constant 0 : index
    %9 = vector.load %arg4[%c1, %c0_7] : memref<51x256xf32, #tpu.memory_space<vmem>>, vector<1x128xf32>
    %10 = vector.broadcast %9 : vector<1x128xf32> to vector<64x128xf32>
    %11 = arith.addf %8, %10 : vector<64x128xf32>
    %12 = arith.negf %11 : vector<64x128xf32>
    %13 = math.exp %12 : vector<64x128xf32>
    %cst_8 = arith.constant 1.000000e+00 : f32
    %14 = vector.broadcast %cst_8 : f32 to vector<64x128xf32>
    %15 = arith.addf %14, %13 : vector<64x128xf32>
    %16 = arith.divf %14, %15 : vector<64x128xf32>
    %17 = arith.mulf %11, %16 : vector<64x128xf32>
    %cst_9 = arith.constant 0.000000e+00 : f32
    %18 = vector.broadcast %cst_9 : f32 to vector<1x10x128xf32>
    %cst_10 = arith.constant 0.000000e+00 : f32
    %19 = vector.broadcast %cst_10 : f32 to vector<8x1x128xf32>
    %c0_11 = arith.constant 0 : index
    %c0_12 = arith.constant 0 : index
    %c0_13 = arith.constant 0 : index
    %20 = vector.load %arg6[%c0_11, %c0_12, %c0_13] : memref<10x10x256xf32, #tpu.memory_space<vmem>>, vector<1x10x128xf32>
    tpu.vector_store %arg6[%c0_11, %c0_12, %c0_13], %18 {strides = array<i32>} : memref<10x10x256xf32, #tpu.memory_space<vmem>>, vector<1x10x128xf32>,
    %c9 = arith.constant 9 : index
    %c0_14 = arith.constant 0 : index
    %c0_15 = arith.constant 0 : index
    %21 = vector.load %arg6[%c9, %c0_14, %c0_15] : memref<10x10x256xf32, #tpu.memory_space<vmem>>, vector<1x10x128xf32>
    tpu.vector_store %arg6[%c9, %c0_14, %c0_15], %18 {strides = array<i32>} : memref<10x10x256xf32, #tpu.memory_space<vmem>>, vector<1x10x128xf32>,
    %c1_16 = arith.constant 1 : index
    %c0_17 = arith.constant 0 : index
    %c0_18 = arith.constant 0 : index
    %22 = vector.load %arg6[%c1_16, %c0_17, %c0_18] : memref<10x10x256xf32, #tpu.memory_space<vmem>>, vector<8x1x128xf32>
    tpu.vector_store %arg6[%c1_16, %c0_17, %c0_18], %19 {strides = array<i32>} : memref<10x10x256xf32, #tpu.memory_space<vmem>>, vector<8x1x128xf32>,
    %c1_19 = arith.constant 1 : index
    %c9_20 = arith.constant 9 : index
    %c0_21 = arith.constant 0 : index
    %23 = vector.load %arg6[%c1_19, %c9_20, %c0_21] : memref<10x10x256xf32, #tpu.memory_space<vmem>>, vector<8x1x128xf32>
    tpu.vector_store %arg6[%c1_19, %c9_20, %c0_21], %19 {strides = array<i32>} : memref<10x10x256xf32, #tpu.memory_space<vmem>>, vector<8x1x128xf32>,
    %24 = vector.shape_cast %17 : vector<64x128xf32> to vector<8x8x128xf32>
    %c1_22 = arith.constant 1 : index
    %c1_23 = arith.constant 1 : index
    %c0_24 = arith.constant 0 : index
    %25 = vector.load %arg6[%c1_22, %c1_23, %c0_24] : memref<10x10x256xf32, #tpu.memory_space<vmem>>, vector<8x8x128xf32>
    tpu.vector_store %arg6[%c1_22, %c1_23, %c0_24], %24 {strides = array<i32>} : memref<10x10x256xf32, #tpu.memory_space<vmem>>, vector<8x8x128xf32>,
    %c2 = arith.constant 2 : index
    %c0_25 = arith.constant 0 : index
    %26 = vector.load %arg4[%c2, %c0_25] : memref<51x256xf32, #tpu.memory_space<vmem>>, vector<1x128xf32>
    %c3 = arith.constant 3 : index
    %c0_26 = arith.constant 0 : index
    %27 = vector.load %arg4[%c3, %c0_26] : memref<51x256xf32, #tpu.memory_space<vmem>>, vector<1x128xf32>
    %cst_27 = arith.constant 0.000000e+00 : f32
    %28 = vector.broadcast %cst_27 : f32 to vector<8x8x128xf32>
    %c0_28 = arith.constant 0 : index
    %c0_29 = arith.constant 0 : index
    %c0_30 = arith.constant 0 : index
    %29 = vector.load %arg6[%c0_28, %c0_29, %c0_30] : memref<10x10x256xf32, #tpu.memory_space<vmem>>, vector<8x10x128xf32>
    %c0_31 = arith.constant 0 : index
    %c0_32 = arith.constant 0 : index
    %c0_33 = arith.constant 0 : index
    %30 = vector.load %arg3[%c0_31, %c0_32, %c0_33] : memref<6x32x256xf32, #tpu.memory_space<vmem>>, vector<1x1x128xf32>
    %31 = vector.shape_cast %30 : vector<1x1x128xf32> to vector<1x128xf32>
    %32 = vector.shape_cast %31 : vector<1x128xf32> to vector<1x1x128xf32>
    %33 = vector.extract_strided_slice %29 {offsets = [0, 0, 0], sizes = [8, 8, 128], strides = [1, 1, 1]} : vector<8x10x128xf32> to vector<8x8x128xf32>
    %34 = vector.broadcast %32 : vector<1x1x128xf32> to vector<8x8x128xf32>
    %35 = arith.mulf %33, %34 : vector<8x8x128xf32>
    %36 = arith.addf %28, %35 : vector<8x8x128xf32>
    %c0_34 = arith.constant 0 : index
    %c1_35 = arith.constant 1 : index
    %c0_36 = arith.constant 0 : index
    %37 = vector.load %arg3[%c0_34, %c1_35, %c0_36] : memref<6x32x256xf32, #tpu.memory_space<vmem>>, vector<1x1x128xf32>
    %38 = vector.shape_cast %37 : vector<1x1x128xf32> to vector<1x128xf32>
    %39 = vector.shape_cast %38 : vector<1x128xf32> to vector<1x1x128xf32>
    %40 = vector.extract_strided_slice %29 {offsets = [0, 1, 0], sizes = [8, 8, 128], strides = [1, 1, 1]} : vector<8x10x128xf32> to vector<8x8x128xf32>
    %41 = vector.broadcast %39 : vector<1x1x128xf32> to vector<8x8x128xf32>
    %42 = arith.mulf %40, %41 : vector<8x8x128xf32>
    %43 = arith.addf %36, %42 : vector<8x8x128xf32>
    %c0_37 = arith.constant 0 : index
    %c2_38 = arith.constant 2 : index
    %c0_39 = arith.constant 0 : index
    %44 = vector.load %arg3[%c0_37, %c2_38, %c0_39] : memref<6x32x256xf32, #tpu.memory_space<vmem>>, vector<1x1x128xf32>
    %45 = vector.shape_cast %44 : vector<1x1x128xf32> to vector<1x128xf32>
    %46 = vector.shape_cast %45 : vector<1x128xf32> to vector<1x1x128xf32>
    %47 = vector.extract_strided_slice %29 {offsets = [0, 2, 0], sizes = [8, 8, 128], strides = [1, 1, 1]} : vector<8x10x128xf32> to vector<8x8x128xf32>
    %48 = vector.broadcast %46 : vector<1x1x128xf32> to vector<8x8x128xf32>
    %49 = arith.mulf %47, %48 : vector<8x8x128xf32>
    %50 = arith.addf %43, %49 : vector<8x8x128xf32>
    %c1_40 = arith.constant 1 : index
    %c0_41 = arith.constant 0 : index
    %c0_42 = arith.constant 0 : index
    %51 = vector.load %arg6[%c1_40, %c0_41, %c0_42] : memref<10x10x256xf32, #tpu.memory_space<vmem>>, vector<8x10x128xf32>
    %c0_43 = arith.constant 0 : index
    %c3_44 = arith.constant 3 : index
    %c0_45 = arith.constant 0 : index
    %52 = vector.load %arg3[%c0_43, %c3_44, %c0_45] : memref<6x32x256xf32, #tpu.memory_space<vmem>>, vector<1x1x128xf32>
    %53 = vector.shape_cast %52 : vector<1x1x128xf32> to vector<1x128xf32>
    %54 = vector.shape_cast %53 : vector<1x128xf32> to vector<1x1x128xf32>
    %55 = vector.extract_strided_slice %51 {offsets = [0, 0, 0], sizes = [8, 8, 128], strides = [1, 1, 1]} : vector<8x10x128xf32> to vector<8x8x128xf32>
    %56 = vector.broadcast %54 : vector<1x1x128xf32> to vector<8x8x128xf32>
    %57 = arith.mulf %55, %56 : vector<8x8x128xf32>
    %58 = arith.addf %50, %57 : vector<8x8x128xf32>
    %c0_46 = arith.constant 0 : index
    %c4 = arith.constant 4 : index
    %c0_47 = arith.constant 0 : index
    %59 = vector.load %arg3[%c0_46, %c4, %c0_47] : memref<6x32x256xf32, #tpu.memory_space<vmem>>, vector<1x1x128xf32>
    %60 = vector.shape_cast %59 : vector<1x1x128xf32> to vector<1x128xf32>
    %61 = vector.shape_cast %60 : vector<1x128xf32> to vector<1x1x128xf32>
    %62 = vector.extract_strided_slice %51 {offsets = [0, 1, 0], sizes = [8, 8, 128], strides = [1, 1, 1]} : vector<8x10x128xf32> to vector<8x8x128xf32>
    %63 = vector.broadcast %61 : vector<1x1x128xf32> to vector<8x8x128xf32>
    %64 = arith.mulf %62, %63 : vector<8x8x128xf32>
    %65 = arith.addf %58, %64 : vector<8x8x128xf32>
    %c0_48 = arith.constant 0 : index
    %c5 = arith.constant 5 : index
    %c0_49 = arith.constant 0 : index
    %66 = vector.load %arg3[%c0_48, %c5, %c0_49] : memref<6x32x256xf32, #tpu.memory_space<vmem>>, vector<1x1x128xf32>
    %67 = vector.shape_cast %66 : vector<1x1x128xf32> to vector<1x128xf32>
    %68 = vector.shape_cast %67 : vector<1x128xf32> to vector<1x1x128xf32>
    %69 = vector.extract_strided_slice %51 {offsets = [0, 2, 0], sizes = [8, 8, 128], strides = [1, 1, 1]} : vector<8x10x128xf32> to vector<8x8x128xf32>
    %70 = vector.broadcast %68 : vector<1x1x128xf32> to vector<8x8x128xf32>
    %71 = arith.mulf %69, %70 : vector<8x8x128xf32>
    %72 = arith.addf %65, %71 : vector<8x8x128xf32>
    %c2_50 = arith.constant 2 : index
    %c0_51 = arith.constant 0 : index
    %c0_52 = arith.constant 0 : index
    %73 = vector.load %arg6[%c2_50, %c0_51, %c0_52] : memref<10x10x256xf32, #tpu.memory_space<vmem>>, vector<8x10x128xf32>
    %c0_53 = arith.constant 0 : index
    %c6 = arith.constant 6 : index
    %c0_54 = arith.constant 0 : index
    %74 = vector.load %arg3[%c0_53, %c6, %c0_54] : memref<6x32x256xf32, #tpu.memory_space<vmem>>, vector<1x1x128xf32>
    %75 = vector.shape_cast %74 : vector<1x1x128xf32> to vector<1x128xf32>
    %76 = vector.shape_cast %75 : vector<1x128xf32> to vector<1x1x128xf32>
    %77 = vector.extract_strided_slice %73 {offsets = [0, 0, 0], sizes = [8, 8, 128], strides = [1, 1, 1]} : vector<8x10x128xf32> to vector<8x8x128xf32>
    %78 = vector.broadcast %76 : vector<1x1x128xf32> to vector<8x8x128xf32>
    %79 = arith.mulf %77, %78 : vector<8x8x128xf32>
    %80 = arith.addf %72, %79 : vector<8x8x128xf32>
    %c0_55 = arith.constant 0 : index
    %c7 = arith.constant 7 : index
    %c0_56 = arith.constant 0 : index
    %81 = vector.load %arg3[%c0_55, %c7, %c0_56] : memref<6x32x256xf32, #tpu.memory_space<vmem>>, vector<1x1x128xf32>
    %82 = vector.shape_cast %81 : vector<1x1x128xf32> to vector<1x128xf32>
    %83 = vector.shape_cast %82 : vector<1x128xf32> to vector<1x1x128xf32>
    %84 = vector.extract_strided_slice %73 {offsets = [0, 1, 0], sizes = [8, 8, 128], strides = [1, 1, 1]} : vector<8x10x128xf32> to vector<8x8x128xf32>
    %85 = vector.broadcast %83 : vector<1x1x128xf32> to vector<8x8x128xf32>
    %86 = arith.mulf %84, %85 : vector<8x8x128xf32>
    %87 = arith.addf %80, %86 : vector<8x8x128xf32>
    %c0_57 = arith.constant 0 : index
    %c8 = arith.constant 8 : index
    %c0_58 = arith.constant 0 : index
    %88 = vector.load %arg3[%c0_57, %c8, %c0_58] : memref<6x32x256xf32, #tpu.memory_space<vmem>>, vector<1x1x128xf32>
    %89 = vector.shape_cast %88 : vector<1x1x128xf32> to vector<1x128xf32>
    %90 = vector.shape_cast %89 : vector<1x128xf32> to vector<1x1x128xf32>
    %91 = vector.extract_strided_slice %73 {offsets = [0, 2, 0], sizes = [8, 8, 128], strides = [1, 1, 1]} : vector<8x10x128xf32> to vector<8x8x128xf32>
    %92 = vector.broadcast %90 : vector<1x1x128xf32> to vector<8x8x128xf32>
    %93 = arith.mulf %91, %92 : vector<8x8x128xf32>
    %94 = arith.addf %87, %93 : vector<8x8x128xf32>
    %95 = vector.shape_cast %26 : vector<1x128xf32> to vector<1x1x128xf32>
    %96 = vector.broadcast %95 : vector<1x1x128xf32> to vector<8x8x128xf32>
    %97 = arith.mulf %94, %96 : vector<8x8x128xf32>
    %98 = vector.shape_cast %27 : vector<1x128xf32> to vector<1x1x128xf32>
    %99 = vector.broadcast %98 : vector<1x1x128xf32> to vector<8x8x128xf32>
    %100 = arith.addf %97, %99 : vector<8x8x128xf32>
    %101 = arith.negf %100 : vector<8x8x128xf32>
    %102 = math.exp %101 : vector<8x8x128xf32>
    %cst_59 = arith.constant 1.000000e+00 : f32
    %103 = vector.broadcast %cst_59 : f32 to vector<8x8x128xf32>
    %104 = arith.addf %103, %102 : vector<8x8x128xf32>
    %105 = arith.divf %103, %104 : vector<8x8x128xf32>
    %106 = arith.mulf %100, %105 : vector<8x8x128xf32>
    %107 = vector.shape_cast %106 : vector<8x8x128xf32> to vector<64x128xf32>
    %cst_60 = arith.constant dense<0.000000e+00> : vector<128xf32>
    %108 = vector.multi_reduction <add>, %107, %cst_60 [0] : vector<64x128xf32> to vector<128xf32>
    %109 = vector.shape_cast %108 : vector<128xf32> to vector<1x128xf32>
    %cst_61 = arith.constant 6.400000e+01 : f32
    %110 = vector.broadcast %cst_61 : f32 to vector<1x128xf32>
    %111 = arith.divf %109, %110 : vector<1x128xf32>
    %112 = arith.truncf %111 : vector<1x128xf32> to vector<1x128xbf16>
    %c1_62 = arith.constant 1 : index
    %c0_63 = arith.constant 0 : index
    %c0_64 = arith.constant 0 : index
    %113 = vector.load %arg2[%c1_62, %c0_63, %c0_64] : memref<26x256x256xbf16, #tpu.memory_space<vmem>>, vector<1x128x128xbf16>
    %114 = vector.shape_cast %113 : vector<1x128x128xbf16> to vector<128x128xbf16>
    %cst_65 = arith.constant dense<0.000000e+00> : vector<1x128xf32>
    %115 = tpu.matmul %112, %114, %cst_65 {dimension_numbers = #tpu.dot_dimension_numbers<[1], [0], [0], [1], [0, 0, 1, 1], [], []>} : vector<1x128xbf16>, vector<128x128xbf16>, vector<1x128xf32> -> vector<1x128xf32>
    %c4_66 = arith.constant 4 : index
    %c0_67 = arith.constant 0 : index
    %116 = vector.load %arg4[%c4_66, %c0_67] : memref<51x256xf32, #tpu.memory_space<vmem>>, vector<1x128xf32>
    %117 = arith.addf %115, %116 : vector<1x128xf32>
    %118 = arith.negf %117 : vector<1x128xf32>
    %119 = math.exp %118 : vector<1x128xf32>
    %cst_68 = arith.constant 1.000000e+00 : f32
    %120 = vector.broadcast %cst_68 : f32 to vector<1x128xf32>
    %121 = arith.addf %120, %119 : vector<1x128xf32>
    %122 = arith.divf %120, %121 : vector<1x128xf32>
    %123 = arith.mulf %117, %122 : vector<1x128xf32>
    %124 = arith.truncf %123 : vector<1x128xf32> to vector<1x128xbf16>
    %c2_69 = arith.constant 2 : index
    %c0_70 = arith.constant 0 : index
    %c0_71 = arith.constant 0 : index
    %125 = vector.load %arg2[%c2_69, %c0_70, %c0_71] : memref<26x256x256xbf16, #tpu.memory_space<vmem>>, vector<1x128x128xbf16>
    %126 = vector.shape_cast %125 : vector<1x128x128xbf16> to vector<128x128xbf16>
    %cst_72 = arith.constant dense<0.000000e+00> : vector<1x128xf32>
    %127 = tpu.matmul %124, %126, %cst_72 {dimension_numbers = #tpu.dot_dimension_numbers<[1], [0], [0], [1], [0, 0, 1, 1], [], []>} : vector<1x128xbf16>, vector<128x128xbf16>, vector<1x128xf32> -> vector<1x128xf32>
    %c5_73 = arith.constant 5 : index
    %c0_74 = arith.constant 0 : index
    %128 = vector.load %arg4[%c5_73, %c0_74] : memref<51x256xf32, #tpu.memory_space<vmem>>, vector<1x128xf32>
    %129 = arith.addf %127, %128 : vector<1x128xf32>
    %130 = arith.negf %129 : vector<1x128xf32>
    %131 = math.exp %130 : vector<1x128xf32>
    %cst_75 = arith.constant 1.000000e+00 : f32
    %132 = vector.broadcast %cst_75 : f32 to vector<1x128xf32>
    %133 = arith.addf %132, %131 : vector<1x128xf32>
    %134 = arith.divf %132, %133 : vector<1x128xf32>
    %135 = vector.broadcast %134 : vector<1x128xf32> to vector<64x128xf32>
    %136 = arith.mulf %107, %135 : vector<64x128xf32>
    %137 = arith.truncf %136 : vector<64x128xf32> to vector<64x128xbf16>
    %c3_76 = arith.constant 3 : index
    %c0_77 = arith.constant 0 : index
    %c0_78 = arith.constant 0 : index
    %138 = vector.load %arg2[%c3_76, %c0_77, %c0_78] : memref<26x256x256xbf16, #tpu.memory_space<vmem>>, vector<1x128x128xbf16>
    %139 = vector.shape_cast %138 : vector<1x128x128xbf16> to vector<128x128xbf16>
    %cst_79 = arith.constant dense<0.000000e+00> : vector<64x128xf32>
    %140 = tpu.matmul %137, %139, %cst_79 {dimension_numbers = #tpu.dot_dimension_numbers<[1], [0], [0], [1], [0, 0, 1, 1], [], []>} : vector<64x128xbf16>, vector<128x128xbf16>, vector<64x128xf32> -> vector<64x128xf32>
    %c6_80 = arith.constant 6 : index
    %c0_81 = arith.constant 0 : index
    %141 = vector.load %arg4[%c6_80, %c0_81] : memref<51x256xf32, #tpu.memory_space<vmem>>, vector<1x128xf32>
    %142 = vector.broadcast %141 : vector<1x128xf32> to vector<64x128xf32>
    %143 = arith.mulf %140, %142 : vector<64x128xf32>
    %c7_82 = arith.constant 7 : index
    %c0_83 = arith.constant 0 : index
    %144 = vector.load %arg4[%c7_82, %c0_83] : memref<51x256xf32, #tpu.memory_space<vmem>>, vector<1x128xf32>
    %145 = vector.broadcast %144 : vector<1x128xf32> to vector<64x128xf32>
    %146 = arith.addf %143, %145 : vector<64x128xf32>
    %147 = arith.addf %146, %17 : vector<64x128xf32>
    %148 = arith.truncf %147 : vector<64x128xf32> to vector<64x128xbf16>
    %c4_84 = arith.constant 4 : index
    %c0_85 = arith.constant 0 : index
    %c0_86 = arith.constant 0 : index
    %149 = vector.load %arg2[%c4_84, %c0_85, %c0_86] : memref<26x256x256xbf16, #tpu.memory_space<vmem>>, vector<1x128x128xbf16>
    %150 = vector.shape_cast %149 : vector<1x128x128xbf16> to vector<128x128xbf16>
    %cst_87 = arith.constant dense<0.000000e+00> : vector<64x128xf32>
    %151 = tpu.matmul %148, %150, %cst_87 {dimension_numbers = #tpu.dot_dimension_numbers<[1], [0], [0], [1], [0, 0, 1, 1], [], []>} : vector<64x128xbf16>, vector<128x128xbf16>, vector<64x128xf32> -> vector<64x128xf32>
    %c8_88 = arith.constant 8 : index
    %c0_89 = arith.constant 0 : index
    %152 = vector.load %arg4[%c8_88, %c0_89] : memref<51x256xf32, #tpu.memory_space<vmem>>, vector<1x128xf32>
    %153 = vector.broadcast %152 : vector<1x128xf32> to vector<64x128xf32>
    %154 = arith.mulf %151, %153 : vector<64x128xf32>
    %c9_90 = arith.constant 9 : index
    %c0_91 = arith.constant 0 : index
    %155 = vector.load %arg4[%c9_90, %c0_91] : memref<51x256xf32, #tpu.memory_space<vmem>>, vector<1x128xf32>
    %156 = vector.broadcast %155 : vector<1x128xf32> to vector<64x128xf32>
    %157 = arith.addf %154, %156 : vector<64x128xf32>
    %158 = arith.negf %157 : vector<64x128xf32>
    %159 = math.exp %158 : vector<64x128xf32>
    %cst_92 = arith.constant 1.000000e+00 : f32
    %160 = vector.broadcast %cst_92 : f32 to vector<64x128xf32>
    %161 = arith.addf %160, %159 : vector<64x128xf32>
    %162 = arith.divf %160, %161 : vector<64x128xf32>
    %163 = arith.mulf %157, %162 : vector<64x128xf32>
    %cst_93 = arith.constant 0.000000e+00 : f32
    %164 = vector.broadcast %cst_93 : f32 to vector<1x10x128xf32>
    %cst_94 = arith.constant 0.000000e+00 : f32
    %165 = vector.broadcast %cst_94 : f32 to vector<8x1x128xf32>
    %c0_95 = arith.constant 0 : index
    %c0_96 = arith.constant 0 : index
    %c0_97 = arith.constant 0 : index
    %166 = vector.load %arg6[%c0_95, %c0_96, %c0_97] : memref<10x10x256xf32, #tpu.memory_space<vmem>>, vector<1x10x128xf32>
    tpu.vector_store %arg6[%c0_95, %c0_96, %c0_97], %164 {strides = array<i32>} : memref<10x10x256xf32, #tpu.memory_space<vmem>>, vector<1x10x128xf32>,
    %c9_98 = arith.constant 9 : index
    %c0_99 = arith.constant 0 : index
    %c0_100 = arith.constant 0 : index
    %167 = vector.load %arg6[%c9_98, %c0_99, %c0_100] : memref<10x10x256xf32, #tpu.memory_space<vmem>>, vector<1x10x128xf32>
    tpu.vector_store %arg6[%c9_98, %c0_99, %c0_100], %164 {strides = array<i32>} : memref<10x10x256xf32, #tpu.memory_space<vmem>>, vector<1x10x128xf32>,
    %c1_101 = arith.constant 1 : index
    %c0_102 = arith.constant 0 : index
    %c0_103 = arith.constant 0 : index
    %168 = vector.load %arg6[%c1_101, %c0_102, %c0_103] : memref<10x10x256xf32, #tpu.memory_space<vmem>>, vector<8x1x128xf32>
    tpu.vector_store %arg6[%c1_101, %c0_102, %c0_103], %165 {strides = array<i32>} : memref<10x10x256xf32, #tpu.memory_space<vmem>>, vector<8x1x128xf32>,
    %c1_104 = arith.constant 1 : index
    %c9_105 = arith.constant 9 : index
    %c0_106 = arith.constant 0 : index
    %169 = vector.load %arg6[%c1_104, %c9_105, %c0_106] : memref<10x10x256xf32, #tpu.memory_space<vmem>>, vector<8x1x128xf32>
    tpu.vector_store %arg6[%c1_104, %c9_105, %c0_106], %165 {strides = array<i32>} : memref<10x10x256xf32, #tpu.memory_space<vmem>>, vector<8x1x128xf32>,
    %170 = vector.shape_cast %163 : vector<64x128xf32> to vector<8x8x128xf32>
    %c1_107 = arith.constant 1 : index
    %c1_108 = arith.constant 1 : index
    %c0_109 = arith.constant 0 : index
    %171 = vector.load %arg6[%c1_107, %c1_108, %c0_109] : memref<10x10x256xf32, #tpu.memory_space<vmem>>, vector<8x8x128xf32>
    tpu.vector_store %arg6[%c1_107, %c1_108, %c0_109], %170 {strides = array<i32>} : memref<10x10x256xf32, #tpu.memory_space<vmem>>, vector<8x8x128xf32>,
    %c10 = arith.constant 10 : index
    %c0_110 = arith.constant 0 : index
    %172 = vector.load %arg4[%c10, %c0_110] : memref<51x256xf32, #tpu.memory_space<vmem>>, vector<1x128xf32>
    %c11 = arith.constant 11 : index
    %c0_111 = arith.constant 0 : index
    %173 = vector.load %arg4[%c11, %c0_111] : memref<51x256xf32, #tpu.memory_space<vmem>>, vector<1x128xf32>
    %174 = tpu.iota {dimensions = array<i32: 0>} : vector<4x8xi32>
    %175 = tpu.iota {dimensions = array<i32: 1>} : vector<4x8xi32>
    %c2_i32 = arith.constant 2 : i32
    %176 = vector.broadcast %c2_i32 : i32 to vector<4x8xi32>
    %177 = arith.muli %176, %174 : vector<4x8xi32>
    %178 = arith.cmpi eq, %175, %177 : vector<4x8xi32>
    %179 = arith.extui %178 : vector<4x8xi1> to vector<4x8xi32>
    %180 = arith.sitofp %179 : vector<4x8xi32> to vector<4x8xf32>
    %cst_112 = arith.constant 0.000000e+00 : f32
    %181 = vector.broadcast %cst_112 : f32 to vector<8x128xf32>
    %c0_113 = arith.constant 0 : index
    %c0_114 = arith.constant 0 : index
    %c0_115 = arith.constant 0 : index
    %182 = vector.load %arg6[%c0_113, %c0_114, %c0_115] : memref<10x10x256xf32, #tpu.memory_space<vmem>>, vector<1x10x128xf32>
    %183 = vector.shape_cast %182 : vector<1x10x128xf32> to vector<10x128xf32>
    %c1_116 = arith.constant 1 : index
    %c0_117 = arith.constant 0 : index
    %c0_118 = arith.constant 0 : index
    %184 = vector.load %arg3[%c1_116, %c0_117, %c0_118] : memref<6x32x256xf32, #tpu.memory_space<vmem>>, vector<1x1x128xf32>
    %185 = vector.shape_cast %184 : vector<1x1x128xf32> to vector<1x128xf32>
    %186 = vector.extract_strided_slice %183 {offsets = [0, 0], sizes = [8, 128], strides = [1, 1]} : vector<10x128xf32> to vector<8x128xf32>
    %187 = vector.broadcast %185 : vector<1x128xf32> to vector<8x128xf32>
    %188 = arith.mulf %186, %187 : vector<8x128xf32>
    %189 = arith.addf %181, %188 : vector<8x128xf32>
    %c1_119 = arith.constant 1 : index
    %c1_120 = arith.constant 1 : index
    %c0_121 = arith.constant 0 : index
    %190 = vector.load %arg3[%c1_119, %c1_120, %c0_121] : memref<6x32x256xf32, #tpu.memory_space<vmem>>, vector<1x1x128xf32>
    %191 = vector.shape_cast %190 : vector<1x1x128xf32> to vector<1x128xf32>
    %192 = vector.extract_strided_slice %183 {offsets = [1, 0], sizes = [8, 128], strides = [1, 1]} : vector<10x128xf32> to vector<8x128xf32>
    %193 = vector.broadcast %191 : vector<1x128xf32> to vector<8x128xf32>
    %194 = arith.mulf %192, %193 : vector<8x128xf32>
    %195 = arith.addf %189, %194 : vector<8x128xf32>
    %c1_122 = arith.constant 1 : index
    %c2_123 = arith.constant 2 : index
    %c0_124 = arith.constant 0 : index
    %196 = vector.load %arg3[%c1_122, %c2_123, %c0_124] : memref<6x32x256xf32, #tpu.memory_space<vmem>>, vector<1x1x128xf32>
    %197 = vector.shape_cast %196 : vector<1x1x128xf32> to vector<1x128xf32>
    %198 = vector.extract_strided_slice %183 {offsets = [2, 0], sizes = [8, 128], strides = [1, 1]} : vector<10x128xf32> to vector<8x128xf32>
    %199 = vector.broadcast %197 : vector<1x128xf32> to vector<8x128xf32>
    %200 = arith.mulf %198, %199 : vector<8x128xf32>
    %201 = arith.addf %195, %200 : vector<8x128xf32>
    %c1_125 = arith.constant 1 : index
    %c0_126 = arith.constant 0 : index
    %c0_127 = arith.constant 0 : index
    %202 = vector.load %arg6[%c1_125, %c0_126, %c0_127] : memref<10x10x256xf32, #tpu.memory_space<vmem>>, vector<1x10x128xf32>
    %203 = vector.shape_cast %202 : vector<1x10x128xf32> to vector<10x128xf32>
    %c1_128 = arith.constant 1 : index
    %c3_129 = arith.constant 3 : index
    %c0_130 = arith.constant 0 : index
    %204 = vector.load %arg3[%c1_128, %c3_129, %c0_130] : memref<6x32x256xf32, #tpu.memory_space<vmem>>, vector<1x1x128xf32>
    %205 = vector.shape_cast %204 : vector<1x1x128xf32> to vector<1x128xf32>
    %206 = vector.extract_strided_slice %203 {offsets = [0, 0], sizes = [8, 128], strides = [1, 1]} : vector<10x128xf32> to vector<8x128xf32>
    %207 = vector.broadcast %205 : vector<1x128xf32> to vector<8x128xf32>
    %208 = arith.mulf %206, %207 : vector<8x128xf32>
    %209 = arith.addf %201, %208 : vector<8x128xf32>
    %c1_131 = arith.constant 1 : index
    %c4_132 = arith.constant 4 : index
    %c0_133 = arith.constant 0 : index
    %210 = vector.load %arg3[%c1_131, %c4_132, %c0_133] : memref<6x32x256xf32, #tpu.memory_space<vmem>>, vector<1x1x128xf32>
    %211 = vector.shape_cast %210 : vector<1x1x128xf32> to vector<1x128xf32>
    %212 = vector.extract_strided_slice %203 {offsets = [1, 0], sizes = [8, 128], strides = [1, 1]} : vector<10x128xf32> to vector<8x128xf32>
    %213 = vector.broadcast %211 : vector<1x128xf32> to vector<8x128xf32>
    %214 = arith.mulf %212, %213 : vector<8x128xf32>
    %215 = arith.addf %209, %214 : vector<8x128xf32>
    %c1_134 = arith.constant 1 : index
    %c5_135 = arith.constant 5 : index
    %c0_136 = arith.constant 0 : index
    %216 = vector.load %arg3[%c1_134, %c5_135, %c0_136] : memref<6x32x256xf32, #tpu.memory_space<vmem>>, vector<1x1x128xf32>
    %217 = vector.shape_cast %216 : vector<1x1x128xf32> to vector<1x128xf32>
    %218 = vector.extract_strided_slice %203 {offsets = [2, 0], sizes = [8, 128], strides = [1, 1]} : vector<10x128xf32> to vector<8x128xf32>
    %219 = vector.broadcast %217 : vector<1x128xf32> to vector<8x128xf32>
    %220 = arith.mulf %218, %219 : vector<8x128xf32>
    %221 = arith.addf %215, %220 : vector<8x128xf32>
    %c2_137 = arith.constant 2 : index
    %c0_138 = arith.constant 0 : index
    %c0_139 = arith.constant 0 : index
    %222 = vector.load %arg6[%c2_137, %c0_138, %c0_139] : memref<10x10x256xf32, #tpu.memory_space<vmem>>, vector<1x10x128xf32>
    %223 = vector.shape_cast %222 : vector<1x10x128xf32> to vector<10x128xf32>
    %c1_140 = arith.constant 1 : index
    %c6_141 = arith.constant 6 : index
    %c0_142 = arith.constant 0 : index
    %224 = vector.load %arg3[%c1_140, %c6_141, %c0_142] : memref<6x32x256xf32, #tpu.memory_space<vmem>>, vector<1x1x128xf32>
    %225 = vector.shape_cast %224 : vector<1x1x128xf32> to vector<1x128xf32>
    %226 = vector.extract_strided_slice %223 {offsets = [0, 0], sizes = [8, 128], strides = [1, 1]} : vector<10x128xf32> to vector<8x128xf32>
    %227 = vector.broadcast %225 : vector<1x128xf32> to vector<8x128xf32>
    %228 = arith.mulf %226, %227 : vector<8x128xf32>
    %229 = arith.addf %221, %228 : vector<8x128xf32>
    %c1_143 = arith.constant 1 : index
    %c7_144 = arith.constant 7 : index
    %c0_145 = arith.constant 0 : index
    %230 = vector.load %arg3[%c1_143, %c7_144, %c0_145] : memref<6x32x256xf32, #tpu.memory_space<vmem>>, vector<1x1x128xf32>
    %231 = vector.shape_cast %230 : vector<1x1x128xf32> to vector<1x128xf32>
    %232 = vector.extract_strided_slice %223 {offsets = [1, 0], sizes = [8, 128], strides = [1, 1]} : vector<10x128xf32> to vector<8x128xf32>
    %233 = vector.broadcast %231 : vector<1x128xf32> to vector<8x128xf32>
    %234 = arith.mulf %232, %233 : vector<8x128xf32>
    %235 = arith.addf %229, %234 : vector<8x128xf32>
    %c1_146 = arith.constant 1 : index
    %c8_147 = arith.constant 8 : index
    %c0_148 = arith.constant 0 : index
    %236 = vector.load %arg3[%c1_146, %c8_147, %c0_148] : memref<6x32x256xf32, #tpu.memory_space<vmem>>, vector<1x1x128xf32>
    %237 = vector.shape_cast %236 : vector<1x1x128xf32> to vector<1x128xf32>
    %238 = vector.extract_strided_slice %223 {offsets = [2, 0], sizes = [8, 128], strides = [1, 1]} : vector<10x128xf32> to vector<8x128xf32>
    %239 = vector.broadcast %237 : vector<1x128xf32> to vector<8x128xf32>
    %240 = arith.mulf %238, %239 : vector<8x128xf32>
    %241 = arith.addf %235, %240 : vector<8x128xf32>
    %cst_149 = arith.constant dense<0.000000e+00> : vector<4x128xf32>
    %242 = tpu.matmul %180, %241, %cst_149 {dimension_numbers = #tpu.dot_dimension_numbers<[1], [0], [0], [1], [0, 0, 1, 1], [], []>} : vector<4x8xf32>, vector<8x128xf32>, vector<4x128xf32> -> vector<4x128xf32>
    %243 = vector.broadcast %172 : vector<1x128xf32> to vector<4x128xf32>
    %244 = arith.mulf %242, %243 : vector<4x128xf32>
    %245 = vector.broadcast %173 : vector<1x128xf32> to vector<4x128xf32>
    %246 = arith.addf %244, %245 : vector<4x128xf32>
    %247 = arith.negf %246 : vector<4x128xf32>
    %248 = math.exp %247 : vector<4x128xf32>
    %cst_150 = arith.constant 1.000000e+00 : f32
    %249 = vector.broadcast %cst_150 : f32 to vector<4x128xf32>
    %250 = arith.addf %249, %248 : vector<4x128xf32>
    %251 = arith.divf %249, %250 : vector<4x128xf32>
    %252 = arith.mulf %246, %251 : vector<4x128xf32>
    %cst_151 = arith.constant 0.000000e+00 : f32
    %253 = vector.broadcast %cst_151 : f32 to vector<8x128xf32>
    %c2_152 = arith.constant 2 : index
    %c0_153 = arith.constant 0 : index
    %c0_154 = arith.constant 0 : index
    %254 = vector.load %arg6[%c2_152, %c0_153, %c0_154] : memref<10x10x256xf32, #tpu.memory_space<vmem>>, vector<1x10x128xf32>
    %255 = vector.shape_cast %254 : vector<1x10x128xf32> to vector<10x128xf32>
    %c1_155 = arith.constant 1 : index
    %c0_156 = arith.constant 0 : index
    %c0_157 = arith.constant 0 : index
    %256 = vector.load %arg3[%c1_155, %c0_156, %c0_157] : memref<6x32x256xf32, #tpu.memory_space<vmem>>, vector<1x1x128xf32>
    %257 = vector.shape_cast %256 : vector<1x1x128xf32> to vector<1x128xf32>
    %258 = vector.extract_strided_slice %255 {offsets = [0, 0], sizes = [8, 128], strides = [1, 1]} : vector<10x128xf32> to vector<8x128xf32>
    %259 = vector.broadcast %257 : vector<1x128xf32> to vector<8x128xf32>
    %260 = arith.mulf %258, %259 : vector<8x128xf32>
    %261 = arith.addf %253, %260 : vector<8x128xf32>
    %c1_158 = arith.constant 1 : index
    %c1_159 = arith.constant 1 : index
    %c0_160 = arith.constant 0 : index
    %262 = vector.load %arg3[%c1_158, %c1_159, %c0_160] : memref<6x32x256xf32, #tpu.memory_space<vmem>>, vector<1x1x128xf32>
    %263 = vector.shape_cast %262 : vector<1x1x128xf32> to vector<1x128xf32>
    %264 = vector.extract_strided_slice %255 {offsets = [1, 0], sizes = [8, 128], strides = [1, 1]} : vector<10x128xf32> to vector<8x128xf32>
    %265 = vector.broadcast %263 : vector<1x128xf32> to vector<8x128xf32>
    %266 = arith.mulf %264, %265 : vector<8x128xf32>
    %267 = arith.addf %261, %266 : vector<8x128xf32>
    %c1_161 = arith.constant 1 : index
    %c2_162 = arith.constant 2 : index
    %c0_163 = arith.constant 0 : index
    %268 = vector.load %arg3[%c1_161, %c2_162, %c0_163] : memref<6x32x256xf32, #tpu.memory_space<vmem>>, vector<1x1x128xf32>
    %269 = vector.shape_cast %268 : vector<1x1x128xf32> to vector<1x128xf32>
    %270 = vector.extract_strided_slice %255 {offsets = [2, 0], sizes = [8, 128], strides = [1, 1]} : vector<10x128xf32> to vector<8x128xf32>
    %271 = vector.broadcast %269 : vector<1x128xf32> to vector<8x128xf32>
    %272 = arith.mulf %270, %271 : vector<8x128xf32>
    %273 = arith.addf %267, %272 : vector<8x128xf32>
    %c3_164 = arith.constant 3 : index
    %c0_165 = arith.constant 0 : index
    %c0_166 = arith.constant 0 : index
    %274 = vector.load %arg6[%c3_164, %c0_165, %c0_166] : memref<10x10x256xf32, #tpu.memory_space<vmem>>, vector<1x10x128xf32>
    %275 = vector.shape_cast %274 : vector<1x10x128xf32> to vector<10x128xf32>
    %c1_167 = arith.constant 1 : index
    %c3_168 = arith.constant 3 : index
    %c0_169 = arith.constant 0 : index
    %276 = vector.load %arg3[%c1_167, %c3_168, %c0_169] : memref<6x32x256xf32, #tpu.memory_space<vmem>>, vector<1x1x128xf32>
    %277 = vector.shape_cast %276 : vector<1x1x128xf32> to vector<1x128xf32>
    %278 = vector.extract_strided_slice %275 {offsets = [0, 0], sizes = [8, 128], strides = [1, 1]} : vector<10x128xf32> to vector<8x128xf32>
    %279 = vector.broadcast %277 : vector<1x128xf32> to vector<8x128xf32>
    %280 = arith.mulf %278, %279 : vector<8x128xf32>
    %281 = arith.addf %273, %280 : vector<8x128xf32>
    %c1_170 = arith.constant 1 : index
    %c4_171 = arith.constant 4 : index
    %c0_172 = arith.constant 0 : index
    %282 = vector.load %arg3[%c1_170, %c4_171, %c0_172] : memref<6x32x256xf32, #tpu.memory_space<vmem>>, vector<1x1x128xf32>
    %283 = vector.shape_cast %282 : vector<1x1x128xf32> to vector<1x128xf32>
    %284 = vector.extract_strided_slice %275 {offsets = [1, 0], sizes = [8, 128], strides = [1, 1]} : vector<10x128xf32> to vector<8x128xf32>
    %285 = vector.broadcast %283 : vector<1x128xf32> to vector<8x128xf32>
    %286 = arith.mulf %284, %285 : vector<8x128xf32>
    %287 = arith.addf %281, %286 : vector<8x128xf32>
    %c1_173 = arith.constant 1 : index
    %c5_174 = arith.constant 5 : index
    %c0_175 = arith.constant 0 : index
    %288 = vector.load %arg3[%c1_173, %c5_174, %c0_175] : memref<6x32x256xf32, #tpu.memory_space<vmem>>, vector<1x1x128xf32>
    %289 = vector.shape_cast %288 : vector<1x1x128xf32> to vector<1x128xf32>
    %290 = vector.extract_strided_slice %275 {offsets = [2, 0], sizes = [8, 128], strides = [1, 1]} : vector<10x128xf32> to vector<8x128xf32>
    %291 = vector.broadcast %289 : vector<1x128xf32> to vector<8x128xf32>
    %292 = arith.mulf %290, %291 : vector<8x128xf32>
    %293 = arith.addf %287, %292 : vector<8x128xf32>
    %c4_176 = arith.constant 4 : index
    %c0_177 = arith.constant 0 : index
    %c0_178 = arith.constant 0 : index
    %294 = vector.load %arg6[%c4_176, %c0_177, %c0_178] : memref<10x10x256xf32, #tpu.memory_space<vmem>>, vector<1x10x128xf32>
    %295 = vector.shape_cast %294 : vector<1x10x128xf32> to vector<10x128xf32>
    %c1_179 = arith.constant 1 : index
    %c6_180 = arith.constant 6 : index
    %c0_181 = arith.constant 0 : index
    %296 = vector.load %arg3[%c1_179, %c6_180, %c0_181] : memref<6x32x256xf32, #tpu.memory_space<vmem>>, vector<1x1x128xf32>
    %297 = vector.shape_cast %296 : vector<1x1x128xf32> to vector<1x128xf32>
    %298 = vector.extract_strided_slice %295 {offsets = [0, 0], sizes = [8, 128], strides = [1, 1]} : vector<10x128xf32> to vector<8x128xf32>
    %299 = vector.broadcast %297 : vector<1x128xf32> to vector<8x128xf32>
    %300 = arith.mulf %298, %299 : vector<8x128xf32>
    %301 = arith.addf %293, %300 : vector<8x128xf32>
    %c1_182 = arith.constant 1 : index
    %c7_183 = arith.constant 7 : index
    %c0_184 = arith.constant 0 : index
    %302 = vector.load %arg3[%c1_182, %c7_183, %c0_184] : memref<6x32x256xf32, #tpu.memory_space<vmem>>, vector<1x1x128xf32>
    %303 = vector.shape_cast %302 : vector<1x1x128xf32> to vector<1x128xf32>
    %304 = vector.extract_strided_slice %295 {offsets = [1, 0], sizes = [8, 128], strides = [1, 1]} : vector<10x128xf32> to vector<8x128xf32>
    %305 = vector.broadcast %303 : vector<1x128xf32> to vector<8x128xf32>
    %306 = arith.mulf %304, %305 : vector<8x128xf32>
    %307 = arith.addf %301, %306 : vector<8x128xf32>
    %c1_185 = arith.constant 1 : index
    %c8_186 = arith.constant 8 : index
    %c0_187 = arith.constant 0 : index
    %308 = vector.load %arg3[%c1_185, %c8_186, %c0_187] : memref<6x32x256xf32, #tpu.memory_space<vmem>>, vector<1x1x128xf32>
    %309 = vector.shape_cast %308 : vector<1x1x128xf32> to vector<1x128xf32>
    %310 = vector.extract_strided_slice %295 {offsets = [2, 0], sizes = [8, 128], strides = [1, 1]} : vector<10x128xf32> to vector<8x128xf32>
    %311 = vector.broadcast %309 : vector<1x128xf32> to vector<8x128xf32>
    %312 = arith.mulf %310, %311 : vector<8x128xf32>
    %313 = arith.addf %307, %312 : vector<8x128xf32>
    %cst_188 = arith.constant dense<0.000000e+00> : vector<4x128xf32>
    %314 = tpu.matmul %180, %313, %cst_188 {dimension_numbers = #tpu.dot_dimension_numbers<[1], [0], [0], [1], [0, 0, 1, 1], [], []>} : vector<4x8xf32>, vector<8x128xf32>, vector<4x128xf32> -> vector<4x128xf32>
    %315 = vector.broadcast %172 : vector<1x128xf32> to vector<4x128xf32>
    %316 = arith.mulf %314, %315 : vector<4x128xf32>
    %317 = vector.broadcast %173 : vector<1x128xf32> to vector<4x128xf32>
    %318 = arith.addf %316, %317 : vector<4x128xf32>
    %319 = arith.negf %318 : vector<4x128xf32>
    %320 = math.exp %319 : vector<4x128xf32>
    %cst_189 = arith.constant 1.000000e+00 : f32
    %321 = vector.broadcast %cst_189 : f32 to vector<4x128xf32>
    %322 = arith.addf %321, %320 : vector<4x128xf32>
    %323 = arith.divf %321, %322 : vector<4x128xf32>
    %324 = arith.mulf %318, %323 : vector<4x128xf32>
    %cst_190 = arith.constant 0.000000e+00 : f32
    %325 = vector.broadcast %cst_190 : f32 to vector<8x128xf32>
    %c4_191 = arith.constant 4 : index
    %c0_192 = arith.constant 0 : index
    %c0_193 = arith.constant 0 : index
    %326 = vector.load %arg6[%c4_191, %c0_192, %c0_193] : memref<10x10x256xf32, #tpu.memory_space<vmem>>, vector<1x10x128xf32>
    %327 = vector.shape_cast %326 : vector<1x10x128xf32> to vector<10x128xf32>
    %c1_194 = arith.constant 1 : index
    %c0_195 = arith.constant 0 : index
    %c0_196 = arith.constant 0 : index
    %328 = vector.load %arg3[%c1_194, %c0_195, %c0_196] : memref<6x32x256xf32, #tpu.memory_space<vmem>>, vector<1x1x128xf32>
    %329 = vector.shape_cast %328 : vector<1x1x128xf32> to vector<1x128xf32>
    %330 = vector.extract_strided_slice %327 {offsets = [0, 0], sizes = [8, 128], strides = [1, 1]} : vector<10x128xf32> to vector<8x128xf32>
    %331 = vector.broadcast %329 : vector<1x128xf32> to vector<8x128xf32>
    %332 = arith.mulf %330, %331 : vector<8x128xf32>
    %333 = arith.addf %325, %332 : vector<8x128xf32>
    %c1_197 = arith.constant 1 : index
    %c1_198 = arith.constant 1 : index
    %c0_199 = arith.constant 0 : index
    %334 = vector.load %arg3[%c1_197, %c1_198, %c0_199] : memref<6x32x256xf32, #tpu.memory_space<vmem>>, vector<1x1x128xf32>
    %335 = vector.shape_cast %334 : vector<1x1x128xf32> to vector<1x128xf32>
    %336 = vector.extract_strided_slice %327 {offsets = [1, 0], sizes = [8, 128], strides = [1, 1]} : vector<10x128xf32> to vector<8x128xf32>
    %337 = vector.broadcast %335 : vector<1x128xf32> to vector<8x128xf32>
    %338 = arith.mulf %336, %337 : vector<8x128xf32>
    %339 = arith.addf %333, %338 : vector<8x128xf32>
    %c1_200 = arith.constant 1 : index
    %c2_201 = arith.constant 2 : index
    %c0_202 = arith.constant 0 : index
    %340 = vector.load %arg3[%c1_200, %c2_201, %c0_202] : memref<6x32x256xf32, #tpu.memory_space<vmem>>, vector<1x1x128xf32>
    %341 = vector.shape_cast %340 : vector<1x1x128xf32> to vector<1x128xf32>
    %342 = vector.extract_strided_slice %327 {offsets = [2, 0], sizes = [8, 128], strides = [1, 1]} : vector<10x128xf32> to vector<8x128xf32>
    %343 = vector.broadcast %341 : vector<1x128xf32> to vector<8x128xf32>
    %344 = arith.mulf %342, %343 : vector<8x128xf32>
    %345 = arith.addf %339, %344 : vector<8x128xf32>
    %c5_203 = arith.constant 5 : index
    %c0_204 = arith.constant 0 : index
    %c0_205 = arith.constant 0 : index
    %346 = vector.load %arg6[%c5_203, %c0_204, %c0_205] : memref<10x10x256xf32, #tpu.memory_space<vmem>>, vector<1x10x128xf32>
    %347 = vector.shape_cast %346 : vector<1x10x128xf32> to vector<10x128xf32>
    %c1_206 = arith.constant 1 : index
    %c3_207 = arith.constant 3 : index
    %c0_208 = arith.constant 0 : index
    %348 = vector.load %arg3[%c1_206, %c3_207, %c0_208] : memref<6x32x256xf32, #tpu.memory_space<vmem>>, vector<1x1x128xf32>
    %349 = vector.shape_cast %348 : vector<1x1x128xf32> to vector<1x128xf32>
    %350 = vector.extract_strided_slice %347 {offsets = [0, 0], sizes = [8, 128], strides = [1, 1]} : vector<10x128xf32> to vector<8x128xf32>
    %351 = vector.broadcast %349 : vector<1x128xf32> to vector<8x128xf32>
    %352 = arith.mulf %350, %351 : vector<8x128xf32>
    %353 = arith.addf %345, %352 : vector<8x128xf32>
    %c1_209 = arith.constant 1 : index
    %c4_210 = arith.constant 4 : index
    %c0_211 = arith.constant 0 : index
    %354 = vector.load %arg3[%c1_209, %c4_210, %c0_211] : memref<6x32x256xf32, #tpu.memory_space<vmem>>, vector<1x1x128xf32>
    %355 = vector.shape_cast %354 : vector<1x1x128xf32> to vector<1x128xf32>
    %356 = vector.extract_strided_slice %347 {offsets = [1, 0], sizes = [8, 128], strides = [1, 1]} : vector<10x128xf32> to vector<8x128xf32>
    %357 = vector.broadcast %355 : vector<1x128xf32> to vector<8x128xf32>
    %358 = arith.mulf %356, %357 : vector<8x128xf32>
    %359 = arith.addf %353, %358 : vector<8x128xf32>
    %c1_212 = arith.constant 1 : index
    %c5_213 = arith.constant 5 : index
    %c0_214 = arith.constant 0 : index
    %360 = vector.load %arg3[%c1_212, %c5_213, %c0_214] : memref<6x32x256xf32, #tpu.memory_space<vmem>>, vector<1x1x128xf32>
    %361 = vector.shape_cast %360 : vector<1x1x128xf32> to vector<1x128xf32>
    %362 = vector.extract_strided_slice %347 {offsets = [2, 0], sizes = [8, 128], strides = [1, 1]} : vector<10x128xf32> to vector<8x128xf32>
    %363 = vector.broadcast %361 : vector<1x128xf32> to vector<8x128xf32>
    %364 = arith.mulf %362, %363 : vector<8x128xf32>
    %365 = arith.addf %359, %364 : vector<8x128xf32>
    %c6_215 = arith.constant 6 : index
    %c0_216 = arith.constant 0 : index
    %c0_217 = arith.constant 0 : index
    %366 = vector.load %arg6[%c6_215, %c0_216, %c0_217] : memref<10x10x256xf32, #tpu.memory_space<vmem>>, vector<1x10x128xf32>
    %367 = vector.shape_cast %366 : vector<1x10x128xf32> to vector<10x128xf32>
    %c1_218 = arith.constant 1 : index
    %c6_219 = arith.constant 6 : index
    %c0_220 = arith.constant 0 : index
    %368 = vector.load %arg3[%c1_218, %c6_219, %c0_220] : memref<6x32x256xf32, #tpu.memory_space<vmem>>, vector<1x1x128xf32>
    %369 = vector.shape_cast %368 : vector<1x1x128xf32> to vector<1x128xf32>
    %370 = vector.extract_strided_slice %367 {offsets = [0, 0], sizes = [8, 128], strides = [1, 1]} : vector<10x128xf32> to vector<8x128xf32>
    %371 = vector.broadcast %369 : vector<1x128xf32> to vector<8x128xf32>
    %372 = arith.mulf %370, %371 : vector<8x128xf32>
    %373 = arith.addf %365, %372 : vector<8x128xf32>
    %c1_221 = arith.constant 1 : index
    %c7_222 = arith.constant 7 : index
    %c0_223 = arith.constant 0 : index
    %374 = vector.load %arg3[%c1_221, %c7_222, %c0_223] : memref<6x32x256xf32, #tpu.memory_space<vmem>>, vector<1x1x128xf32>
    %375 = vector.shape_cast %374 : vector<1x1x128xf32> to vector<1x128xf32>
    %376 = vector.extract_strided_slice %367 {offsets = [1, 0], sizes = [8, 128], strides = [1, 1]} : vector<10x128xf32> to vector<8x128xf32>
    %377 = vector.broadcast %375 : vector<1x128xf32> to vector<8x128xf32>
    %378 = arith.mulf %376, %377 : vector<8x128xf32>
    %379 = arith.addf %373, %378 : vector<8x128xf32>
    %c1_224 = arith.constant 1 : index
    %c8_225 = arith.constant 8 : index
    %c0_226 = arith.constant 0 : index
    %380 = vector.load %arg3[%c1_224, %c8_225, %c0_226] : memref<6x32x256xf32, #tpu.memory_space<vmem>>, vector<1x1x128xf32>
    %381 = vector.shape_cast %380 : vector<1x1x128xf32> to vector<1x128xf32>
    %382 = vector.extract_strided_slice %367 {offsets = [2, 0], sizes = [8, 128], strides = [1, 1]} : vector<10x128xf32> to vector<8x128xf32>
    %383 = vector.broadcast %381 : vector<1x128xf32> to vector<8x128xf32>
    %384 = arith.mulf %382, %383 : vector<8x128xf32>
    %385 = arith.addf %379, %384 : vector<8x128xf32>
    %cst_227 = arith.constant dense<0.000000e+00> : vector<4x128xf32>
    %386 = tpu.matmul %180, %385, %cst_227 {dimension_numbers = #tpu.dot_dimension_numbers<[1], [0], [0], [1], [0, 0, 1, 1], [], []>} : vector<4x8xf32>, vector<8x128xf32>, vector<4x128xf32> -> vector<4x128xf32>
    %387 = vector.broadcast %172 : vector<1x128xf32> to vector<4x128xf32>
    %388 = arith.mulf %386, %387 : vector<4x128xf32>
    %389 = vector.broadcast %173 : vector<1x128xf32> to vector<4x128xf32>
    %390 = arith.addf %388, %389 : vector<4x128xf32>
    %391 = arith.negf %390 : vector<4x128xf32>
    %392 = math.exp %391 : vector<4x128xf32>
    %cst_228 = arith.constant 1.000000e+00 : f32
    %393 = vector.broadcast %cst_228 : f32 to vector<4x128xf32>
    %394 = arith.addf %393, %392 : vector<4x128xf32>
    %395 = arith.divf %393, %394 : vector<4x128xf32>
    %396 = arith.mulf %390, %395 : vector<4x128xf32>
    %cst_229 = arith.constant 0.000000e+00 : f32
    %397 = vector.broadcast %cst_229 : f32 to vector<8x128xf32>
    %c6_230 = arith.constant 6 : index
    %c0_231 = arith.constant 0 : index
    %c0_232 = arith.constant 0 : index
    %398 = vector.load %arg6[%c6_230, %c0_231, %c0_232] : memref<10x10x256xf32, #tpu.memory_space<vmem>>, vector<1x10x128xf32>
    %399 = vector.shape_cast %398 : vector<1x10x128xf32> to vector<10x128xf32>
    %c1_233 = arith.constant 1 : index
    %c0_234 = arith.constant 0 : index
    %c0_235 = arith.constant 0 : index
    %400 = vector.load %arg3[%c1_233, %c0_234, %c0_235] : memref<6x32x256xf32, #tpu.memory_space<vmem>>, vector<1x1x128xf32>
    %401 = vector.shape_cast %400 : vector<1x1x128xf32> to vector<1x128xf32>
    %402 = vector.extract_strided_slice %399 {offsets = [0, 0], sizes = [8, 128], strides = [1, 1]} : vector<10x128xf32> to vector<8x128xf32>
    %403 = vector.broadcast %401 : vector<1x128xf32> to vector<8x128xf32>
    %404 = arith.mulf %402, %403 : vector<8x128xf32>
    %405 = arith.addf %397, %404 : vector<8x128xf32>
    %c1_236 = arith.constant 1 : index
    %c1_237 = arith.constant 1 : index
    %c0_238 = arith.constant 0 : index
    %406 = vector.load %arg3[%c1_236, %c1_237, %c0_238] : memref<6x32x256xf32, #tpu.memory_space<vmem>>, vector<1x1x128xf32>
    %407 = vector.shape_cast %406 : vector<1x1x128xf32> to vector<1x128xf32>
    %408 = vector.extract_strided_slice %399 {offsets = [1, 0], sizes = [8, 128], strides = [1, 1]} : vector<10x128xf32> to vector<8x128xf32>
    %409 = vector.broadcast %407 : vector<1x128xf32> to vector<8x128xf32>
    %410 = arith.mulf %408, %409 : vector<8x128xf32>
    %411 = arith.addf %405, %410 : vector<8x128xf32>
    %c1_239 = arith.constant 1 : index
    %c2_240 = arith.constant 2 : index
    %c0_241 = arith.constant 0 : index
    %412 = vector.load %arg3[%c1_239, %c2_240, %c0_241] : memref<6x32x256xf32, #tpu.memory_space<vmem>>, vector<1x1x128xf32>
    %413 = vector.shape_cast %412 : vector<1x1x128xf32> to vector<1x128xf32>
    %414 = vector.extract_strided_slice %399 {offsets = [2, 0], sizes = [8, 128], strides = [1, 1]} : vector<10x128xf32> to vector<8x128xf32>
    %415 = vector.broadcast %413 : vector<1x128xf32> to vector<8x128xf32>
    %416 = arith.mulf %414, %415 : vector<8x128xf32>
    %417 = arith.addf %411, %416 : vector<8x128xf32>
    %c7_242 = arith.constant 7 : index
    %c0_243 = arith.constant 0 : index
    %c0_244 = arith.constant 0 : index
    %418 = vector.load %arg6[%c7_242, %c0_243, %c0_244] : memref<10x10x256xf32, #tpu.memory_space<vmem>>, vector<1x10x128xf32>
    %419 = vector.shape_cast %418 : vector<1x10x128xf32> to vector<10x128xf32>
    %c1_245 = arith.constant 1 : index
    %c3_246 = arith.constant 3 : index
    %c0_247 = arith.constant 0 : index
    %420 = vector.load %arg3[%c1_245, %c3_246, %c0_247] : memref<6x32x256xf32, #tpu.memory_space<vmem>>, vector<1x1x128xf32>
    %421 = vector.shape_cast %420 : vector<1x1x128xf32> to vector<1x128xf32>
    %422 = vector.extract_strided_slice %419 {offsets = [0, 0], sizes = [8, 128], strides = [1, 1]} : vector<10x128xf32> to vector<8x128xf32>
    %423 = vector.broadcast %421 : vector<1x128xf32> to vector<8x128xf32>
    %424 = arith.mulf %422, %423 : vector<8x128xf32>
    %425 = arith.addf %417, %424 : vector<8x128xf32>
    %c1_248 = arith.constant 1 : index
    %c4_249 = arith.constant 4 : index
    %c0_250 = arith.constant 0 : index
    %426 = vector.load %arg3[%c1_248, %c4_249, %c0_250] : memref<6x32x256xf32, #tpu.memory_space<vmem>>, vector<1x1x128xf32>
    %427 = vector.shape_cast %426 : vector<1x1x128xf32> to vector<1x128xf32>
    %428 = vector.extract_strided_slice %419 {offsets = [1, 0], sizes = [8, 128], strides = [1, 1]} : vector<10x128xf32> to vector<8x128xf32>
    %429 = vector.broadcast %427 : vector<1x128xf32> to vector<8x128xf32>
    %430 = arith.mulf %428, %429 : vector<8x128xf32>
    %431 = arith.addf %425, %430 : vector<8x128xf32>
    %c1_251 = arith.constant 1 : index
    %c5_252 = arith.constant 5 : index
    %c0_253 = arith.constant 0 : index
    %432 = vector.load %arg3[%c1_251, %c5_252, %c0_253] : memref<6x32x256xf32, #tpu.memory_space<vmem>>, vector<1x1x128xf32>
    %433 = vector.shape_cast %432 : vector<1x1x128xf32> to vector<1x128xf32>
    %434 = vector.extract_strided_slice %419 {offsets = [2, 0], sizes = [8, 128], strides = [1, 1]} : vector<10x128xf32> to vector<8x128xf32>
    %435 = vector.broadcast %433 : vector<1x128xf32> to vector<8x128xf32>
    %436 = arith.mulf %434, %435 : vector<8x128xf32>
    %437 = arith.addf %431, %436 : vector<8x128xf32>
    %c8_254 = arith.constant 8 : index
    %c0_255 = arith.constant 0 : index
    %c0_256 = arith.constant 0 : index
    %438 = vector.load %arg6[%c8_254, %c0_255, %c0_256] : memref<10x10x256xf32, #tpu.memory_space<vmem>>, vector<1x10x128xf32>
    %439 = vector.shape_cast %438 : vector<1x10x128xf32> to vector<10x128xf32>
    %c1_257 = arith.constant 1 : index
    %c6_258 = arith.constant 6 : index
    %c0_259 = arith.constant 0 : index
    %440 = vector.load %arg3[%c1_257, %c6_258, %c0_259] : memref<6x32x256xf32, #tpu.memory_space<vmem>>, vector<1x1x128xf32>
    %441 = vector.shape_cast %440 : vector<1x1x128xf32> to vector<1x128xf32>
    %442 = vector.extract_strided_slice %439 {offsets = [0, 0], sizes = [8, 128], strides = [1, 1]} : vector<10x128xf32> to vector<8x128xf32>
    %443 = vector.broadcast %441 : vector<1x128xf32> to vector<8x128xf32>
    %444 = arith.mulf %442, %443 : vector<8x128xf32>
    %445 = arith.addf %437, %444 : vector<8x128xf32>
    %c1_260 = arith.constant 1 : index
    %c7_261 = arith.constant 7 : index
    %c0_262 = arith.constant 0 : index
    %446 = vector.load %arg3[%c1_260, %c7_261, %c0_262] : memref<6x32x256xf32, #tpu.memory_space<vmem>>, vector<1x1x128xf32>
    %447 = vector.shape_cast %446 : vector<1x1x128xf32> to vector<1x128xf32>
    %448 = vector.extract_strided_slice %439 {offsets = [1, 0], sizes = [8, 128], strides = [1, 1]} : vector<10x128xf32> to vector<8x128xf32>
    %449 = vector.broadcast %447 : vector<1x128xf32> to vector<8x128xf32>
    %450 = arith.mulf %448, %449 : vector<8x128xf32>
    %451 = arith.addf %445, %450 : vector<8x128xf32>
    %c1_263 = arith.constant 1 : index
    %c8_264 = arith.constant 8 : index
    %c0_265 = arith.constant 0 : index
    %452 = vector.load %arg3[%c1_263, %c8_264, %c0_265] : memref<6x32x256xf32, #tpu.memory_space<vmem>>, vector<1x1x128xf32>
    %453 = vector.shape_cast %452 : vector<1x1x128xf32> to vector<1x128xf32>
    %454 = vector.extract_strided_slice %439 {offsets = [2, 0], sizes = [8, 128], strides = [1, 1]} : vector<10x128xf32> to vector<8x128xf32>
    %455 = vector.broadcast %453 : vector<1x128xf32> to vector<8x128xf32>
    %456 = arith.mulf %454, %455 : vector<8x128xf32>
    %457 = arith.addf %451, %456 : vector<8x128xf32>
    %cst_266 = arith.constant dense<0.000000e+00> : vector<4x128xf32>
    %458 = tpu.matmul %180, %457, %cst_266 {dimension_numbers = #tpu.dot_dimension_numbers<[1], [0], [0], [1], [0, 0, 1, 1], [], []>} : vector<4x8xf32>, vector<8x128xf32>, vector<4x128xf32> -> vector<4x128xf32>
    %459 = vector.broadcast %172 : vector<1x128xf32> to vector<4x128xf32>
    %460 = arith.mulf %458, %459 : vector<4x128xf32>
    %461 = vector.broadcast %173 : vector<1x128xf32> to vector<4x128xf32>
    %462 = arith.addf %460, %461 : vector<4x128xf32>
    %463 = arith.negf %462 : vector<4x128xf32>
    %464 = math.exp %463 : vector<4x128xf32>
    %cst_267 = arith.constant 1.000000e+00 : f32
    %465 = vector.broadcast %cst_267 : f32 to vector<4x128xf32>
    %466 = arith.addf %465, %464 : vector<4x128xf32>
    %467 = arith.divf %465, %466 : vector<4x128xf32>
    %468 = arith.mulf %462, %467 : vector<4x128xf32>
    %469 = tpu.concatenate %252, %324, %396, %468 in 0 : vector<4x128xf32>, vector<4x128xf32>, vector<4x128xf32>, vector<4x128xf32> -> vector<16x128xf32>
    %cst_268 = arith.constant dense<0.000000e+00> : vector<128xf32>
    %470 = vector.multi_reduction <add>, %469, %cst_268 [0] : vector<16x128xf32> to vector<128xf32>
    %471 = vector.shape_cast %470 : vector<128xf32> to vector<1x128xf32>
    %cst_269 = arith.constant 1.600000e+01 : f32
    %472 = vector.broadcast %cst_269 : f32 to vector<1x128xf32>
    %473 = arith.divf %471, %472 : vector<1x128xf32>
    %474 = arith.truncf %473 : vector<1x128xf32> to vector<1x128xbf16>
    %c5_270 = arith.constant 5 : index
    %c0_271 = arith.constant 0 : index
    %c0_272 = arith.constant 0 : index
    %475 = vector.load %arg2[%c5_270, %c0_271, %c0_272] : memref<26x256x256xbf16, #tpu.memory_space<vmem>>, vector<1x128x128xbf16>
    %476 = vector.shape_cast %475 : vector<1x128x128xbf16> to vector<128x128xbf16>
    %cst_273 = arith.constant dense<0.000000e+00> : vector<1x128xf32>
    %477 = tpu.matmul %474, %476, %cst_273 {dimension_numbers = #tpu.dot_dimension_numbers<[1], [0], [0], [1], [0, 0, 1, 1], [], []>} : vector<1x128xbf16>, vector<128x128xbf16>, vector<1x128xf32> -> vector<1x128xf32>
    %c12 = arith.constant 12 : index
    %c0_274 = arith.constant 0 : index
    %478 = vector.load %arg4[%c12, %c0_274] : memref<51x256xf32, #tpu.memory_space<vmem>>, vector<1x128xf32>
    %479 = arith.addf %477, %478 : vector<1x128xf32>
    %480 = arith.negf %479 : vector<1x128xf32>
    %481 = math.exp %480 : vector<1x128xf32>
    %cst_275 = arith.constant 1.000000e+00 : f32
    %482 = vector.broadcast %cst_275 : f32 to vector<1x128xf32>
    %483 = arith.addf %482, %481 : vector<1x128xf32>
    %484 = arith.divf %482, %483 : vector<1x128xf32>
    %485 = arith.mulf %479, %484 : vector<1x128xf32>
    %486 = arith.truncf %485 : vector<1x128xf32> to vector<1x128xbf16>
    %c6_276 = arith.constant 6 : index
    %c0_277 = arith.constant 0 : index
    %c0_278 = arith.constant 0 : index
    %487 = vector.load %arg2[%c6_276, %c0_277, %c0_278] : memref<26x256x256xbf16, #tpu.memory_space<vmem>>, vector<1x128x128xbf16>
    %488 = vector.shape_cast %487 : vector<1x128x128xbf16> to vector<128x128xbf16>
    %cst_279 = arith.constant dense<0.000000e+00> : vector<1x128xf32>
    %489 = tpu.matmul %486, %488, %cst_279 {dimension_numbers = #tpu.dot_dimension_numbers<[1], [0], [0], [1], [0, 0, 1, 1], [], []>} : vector<1x128xbf16>, vector<128x128xbf16>, vector<1x128xf32> -> vector<1x128xf32>
    %c13 = arith.constant 13 : index
    %c0_280 = arith.constant 0 : index
    %490 = vector.load %arg4[%c13, %c0_280] : memref<51x256xf32, #tpu.memory_space<vmem>>, vector<1x128xf32>
    %491 = arith.addf %489, %490 : vector<1x128xf32>
    %492 = arith.negf %491 : vector<1x128xf32>
    %493 = math.exp %492 : vector<1x128xf32>
    %cst_281 = arith.constant 1.000000e+00 : f32
    %494 = vector.broadcast %cst_281 : f32 to vector<1x128xf32>
    %495 = arith.addf %494, %493 : vector<1x128xf32>
    %496 = arith.divf %494, %495 : vector<1x128xf32>
    %497 = vector.broadcast %496 : vector<1x128xf32> to vector<16x128xf32>
    %498 = arith.mulf %469, %497 : vector<16x128xf32>
    %499 = arith.truncf %498 : vector<16x128xf32> to vector<16x128xbf16>
    %c7_282 = arith.constant 7 : index
    %c0_283 = arith.constant 0 : index
    %c0_284 = arith.constant 0 : index
    %500 = vector.load %arg2[%c7_282, %c0_283, %c0_284] : memref<26x256x256xbf16, #tpu.memory_space<vmem>>, vector<1x128x128xbf16>
    %501 = vector.shape_cast %500 : vector<1x128x128xbf16> to vector<128x128xbf16>
    %cst_285 = arith.constant dense<0.000000e+00> : vector<16x128xf32>
    %502 = tpu.matmul %499, %501, %cst_285 {dimension_numbers = #tpu.dot_dimension_numbers<[1], [0], [0], [1], [0, 0, 1, 1], [], []>} : vector<16x128xbf16>, vector<128x128xbf16>, vector<16x128xf32> -> vector<16x128xf32>
    %c14 = arith.constant 14 : index
    %c0_286 = arith.constant 0 : index
    %503 = vector.load %arg4[%c14, %c0_286] : memref<51x256xf32, #tpu.memory_space<vmem>>, vector<1x128xf32>
    %504 = vector.broadcast %503 : vector<1x128xf32> to vector<16x128xf32>
    %505 = arith.mulf %502, %504 : vector<16x128xf32>
    %c15 = arith.constant 15 : index
    %c0_287 = arith.constant 0 : index
    %506 = vector.load %arg4[%c15, %c0_287] : memref<51x256xf32, #tpu.memory_space<vmem>>, vector<1x128xf32>
    %507 = vector.broadcast %506 : vector<1x128xf32> to vector<16x128xf32>
    %508 = arith.addf %505, %507 : vector<16x128xf32>
    %509 = arith.truncf %508 : vector<16x128xf32> to vector<16x128xbf16>
    %c8_288 = arith.constant 8 : index
    %c0_289 = arith.constant 0 : index
    %c0_290 = arith.constant 0 : index
    %510 = vector.load %arg2[%c8_288, %c0_289, %c0_290] : memref<26x256x256xbf16, #tpu.memory_space<vmem>>, vector<1x128x128xbf16>
    %511 = vector.shape_cast %510 : vector<1x128x128xbf16> to vector<128x128xbf16>
    %cst_291 = arith.constant dense<0.000000e+00> : vector<16x128xf32>
    %512 = tpu.matmul %509, %511, %cst_291 {dimension_numbers = #tpu.dot_dimension_numbers<[1], [0], [0], [1], [0, 0, 1, 1], [], []>} : vector<16x128xbf16>, vector<128x128xbf16>, vector<16x128xf32> -> vector<16x128xf32>
    %c16 = arith.constant 16 : index
    %c0_292 = arith.constant 0 : index
    %513 = vector.load %arg4[%c16, %c0_292] : memref<51x256xf32, #tpu.memory_space<vmem>>, vector<1x128xf32>
    %514 = vector.broadcast %513 : vector<1x128xf32> to vector<16x128xf32>
    %515 = arith.mulf %512, %514 : vector<16x128xf32>
    %c17 = arith.constant 17 : index
    %c0_293 = arith.constant 0 : index
    %516 = vector.load %arg4[%c17, %c0_293] : memref<51x256xf32, #tpu.memory_space<vmem>>, vector<1x128xf32>
    %517 = vector.broadcast %516 : vector<1x128xf32> to vector<16x128xf32>
    %518 = arith.addf %515, %517 : vector<16x128xf32>
    %519 = arith.negf %518 : vector<16x128xf32>
    %520 = math.exp %519 : vector<16x128xf32>
    %cst_294 = arith.constant 1.000000e+00 : f32
    %521 = vector.broadcast %cst_294 : f32 to vector<16x128xf32>
    %522 = arith.addf %521, %520 : vector<16x128xf32>
    %523 = arith.divf %521, %522 : vector<16x128xf32>
    %524 = arith.mulf %518, %523 : vector<16x128xf32>
    %cst_295 = arith.constant 0.000000e+00 : f32
    %525 = vector.broadcast %cst_295 : f32 to vector<2x8x128xf32>
    %cst_296 = arith.constant 0.000000e+00 : f32
    %526 = vector.broadcast %cst_296 : f32 to vector<4x2x128xf32>
    %c0_297 = arith.constant 0 : index
    %c0_298 = arith.constant 0 : index
    %c0_299 = arith.constant 0 : index
    %527 = vector.load %arg6[%c0_297, %c0_298, %c0_299] : memref<10x10x256xf32, #tpu.memory_space<vmem>>, vector<2x8x128xf32>
    tpu.vector_store %arg6[%c0_297, %c0_298, %c0_299], %525 {strides = array<i32>} : memref<10x10x256xf32, #tpu.memory_space<vmem>>, vector<2x8x128xf32>,
    %c6_300 = arith.constant 6 : index
    %c0_301 = arith.constant 0 : index
    %c0_302 = arith.constant 0 : index
    %528 = vector.load %arg6[%c6_300, %c0_301, %c0_302] : memref<10x10x256xf32, #tpu.memory_space<vmem>>, vector<2x8x128xf32>
    tpu.vector_store %arg6[%c6_300, %c0_301, %c0_302], %525 {strides = array<i32>} : memref<10x10x256xf32, #tpu.memory_space<vmem>>, vector<2x8x128xf32>,
    %c2_303 = arith.constant 2 : index
    %c0_304 = arith.constant 0 : index
    %c0_305 = arith.constant 0 : index
    %529 = vector.load %arg6[%c2_303, %c0_304, %c0_305] : memref<10x10x256xf32, #tpu.memory_space<vmem>>, vector<4x2x128xf32>
    tpu.vector_store %arg6[%c2_303, %c0_304, %c0_305], %526 {strides = array<i32>} : memref<10x10x256xf32, #tpu.memory_space<vmem>>, vector<4x2x128xf32>,
    %c2_306 = arith.constant 2 : index
    %c6_307 = arith.constant 6 : index
    %c0_308 = arith.constant 0 : index
    %530 = vector.load %arg6[%c2_306, %c6_307, %c0_308] : memref<10x10x256xf32, #tpu.memory_space<vmem>>, vector<4x2x128xf32>
    tpu.vector_store %arg6[%c2_306, %c6_307, %c0_308], %526 {strides = array<i32>} : memref<10x10x256xf32, #tpu.memory_space<vmem>>, vector<4x2x128xf32>,
    %531 = vector.extract_strided_slice %524 {offsets = [0, 0], sizes = [4, 128], strides = [1, 1]} : vector<16x128xf32> to vector<4x128xf32>
    %c2_309 = arith.constant 2 : index
    %c2_310 = arith.constant 2 : index
    %c0_311 = arith.constant 0 : index
    %532 = vector.load %arg6[%c2_309, %c2_310, %c0_311] : memref<10x10x256xf32, #tpu.memory_space<vmem>>, vector<1x4x128xf32>
    %533 = vector.shape_cast %532 : vector<1x4x128xf32> to vector<4x128xf32>
    %534 = vector.shape_cast %531 : vector<4x128xf32> to vector<1x4x128xf32>
    tpu.vector_store %arg6[%c2_309, %c2_310, %c0_311], %534 {strides = array<i32>} : memref<10x10x256xf32, #tpu.memory_space<vmem>>, vector<1x4x128xf32>,
    %535 = vector.extract_strided_slice %524 {offsets = [4, 0], sizes = [4, 128], strides = [1, 1]} : vector<16x128xf32> to vector<4x128xf32>
    %c3_312 = arith.constant 3 : index
    %c2_313 = arith.constant 2 : index
    %c0_314 = arith.constant 0 : index
    %536 = vector.load %arg6[%c3_312, %c2_313, %c0_314] : memref<10x10x256xf32, #tpu.memory_space<vmem>>, vector<1x4x128xf32>
    %537 = vector.shape_cast %536 : vector<1x4x128xf32> to vector<4x128xf32>
    %538 = vector.shape_cast %535 : vector<4x128xf32> to vector<1x4x128xf32>
    tpu.vector_store %arg6[%c3_312, %c2_313, %c0_314], %538 {strides = array<i32>} : memref<10x10x256xf32, #tpu.memory_space<vmem>>, vector<1x4x128xf32>,
    %539 = vector.extract_strided_slice %524 {offsets = [8, 0], sizes = [4, 128], strides = [1, 1]} : vector<16x128xf32> to vector<4x128xf32>
    %c4_315 = arith.constant 4 : index
    %c2_316 = arith.constant 2 : index
    %c0_317 = arith.constant 0 : index
    %540 = vector.load %arg6[%c4_315, %c2_316, %c0_317] : memref<10x10x256xf32, #tpu.memory_space<vmem>>, vector<1x4x128xf32>
    %541 = vector.shape_cast %540 : vector<1x4x128xf32> to vector<4x128xf32>
    %542 = vector.shape_cast %539 : vector<4x128xf32> to vector<1x4x128xf32>
    tpu.vector_store %arg6[%c4_315, %c2_316, %c0_317], %542 {strides = array<i32>} : memref<10x10x256xf32, #tpu.memory_space<vmem>>, vector<1x4x128xf32>,
    %543 = vector.extract_strided_slice %524 {offsets = [12, 0], sizes = [4, 128], strides = [1, 1]} : vector<16x128xf32> to vector<4x128xf32>
    %c5_318 = arith.constant 5 : index
    %c2_319 = arith.constant 2 : index
    %c0_320 = arith.constant 0 : index
    %544 = vector.load %arg6[%c5_318, %c2_319, %c0_320] : memref<10x10x256xf32, #tpu.memory_space<vmem>>, vector<1x4x128xf32>
    %545 = vector.shape_cast %544 : vector<1x4x128xf32> to vector<4x128xf32>
    %546 = vector.shape_cast %543 : vector<4x128xf32> to vector<1x4x128xf32>
    tpu.vector_store %arg6[%c5_318, %c2_319, %c0_320], %546 {strides = array<i32>} : memref<10x10x256xf32, #tpu.memory_space<vmem>>, vector<1x4x128xf32>,
    %c18 = arith.constant 18 : index
    %c0_321 = arith.constant 0 : index
    %547 = vector.load %arg4[%c18, %c0_321] : memref<51x256xf32, #tpu.memory_space<vmem>>, vector<1x128xf32>
    %c19 = arith.constant 19 : index
    %c0_322 = arith.constant 0 : index
    %548 = vector.load %arg4[%c19, %c0_322] : memref<51x256xf32, #tpu.memory_space<vmem>>, vector<1x128xf32>
    %cst_323 = arith.constant 0.000000e+00 : f32
    %549 = vector.broadcast %cst_323 : f32 to vector<4x4x128xf32>
    %c0_324 = arith.constant 0 : index
    %c0_325 = arith.constant 0 : index
    %c0_326 = arith.constant 0 : index
    %550 = vector.load %arg6[%c0_324, %c0_325, %c0_326] : memref<10x10x256xf32, #tpu.memory_space<vmem>>, vector<4x8x128xf32>
    %c2_327 = arith.constant 2 : index
    %c0_328 = arith.constant 0 : index
    %c0_329 = arith.constant 0 : index
    %551 = vector.load %arg3[%c2_327, %c0_328, %c0_329] : memref<6x32x256xf32, #tpu.memory_space<vmem>>, vector<1x1x128xf32>
    %552 = vector.shape_cast %551 : vector<1x1x128xf32> to vector<1x128xf32>
    %553 = vector.shape_cast %552 : vector<1x128xf32> to vector<1x1x128xf32>
    %554 = vector.extract_strided_slice %550 {offsets = [0, 0, 0], sizes = [4, 4, 128], strides = [1, 1, 1]} : vector<4x8x128xf32> to vector<4x4x128xf32>
    %555 = vector.broadcast %553 : vector<1x1x128xf32> to vector<4x4x128xf32>
    %556 = arith.mulf %554, %555 : vector<4x4x128xf32>
    %557 = arith.addf %549, %556 : vector<4x4x128xf32>
    %c2_330 = arith.constant 2 : index
    %c1_331 = arith.constant 1 : index
    %c0_332 = arith.constant 0 : index
    %558 = vector.load %arg3[%c2_330, %c1_331, %c0_332] : memref<6x32x256xf32, #tpu.memory_space<vmem>>, vector<1x1x128xf32>
    %559 = vector.shape_cast %558 : vector<1x1x128xf32> to vector<1x128xf32>
    %560 = vector.shape_cast %559 : vector<1x128xf32> to vector<1x1x128xf32>
    %561 = vector.extract_strided_slice %550 {offsets = [0, 1, 0], sizes = [4, 4, 128], strides = [1, 1, 1]} : vector<4x8x128xf32> to vector<4x4x128xf32>
    %562 = vector.broadcast %560 : vector<1x1x128xf32> to vector<4x4x128xf32>
    %563 = arith.mulf %561, %562 : vector<4x4x128xf32>
    %564 = arith.addf %557, %563 : vector<4x4x128xf32>
    %c2_333 = arith.constant 2 : index
    %c2_334 = arith.constant 2 : index
    %c0_335 = arith.constant 0 : index
    %565 = vector.load %arg3[%c2_333, %c2_334, %c0_335] : memref<6x32x256xf32, #tpu.memory_space<vmem>>, vector<1x1x128xf32>
    %566 = vector.shape_cast %565 : vector<1x1x128xf32> to vector<1x128xf32>
    %567 = vector.shape_cast %566 : vector<1x128xf32> to vector<1x1x128xf32>
    %568 = vector.extract_strided_slice %550 {offsets = [0, 2, 0], sizes = [4, 4, 128], strides = [1, 1, 1]} : vector<4x8x128xf32> to vector<4x4x128xf32>
    %569 = vector.broadcast %567 : vector<1x1x128xf32> to vector<4x4x128xf32>
    %570 = arith.mulf %568, %569 : vector<4x4x128xf32>
    %571 = arith.addf %564, %570 : vector<4x4x128xf32>
    %c2_336 = arith.constant 2 : index
    %c3_337 = arith.constant 3 : index
    %c0_338 = arith.constant 0 : index
    %572 = vector.load %arg3[%c2_336, %c3_337, %c0_338] : memref<6x32x256xf32, #tpu.memory_space<vmem>>, vector<1x1x128xf32>
    %573 = vector.shape_cast %572 : vector<1x1x128xf32> to vector<1x128xf32>
    %574 = vector.shape_cast %573 : vector<1x128xf32> to vector<1x1x128xf32>
    %575 = vector.extract_strided_slice %550 {offsets = [0, 3, 0], sizes = [4, 4, 128], strides = [1, 1, 1]} : vector<4x8x128xf32> to vector<4x4x128xf32>
    %576 = vector.broadcast %574 : vector<1x1x128xf32> to vector<4x4x128xf32>
    %577 = arith.mulf %575, %576 : vector<4x4x128xf32>
    %578 = arith.addf %571, %577 : vector<4x4x128xf32>
    %c2_339 = arith.constant 2 : index
    %c4_340 = arith.constant 4 : index
    %c0_341 = arith.constant 0 : index
    %579 = vector.load %arg3[%c2_339, %c4_340, %c0_341] : memref<6x32x256xf32, #tpu.memory_space<vmem>>, vector<1x1x128xf32>
    %580 = vector.shape_cast %579 : vector<1x1x128xf32> to vector<1x128xf32>
    %581 = vector.shape_cast %580 : vector<1x128xf32> to vector<1x1x128xf32>
    %582 = vector.extract_strided_slice %550 {offsets = [0, 4, 0], sizes = [4, 4, 128], strides = [1, 1, 1]} : vector<4x8x128xf32> to vector<4x4x128xf32>
    %583 = vector.broadcast %581 : vector<1x1x128xf32> to vector<4x4x128xf32>
    %584 = arith.mulf %582, %583 : vector<4x4x128xf32>
    %585 = arith.addf %578, %584 : vector<4x4x128xf32>
    %c1_342 = arith.constant 1 : index
    %c0_343 = arith.constant 0 : index
    %c0_344 = arith.constant 0 : index
    %586 = vector.load %arg6[%c1_342, %c0_343, %c0_344] : memref<10x10x256xf32, #tpu.memory_space<vmem>>, vector<4x8x128xf32>
    %c2_345 = arith.constant 2 : index
    %c5_346 = arith.constant 5 : index
    %c0_347 = arith.constant 0 : index
    %587 = vector.load %arg3[%c2_345, %c5_346, %c0_347] : memref<6x32x256xf32, #tpu.memory_space<vmem>>, vector<1x1x128xf32>
    %588 = vector.shape_cast %587 : vector<1x1x128xf32> to vector<1x128xf32>
    %589 = vector.shape_cast %588 : vector<1x128xf32> to vector<1x1x128xf32>
    %590 = vector.extract_strided_slice %586 {offsets = [0, 0, 0], sizes = [4, 4, 128], strides = [1, 1, 1]} : vector<4x8x128xf32> to vector<4x4x128xf32>
    %591 = vector.broadcast %589 : vector<1x1x128xf32> to vector<4x4x128xf32>
    %592 = arith.mulf %590, %591 : vector<4x4x128xf32>
    %593 = arith.addf %585, %592 : vector<4x4x128xf32>
    %c2_348 = arith.constant 2 : index
    %c6_349 = arith.constant 6 : index
    %c0_350 = arith.constant 0 : index
    %594 = vector.load %arg3[%c2_348, %c6_349, %c0_350] : memref<6x32x256xf32, #tpu.memory_space<vmem>>, vector<1x1x128xf32>
    %595 = vector.shape_cast %594 : vector<1x1x128xf32> to vector<1x128xf32>
    %596 = vector.shape_cast %595 : vector<1x128xf32> to vector<1x1x128xf32>
    %597 = vector.extract_strided_slice %586 {offsets = [0, 1, 0], sizes = [4, 4, 128], strides = [1, 1, 1]} : vector<4x8x128xf32> to vector<4x4x128xf32>
    %598 = vector.broadcast %596 : vector<1x1x128xf32> to vector<4x4x128xf32>
    %599 = arith.mulf %597, %598 : vector<4x4x128xf32>
    %600 = arith.addf %593, %599 : vector<4x4x128xf32>
    %c2_351 = arith.constant 2 : index
    %c7_352 = arith.constant 7 : index
    %c0_353 = arith.constant 0 : index
    %601 = vector.load %arg3[%c2_351, %c7_352, %c0_353] : memref<6x32x256xf32, #tpu.memory_space<vmem>>, vector<1x1x128xf32>
    %602 = vector.shape_cast %601 : vector<1x1x128xf32> to vector<1x128xf32>
    %603 = vector.shape_cast %602 : vector<1x128xf32> to vector<1x1x128xf32>
    %604 = vector.extract_strided_slice %586 {offsets = [0, 2, 0], sizes = [4, 4, 128], strides = [1, 1, 1]} : vector<4x8x128xf32> to vector<4x4x128xf32>
    %605 = vector.broadcast %603 : vector<1x1x128xf32> to vector<4x4x128xf32>
    %606 = arith.mulf %604, %605 : vector<4x4x128xf32>
    %607 = arith.addf %600, %606 : vector<4x4x128xf32>
    %c2_354 = arith.constant 2 : index
    %c8_355 = arith.constant 8 : index
    %c0_356 = arith.constant 0 : index
    %608 = vector.load %arg3[%c2_354, %c8_355, %c0_356] : memref<6x32x256xf32, #tpu.memory_space<vmem>>, vector<1x1x128xf32>
    %609 = vector.shape_cast %608 : vector<1x1x128xf32> to vector<1x128xf32>
    %610 = vector.shape_cast %609 : vector<1x128xf32> to vector<1x1x128xf32>
    %611 = vector.extract_strided_slice %586 {offsets = [0, 3, 0], sizes = [4, 4, 128], strides = [1, 1, 1]} : vector<4x8x128xf32> to vector<4x4x128xf32>
    %612 = vector.broadcast %610 : vector<1x1x128xf32> to vector<4x4x128xf32>
    %613 = arith.mulf %611, %612 : vector<4x4x128xf32>
    %614 = arith.addf %607, %613 : vector<4x4x128xf32>
    %c2_357 = arith.constant 2 : index
    %c9_358 = arith.constant 9 : index
    %c0_359 = arith.constant 0 : index
    %615 = vector.load %arg3[%c2_357, %c9_358, %c0_359] : memref<6x32x256xf32, #tpu.memory_space<vmem>>, vector<1x1x128xf32>
    %616 = vector.shape_cast %615 : vector<1x1x128xf32> to vector<1x128xf32>
    %617 = vector.shape_cast %616 : vector<1x128xf32> to vector<1x1x128xf32>
    %618 = vector.extract_strided_slice %586 {offsets = [0, 4, 0], sizes = [4, 4, 128], strides = [1, 1, 1]} : vector<4x8x128xf32> to vector<4x4x128xf32>
    %619 = vector.broadcast %617 : vector<1x1x128xf32> to vector<4x4x128xf32>
    %620 = arith.mulf %618, %619 : vector<4x4x128xf32>
    %621 = arith.addf %614, %620 : vector<4x4x128xf32>
    %c2_360 = arith.constant 2 : index
    %c0_361 = arith.constant 0 : index
    %c0_362 = arith.constant 0 : index
    %622 = vector.load %arg6[%c2_360, %c0_361, %c0_362] : memref<10x10x256xf32, #tpu.memory_space<vmem>>, vector<4x8x128xf32>
    %c2_363 = arith.constant 2 : index
    %c10_364 = arith.constant 10 : index
    %c0_365 = arith.constant 0 : index
    %623 = vector.load %arg3[%c2_363, %c10_364, %c0_365] : memref<6x32x256xf32, #tpu.memory_space<vmem>>, vector<1x1x128xf32>
    %624 = vector.shape_cast %623 : vector<1x1x128xf32> to vector<1x128xf32>
    %625 = vector.shape_cast %624 : vector<1x128xf32> to vector<1x1x128xf32>
    %626 = vector.extract_strided_slice %622 {offsets = [0, 0, 0], sizes = [4, 4, 128], strides = [1, 1, 1]} : vector<4x8x128xf32> to vector<4x4x128xf32>
    %627 = vector.broadcast %625 : vector<1x1x128xf32> to vector<4x4x128xf32>
    %628 = arith.mulf %626, %627 : vector<4x4x128xf32>
    %629 = arith.addf %621, %628 : vector<4x4x128xf32>
    %c2_366 = arith.constant 2 : index
    %c11_367 = arith.constant 11 : index
    %c0_368 = arith.constant 0 : index
    %630 = vector.load %arg3[%c2_366, %c11_367, %c0_368] : memref<6x32x256xf32, #tpu.memory_space<vmem>>, vector<1x1x128xf32>
    %631 = vector.shape_cast %630 : vector<1x1x128xf32> to vector<1x128xf32>
    %632 = vector.shape_cast %631 : vector<1x128xf32> to vector<1x1x128xf32>
    %633 = vector.extract_strided_slice %622 {offsets = [0, 1, 0], sizes = [4, 4, 128], strides = [1, 1, 1]} : vector<4x8x128xf32> to vector<4x4x128xf32>
    %634 = vector.broadcast %632 : vector<1x1x128xf32> to vector<4x4x128xf32>
    %635 = arith.mulf %633, %634 : vector<4x4x128xf32>
    %636 = arith.addf %629, %635 : vector<4x4x128xf32>
    %c2_369 = arith.constant 2 : index
    %c12_370 = arith.constant 12 : index
    %c0_371 = arith.constant 0 : index
    %637 = vector.load %arg3[%c2_369, %c12_370, %c0_371] : memref<6x32x256xf32, #tpu.memory_space<vmem>>, vector<1x1x128xf32>
    %638 = vector.shape_cast %637 : vector<1x1x128xf32> to vector<1x128xf32>
    %639 = vector.shape_cast %638 : vector<1x128xf32> to vector<1x1x128xf32>
    %640 = vector.extract_strided_slice %622 {offsets = [0, 2, 0], sizes = [4, 4, 128], strides = [1, 1, 1]} : vector<4x8x128xf32> to vector<4x4x128xf32>
    %641 = vector.broadcast %639 : vector<1x1x128xf32> to vector<4x4x128xf32>
    %642 = arith.mulf %640, %641 : vector<4x4x128xf32>
    %643 = arith.addf %636, %642 : vector<4x4x128xf32>
    %c2_372 = arith.constant 2 : index
    %c13_373 = arith.constant 13 : index
    %c0_374 = arith.constant 0 : index
    %644 = vector.load %arg3[%c2_372, %c13_373, %c0_374] : memref<6x32x256xf32, #tpu.memory_space<vmem>>, vector<1x1x128xf32>
    %645 = vector.shape_cast %644 : vector<1x1x128xf32> to vector<1x128xf32>
    %646 = vector.shape_cast %645 : vector<1x128xf32> to vector<1x1x128xf32>
    %647 = vector.extract_strided_slice %622 {offsets = [0, 3, 0], sizes = [4, 4, 128], strides = [1, 1, 1]} : vector<4x8x128xf32> to vector<4x4x128xf32>
    %648 = vector.broadcast %646 : vector<1x1x128xf32> to vector<4x4x128xf32>
    %649 = arith.mulf %647, %648 : vector<4x4x128xf32>
    %650 = arith.addf %643, %649 : vector<4x4x128xf32>
    %c2_375 = arith.constant 2 : index
    %c14_376 = arith.constant 14 : index
    %c0_377 = arith.constant 0 : index
    %651 = vector.load %arg3[%c2_375, %c14_376, %c0_377] : memref<6x32x256xf32, #tpu.memory_space<vmem>>, vector<1x1x128xf32>
    %652 = vector.shape_cast %651 : vector<1x1x128xf32> to vector<1x128xf32>
    %653 = vector.shape_cast %652 : vector<1x128xf32> to vector<1x1x128xf32>
    %654 = vector.extract_strided_slice %622 {offsets = [0, 4, 0], sizes = [4, 4, 128], strides = [1, 1, 1]} : vector<4x8x128xf32> to vector<4x4x128xf32>
    %655 = vector.broadcast %653 : vector<1x1x128xf32> to vector<4x4x128xf32>
    %656 = arith.mulf %654, %655 : vector<4x4x128xf32>
    %657 = arith.addf %650, %656 : vector<4x4x128xf32>
    %c3_378 = arith.constant 3 : index
    %c0_379 = arith.constant 0 : index
    %c0_380 = arith.constant 0 : index
    %658 = vector.load %arg6[%c3_378, %c0_379, %c0_380] : memref<10x10x256xf32, #tpu.memory_space<vmem>>, vector<4x8x128xf32>
    %c2_381 = arith.constant 2 : index
    %c15_382 = arith.constant 15 : index
    %c0_383 = arith.constant 0 : index
    %659 = vector.load %arg3[%c2_381, %c15_382, %c0_383] : memref<6x32x256xf32, #tpu.memory_space<vmem>>, vector<1x1x128xf32>
    %660 = vector.shape_cast %659 : vector<1x1x128xf32> to vector<1x128xf32>
    %661 = vector.shape_cast %660 : vector<1x128xf32> to vector<1x1x128xf32>
    %662 = vector.extract_strided_slice %658 {offsets = [0, 0, 0], sizes = [4, 4, 128], strides = [1, 1, 1]} : vector<4x8x128xf32> to vector<4x4x128xf32>
    %663 = vector.broadcast %661 : vector<1x1x128xf32> to vector<4x4x128xf32>
    %664 = arith.mulf %662, %663 : vector<4x4x128xf32>
    %665 = arith.addf %657, %664 : vector<4x4x128xf32>
    %c2_384 = arith.constant 2 : index
    %c16_385 = arith.constant 16 : index
    %c0_386 = arith.constant 0 : index
    %666 = vector.load %arg3[%c2_384, %c16_385, %c0_386] : memref<6x32x256xf32, #tpu.memory_space<vmem>>, vector<1x1x128xf32>
    %667 = vector.shape_cast %666 : vector<1x1x128xf32> to vector<1x128xf32>
    %668 = vector.shape_cast %667 : vector<1x128xf32> to vector<1x1x128xf32>
    %669 = vector.extract_strided_slice %658 {offsets = [0, 1, 0], sizes = [4, 4, 128], strides = [1, 1, 1]} : vector<4x8x128xf32> to vector<4x4x128xf32>
    %670 = vector.broadcast %668 : vector<1x1x128xf32> to vector<4x4x128xf32>
    %671 = arith.mulf %669, %670 : vector<4x4x128xf32>
    %672 = arith.addf %665, %671 : vector<4x4x128xf32>
    %c2_387 = arith.constant 2 : index
    %c17_388 = arith.constant 17 : index
    %c0_389 = arith.constant 0 : index
    %673 = vector.load %arg3[%c2_387, %c17_388, %c0_389] : memref<6x32x256xf32, #tpu.memory_space<vmem>>, vector<1x1x128xf32>
    %674 = vector.shape_cast %673 : vector<1x1x128xf32> to vector<1x128xf32>
    %675 = vector.shape_cast %674 : vector<1x128xf32> to vector<1x1x128xf32>
    %676 = vector.extract_strided_slice %658 {offsets = [0, 2, 0], sizes = [4, 4, 128], strides = [1, 1, 1]} : vector<4x8x128xf32> to vector<4x4x128xf32>
    %677 = vector.broadcast %675 : vector<1x1x128xf32> to vector<4x4x128xf32>
    %678 = arith.mulf %676, %677 : vector<4x4x128xf32>
    %679 = arith.addf %672, %678 : vector<4x4x128xf32>
    %c2_390 = arith.constant 2 : index
    %c18_391 = arith.constant 18 : index
    %c0_392 = arith.constant 0 : index
    %680 = vector.load %arg3[%c2_390, %c18_391, %c0_392] : memref<6x32x256xf32, #tpu.memory_space<vmem>>, vector<1x1x128xf32>
    %681 = vector.shape_cast %680 : vector<1x1x128xf32> to vector<1x128xf32>
    %682 = vector.shape_cast %681 : vector<1x128xf32> to vector<1x1x128xf32>
    %683 = vector.extract_strided_slice %658 {offsets = [0, 3, 0], sizes = [4, 4, 128], strides = [1, 1, 1]} : vector<4x8x128xf32> to vector<4x4x128xf32>
    %684 = vector.broadcast %682 : vector<1x1x128xf32> to vector<4x4x128xf32>
    %685 = arith.mulf %683, %684 : vector<4x4x128xf32>
    %686 = arith.addf %679, %685 : vector<4x4x128xf32>
    %c2_393 = arith.constant 2 : index
    %c19_394 = arith.constant 19 : index
    %c0_395 = arith.constant 0 : index
    %687 = vector.load %arg3[%c2_393, %c19_394, %c0_395] : memref<6x32x256xf32, #tpu.memory_space<vmem>>, vector<1x1x128xf32>
    %688 = vector.shape_cast %687 : vector<1x1x128xf32> to vector<1x128xf32>
    %689 = vector.shape_cast %688 : vector<1x128xf32> to vector<1x1x128xf32>
    %690 = vector.extract_strided_slice %658 {offsets = [0, 4, 0], sizes = [4, 4, 128], strides = [1, 1, 1]} : vector<4x8x128xf32> to vector<4x4x128xf32>
    %691 = vector.broadcast %689 : vector<1x1x128xf32> to vector<4x4x128xf32>
    %692 = arith.mulf %690, %691 : vector<4x4x128xf32>
    %693 = arith.addf %686, %692 : vector<4x4x128xf32>
    %c4_396 = arith.constant 4 : index
    %c0_397 = arith.constant 0 : index
    %c0_398 = arith.constant 0 : index
    %694 = vector.load %arg6[%c4_396, %c0_397, %c0_398] : memref<10x10x256xf32, #tpu.memory_space<vmem>>, vector<4x8x128xf32>
    %c2_399 = arith.constant 2 : index
    %c20 = arith.constant 20 : index
    %c0_400 = arith.constant 0 : index
    %695 = vector.load %arg3[%c2_399, %c20, %c0_400] : memref<6x32x256xf32, #tpu.memory_space<vmem>>, vector<1x1x128xf32>
    %696 = vector.shape_cast %695 : vector<1x1x128xf32> to vector<1x128xf32>
    %697 = vector.shape_cast %696 : vector<1x128xf32> to vector<1x1x128xf32>
    %698 = vector.extract_strided_slice %694 {offsets = [0, 0, 0], sizes = [4, 4, 128], strides = [1, 1, 1]} : vector<4x8x128xf32> to vector<4x4x128xf32>
    %699 = vector.broadcast %697 : vector<1x1x128xf32> to vector<4x4x128xf32>
    %700 = arith.mulf %698, %699 : vector<4x4x128xf32>
    %701 = arith.addf %693, %700 : vector<4x4x128xf32>
    %c2_401 = arith.constant 2 : index
    %c21 = arith.constant 21 : index
    %c0_402 = arith.constant 0 : index
    %702 = vector.load %arg3[%c2_401, %c21, %c0_402] : memref<6x32x256xf32, #tpu.memory_space<vmem>>, vector<1x1x128xf32>
    %703 = vector.shape_cast %702 : vector<1x1x128xf32> to vector<1x128xf32>
    %704 = vector.shape_cast %703 : vector<1x128xf32> to vector<1x1x128xf32>
    %705 = vector.extract_strided_slice %694 {offsets = [0, 1, 0], sizes = [4, 4, 128], strides = [1, 1, 1]} : vector<4x8x128xf32> to vector<4x4x128xf32>
    %706 = vector.broadcast %704 : vector<1x1x128xf32> to vector<4x4x128xf32>
    %707 = arith.mulf %705, %706 : vector<4x4x128xf32>
    %708 = arith.addf %701, %707 : vector<4x4x128xf32>
    %c2_403 = arith.constant 2 : index
    %c22 = arith.constant 22 : index
    %c0_404 = arith.constant 0 : index
    %709 = vector.load %arg3[%c2_403, %c22, %c0_404] : memref<6x32x256xf32, #tpu.memory_space<vmem>>, vector<1x1x128xf32>
    %710 = vector.shape_cast %709 : vector<1x1x128xf32> to vector<1x128xf32>
    %711 = vector.shape_cast %710 : vector<1x128xf32> to vector<1x1x128xf32>
    %712 = vector.extract_strided_slice %694 {offsets = [0, 2, 0], sizes = [4, 4, 128], strides = [1, 1, 1]} : vector<4x8x128xf32> to vector<4x4x128xf32>
    %713 = vector.broadcast %711 : vector<1x1x128xf32> to vector<4x4x128xf32>
    %714 = arith.mulf %712, %713 : vector<4x4x128xf32>
    %715 = arith.addf %708, %714 : vector<4x4x128xf32>
    %c2_405 = arith.constant 2 : index
    %c23 = arith.constant 23 : index
    %c0_406 = arith.constant 0 : index
    %716 = vector.load %arg3[%c2_405, %c23, %c0_406] : memref<6x32x256xf32, #tpu.memory_space<vmem>>, vector<1x1x128xf32>
    %717 = vector.shape_cast %716 : vector<1x1x128xf32> to vector<1x128xf32>
    %718 = vector.shape_cast %717 : vector<1x128xf32> to vector<1x1x128xf32>
    %719 = vector.extract_strided_slice %694 {offsets = [0, 3, 0], sizes = [4, 4, 128], strides = [1, 1, 1]} : vector<4x8x128xf32> to vector<4x4x128xf32>
    %720 = vector.broadcast %718 : vector<1x1x128xf32> to vector<4x4x128xf32>
    %721 = arith.mulf %719, %720 : vector<4x4x128xf32>
    %722 = arith.addf %715, %721 : vector<4x4x128xf32>
    %c2_407 = arith.constant 2 : index
    %c24 = arith.constant 24 : index
    %c0_408 = arith.constant 0 : index
    %723 = vector.load %arg3[%c2_407, %c24, %c0_408] : memref<6x32x256xf32, #tpu.memory_space<vmem>>, vector<1x1x128xf32>
    %724 = vector.shape_cast %723 : vector<1x1x128xf32> to vector<1x128xf32>
    %725 = vector.shape_cast %724 : vector<1x128xf32> to vector<1x1x128xf32>
    %726 = vector.extract_strided_slice %694 {offsets = [0, 4, 0], sizes = [4, 4, 128], strides = [1, 1, 1]} : vector<4x8x128xf32> to vector<4x4x128xf32>
    %727 = vector.broadcast %725 : vector<1x1x128xf32> to vector<4x4x128xf32>
    %728 = arith.mulf %726, %727 : vector<4x4x128xf32>
    %729 = arith.addf %722, %728 : vector<4x4x128xf32>
    %730 = vector.shape_cast %547 : vector<1x128xf32> to vector<1x1x128xf32>
    %731 = vector.broadcast %730 : vector<1x1x128xf32> to vector<4x4x128xf32>
    %732 = arith.mulf %729, %731 : vector<4x4x128xf32>
    %733 = vector.shape_cast %548 : vector<1x128xf32> to vector<1x1x128xf32>
    %734 = vector.broadcast %733 : vector<1x1x128xf32> to vector<4x4x128xf32>
    %735 = arith.addf %732, %734 : vector<4x4x128xf32>
    %736 = arith.negf %735 : vector<4x4x128xf32>
    %737 = math.exp %736 : vector<4x4x128xf32>
    %cst_409 = arith.constant 1.000000e+00 : f32
    %738 = vector.broadcast %cst_409 : f32 to vector<4x4x128xf32>
    %739 = arith.addf %738, %737 : vector<4x4x128xf32>
    %740 = arith.divf %738, %739 : vector<4x4x128xf32>
    %741 = arith.mulf %735, %740 : vector<4x4x128xf32>
    %742 = vector.extract_strided_slice %741 {offsets = [0, 0, 0], sizes = [1, 4, 128], strides = [1, 1, 1]} : vector<4x4x128xf32> to vector<1x4x128xf32>
    %743 = vector.shape_cast %742 : vector<1x4x128xf32> to vector<4x128xf32>
    %744 = vector.extract_strided_slice %741 {offsets = [1, 0, 0], sizes = [1, 4, 128], strides = [1, 1, 1]} : vector<4x4x128xf32> to vector<1x4x128xf32>
    %745 = vector.shape_cast %744 : vector<1x4x128xf32> to vector<4x128xf32>
    %746 = vector.extract_strided_slice %741 {offsets = [2, 0, 0], sizes = [1, 4, 128], strides = [1, 1, 1]} : vector<4x4x128xf32> to vector<1x4x128xf32>
    %747 = vector.shape_cast %746 : vector<1x4x128xf32> to vector<4x128xf32>
    %748 = vector.extract_strided_slice %741 {offsets = [3, 0, 0], sizes = [1, 4, 128], strides = [1, 1, 1]} : vector<4x4x128xf32> to vector<1x4x128xf32>
    %749 = vector.shape_cast %748 : vector<1x4x128xf32> to vector<4x128xf32>
    %750 = tpu.concatenate %743, %745, %747, %749 in 0 : vector<4x128xf32>, vector<4x128xf32>, vector<4x128xf32>, vector<4x128xf32> -> vector<16x128xf32>
    %cst_410 = arith.constant dense<0.000000e+00> : vector<128xf32>
    %751 = vector.multi_reduction <add>, %750, %cst_410 [0] : vector<16x128xf32> to vector<128xf32>
    %752 = vector.shape_cast %751 : vector<128xf32> to vector<1x128xf32>
    %cst_411 = arith.constant 1.600000e+01 : f32
    %753 = vector.broadcast %cst_411 : f32 to vector<1x128xf32>
    %754 = arith.divf %752, %753 : vector<1x128xf32>
    %755 = arith.truncf %754 : vector<1x128xf32> to vector<1x128xbf16>
    %c9_412 = arith.constant 9 : index
    %c0_413 = arith.constant 0 : index
    %c0_414 = arith.constant 0 : index
    %756 = vector.load %arg2[%c9_412, %c0_413, %c0_414] : memref<26x256x256xbf16, #tpu.memory_space<vmem>>, vector<1x128x128xbf16>
    %757 = vector.shape_cast %756 : vector<1x128x128xbf16> to vector<128x128xbf16>
    %cst_415 = arith.constant dense<0.000000e+00> : vector<1x128xf32>
    %758 = tpu.matmul %755, %757, %cst_415 {dimension_numbers = #tpu.dot_dimension_numbers<[1], [0], [0], [1], [0, 0, 1, 1], [], []>} : vector<1x128xbf16>, vector<128x128xbf16>, vector<1x128xf32> -> vector<1x128xf32>
    %c20_416 = arith.constant 20 : index
    %c0_417 = arith.constant 0 : index
    %759 = vector.load %arg4[%c20_416, %c0_417] : memref<51x256xf32, #tpu.memory_space<vmem>>, vector<1x128xf32>
    %760 = arith.addf %758, %759 : vector<1x128xf32>
    %761 = arith.negf %760 : vector<1x128xf32>
    %762 = math.exp %761 : vector<1x128xf32>
    %cst_418 = arith.constant 1.000000e+00 : f32
    %763 = vector.broadcast %cst_418 : f32 to vector<1x128xf32>
    %764 = arith.addf %763, %762 : vector<1x128xf32>
    %765 = arith.divf %763, %764 : vector<1x128xf32>
    %766 = arith.mulf %760, %765 : vector<1x128xf32>
    %767 = arith.truncf %766 : vector<1x128xf32> to vector<1x128xbf16>
    %c10_419 = arith.constant 10 : index
    %c0_420 = arith.constant 0 : index
    %c0_421 = arith.constant 0 : index
    %768 = vector.load %arg2[%c10_419, %c0_420, %c0_421] : memref<26x256x256xbf16, #tpu.memory_space<vmem>>, vector<1x128x128xbf16>
    %769 = vector.shape_cast %768 : vector<1x128x128xbf16> to vector<128x128xbf16>
    %cst_422 = arith.constant dense<0.000000e+00> : vector<1x128xf32>
    %770 = tpu.matmul %767, %769, %cst_422 {dimension_numbers = #tpu.dot_dimension_numbers<[1], [0], [0], [1], [0, 0, 1, 1], [], []>} : vector<1x128xbf16>, vector<128x128xbf16>, vector<1x128xf32> -> vector<1x128xf32>
    %c21_423 = arith.constant 21 : index
    %c0_424 = arith.constant 0 : index
    %771 = vector.load %arg4[%c21_423, %c0_424] : memref<51x256xf32, #tpu.memory_space<vmem>>, vector<1x128xf32>
    %772 = arith.addf %770, %771 : vector<1x128xf32>
    %773 = arith.negf %772 : vector<1x128xf32>
    %774 = math.exp %773 : vector<1x128xf32>
    %cst_425 = arith.constant 1.000000e+00 : f32
    %775 = vector.broadcast %cst_425 : f32 to vector<1x128xf32>
    %776 = arith.addf %775, %774 : vector<1x128xf32>
    %777 = arith.divf %775, %776 : vector<1x128xf32>
    %778 = vector.broadcast %777 : vector<1x128xf32> to vector<16x128xf32>
    %779 = arith.mulf %750, %778 : vector<16x128xf32>
    %780 = arith.truncf %779 : vector<16x128xf32> to vector<16x128xbf16>
    %c11_426 = arith.constant 11 : index
    %c0_427 = arith.constant 0 : index
    %c0_428 = arith.constant 0 : index
    %781 = vector.load %arg2[%c11_426, %c0_427, %c0_428] : memref<26x256x256xbf16, #tpu.memory_space<vmem>>, vector<1x128x128xbf16>
    %782 = vector.shape_cast %781 : vector<1x128x128xbf16> to vector<128x128xbf16>
    %cst_429 = arith.constant dense<0.000000e+00> : vector<16x128xf32>
    %783 = tpu.matmul %780, %782, %cst_429 {dimension_numbers = #tpu.dot_dimension_numbers<[1], [0], [0], [1], [0, 0, 1, 1], [], []>} : vector<16x128xbf16>, vector<128x128xbf16>, vector<16x128xf32> -> vector<16x128xf32>
    %c22_430 = arith.constant 22 : index
    %c0_431 = arith.constant 0 : index
    %784 = vector.load %arg4[%c22_430, %c0_431] : memref<51x256xf32, #tpu.memory_space<vmem>>, vector<1x128xf32>
    %785 = vector.broadcast %784 : vector<1x128xf32> to vector<16x128xf32>
    %786 = arith.mulf %783, %785 : vector<16x128xf32>
    %c23_432 = arith.constant 23 : index
    %c0_433 = arith.constant 0 : index
    %787 = vector.load %arg4[%c23_432, %c0_433] : memref<51x256xf32, #tpu.memory_space<vmem>>, vector<1x128xf32>
    %788 = vector.broadcast %787 : vector<1x128xf32> to vector<16x128xf32>
    %789 = arith.addf %786, %788 : vector<16x128xf32>
    %790 = arith.addf %789, %508 : vector<16x128xf32>
    %791 = arith.truncf %790 : vector<16x128xf32> to vector<16x128xbf16>
    %c12_434 = arith.constant 12 : index
    %c0_435 = arith.constant 0 : index
    %c0_436 = arith.constant 0 : index
    %792 = vector.load %arg2[%c12_434, %c0_435, %c0_436] : memref<26x256x256xbf16, #tpu.memory_space<vmem>>, vector<1x128x128xbf16>
    %793 = vector.shape_cast %792 : vector<1x128x128xbf16> to vector<128x128xbf16>
    %cst_437 = arith.constant dense<0.000000e+00> : vector<16x128xf32>
    %794 = tpu.matmul %791, %793, %cst_437 {dimension_numbers = #tpu.dot_dimension_numbers<[1], [0], [0], [1], [0, 0, 1, 1], [], []>} : vector<16x128xbf16>, vector<128x128xbf16>, vector<16x128xf32> -> vector<16x128xf32>
    %c24_438 = arith.constant 24 : index
    %c0_439 = arith.constant 0 : index
    %795 = vector.load %arg4[%c24_438, %c0_439] : memref<51x256xf32, #tpu.memory_space<vmem>>, vector<1x128xf32>
    %796 = vector.broadcast %795 : vector<1x128xf32> to vector<16x128xf32>
    %797 = arith.mulf %794, %796 : vector<16x128xf32>
    %c25 = arith.constant 25 : index
    %c0_440 = arith.constant 0 : index
    %798 = vector.load %arg4[%c25, %c0_440] : memref<51x256xf32, #tpu.memory_space<vmem>>, vector<1x128xf32>
    %799 = vector.broadcast %798 : vector<1x128xf32> to vector<16x128xf32>
    %800 = arith.addf %797, %799 : vector<16x128xf32>
    %801 = arith.negf %800 : vector<16x128xf32>
    %802 = math.exp %801 : vector<16x128xf32>
    %cst_441 = arith.constant 1.000000e+00 : f32
    %803 = vector.broadcast %cst_441 : f32 to vector<16x128xf32>
    %804 = arith.addf %803, %802 : vector<16x128xf32>
    %805 = arith.divf %803, %804 : vector<16x128xf32>
    %806 = arith.mulf %800, %805 : vector<16x128xf32>
    %cst_442 = arith.constant 0.000000e+00 : f32
    %807 = vector.broadcast %cst_442 : f32 to vector<1x6x128xf32>
    %cst_443 = arith.constant 0.000000e+00 : f32
    %808 = vector.broadcast %cst_443 : f32 to vector<4x1x128xf32>
    %c0_444 = arith.constant 0 : index
    %c0_445 = arith.constant 0 : index
    %c0_446 = arith.constant 0 : index
    %809 = vector.load %arg6[%c0_444, %c0_445, %c0_446] : memref<10x10x256xf32, #tpu.memory_space<vmem>>, vector<1x6x128xf32>
    tpu.vector_store %arg6[%c0_444, %c0_445, %c0_446], %807 {strides = array<i32>} : memref<10x10x256xf32, #tpu.memory_space<vmem>>, vector<1x6x128xf32>,
    %c5_447 = arith.constant 5 : index
    %c0_448 = arith.constant 0 : index
    %c0_449 = arith.constant 0 : index
    %810 = vector.load %arg6[%c5_447, %c0_448, %c0_449] : memref<10x10x256xf32, #tpu.memory_space<vmem>>, vector<1x6x128xf32>
    tpu.vector_store %arg6[%c5_447, %c0_448, %c0_449], %807 {strides = array<i32>} : memref<10x10x256xf32, #tpu.memory_space<vmem>>, vector<1x6x128xf32>,
    %c1_450 = arith.constant 1 : index
    %c0_451 = arith.constant 0 : index
    %c0_452 = arith.constant 0 : index
    %811 = vector.load %arg6[%c1_450, %c0_451, %c0_452] : memref<10x10x256xf32, #tpu.memory_space<vmem>>, vector<4x1x128xf32>
    tpu.vector_store %arg6[%c1_450, %c0_451, %c0_452], %808 {strides = array<i32>} : memref<10x10x256xf32, #tpu.memory_space<vmem>>, vector<4x1x128xf32>,
    %c1_453 = arith.constant 1 : index
    %c5_454 = arith.constant 5 : index
    %c0_455 = arith.constant 0 : index
    %812 = vector.load %arg6[%c1_453, %c5_454, %c0_455] : memref<10x10x256xf32, #tpu.memory_space<vmem>>, vector<4x1x128xf32>
    tpu.vector_store %arg6[%c1_453, %c5_454, %c0_455], %808 {strides = array<i32>} : memref<10x10x256xf32, #tpu.memory_space<vmem>>, vector<4x1x128xf32>,
    %813 = vector.extract_strided_slice %806 {offsets = [0, 0], sizes = [4, 128], strides = [1, 1]} : vector<16x128xf32> to vector<4x128xf32>
    %c1_456 = arith.constant 1 : index
    %c1_457 = arith.constant 1 : index
    %c0_458 = arith.constant 0 : index
    %814 = vector.load %arg6[%c1_456, %c1_457, %c0_458] : memref<10x10x256xf32, #tpu.memory_space<vmem>>, vector<1x4x128xf32>
    %815 = vector.shape_cast %814 : vector<1x4x128xf32> to vector<4x128xf32>
    %816 = vector.shape_cast %813 : vector<4x128xf32> to vector<1x4x128xf32>
    tpu.vector_store %arg6[%c1_456, %c1_457, %c0_458], %816 {strides = array<i32>} : memref<10x10x256xf32, #tpu.memory_space<vmem>>, vector<1x4x128xf32>,
    %817 = vector.extract_strided_slice %806 {offsets = [4, 0], sizes = [4, 128], strides = [1, 1]} : vector<16x128xf32> to vector<4x128xf32>
    %c2_459 = arith.constant 2 : index
    %c1_460 = arith.constant 1 : index
    %c0_461 = arith.constant 0 : index
    %818 = vector.load %arg6[%c2_459, %c1_460, %c0_461] : memref<10x10x256xf32, #tpu.memory_space<vmem>>, vector<1x4x128xf32>
    %819 = vector.shape_cast %818 : vector<1x4x128xf32> to vector<4x128xf32>
    %820 = vector.shape_cast %817 : vector<4x128xf32> to vector<1x4x128xf32>
    tpu.vector_store %arg6[%c2_459, %c1_460, %c0_461], %820 {strides = array<i32>} : memref<10x10x256xf32, #tpu.memory_space<vmem>>, vector<1x4x128xf32>,
    %821 = vector.extract_strided_slice %806 {offsets = [8, 0], sizes = [4, 128], strides = [1, 1]} : vector<16x128xf32> to vector<4x128xf32>
    %c3_462 = arith.constant 3 : index
    %c1_463 = arith.constant 1 : index
    %c0_464 = arith.constant 0 : index
    %822 = vector.load %arg6[%c3_462, %c1_463, %c0_464] : memref<10x10x256xf32, #tpu.memory_space<vmem>>, vector<1x4x128xf32>
    %823 = vector.shape_cast %822 : vector<1x4x128xf32> to vector<4x128xf32>
    %824 = vector.shape_cast %821 : vector<4x128xf32> to vector<1x4x128xf32>
    tpu.vector_store %arg6[%c3_462, %c1_463, %c0_464], %824 {strides = array<i32>} : memref<10x10x256xf32, #tpu.memory_space<vmem>>, vector<1x4x128xf32>,
    %825 = vector.extract_strided_slice %806 {offsets = [12, 0], sizes = [4, 128], strides = [1, 1]} : vector<16x128xf32> to vector<4x128xf32>
    %c4_465 = arith.constant 4 : index
    %c1_466 = arith.constant 1 : index
    %c0_467 = arith.constant 0 : index
    %826 = vector.load %arg6[%c4_465, %c1_466, %c0_467] : memref<10x10x256xf32, #tpu.memory_space<vmem>>, vector<1x4x128xf32>
    %827 = vector.shape_cast %826 : vector<1x4x128xf32> to vector<4x128xf32>
    %828 = vector.shape_cast %825 : vector<4x128xf32> to vector<1x4x128xf32>
    tpu.vector_store %arg6[%c4_465, %c1_466, %c0_467], %828 {strides = array<i32>} : memref<10x10x256xf32, #tpu.memory_space<vmem>>, vector<1x4x128xf32>,
    %c26 = arith.constant 26 : index
    %c0_468 = arith.constant 0 : index
    %829 = vector.load %arg4[%c26, %c0_468] : memref<51x256xf32, #tpu.memory_space<vmem>>, vector<1x128xf32>
    %c27 = arith.constant 27 : index
    %c0_469 = arith.constant 0 : index
    %830 = vector.load %arg4[%c27, %c0_469] : memref<51x256xf32, #tpu.memory_space<vmem>>, vector<1x128xf32>
    %831 = tpu.iota {dimensions = array<i32: 0>} : vector<2x4xi32>
    %832 = tpu.iota {dimensions = array<i32: 1>} : vector<2x4xi32>
    %c2_i32_470 = arith.constant 2 : i32
    %833 = vector.broadcast %c2_i32_470 : i32 to vector<2x4xi32>
    %834 = arith.muli %833, %831 : vector<2x4xi32>
    %835 = arith.cmpi eq, %832, %834 : vector<2x4xi32>
    %836 = arith.extui %835 : vector<2x4xi1> to vector<2x4xi32>
    %837 = arith.sitofp %836 : vector<2x4xi32> to vector<2x4xf32>
    %cst_471 = arith.constant 0.000000e+00 : f32
    %838 = vector.broadcast %cst_471 : f32 to vector<4x128xf32>
    %c0_472 = arith.constant 0 : index
    %c0_473 = arith.constant 0 : index
    %c0_474 = arith.constant 0 : index
    %839 = vector.load %arg6[%c0_472, %c0_473, %c0_474] : memref<10x10x256xf32, #tpu.memory_space<vmem>>, vector<1x6x128xf32>
    %840 = vector.shape_cast %839 : vector<1x6x128xf32> to vector<6x128xf32>
    %c3_475 = arith.constant 3 : index
    %c0_476 = arith.constant 0 : index
    %c0_477 = arith.constant 0 : index
    %841 = vector.load %arg3[%c3_475, %c0_476, %c0_477] : memref<6x32x256xf32, #tpu.memory_space<vmem>>, vector<1x1x128xf32>
    %842 = vector.shape_cast %841 : vector<1x1x128xf32> to vector<1x128xf32>
    %843 = vector.extract_strided_slice %840 {offsets = [0, 0], sizes = [4, 128], strides = [1, 1]} : vector<6x128xf32> to vector<4x128xf32>
    %844 = vector.broadcast %842 : vector<1x128xf32> to vector<4x128xf32>
    %845 = arith.mulf %843, %844 : vector<4x128xf32>
    %846 = arith.addf %838, %845 : vector<4x128xf32>
    %c3_478 = arith.constant 3 : index
    %c1_479 = arith.constant 1 : index
    %c0_480 = arith.constant 0 : index
    %847 = vector.load %arg3[%c3_478, %c1_479, %c0_480] : memref<6x32x256xf32, #tpu.memory_space<vmem>>, vector<1x1x128xf32>
    %848 = vector.shape_cast %847 : vector<1x1x128xf32> to vector<1x128xf32>
    %849 = vector.extract_strided_slice %840 {offsets = [1, 0], sizes = [4, 128], strides = [1, 1]} : vector<6x128xf32> to vector<4x128xf32>
    %850 = vector.broadcast %848 : vector<1x128xf32> to vector<4x128xf32>
    %851 = arith.mulf %849, %850 : vector<4x128xf32>
    %852 = arith.addf %846, %851 : vector<4x128xf32>
    %c3_481 = arith.constant 3 : index
    %c2_482 = arith.constant 2 : index
    %c0_483 = arith.constant 0 : index
    %853 = vector.load %arg3[%c3_481, %c2_482, %c0_483] : memref<6x32x256xf32, #tpu.memory_space<vmem>>, vector<1x1x128xf32>
    %854 = vector.shape_cast %853 : vector<1x1x128xf32> to vector<1x128xf32>
    %855 = vector.extract_strided_slice %840 {offsets = [2, 0], sizes = [4, 128], strides = [1, 1]} : vector<6x128xf32> to vector<4x128xf32>
    %856 = vector.broadcast %854 : vector<1x128xf32> to vector<4x128xf32>
    %857 = arith.mulf %855, %856 : vector<4x128xf32>
    %858 = arith.addf %852, %857 : vector<4x128xf32>
    %c1_484 = arith.constant 1 : index
    %c0_485 = arith.constant 0 : index
    %c0_486 = arith.constant 0 : index
    %859 = vector.load %arg6[%c1_484, %c0_485, %c0_486] : memref<10x10x256xf32, #tpu.memory_space<vmem>>, vector<1x6x128xf32>
    %860 = vector.shape_cast %859 : vector<1x6x128xf32> to vector<6x128xf32>
    %c3_487 = arith.constant 3 : index
    %c3_488 = arith.constant 3 : index
    %c0_489 = arith.constant 0 : index
    %861 = vector.load %arg3[%c3_487, %c3_488, %c0_489] : memref<6x32x256xf32, #tpu.memory_space<vmem>>, vector<1x1x128xf32>
    %862 = vector.shape_cast %861 : vector<1x1x128xf32> to vector<1x128xf32>
    %863 = vector.extract_strided_slice %860 {offsets = [0, 0], sizes = [4, 128], strides = [1, 1]} : vector<6x128xf32> to vector<4x128xf32>
    %864 = vector.broadcast %862 : vector<1x128xf32> to vector<4x128xf32>
    %865 = arith.mulf %863, %864 : vector<4x128xf32>
    %866 = arith.addf %858, %865 : vector<4x128xf32>
    %c3_490 = arith.constant 3 : index
    %c4_491 = arith.constant 4 : index
    %c0_492 = arith.constant 0 : index
    %867 = vector.load %arg3[%c3_490, %c4_491, %c0_492] : memref<6x32x256xf32, #tpu.memory_space<vmem>>, vector<1x1x128xf32>
    %868 = vector.shape_cast %867 : vector<1x1x128xf32> to vector<1x128xf32>
    %869 = vector.extract_strided_slice %860 {offsets = [1, 0], sizes = [4, 128], strides = [1, 1]} : vector<6x128xf32> to vector<4x128xf32>
    %870 = vector.broadcast %868 : vector<1x128xf32> to vector<4x128xf32>
    %871 = arith.mulf %869, %870 : vector<4x128xf32>
    %872 = arith.addf %866, %871 : vector<4x128xf32>
    %c3_493 = arith.constant 3 : index
    %c5_494 = arith.constant 5 : index
    %c0_495 = arith.constant 0 : index
    %873 = vector.load %arg3[%c3_493, %c5_494, %c0_495] : memref<6x32x256xf32, #tpu.memory_space<vmem>>, vector<1x1x128xf32>
    %874 = vector.shape_cast %873 : vector<1x1x128xf32> to vector<1x128xf32>
    %875 = vector.extract_strided_slice %860 {offsets = [2, 0], sizes = [4, 128], strides = [1, 1]} : vector<6x128xf32> to vector<4x128xf32>
    %876 = vector.broadcast %874 : vector<1x128xf32> to vector<4x128xf32>
    %877 = arith.mulf %875, %876 : vector<4x128xf32>
    %878 = arith.addf %872, %877 : vector<4x128xf32>
    %c2_496 = arith.constant 2 : index
    %c0_497 = arith.constant 0 : index
    %c0_498 = arith.constant 0 : index
    %879 = vector.load %arg6[%c2_496, %c0_497, %c0_498] : memref<10x10x256xf32, #tpu.memory_space<vmem>>, vector<1x6x128xf32>
    %880 = vector.shape_cast %879 : vector<1x6x128xf32> to vector<6x128xf32>
    %c3_499 = arith.constant 3 : index
    %c6_500 = arith.constant 6 : index
    %c0_501 = arith.constant 0 : index
    %881 = vector.load %arg3[%c3_499, %c6_500, %c0_501] : memref<6x32x256xf32, #tpu.memory_space<vmem>>, vector<1x1x128xf32>
    %882 = vector.shape_cast %881 : vector<1x1x128xf32> to vector<1x128xf32>
    %883 = vector.extract_strided_slice %880 {offsets = [0, 0], sizes = [4, 128], strides = [1, 1]} : vector<6x128xf32> to vector<4x128xf32>
    %884 = vector.broadcast %882 : vector<1x128xf32> to vector<4x128xf32>
    %885 = arith.mulf %883, %884 : vector<4x128xf32>
    %886 = arith.addf %878, %885 : vector<4x128xf32>
    %c3_502 = arith.constant 3 : index
    %c7_503 = arith.constant 7 : index
    %c0_504 = arith.constant 0 : index
    %887 = vector.load %arg3[%c3_502, %c7_503, %c0_504] : memref<6x32x256xf32, #tpu.memory_space<vmem>>, vector<1x1x128xf32>
    %888 = vector.shape_cast %887 : vector<1x1x128xf32> to vector<1x128xf32>
    %889 = vector.extract_strided_slice %880 {offsets = [1, 0], sizes = [4, 128], strides = [1, 1]} : vector<6x128xf32> to vector<4x128xf32>
    %890 = vector.broadcast %888 : vector<1x128xf32> to vector<4x128xf32>
    %891 = arith.mulf %889, %890 : vector<4x128xf32>
    %892 = arith.addf %886, %891 : vector<4x128xf32>
    %c3_505 = arith.constant 3 : index
    %c8_506 = arith.constant 8 : index
    %c0_507 = arith.constant 0 : index
    %893 = vector.load %arg3[%c3_505, %c8_506, %c0_507] : memref<6x32x256xf32, #tpu.memory_space<vmem>>, vector<1x1x128xf32>
    %894 = vector.shape_cast %893 : vector<1x1x128xf32> to vector<1x128xf32>
    %895 = vector.extract_strided_slice %880 {offsets = [2, 0], sizes = [4, 128], strides = [1, 1]} : vector<6x128xf32> to vector<4x128xf32>
    %896 = vector.broadcast %894 : vector<1x128xf32> to vector<4x128xf32>
    %897 = arith.mulf %895, %896 : vector<4x128xf32>
    %898 = arith.addf %892, %897 : vector<4x128xf32>
    %cst_508 = arith.constant dense<0.000000e+00> : vector<2x128xf32>
    %899 = tpu.matmul %837, %898, %cst_508 {dimension_numbers = #tpu.dot_dimension_numbers<[1], [0], [0], [1], [0, 0, 1, 1], [], []>} : vector<2x4xf32>, vector<4x128xf32>, vector<2x128xf32> -> vector<2x128xf32>
    %900 = vector.broadcast %829 : vector<1x128xf32> to vector<2x128xf32>
    %901 = arith.mulf %899, %900 : vector<2x128xf32>
    %902 = vector.broadcast %830 : vector<1x128xf32> to vector<2x128xf32>
    %903 = arith.addf %901, %902 : vector<2x128xf32>
    %904 = arith.negf %903 : vector<2x128xf32>
    %905 = math.exp %904 : vector<2x128xf32>
    %cst_509 = arith.constant 1.000000e+00 : f32
    %906 = vector.broadcast %cst_509 : f32 to vector<2x128xf32>
    %907 = arith.addf %906, %905 : vector<2x128xf32>
    %908 = arith.divf %906, %907 : vector<2x128xf32>
    %909 = arith.mulf %903, %908 : vector<2x128xf32>
    %cst_510 = arith.constant 0.000000e+00 : f32
    %910 = vector.broadcast %cst_510 : f32 to vector<4x128xf32>
    %c2_511 = arith.constant 2 : index
    %c0_512 = arith.constant 0 : index
    %c0_513 = arith.constant 0 : index
    %911 = vector.load %arg6[%c2_511, %c0_512, %c0_513] : memref<10x10x256xf32, #tpu.memory_space<vmem>>, vector<1x6x128xf32>
    %912 = vector.shape_cast %911 : vector<1x6x128xf32> to vector<6x128xf32>
    %c3_514 = arith.constant 3 : index
    %c0_515 = arith.constant 0 : index
    %c0_516 = arith.constant 0 : index
    %913 = vector.load %arg3[%c3_514, %c0_515, %c0_516] : memref<6x32x256xf32, #tpu.memory_space<vmem>>, vector<1x1x128xf32>
    %914 = vector.shape_cast %913 : vector<1x1x128xf32> to vector<1x128xf32>
    %915 = vector.extract_strided_slice %912 {offsets = [0, 0], sizes = [4, 128], strides = [1, 1]} : vector<6x128xf32> to vector<4x128xf32>
    %916 = vector.broadcast %914 : vector<1x128xf32> to vector<4x128xf32>
    %917 = arith.mulf %915, %916 : vector<4x128xf32>
    %918 = arith.addf %910, %917 : vector<4x128xf32>
    %c3_517 = arith.constant 3 : index
    %c1_518 = arith.constant 1 : index
    %c0_519 = arith.constant 0 : index
    %919 = vector.load %arg3[%c3_517, %c1_518, %c0_519] : memref<6x32x256xf32, #tpu.memory_space<vmem>>, vector<1x1x128xf32>
    %920 = vector.shape_cast %919 : vector<1x1x128xf32> to vector<1x128xf32>
    %921 = vector.extract_strided_slice %912 {offsets = [1, 0], sizes = [4, 128], strides = [1, 1]} : vector<6x128xf32> to vector<4x128xf32>
    %922 = vector.broadcast %920 : vector<1x128xf32> to vector<4x128xf32>
    %923 = arith.mulf %921, %922 : vector<4x128xf32>
    %924 = arith.addf %918, %923 : vector<4x128xf32>
    %c3_520 = arith.constant 3 : index
    %c2_521 = arith.constant 2 : index
    %c0_522 = arith.constant 0 : index
    %925 = vector.load %arg3[%c3_520, %c2_521, %c0_522] : memref<6x32x256xf32, #tpu.memory_space<vmem>>, vector<1x1x128xf32>
    %926 = vector.shape_cast %925 : vector<1x1x128xf32> to vector<1x128xf32>
    %927 = vector.extract_strided_slice %912 {offsets = [2, 0], sizes = [4, 128], strides = [1, 1]} : vector<6x128xf32> to vector<4x128xf32>
    %928 = vector.broadcast %926 : vector<1x128xf32> to vector<4x128xf32>
    %929 = arith.mulf %927, %928 : vector<4x128xf32>
    %930 = arith.addf %924, %929 : vector<4x128xf32>
    %c3_523 = arith.constant 3 : index
    %c0_524 = arith.constant 0 : index
    %c0_525 = arith.constant 0 : index
    %931 = vector.load %arg6[%c3_523, %c0_524, %c0_525] : memref<10x10x256xf32, #tpu.memory_space<vmem>>, vector<1x6x128xf32>
    %932 = vector.shape_cast %931 : vector<1x6x128xf32> to vector<6x128xf32>
    %c3_526 = arith.constant 3 : index
    %c3_527 = arith.constant 3 : index
    %c0_528 = arith.constant 0 : index
    %933 = vector.load %arg3[%c3_526, %c3_527, %c0_528] : memref<6x32x256xf32, #tpu.memory_space<vmem>>, vector<1x1x128xf32>
    %934 = vector.shape_cast %933 : vector<1x1x128xf32> to vector<1x128xf32>
    %935 = vector.extract_strided_slice %932 {offsets = [0, 0], sizes = [4, 128], strides = [1, 1]} : vector<6x128xf32> to vector<4x128xf32>
    %936 = vector.broadcast %934 : vector<1x128xf32> to vector<4x128xf32>
    %937 = arith.mulf %935, %936 : vector<4x128xf32>
    %938 = arith.addf %930, %937 : vector<4x128xf32>
    %c3_529 = arith.constant 3 : index
    %c4_530 = arith.constant 4 : index
    %c0_531 = arith.constant 0 : index
    %939 = vector.load %arg3[%c3_529, %c4_530, %c0_531] : memref<6x32x256xf32, #tpu.memory_space<vmem>>, vector<1x1x128xf32>
    %940 = vector.shape_cast %939 : vector<1x1x128xf32> to vector<1x128xf32>
    %941 = vector.extract_strided_slice %932 {offsets = [1, 0], sizes = [4, 128], strides = [1, 1]} : vector<6x128xf32> to vector<4x128xf32>
    %942 = vector.broadcast %940 : vector<1x128xf32> to vector<4x128xf32>
    %943 = arith.mulf %941, %942 : vector<4x128xf32>
    %944 = arith.addf %938, %943 : vector<4x128xf32>
    %c3_532 = arith.constant 3 : index
    %c5_533 = arith.constant 5 : index
    %c0_534 = arith.constant 0 : index
    %945 = vector.load %arg3[%c3_532, %c5_533, %c0_534] : memref<6x32x256xf32, #tpu.memory_space<vmem>>, vector<1x1x128xf32>
    %946 = vector.shape_cast %945 : vector<1x1x128xf32> to vector<1x128xf32>
    %947 = vector.extract_strided_slice %932 {offsets = [2, 0], sizes = [4, 128], strides = [1, 1]} : vector<6x128xf32> to vector<4x128xf32>
    %948 = vector.broadcast %946 : vector<1x128xf32> to vector<4x128xf32>
    %949 = arith.mulf %947, %948 : vector<4x128xf32>
    %950 = arith.addf %944, %949 : vector<4x128xf32>
    %c4_535 = arith.constant 4 : index
    %c0_536 = arith.constant 0 : index
    %c0_537 = arith.constant 0 : index
    %951 = vector.load %arg6[%c4_535, %c0_536, %c0_537] : memref<10x10x256xf32, #tpu.memory_space<vmem>>, vector<1x6x128xf32>
    %952 = vector.shape_cast %951 : vector<1x6x128xf32> to vector<6x128xf32>
    %c3_538 = arith.constant 3 : index
    %c6_539 = arith.constant 6 : index
    %c0_540 = arith.constant 0 : index
    %953 = vector.load %arg3[%c3_538, %c6_539, %c0_540] : memref<6x32x256xf32, #tpu.memory_space<vmem>>, vector<1x1x128xf32>
    %954 = vector.shape_cast %953 : vector<1x1x128xf32> to vector<1x128xf32>
    %955 = vector.extract_strided_slice %952 {offsets = [0, 0], sizes = [4, 128], strides = [1, 1]} : vector<6x128xf32> to vector<4x128xf32>
    %956 = vector.broadcast %954 : vector<1x128xf32> to vector<4x128xf32>
    %957 = arith.mulf %955, %956 : vector<4x128xf32>
    %958 = arith.addf %950, %957 : vector<4x128xf32>
    %c3_541 = arith.constant 3 : index
    %c7_542 = arith.constant 7 : index
    %c0_543 = arith.constant 0 : index
    %959 = vector.load %arg3[%c3_541, %c7_542, %c0_543] : memref<6x32x256xf32, #tpu.memory_space<vmem>>, vector<1x1x128xf32>
    %960 = vector.shape_cast %959 : vector<1x1x128xf32> to vector<1x128xf32>
    %961 = vector.extract_strided_slice %952 {offsets = [1, 0], sizes = [4, 128], strides = [1, 1]} : vector<6x128xf32> to vector<4x128xf32>
    %962 = vector.broadcast %960 : vector<1x128xf32> to vector<4x128xf32>
    %963 = arith.mulf %961, %962 : vector<4x128xf32>
    %964 = arith.addf %958, %963 : vector<4x128xf32>
    %c3_544 = arith.constant 3 : index
    %c8_545 = arith.constant 8 : index
    %c0_546 = arith.constant 0 : index
    %965 = vector.load %arg3[%c3_544, %c8_545, %c0_546] : memref<6x32x256xf32, #tpu.memory_space<vmem>>, vector<1x1x128xf32>
    %966 = vector.shape_cast %965 : vector<1x1x128xf32> to vector<1x128xf32>
    %967 = vector.extract_strided_slice %952 {offsets = [2, 0], sizes = [4, 128], strides = [1, 1]} : vector<6x128xf32> to vector<4x128xf32>
    %968 = vector.broadcast %966 : vector<1x128xf32> to vector<4x128xf32>
    %969 = arith.mulf %967, %968 : vector<4x128xf32>
    %970 = arith.addf %964, %969 : vector<4x128xf32>
    %cst_547 = arith.constant dense<0.000000e+00> : vector<2x128xf32>
    %971 = tpu.matmul %837, %970, %cst_547 {dimension_numbers = #tpu.dot_dimension_numbers<[1], [0], [0], [1], [0, 0, 1, 1], [], []>} : vector<2x4xf32>, vector<4x128xf32>, vector<2x128xf32> -> vector<2x128xf32>
    %972 = vector.broadcast %829 : vector<1x128xf32> to vector<2x128xf32>
    %973 = arith.mulf %971, %972 : vector<2x128xf32>
    %974 = vector.broadcast %830 : vector<1x128xf32> to vector<2x128xf32>
    %975 = arith.addf %973, %974 : vector<2x128xf32>
    %976 = arith.negf %975 : vector<2x128xf32>
    %977 = math.exp %976 : vector<2x128xf32>
    %cst_548 = arith.constant 1.000000e+00 : f32
    %978 = vector.broadcast %cst_548 : f32 to vector<2x128xf32>
    %979 = arith.addf %978, %977 : vector<2x128xf32>
    %980 = arith.divf %978, %979 : vector<2x128xf32>
    %981 = arith.mulf %975, %980 : vector<2x128xf32>
    %982 = tpu.concatenate %909, %981 in 0 : vector<2x128xf32>, vector<2x128xf32> -> vector<4x128xf32>
    %cst_549 = arith.constant dense<0.000000e+00> : vector<128xf32>
    %983 = vector.multi_reduction <add>, %982, %cst_549 [0] : vector<4x128xf32> to vector<128xf32>
    %984 = vector.shape_cast %983 : vector<128xf32> to vector<1x128xf32>
    %cst_550 = arith.constant 4.000000e+00 : f32
    %985 = vector.broadcast %cst_550 : f32 to vector<1x128xf32>
    %986 = arith.divf %984, %985 : vector<1x128xf32>
    %987 = arith.truncf %986 : vector<1x128xf32> to vector<1x128xbf16>
    %c13_551 = arith.constant 13 : index
    %c0_552 = arith.constant 0 : index
    %c0_553 = arith.constant 0 : index
    %988 = vector.load %arg2[%c13_551, %c0_552, %c0_553] : memref<26x256x256xbf16, #tpu.memory_space<vmem>>, vector<1x128x128xbf16>
    %989 = vector.shape_cast %988 : vector<1x128x128xbf16> to vector<128x128xbf16>
    %cst_554 = arith.constant dense<0.000000e+00> : vector<1x128xf32>
    %990 = tpu.matmul %987, %989, %cst_554 {dimension_numbers = #tpu.dot_dimension_numbers<[1], [0], [0], [1], [0, 0, 1, 1], [], []>} : vector<1x128xbf16>, vector<128x128xbf16>, vector<1x128xf32> -> vector<1x128xf32>
    %c28 = arith.constant 28 : index
    %c0_555 = arith.constant 0 : index
    %991 = vector.load %arg4[%c28, %c0_555] : memref<51x256xf32, #tpu.memory_space<vmem>>, vector<1x128xf32>
    %992 = arith.addf %990, %991 : vector<1x128xf32>
    %993 = arith.negf %992 : vector<1x128xf32>
    %994 = math.exp %993 : vector<1x128xf32>
    %cst_556 = arith.constant 1.000000e+00 : f32
    %995 = vector.broadcast %cst_556 : f32 to vector<1x128xf32>
    %996 = arith.addf %995, %994 : vector<1x128xf32>
    %997 = arith.divf %995, %996 : vector<1x128xf32>
    %998 = arith.mulf %992, %997 : vector<1x128xf32>
    %999 = arith.truncf %998 : vector<1x128xf32> to vector<1x128xbf16>
    %c14_557 = arith.constant 14 : index
    %c0_558 = arith.constant 0 : index
    %c0_559 = arith.constant 0 : index
    %1000 = vector.load %arg2[%c14_557, %c0_558, %c0_559] : memref<26x256x256xbf16, #tpu.memory_space<vmem>>, vector<1x128x128xbf16>
    %1001 = vector.shape_cast %1000 : vector<1x128x128xbf16> to vector<128x128xbf16>
    %cst_560 = arith.constant dense<0.000000e+00> : vector<1x128xf32>
    %1002 = tpu.matmul %999, %1001, %cst_560 {dimension_numbers = #tpu.dot_dimension_numbers<[1], [0], [0], [1], [0, 0, 1, 1], [], []>} : vector<1x128xbf16>, vector<128x128xbf16>, vector<1x128xf32> -> vector<1x128xf32>
    %c29 = arith.constant 29 : index
    %c0_561 = arith.constant 0 : index
    %1003 = vector.load %arg4[%c29, %c0_561] : memref<51x256xf32, #tpu.memory_space<vmem>>, vector<1x128xf32>
    %1004 = arith.addf %1002, %1003 : vector<1x128xf32>
    %1005 = arith.negf %1004 : vector<1x128xf32>
    %1006 = math.exp %1005 : vector<1x128xf32>
    %cst_562 = arith.constant 1.000000e+00 : f32
    %1007 = vector.broadcast %cst_562 : f32 to vector<1x128xf32>
    %1008 = arith.addf %1007, %1006 : vector<1x128xf32>
    %1009 = arith.divf %1007, %1008 : vector<1x128xf32>
    %1010 = vector.broadcast %1009 : vector<1x128xf32> to vector<4x128xf32>
    %1011 = arith.mulf %982, %1010 : vector<4x128xf32>
    %1012 = arith.truncf %1011 : vector<4x128xf32> to vector<4x128xbf16>
    %c15_563 = arith.constant 15 : index
    %c0_564 = arith.constant 0 : index
    %c0_565 = arith.constant 0 : index
    %1013 = vector.load %arg2[%c15_563, %c0_564, %c0_565] : memref<26x256x256xbf16, #tpu.memory_space<vmem>>, vector<1x128x128xbf16>
    %1014 = vector.shape_cast %1013 : vector<1x128x128xbf16> to vector<128x128xbf16>
    %cst_566 = arith.constant dense<0.000000e+00> : vector<4x128xf32>
    %1015 = tpu.matmul %1012, %1014, %cst_566 {dimension_numbers = #tpu.dot_dimension_numbers<[1], [0], [0], [1], [0, 0, 1, 1], [], []>} : vector<4x128xbf16>, vector<128x128xbf16>, vector<4x128xf32> -> vector<4x128xf32>
    %c30 = arith.constant 30 : index
    %c0_567 = arith.constant 0 : index
    %1016 = vector.load %arg4[%c30, %c0_567] : memref<51x256xf32, #tpu.memory_space<vmem>>, vector<1x128xf32>
    %1017 = vector.broadcast %1016 : vector<1x128xf32> to vector<4x128xf32>
    %1018 = arith.mulf %1015, %1017 : vector<4x128xf32>
    %c31 = arith.constant 31 : index
    %c0_568 = arith.constant 0 : index
    %1019 = vector.load %arg4[%c31, %c0_568] : memref<51x256xf32, #tpu.memory_space<vmem>>, vector<1x128xf32>
    %1020 = vector.broadcast %1019 : vector<1x128xf32> to vector<4x128xf32>
    %1021 = arith.addf %1018, %1020 : vector<4x128xf32>
    %1022 = arith.truncf %1021 : vector<4x128xf32> to vector<4x128xbf16>
    %c16_569 = arith.constant 16 : index
    %c0_570 = arith.constant 0 : index
    %c0_571 = arith.constant 0 : index
    %1023 = vector.load %arg2[%c16_569, %c0_570, %c0_571] : memref<26x256x256xbf16, #tpu.memory_space<vmem>>, vector<1x128x256xbf16>
    %1024 = vector.shape_cast %1023 : vector<1x128x256xbf16> to vector<128x256xbf16>
    %cst_572 = arith.constant dense<0.000000e+00> : vector<4x256xf32>
    %1025 = tpu.matmul %1022, %1024, %cst_572 {dimension_numbers = #tpu.dot_dimension_numbers<[1], [0], [0], [1], [0, 0, 1, 1], [], []>} : vector<4x128xbf16>, vector<128x256xbf16>, vector<4x256xf32> -> vector<4x256xf32>
    %c32 = arith.constant 32 : index
    %c0_573 = arith.constant 0 : index
    %1026 = vector.load %arg4[%c32, %c0_573] : memref<51x256xf32, #tpu.memory_space<vmem>>, vector<1x256xf32>
    %1027 = vector.broadcast %1026 : vector<1x256xf32> to vector<4x256xf32>
    %1028 = arith.mulf %1025, %1027 : vector<4x256xf32>
    %c33 = arith.constant 33 : index
    %c0_574 = arith.constant 0 : index
    %1029 = vector.load %arg4[%c33, %c0_574] : memref<51x256xf32, #tpu.memory_space<vmem>>, vector<1x256xf32>
    %1030 = vector.broadcast %1029 : vector<1x256xf32> to vector<4x256xf32>
    %1031 = arith.addf %1028, %1030 : vector<4x256xf32>
    %1032 = arith.negf %1031 : vector<4x256xf32>
    %1033 = math.exp %1032 : vector<4x256xf32>
    %cst_575 = arith.constant 1.000000e+00 : f32
    %1034 = vector.broadcast %cst_575 : f32 to vector<4x256xf32>
    %1035 = arith.addf %1034, %1033 : vector<4x256xf32>
    %1036 = arith.divf %1034, %1035 : vector<4x256xf32>
    %1037 = arith.mulf %1031, %1036 : vector<4x256xf32>
    %cst_576 = arith.constant 0.000000e+00 : f32
    %1038 = vector.broadcast %cst_576 : f32 to vector<2x6x256xf32>
    %cst_577 = arith.constant 0.000000e+00 : f32
    %1039 = vector.broadcast %cst_577 : f32 to vector<2x2x256xf32>
    %c0_578 = arith.constant 0 : index
    %c0_579 = arith.constant 0 : index
    %c0_580 = arith.constant 0 : index
    %1040 = vector.load %arg6[%c0_578, %c0_579, %c0_580] : memref<10x10x256xf32, #tpu.memory_space<vmem>>, vector<2x6x256xf32>
    tpu.vector_store %arg6[%c0_578, %c0_579, %c0_580], %1038 {strides = array<i32>} : memref<10x10x256xf32, #tpu.memory_space<vmem>>, vector<2x6x256xf32>,
    %c4_581 = arith.constant 4 : index
    %c0_582 = arith.constant 0 : index
    %c0_583 = arith.constant 0 : index
    %1041 = vector.load %arg6[%c4_581, %c0_582, %c0_583] : memref<10x10x256xf32, #tpu.memory_space<vmem>>, vector<2x6x256xf32>
    tpu.vector_store %arg6[%c4_581, %c0_582, %c0_583], %1038 {strides = array<i32>} : memref<10x10x256xf32, #tpu.memory_space<vmem>>, vector<2x6x256xf32>,
    %c2_584 = arith.constant 2 : index
    %c0_585 = arith.constant 0 : index
    %c0_586 = arith.constant 0 : index
    %1042 = vector.load %arg6[%c2_584, %c0_585, %c0_586] : memref<10x10x256xf32, #tpu.memory_space<vmem>>, vector<2x2x256xf32>
    tpu.vector_store %arg6[%c2_584, %c0_585, %c0_586], %1039 {strides = array<i32>} : memref<10x10x256xf32, #tpu.memory_space<vmem>>, vector<2x2x256xf32>,
    %c2_587 = arith.constant 2 : index
    %c4_588 = arith.constant 4 : index
    %c0_589 = arith.constant 0 : index
    %1043 = vector.load %arg6[%c2_587, %c4_588, %c0_589] : memref<10x10x256xf32, #tpu.memory_space<vmem>>, vector<2x2x256xf32>
    tpu.vector_store %arg6[%c2_587, %c4_588, %c0_589], %1039 {strides = array<i32>} : memref<10x10x256xf32, #tpu.memory_space<vmem>>, vector<2x2x256xf32>,
    %1044 = vector.extract_strided_slice %1037 {offsets = [0, 0], sizes = [2, 256], strides = [1, 1]} : vector<4x256xf32> to vector<2x256xf32>
    %c2_590 = arith.constant 2 : index
    %c2_591 = arith.constant 2 : index
    %c0_592 = arith.constant 0 : index
    %1045 = vector.load %arg6[%c2_590, %c2_591, %c0_592] : memref<10x10x256xf32, #tpu.memory_space<vmem>>, vector<1x2x256xf32>
    %1046 = vector.shape_cast %1045 : vector<1x2x256xf32> to vector<2x256xf32>
    %1047 = vector.shape_cast %1044 : vector<2x256xf32> to vector<1x2x256xf32>
    tpu.vector_store %arg6[%c2_590, %c2_591, %c0_592], %1047 {strides = array<i32>} : memref<10x10x256xf32, #tpu.memory_space<vmem>>, vector<1x2x256xf32>,
    %1048 = vector.extract_strided_slice %1037 {offsets = [2, 0], sizes = [2, 256], strides = [1, 1]} : vector<4x256xf32> to vector<2x256xf32>
    %c3_593 = arith.constant 3 : index
    %c2_594 = arith.constant 2 : index
    %c0_595 = arith.constant 0 : index
    %1049 = vector.load %arg6[%c3_593, %c2_594, %c0_595] : memref<10x10x256xf32, #tpu.memory_space<vmem>>, vector<1x2x256xf32>
    %1050 = vector.shape_cast %1049 : vector<1x2x256xf32> to vector<2x256xf32>
    %1051 = vector.shape_cast %1048 : vector<2x256xf32> to vector<1x2x256xf32>
    tpu.vector_store %arg6[%c3_593, %c2_594, %c0_595], %1051 {strides = array<i32>} : memref<10x10x256xf32, #tpu.memory_space<vmem>>, vector<1x2x256xf32>,
    %c34 = arith.constant 34 : index
    %c0_596 = arith.constant 0 : index
    %1052 = vector.load %arg4[%c34, %c0_596] : memref<51x256xf32, #tpu.memory_space<vmem>>, vector<1x256xf32>
    %c35 = arith.constant 35 : index
    %c0_597 = arith.constant 0 : index
    %1053 = vector.load %arg4[%c35, %c0_597] : memref<51x256xf32, #tpu.memory_space<vmem>>, vector<1x256xf32>
    %cst_598 = arith.constant 0.000000e+00 : f32
    %1054 = vector.broadcast %cst_598 : f32 to vector<2x2x256xf32>
    %c0_599 = arith.constant 0 : index
    %c0_600 = arith.constant 0 : index
    %c0_601 = arith.constant 0 : index
    %1055 = vector.load %arg6[%c0_599, %c0_600, %c0_601] : memref<10x10x256xf32, #tpu.memory_space<vmem>>, vector<2x6x256xf32>
    %c4_602 = arith.constant 4 : index
    %c0_603 = arith.constant 0 : index
    %c0_604 = arith.constant 0 : index
    %1056 = vector.load %arg3[%c4_602, %c0_603, %c0_604] : memref<6x32x256xf32, #tpu.memory_space<vmem>>, vector<1x1x256xf32>
    %1057 = vector.shape_cast %1056 : vector<1x1x256xf32> to vector<1x256xf32>
    %1058 = vector.shape_cast %1057 : vector<1x256xf32> to vector<1x1x256xf32>
    %1059 = vector.extract_strided_slice %1055 {offsets = [0, 0, 0], sizes = [2, 2, 256], strides = [1, 1, 1]} : vector<2x6x256xf32> to vector<2x2x256xf32>
    %1060 = vector.broadcast %1058 : vector<1x1x256xf32> to vector<2x2x256xf32>
    %1061 = arith.mulf %1059, %1060 : vector<2x2x256xf32>
    %1062 = arith.addf %1054, %1061 : vector<2x2x256xf32>
    %c4_605 = arith.constant 4 : index
    %c1_606 = arith.constant 1 : index
    %c0_607 = arith.constant 0 : index
    %1063 = vector.load %arg3[%c4_605, %c1_606, %c0_607] : memref<6x32x256xf32, #tpu.memory_space<vmem>>, vector<1x1x256xf32>
    %1064 = vector.shape_cast %1063 : vector<1x1x256xf32> to vector<1x256xf32>
    %1065 = vector.shape_cast %1064 : vector<1x256xf32> to vector<1x1x256xf32>
    %1066 = vector.extract_strided_slice %1055 {offsets = [0, 1, 0], sizes = [2, 2, 256], strides = [1, 1, 1]} : vector<2x6x256xf32> to vector<2x2x256xf32>
    %1067 = vector.broadcast %1065 : vector<1x1x256xf32> to vector<2x2x256xf32>
    %1068 = arith.mulf %1066, %1067 : vector<2x2x256xf32>
    %1069 = arith.addf %1062, %1068 : vector<2x2x256xf32>
    %c4_608 = arith.constant 4 : index
    %c2_609 = arith.constant 2 : index
    %c0_610 = arith.constant 0 : index
    %1070 = vector.load %arg3[%c4_608, %c2_609, %c0_610] : memref<6x32x256xf32, #tpu.memory_space<vmem>>, vector<1x1x256xf32>
    %1071 = vector.shape_cast %1070 : vector<1x1x256xf32> to vector<1x256xf32>
    %1072 = vector.shape_cast %1071 : vector<1x256xf32> to vector<1x1x256xf32>
    %1073 = vector.extract_strided_slice %1055 {offsets = [0, 2, 0], sizes = [2, 2, 256], strides = [1, 1, 1]} : vector<2x6x256xf32> to vector<2x2x256xf32>
    %1074 = vector.broadcast %1072 : vector<1x1x256xf32> to vector<2x2x256xf32>
    %1075 = arith.mulf %1073, %1074 : vector<2x2x256xf32>
    %1076 = arith.addf %1069, %1075 : vector<2x2x256xf32>
    %c4_611 = arith.constant 4 : index
    %c3_612 = arith.constant 3 : index
    %c0_613 = arith.constant 0 : index
    %1077 = vector.load %arg3[%c4_611, %c3_612, %c0_613] : memref<6x32x256xf32, #tpu.memory_space<vmem>>, vector<1x1x256xf32>
    %1078 = vector.shape_cast %1077 : vector<1x1x256xf32> to vector<1x256xf32>
    %1079 = vector.shape_cast %1078 : vector<1x256xf32> to vector<1x1x256xf32>
    %1080 = vector.extract_strided_slice %1055 {offsets = [0, 3, 0], sizes = [2, 2, 256], strides = [1, 1, 1]} : vector<2x6x256xf32> to vector<2x2x256xf32>
    %1081 = vector.broadcast %1079 : vector<1x1x256xf32> to vector<2x2x256xf32>
    %1082 = arith.mulf %1080, %1081 : vector<2x2x256xf32>
    %1083 = arith.addf %1076, %1082 : vector<2x2x256xf32>
    %c4_614 = arith.constant 4 : index
    %c4_615 = arith.constant 4 : index
    %c0_616 = arith.constant 0 : index
    %1084 = vector.load %arg3[%c4_614, %c4_615, %c0_616] : memref<6x32x256xf32, #tpu.memory_space<vmem>>, vector<1x1x256xf32>
    %1085 = vector.shape_cast %1084 : vector<1x1x256xf32> to vector<1x256xf32>
    %1086 = vector.shape_cast %1085 : vector<1x256xf32> to vector<1x1x256xf32>
    %1087 = vector.extract_strided_slice %1055 {offsets = [0, 4, 0], sizes = [2, 2, 256], strides = [1, 1, 1]} : vector<2x6x256xf32> to vector<2x2x256xf32>
    %1088 = vector.broadcast %1086 : vector<1x1x256xf32> to vector<2x2x256xf32>
    %1089 = arith.mulf %1087, %1088 : vector<2x2x256xf32>
    %1090 = arith.addf %1083, %1089 : vector<2x2x256xf32>
    %c1_617 = arith.constant 1 : index
    %c0_618 = arith.constant 0 : index
    %c0_619 = arith.constant 0 : index
    %1091 = vector.load %arg6[%c1_617, %c0_618, %c0_619] : memref<10x10x256xf32, #tpu.memory_space<vmem>>, vector<2x6x256xf32>
    %c4_620 = arith.constant 4 : index
    %c5_621 = arith.constant 5 : index
    %c0_622 = arith.constant 0 : index
    %1092 = vector.load %arg3[%c4_620, %c5_621, %c0_622] : memref<6x32x256xf32, #tpu.memory_space<vmem>>, vector<1x1x256xf32>
    %1093 = vector.shape_cast %1092 : vector<1x1x256xf32> to vector<1x256xf32>
    %1094 = vector.shape_cast %1093 : vector<1x256xf32> to vector<1x1x256xf32>
    %1095 = vector.extract_strided_slice %1091 {offsets = [0, 0, 0], sizes = [2, 2, 256], strides = [1, 1, 1]} : vector<2x6x256xf32> to vector<2x2x256xf32>
    %1096 = vector.broadcast %1094 : vector<1x1x256xf32> to vector<2x2x256xf32>
    %1097 = arith.mulf %1095, %1096 : vector<2x2x256xf32>
    %1098 = arith.addf %1090, %1097 : vector<2x2x256xf32>
    %c4_623 = arith.constant 4 : index
    %c6_624 = arith.constant 6 : index
    %c0_625 = arith.constant 0 : index
    %1099 = vector.load %arg3[%c4_623, %c6_624, %c0_625] : memref<6x32x256xf32, #tpu.memory_space<vmem>>, vector<1x1x256xf32>
    %1100 = vector.shape_cast %1099 : vector<1x1x256xf32> to vector<1x256xf32>
    %1101 = vector.shape_cast %1100 : vector<1x256xf32> to vector<1x1x256xf32>
    %1102 = vector.extract_strided_slice %1091 {offsets = [0, 1, 0], sizes = [2, 2, 256], strides = [1, 1, 1]} : vector<2x6x256xf32> to vector<2x2x256xf32>
    %1103 = vector.broadcast %1101 : vector<1x1x256xf32> to vector<2x2x256xf32>
    %1104 = arith.mulf %1102, %1103 : vector<2x2x256xf32>
    %1105 = arith.addf %1098, %1104 : vector<2x2x256xf32>
    %c4_626 = arith.constant 4 : index
    %c7_627 = arith.constant 7 : index
    %c0_628 = arith.constant 0 : index
    %1106 = vector.load %arg3[%c4_626, %c7_627, %c0_628] : memref<6x32x256xf32, #tpu.memory_space<vmem>>, vector<1x1x256xf32>
    %1107 = vector.shape_cast %1106 : vector<1x1x256xf32> to vector<1x256xf32>
    %1108 = vector.shape_cast %1107 : vector<1x256xf32> to vector<1x1x256xf32>
    %1109 = vector.extract_strided_slice %1091 {offsets = [0, 2, 0], sizes = [2, 2, 256], strides = [1, 1, 1]} : vector<2x6x256xf32> to vector<2x2x256xf32>
    %1110 = vector.broadcast %1108 : vector<1x1x256xf32> to vector<2x2x256xf32>
    %1111 = arith.mulf %1109, %1110 : vector<2x2x256xf32>
    %1112 = arith.addf %1105, %1111 : vector<2x2x256xf32>
    %c4_629 = arith.constant 4 : index
    %c8_630 = arith.constant 8 : index
    %c0_631 = arith.constant 0 : index
    %1113 = vector.load %arg3[%c4_629, %c8_630, %c0_631] : memref<6x32x256xf32, #tpu.memory_space<vmem>>, vector<1x1x256xf32>
    %1114 = vector.shape_cast %1113 : vector<1x1x256xf32> to vector<1x256xf32>
    %1115 = vector.shape_cast %1114 : vector<1x256xf32> to vector<1x1x256xf32>
    %1116 = vector.extract_strided_slice %1091 {offsets = [0, 3, 0], sizes = [2, 2, 256], strides = [1, 1, 1]} : vector<2x6x256xf32> to vector<2x2x256xf32>
    %1117 = vector.broadcast %1115 : vector<1x1x256xf32> to vector<2x2x256xf32>
    %1118 = arith.mulf %1116, %1117 : vector<2x2x256xf32>
    %1119 = arith.addf %1112, %1118 : vector<2x2x256xf32>
    %c4_632 = arith.constant 4 : index
    %c9_633 = arith.constant 9 : index
    %c0_634 = arith.constant 0 : index
    %1120 = vector.load %arg3[%c4_632, %c9_633, %c0_634] : memref<6x32x256xf32, #tpu.memory_space<vmem>>, vector<1x1x256xf32>
    %1121 = vector.shape_cast %1120 : vector<1x1x256xf32> to vector<1x256xf32>
    %1122 = vector.shape_cast %1121 : vector<1x256xf32> to vector<1x1x256xf32>
    %1123 = vector.extract_strided_slice %1091 {offsets = [0, 4, 0], sizes = [2, 2, 256], strides = [1, 1, 1]} : vector<2x6x256xf32> to vector<2x2x256xf32>
    %1124 = vector.broadcast %1122 : vector<1x1x256xf32> to vector<2x2x256xf32>
    %1125 = arith.mulf %1123, %1124 : vector<2x2x256xf32>
    %1126 = arith.addf %1119, %1125 : vector<2x2x256xf32>
    %c2_635 = arith.constant 2 : index
    %c0_636 = arith.constant 0 : index
    %c0_637 = arith.constant 0 : index
    %1127 = vector.load %arg6[%c2_635, %c0_636, %c0_637] : memref<10x10x256xf32, #tpu.memory_space<vmem>>, vector<2x6x256xf32>
    %c4_638 = arith.constant 4 : index
    %c10_639 = arith.constant 10 : index
    %c0_640 = arith.constant 0 : index
    %1128 = vector.load %arg3[%c4_638, %c10_639, %c0_640] : memref<6x32x256xf32, #tpu.memory_space<vmem>>, vector<1x1x256xf32>
    %1129 = vector.shape_cast %1128 : vector<1x1x256xf32> to vector<1x256xf32>
    %1130 = vector.shape_cast %1129 : vector<1x256xf32> to vector<1x1x256xf32>
    %1131 = vector.extract_strided_slice %1127 {offsets = [0, 0, 0], sizes = [2, 2, 256], strides = [1, 1, 1]} : vector<2x6x256xf32> to vector<2x2x256xf32>
    %1132 = vector.broadcast %1130 : vector<1x1x256xf32> to vector<2x2x256xf32>
    %1133 = arith.mulf %1131, %1132 : vector<2x2x256xf32>
    %1134 = arith.addf %1126, %1133 : vector<2x2x256xf32>
    %c4_641 = arith.constant 4 : index
    %c11_642 = arith.constant 11 : index
    %c0_643 = arith.constant 0 : index
    %1135 = vector.load %arg3[%c4_641, %c11_642, %c0_643] : memref<6x32x256xf32, #tpu.memory_space<vmem>>, vector<1x1x256xf32>
    %1136 = vector.shape_cast %1135 : vector<1x1x256xf32> to vector<1x256xf32>
    %1137 = vector.shape_cast %1136 : vector<1x256xf32> to vector<1x1x256xf32>
    %1138 = vector.extract_strided_slice %1127 {offsets = [0, 1, 0], sizes = [2, 2, 256], strides = [1, 1, 1]} : vector<2x6x256xf32> to vector<2x2x256xf32>
    %1139 = vector.broadcast %1137 : vector<1x1x256xf32> to vector<2x2x256xf32>
    %1140 = arith.mulf %1138, %1139 : vector<2x2x256xf32>
    %1141 = arith.addf %1134, %1140 : vector<2x2x256xf32>
    %c4_644 = arith.constant 4 : index
    %c12_645 = arith.constant 12 : index
    %c0_646 = arith.constant 0 : index
    %1142 = vector.load %arg3[%c4_644, %c12_645, %c0_646] : memref<6x32x256xf32, #tpu.memory_space<vmem>>, vector<1x1x256xf32>
    %1143 = vector.shape_cast %1142 : vector<1x1x256xf32> to vector<1x256xf32>
    %1144 = vector.shape_cast %1143 : vector<1x256xf32> to vector<1x1x256xf32>
    %1145 = vector.extract_strided_slice %1127 {offsets = [0, 2, 0], sizes = [2, 2, 256], strides = [1, 1, 1]} : vector<2x6x256xf32> to vector<2x2x256xf32>
    %1146 = vector.broadcast %1144 : vector<1x1x256xf32> to vector<2x2x256xf32>
    %1147 = arith.mulf %1145, %1146 : vector<2x2x256xf32>
    %1148 = arith.addf %1141, %1147 : vector<2x2x256xf32>
    %c4_647 = arith.constant 4 : index
    %c13_648 = arith.constant 13 : index
    %c0_649 = arith.constant 0 : index
    %1149 = vector.load %arg3[%c4_647, %c13_648, %c0_649] : memref<6x32x256xf32, #tpu.memory_space<vmem>>, vector<1x1x256xf32>
    %1150 = vector.shape_cast %1149 : vector<1x1x256xf32> to vector<1x256xf32>
    %1151 = vector.shape_cast %1150 : vector<1x256xf32> to vector<1x1x256xf32>
    %1152 = vector.extract_strided_slice %1127 {offsets = [0, 3, 0], sizes = [2, 2, 256], strides = [1, 1, 1]} : vector<2x6x256xf32> to vector<2x2x256xf32>
    %1153 = vector.broadcast %1151 : vector<1x1x256xf32> to vector<2x2x256xf32>
    %1154 = arith.mulf %1152, %1153 : vector<2x2x256xf32>
    %1155 = arith.addf %1148, %1154 : vector<2x2x256xf32>
    %c4_650 = arith.constant 4 : index
    %c14_651 = arith.constant 14 : index
    %c0_652 = arith.constant 0 : index
    %1156 = vector.load %arg3[%c4_650, %c14_651, %c0_652] : memref<6x32x256xf32, #tpu.memory_space<vmem>>, vector<1x1x256xf32>
    %1157 = vector.shape_cast %1156 : vector<1x1x256xf32> to vector<1x256xf32>
    %1158 = vector.shape_cast %1157 : vector<1x256xf32> to vector<1x1x256xf32>
    %1159 = vector.extract_strided_slice %1127 {offsets = [0, 4, 0], sizes = [2, 2, 256], strides = [1, 1, 1]} : vector<2x6x256xf32> to vector<2x2x256xf32>
    %1160 = vector.broadcast %1158 : vector<1x1x256xf32> to vector<2x2x256xf32>
    %1161 = arith.mulf %1159, %1160 : vector<2x2x256xf32>
    %1162 = arith.addf %1155, %1161 : vector<2x2x256xf32>
    %c3_653 = arith.constant 3 : index
    %c0_654 = arith.constant 0 : index
    %c0_655 = arith.constant 0 : index
    %1163 = vector.load %arg6[%c3_653, %c0_654, %c0_655] : memref<10x10x256xf32, #tpu.memory_space<vmem>>, vector<2x6x256xf32>
    %c4_656 = arith.constant 4 : index
    %c15_657 = arith.constant 15 : index
    %c0_658 = arith.constant 0 : index
    %1164 = vector.load %arg3[%c4_656, %c15_657, %c0_658] : memref<6x32x256xf32, #tpu.memory_space<vmem>>, vector<1x1x256xf32>
    %1165 = vector.shape_cast %1164 : vector<1x1x256xf32> to vector<1x256xf32>
    %1166 = vector.shape_cast %1165 : vector<1x256xf32> to vector<1x1x256xf32>
    %1167 = vector.extract_strided_slice %1163 {offsets = [0, 0, 0], sizes = [2, 2, 256], strides = [1, 1, 1]} : vector<2x6x256xf32> to vector<2x2x256xf32>
    %1168 = vector.broadcast %1166 : vector<1x1x256xf32> to vector<2x2x256xf32>
    %1169 = arith.mulf %1167, %1168 : vector<2x2x256xf32>
    %1170 = arith.addf %1162, %1169 : vector<2x2x256xf32>
    %c4_659 = arith.constant 4 : index
    %c16_660 = arith.constant 16 : index
    %c0_661 = arith.constant 0 : index
    %1171 = vector.load %arg3[%c4_659, %c16_660, %c0_661] : memref<6x32x256xf32, #tpu.memory_space<vmem>>, vector<1x1x256xf32>
    %1172 = vector.shape_cast %1171 : vector<1x1x256xf32> to vector<1x256xf32>
    %1173 = vector.shape_cast %1172 : vector<1x256xf32> to vector<1x1x256xf32>
    %1174 = vector.extract_strided_slice %1163 {offsets = [0, 1, 0], sizes = [2, 2, 256], strides = [1, 1, 1]} : vector<2x6x256xf32> to vector<2x2x256xf32>
    %1175 = vector.broadcast %1173 : vector<1x1x256xf32> to vector<2x2x256xf32>
    %1176 = arith.mulf %1174, %1175 : vector<2x2x256xf32>
    %1177 = arith.addf %1170, %1176 : vector<2x2x256xf32>
    %c4_662 = arith.constant 4 : index
    %c17_663 = arith.constant 17 : index
    %c0_664 = arith.constant 0 : index
    %1178 = vector.load %arg3[%c4_662, %c17_663, %c0_664] : memref<6x32x256xf32, #tpu.memory_space<vmem>>, vector<1x1x256xf32>
    %1179 = vector.shape_cast %1178 : vector<1x1x256xf32> to vector<1x256xf32>
    %1180 = vector.shape_cast %1179 : vector<1x256xf32> to vector<1x1x256xf32>
    %1181 = vector.extract_strided_slice %1163 {offsets = [0, 2, 0], sizes = [2, 2, 256], strides = [1, 1, 1]} : vector<2x6x256xf32> to vector<2x2x256xf32>
    %1182 = vector.broadcast %1180 : vector<1x1x256xf32> to vector<2x2x256xf32>
    %1183 = arith.mulf %1181, %1182 : vector<2x2x256xf32>
    %1184 = arith.addf %1177, %1183 : vector<2x2x256xf32>
    %c4_665 = arith.constant 4 : index
    %c18_666 = arith.constant 18 : index
    %c0_667 = arith.constant 0 : index
    %1185 = vector.load %arg3[%c4_665, %c18_666, %c0_667] : memref<6x32x256xf32, #tpu.memory_space<vmem>>, vector<1x1x256xf32>
    %1186 = vector.shape_cast %1185 : vector<1x1x256xf32> to vector<1x256xf32>
    %1187 = vector.shape_cast %1186 : vector<1x256xf32> to vector<1x1x256xf32>
    %1188 = vector.extract_strided_slice %1163 {offsets = [0, 3, 0], sizes = [2, 2, 256], strides = [1, 1, 1]} : vector<2x6x256xf32> to vector<2x2x256xf32>
    %1189 = vector.broadcast %1187 : vector<1x1x256xf32> to vector<2x2x256xf32>
    %1190 = arith.mulf %1188, %1189 : vector<2x2x256xf32>
    %1191 = arith.addf %1184, %1190 : vector<2x2x256xf32>
    %c4_668 = arith.constant 4 : index
    %c19_669 = arith.constant 19 : index
    %c0_670 = arith.constant 0 : index
    %1192 = vector.load %arg3[%c4_668, %c19_669, %c0_670] : memref<6x32x256xf32, #tpu.memory_space<vmem>>, vector<1x1x256xf32>
    %1193 = vector.shape_cast %1192 : vector<1x1x256xf32> to vector<1x256xf32>
    %1194 = vector.shape_cast %1193 : vector<1x256xf32> to vector<1x1x256xf32>
    %1195 = vector.extract_strided_slice %1163 {offsets = [0, 4, 0], sizes = [2, 2, 256], strides = [1, 1, 1]} : vector<2x6x256xf32> to vector<2x2x256xf32>
    %1196 = vector.broadcast %1194 : vector<1x1x256xf32> to vector<2x2x256xf32>
    %1197 = arith.mulf %1195, %1196 : vector<2x2x256xf32>
    %1198 = arith.addf %1191, %1197 : vector<2x2x256xf32>
    %c4_671 = arith.constant 4 : index
    %c0_672 = arith.constant 0 : index
    %c0_673 = arith.constant 0 : index
    %1199 = vector.load %arg6[%c4_671, %c0_672, %c0_673] : memref<10x10x256xf32, #tpu.memory_space<vmem>>, vector<2x6x256xf32>
    %c4_674 = arith.constant 4 : index
    %c20_675 = arith.constant 20 : index
    %c0_676 = arith.constant 0 : index
    %1200 = vector.load %arg3[%c4_674, %c20_675, %c0_676] : memref<6x32x256xf32, #tpu.memory_space<vmem>>, vector<1x1x256xf32>
    %1201 = vector.shape_cast %1200 : vector<1x1x256xf32> to vector<1x256xf32>
    %1202 = vector.shape_cast %1201 : vector<1x256xf32> to vector<1x1x256xf32>
    %1203 = vector.extract_strided_slice %1199 {offsets = [0, 0, 0], sizes = [2, 2, 256], strides = [1, 1, 1]} : vector<2x6x256xf32> to vector<2x2x256xf32>
    %1204 = vector.broadcast %1202 : vector<1x1x256xf32> to vector<2x2x256xf32>
    %1205 = arith.mulf %1203, %1204 : vector<2x2x256xf32>
    %1206 = arith.addf %1198, %1205 : vector<2x2x256xf32>
    %c4_677 = arith.constant 4 : index
    %c21_678 = arith.constant 21 : index
    %c0_679 = arith.constant 0 : index
    %1207 = vector.load %arg3[%c4_677, %c21_678, %c0_679] : memref<6x32x256xf32, #tpu.memory_space<vmem>>, vector<1x1x256xf32>
    %1208 = vector.shape_cast %1207 : vector<1x1x256xf32> to vector<1x256xf32>
    %1209 = vector.shape_cast %1208 : vector<1x256xf32> to vector<1x1x256xf32>
    %1210 = vector.extract_strided_slice %1199 {offsets = [0, 1, 0], sizes = [2, 2, 256], strides = [1, 1, 1]} : vector<2x6x256xf32> to vector<2x2x256xf32>
    %1211 = vector.broadcast %1209 : vector<1x1x256xf32> to vector<2x2x256xf32>
    %1212 = arith.mulf %1210, %1211 : vector<2x2x256xf32>
    %1213 = arith.addf %1206, %1212 : vector<2x2x256xf32>
    %c4_680 = arith.constant 4 : index
    %c22_681 = arith.constant 22 : index
    %c0_682 = arith.constant 0 : index
    %1214 = vector.load %arg3[%c4_680, %c22_681, %c0_682] : memref<6x32x256xf32, #tpu.memory_space<vmem>>, vector<1x1x256xf32>
    %1215 = vector.shape_cast %1214 : vector<1x1x256xf32> to vector<1x256xf32>
    %1216 = vector.shape_cast %1215 : vector<1x256xf32> to vector<1x1x256xf32>
    %1217 = vector.extract_strided_slice %1199 {offsets = [0, 2, 0], sizes = [2, 2, 256], strides = [1, 1, 1]} : vector<2x6x256xf32> to vector<2x2x256xf32>
    %1218 = vector.broadcast %1216 : vector<1x1x256xf32> to vector<2x2x256xf32>
    %1219 = arith.mulf %1217, %1218 : vector<2x2x256xf32>
    %1220 = arith.addf %1213, %1219 : vector<2x2x256xf32>
    %c4_683 = arith.constant 4 : index
    %c23_684 = arith.constant 23 : index
    %c0_685 = arith.constant 0 : index
    %1221 = vector.load %arg3[%c4_683, %c23_684, %c0_685] : memref<6x32x256xf32, #tpu.memory_space<vmem>>, vector<1x1x256xf32>
    %1222 = vector.shape_cast %1221 : vector<1x1x256xf32> to vector<1x256xf32>
    %1223 = vector.shape_cast %1222 : vector<1x256xf32> to vector<1x1x256xf32>
    %1224 = vector.extract_strided_slice %1199 {offsets = [0, 3, 0], sizes = [2, 2, 256], strides = [1, 1, 1]} : vector<2x6x256xf32> to vector<2x2x256xf32>
    %1225 = vector.broadcast %1223 : vector<1x1x256xf32> to vector<2x2x256xf32>
    %1226 = arith.mulf %1224, %1225 : vector<2x2x256xf32>
    %1227 = arith.addf %1220, %1226 : vector<2x2x256xf32>
    %c4_686 = arith.constant 4 : index
    %c24_687 = arith.constant 24 : index
    %c0_688 = arith.constant 0 : index
    %1228 = vector.load %arg3[%c4_686, %c24_687, %c0_688] : memref<6x32x256xf32, #tpu.memory_space<vmem>>, vector<1x1x256xf32>
    %1229 = vector.shape_cast %1228 : vector<1x1x256xf32> to vector<1x256xf32>
    %1230 = vector.shape_cast %1229 : vector<1x256xf32> to vector<1x1x256xf32>
    %1231 = vector.extract_strided_slice %1199 {offsets = [0, 4, 0], sizes = [2, 2, 256], strides = [1, 1, 1]} : vector<2x6x256xf32> to vector<2x2x256xf32>
    %1232 = vector.broadcast %1230 : vector<1x1x256xf32> to vector<2x2x256xf32>
    %1233 = arith.mulf %1231, %1232 : vector<2x2x256xf32>
    %1234 = arith.addf %1227, %1233 : vector<2x2x256xf32>
    %1235 = vector.shape_cast %1052 : vector<1x256xf32> to vector<1x1x256xf32>
    %1236 = vector.broadcast %1235 : vector<1x1x256xf32> to vector<2x2x256xf32>
    %1237 = arith.mulf %1234, %1236 : vector<2x2x256xf32>
    %1238 = vector.shape_cast %1053 : vector<1x256xf32> to vector<1x1x256xf32>
    %1239 = vector.broadcast %1238 : vector<1x1x256xf32> to vector<2x2x256xf32>
    %1240 = arith.addf %1237, %1239 : vector<2x2x256xf32>
    %1241 = arith.negf %1240 : vector<2x2x256xf32>
    %1242 = math.exp %1241 : vector<2x2x256xf32>
    %cst_689 = arith.constant 1.000000e+00 : f32
    %1243 = vector.broadcast %cst_689 : f32 to vector<2x2x256xf32>
    %1244 = arith.addf %1243, %1242 : vector<2x2x256xf32>
    %1245 = arith.divf %1243, %1244 : vector<2x2x256xf32>
    %1246 = arith.mulf %1240, %1245 : vector<2x2x256xf32>
    %1247 = vector.extract_strided_slice %1246 {offsets = [0, 0, 0], sizes = [1, 2, 256], strides = [1, 1, 1]} : vector<2x2x256xf32> to vector<1x2x256xf32>
    %1248 = vector.shape_cast %1247 : vector<1x2x256xf32> to vector<2x256xf32>
    %1249 = vector.extract_strided_slice %1246 {offsets = [1, 0, 0], sizes = [1, 2, 256], strides = [1, 1, 1]} : vector<2x2x256xf32> to vector<1x2x256xf32>
    %1250 = vector.shape_cast %1249 : vector<1x2x256xf32> to vector<2x256xf32>
    %1251 = tpu.concatenate %1248, %1250 in 0 : vector<2x256xf32>, vector<2x256xf32> -> vector<4x256xf32>
    %cst_690 = arith.constant dense<0.000000e+00> : vector<256xf32>
    %1252 = vector.multi_reduction <add>, %1251, %cst_690 [0] : vector<4x256xf32> to vector<256xf32>
    %1253 = vector.shape_cast %1252 : vector<256xf32> to vector<1x256xf32>
    %cst_691 = arith.constant 4.000000e+00 : f32
    %1254 = vector.broadcast %cst_691 : f32 to vector<1x256xf32>
    %1255 = arith.divf %1253, %1254 : vector<1x256xf32>
    %1256 = arith.truncf %1255 : vector<1x256xf32> to vector<1x256xbf16>
    %c17_692 = arith.constant 17 : index
    %c0_693 = arith.constant 0 : index
    %c0_694 = arith.constant 0 : index
    %1257 = vector.load %arg2[%c17_692, %c0_693, %c0_694] : memref<26x256x256xbf16, #tpu.memory_space<vmem>>, vector<1x256x128xbf16>
    %1258 = vector.shape_cast %1257 : vector<1x256x128xbf16> to vector<256x128xbf16>
    %cst_695 = arith.constant dense<0.000000e+00> : vector<1x128xf32>
    %1259 = tpu.matmul %1256, %1258, %cst_695 {dimension_numbers = #tpu.dot_dimension_numbers<[1], [0], [0], [1], [0, 0, 1, 1], [], []>} : vector<1x256xbf16>, vector<256x128xbf16>, vector<1x128xf32> -> vector<1x128xf32>
    %c36 = arith.constant 36 : index
    %c0_696 = arith.constant 0 : index
    %1260 = vector.load %arg4[%c36, %c0_696] : memref<51x256xf32, #tpu.memory_space<vmem>>, vector<1x128xf32>
    %1261 = arith.addf %1259, %1260 : vector<1x128xf32>
    %1262 = arith.negf %1261 : vector<1x128xf32>
    %1263 = math.exp %1262 : vector<1x128xf32>
    %cst_697 = arith.constant 1.000000e+00 : f32
    %1264 = vector.broadcast %cst_697 : f32 to vector<1x128xf32>
    %1265 = arith.addf %1264, %1263 : vector<1x128xf32>
    %1266 = arith.divf %1264, %1265 : vector<1x128xf32>
    %1267 = arith.mulf %1261, %1266 : vector<1x128xf32>
    %1268 = arith.truncf %1267 : vector<1x128xf32> to vector<1x128xbf16>
    %c18_698 = arith.constant 18 : index
    %c0_699 = arith.constant 0 : index
    %c0_700 = arith.constant 0 : index
    %1269 = vector.load %arg2[%c18_698, %c0_699, %c0_700] : memref<26x256x256xbf16, #tpu.memory_space<vmem>>, vector<1x128x256xbf16>
    %1270 = vector.shape_cast %1269 : vector<1x128x256xbf16> to vector<128x256xbf16>
    %cst_701 = arith.constant dense<0.000000e+00> : vector<1x256xf32>
    %1271 = tpu.matmul %1268, %1270, %cst_701 {dimension_numbers = #tpu.dot_dimension_numbers<[1], [0], [0], [1], [0, 0, 1, 1], [], []>} : vector<1x128xbf16>, vector<128x256xbf16>, vector<1x256xf32> -> vector<1x256xf32>
    %c37 = arith.constant 37 : index
    %c0_702 = arith.constant 0 : index
    %1272 = vector.load %arg4[%c37, %c0_702] : memref<51x256xf32, #tpu.memory_space<vmem>>, vector<1x256xf32>
    %1273 = arith.addf %1271, %1272 : vector<1x256xf32>
    %1274 = arith.negf %1273 : vector<1x256xf32>
    %1275 = math.exp %1274 : vector<1x256xf32>
    %cst_703 = arith.constant 1.000000e+00 : f32
    %1276 = vector.broadcast %cst_703 : f32 to vector<1x256xf32>
    %1277 = arith.addf %1276, %1275 : vector<1x256xf32>
    %1278 = arith.divf %1276, %1277 : vector<1x256xf32>
    %1279 = vector.broadcast %1278 : vector<1x256xf32> to vector<4x256xf32>
    %1280 = arith.mulf %1251, %1279 : vector<4x256xf32>
    %1281 = arith.truncf %1280 : vector<4x256xf32> to vector<4x256xbf16>
    %c19_704 = arith.constant 19 : index
    %c0_705 = arith.constant 0 : index
    %c0_706 = arith.constant 0 : index
    %1282 = vector.load %arg2[%c19_704, %c0_705, %c0_706] : memref<26x256x256xbf16, #tpu.memory_space<vmem>>, vector<1x256x128xbf16>
    %1283 = vector.shape_cast %1282 : vector<1x256x128xbf16> to vector<256x128xbf16>
    %cst_707 = arith.constant dense<0.000000e+00> : vector<4x128xf32>
    %1284 = tpu.matmul %1281, %1283, %cst_707 {dimension_numbers = #tpu.dot_dimension_numbers<[1], [0], [0], [1], [0, 0, 1, 1], [], []>} : vector<4x256xbf16>, vector<256x128xbf16>, vector<4x128xf32> -> vector<4x128xf32>
    %c38 = arith.constant 38 : index
    %c0_708 = arith.constant 0 : index
    %1285 = vector.load %arg4[%c38, %c0_708] : memref<51x256xf32, #tpu.memory_space<vmem>>, vector<1x128xf32>
    %1286 = vector.broadcast %1285 : vector<1x128xf32> to vector<4x128xf32>
    %1287 = arith.mulf %1284, %1286 : vector<4x128xf32>
    %c39 = arith.constant 39 : index
    %c0_709 = arith.constant 0 : index
    %1288 = vector.load %arg4[%c39, %c0_709] : memref<51x256xf32, #tpu.memory_space<vmem>>, vector<1x128xf32>
    %1289 = vector.broadcast %1288 : vector<1x128xf32> to vector<4x128xf32>
    %1290 = arith.addf %1287, %1289 : vector<4x128xf32>
    %1291 = arith.addf %1290, %1021 : vector<4x128xf32>
    %1292 = arith.truncf %1291 : vector<4x128xf32> to vector<4x128xbf16>
    %c20_710 = arith.constant 20 : index
    %c0_711 = arith.constant 0 : index
    %c0_712 = arith.constant 0 : index
    %1293 = vector.load %arg2[%c20_710, %c0_711, %c0_712] : memref<26x256x256xbf16, #tpu.memory_space<vmem>>, vector<1x128x256xbf16>
    %1294 = vector.shape_cast %1293 : vector<1x128x256xbf16> to vector<128x256xbf16>
    %cst_713 = arith.constant dense<0.000000e+00> : vector<4x256xf32>
    %1295 = tpu.matmul %1292, %1294, %cst_713 {dimension_numbers = #tpu.dot_dimension_numbers<[1], [0], [0], [1], [0, 0, 1, 1], [], []>} : vector<4x128xbf16>, vector<128x256xbf16>, vector<4x256xf32> -> vector<4x256xf32>
    %c40 = arith.constant 40 : index
    %c0_714 = arith.constant 0 : index
    %1296 = vector.load %arg4[%c40, %c0_714] : memref<51x256xf32, #tpu.memory_space<vmem>>, vector<1x256xf32>
    %1297 = vector.broadcast %1296 : vector<1x256xf32> to vector<4x256xf32>
    %1298 = arith.mulf %1295, %1297 : vector<4x256xf32>
    %c41 = arith.constant 41 : index
    %c0_715 = arith.constant 0 : index
    %1299 = vector.load %arg4[%c41, %c0_715] : memref<51x256xf32, #tpu.memory_space<vmem>>, vector<1x256xf32>
    %1300 = vector.broadcast %1299 : vector<1x256xf32> to vector<4x256xf32>
    %1301 = arith.addf %1298, %1300 : vector<4x256xf32>
    %1302 = arith.negf %1301 : vector<4x256xf32>
    %1303 = math.exp %1302 : vector<4x256xf32>
    %cst_716 = arith.constant 1.000000e+00 : f32
    %1304 = vector.broadcast %cst_716 : f32 to vector<4x256xf32>
    %1305 = arith.addf %1304, %1303 : vector<4x256xf32>
    %1306 = arith.divf %1304, %1305 : vector<4x256xf32>
    %1307 = arith.mulf %1301, %1306 : vector<4x256xf32>
    %cst_717 = arith.constant 0.000000e+00 : f32
    %1308 = vector.broadcast %cst_717 : f32 to vector<1x4x256xf32>
    %cst_718 = arith.constant 0.000000e+00 : f32
    %1309 = vector.broadcast %cst_718 : f32 to vector<2x1x256xf32>
    %c0_719 = arith.constant 0 : index
    %c0_720 = arith.constant 0 : index
    %c0_721 = arith.constant 0 : index
    %1310 = vector.load %arg6[%c0_719, %c0_720, %c0_721] : memref<10x10x256xf32, #tpu.memory_space<vmem>>, vector<1x4x256xf32>
    tpu.vector_store %arg6[%c0_719, %c0_720, %c0_721], %1308 {strides = array<i32>} : memref<10x10x256xf32, #tpu.memory_space<vmem>>, vector<1x4x256xf32>,
    %c3_722 = arith.constant 3 : index
    %c0_723 = arith.constant 0 : index
    %c0_724 = arith.constant 0 : index
    %1311 = vector.load %arg6[%c3_722, %c0_723, %c0_724] : memref<10x10x256xf32, #tpu.memory_space<vmem>>, vector<1x4x256xf32>
    tpu.vector_store %arg6[%c3_722, %c0_723, %c0_724], %1308 {strides = array<i32>} : memref<10x10x256xf32, #tpu.memory_space<vmem>>, vector<1x4x256xf32>,
    %c1_725 = arith.constant 1 : index
    %c0_726 = arith.constant 0 : index
    %c0_727 = arith.constant 0 : index
    %1312 = vector.load %arg6[%c1_725, %c0_726, %c0_727] : memref<10x10x256xf32, #tpu.memory_space<vmem>>, vector<2x1x256xf32>
    tpu.vector_store %arg6[%c1_725, %c0_726, %c0_727], %1309 {strides = array<i32>} : memref<10x10x256xf32, #tpu.memory_space<vmem>>, vector<2x1x256xf32>,
    %c1_728 = arith.constant 1 : index
    %c3_729 = arith.constant 3 : index
    %c0_730 = arith.constant 0 : index
    %1313 = vector.load %arg6[%c1_728, %c3_729, %c0_730] : memref<10x10x256xf32, #tpu.memory_space<vmem>>, vector<2x1x256xf32>
    tpu.vector_store %arg6[%c1_728, %c3_729, %c0_730], %1309 {strides = array<i32>} : memref<10x10x256xf32, #tpu.memory_space<vmem>>, vector<2x1x256xf32>,
    %1314 = vector.extract_strided_slice %1307 {offsets = [0, 0], sizes = [2, 256], strides = [1, 1]} : vector<4x256xf32> to vector<2x256xf32>
    %c1_731 = arith.constant 1 : index
    %c1_732 = arith.constant 1 : index
    %c0_733 = arith.constant 0 : index
    %1315 = vector.load %arg6[%c1_731, %c1_732, %c0_733] : memref<10x10x256xf32, #tpu.memory_space<vmem>>, vector<1x2x256xf32>
    %1316 = vector.shape_cast %1315 : vector<1x2x256xf32> to vector<2x256xf32>
    %1317 = vector.shape_cast %1314 : vector<2x256xf32> to vector<1x2x256xf32>
    tpu.vector_store %arg6[%c1_731, %c1_732, %c0_733], %1317 {strides = array<i32>} : memref<10x10x256xf32, #tpu.memory_space<vmem>>, vector<1x2x256xf32>,
    %1318 = vector.extract_strided_slice %1307 {offsets = [2, 0], sizes = [2, 256], strides = [1, 1]} : vector<4x256xf32> to vector<2x256xf32>
    %c2_734 = arith.constant 2 : index
    %c1_735 = arith.constant 1 : index
    %c0_736 = arith.constant 0 : index
    %1319 = vector.load %arg6[%c2_734, %c1_735, %c0_736] : memref<10x10x256xf32, #tpu.memory_space<vmem>>, vector<1x2x256xf32>
    %1320 = vector.shape_cast %1319 : vector<1x2x256xf32> to vector<2x256xf32>
    %1321 = vector.shape_cast %1318 : vector<2x256xf32> to vector<1x2x256xf32>
    tpu.vector_store %arg6[%c2_734, %c1_735, %c0_736], %1321 {strides = array<i32>} : memref<10x10x256xf32, #tpu.memory_space<vmem>>, vector<1x2x256xf32>,
    %c42 = arith.constant 42 : index
    %c0_737 = arith.constant 0 : index
    %1322 = vector.load %arg4[%c42, %c0_737] : memref<51x256xf32, #tpu.memory_space<vmem>>, vector<1x256xf32>
    %c43 = arith.constant 43 : index
    %c0_738 = arith.constant 0 : index
    %1323 = vector.load %arg4[%c43, %c0_738] : memref<51x256xf32, #tpu.memory_space<vmem>>, vector<1x256xf32>
    %cst_739 = arith.constant 0.000000e+00 : f32
    %1324 = vector.broadcast %cst_739 : f32 to vector<2x2x256xf32>
    %c0_740 = arith.constant 0 : index
    %c0_741 = arith.constant 0 : index
    %c0_742 = arith.constant 0 : index
    %1325 = vector.load %arg6[%c0_740, %c0_741, %c0_742] : memref<10x10x256xf32, #tpu.memory_space<vmem>>, vector<2x4x256xf32>
    %c5_743 = arith.constant 5 : index
    %c0_744 = arith.constant 0 : index
    %c0_745 = arith.constant 0 : index
    %1326 = vector.load %arg3[%c5_743, %c0_744, %c0_745] : memref<6x32x256xf32, #tpu.memory_space<vmem>>, vector<1x1x256xf32>
    %1327 = vector.shape_cast %1326 : vector<1x1x256xf32> to vector<1x256xf32>
    %1328 = vector.shape_cast %1327 : vector<1x256xf32> to vector<1x1x256xf32>
    %1329 = vector.extract_strided_slice %1325 {offsets = [0, 0, 0], sizes = [2, 2, 256], strides = [1, 1, 1]} : vector<2x4x256xf32> to vector<2x2x256xf32>
    %1330 = vector.broadcast %1328 : vector<1x1x256xf32> to vector<2x2x256xf32>
    %1331 = arith.mulf %1329, %1330 : vector<2x2x256xf32>
    %1332 = arith.addf %1324, %1331 : vector<2x2x256xf32>
    %c5_746 = arith.constant 5 : index
    %c1_747 = arith.constant 1 : index
    %c0_748 = arith.constant 0 : index
    %1333 = vector.load %arg3[%c5_746, %c1_747, %c0_748] : memref<6x32x256xf32, #tpu.memory_space<vmem>>, vector<1x1x256xf32>
    %1334 = vector.shape_cast %1333 : vector<1x1x256xf32> to vector<1x256xf32>
    %1335 = vector.shape_cast %1334 : vector<1x256xf32> to vector<1x1x256xf32>
    %1336 = vector.extract_strided_slice %1325 {offsets = [0, 1, 0], sizes = [2, 2, 256], strides = [1, 1, 1]} : vector<2x4x256xf32> to vector<2x2x256xf32>
    %1337 = vector.broadcast %1335 : vector<1x1x256xf32> to vector<2x2x256xf32>
    %1338 = arith.mulf %1336, %1337 : vector<2x2x256xf32>
    %1339 = arith.addf %1332, %1338 : vector<2x2x256xf32>
    %c5_749 = arith.constant 5 : index
    %c2_750 = arith.constant 2 : index
    %c0_751 = arith.constant 0 : index
    %1340 = vector.load %arg3[%c5_749, %c2_750, %c0_751] : memref<6x32x256xf32, #tpu.memory_space<vmem>>, vector<1x1x256xf32>
    %1341 = vector.shape_cast %1340 : vector<1x1x256xf32> to vector<1x256xf32>
    %1342 = vector.shape_cast %1341 : vector<1x256xf32> to vector<1x1x256xf32>
    %1343 = vector.extract_strided_slice %1325 {offsets = [0, 2, 0], sizes = [2, 2, 256], strides = [1, 1, 1]} : vector<2x4x256xf32> to vector<2x2x256xf32>
    %1344 = vector.broadcast %1342 : vector<1x1x256xf32> to vector<2x2x256xf32>
    %1345 = arith.mulf %1343, %1344 : vector<2x2x256xf32>
    %1346 = arith.addf %1339, %1345 : vector<2x2x256xf32>
    %c1_752 = arith.constant 1 : index
    %c0_753 = arith.constant 0 : index
    %c0_754 = arith.constant 0 : index
    %1347 = vector.load %arg6[%c1_752, %c0_753, %c0_754] : memref<10x10x256xf32, #tpu.memory_space<vmem>>, vector<2x4x256xf32>
    %c5_755 = arith.constant 5 : index
    %c3_756 = arith.constant 3 : index
    %c0_757 = arith.constant 0 : index
    %1348 = vector.load %arg3[%c5_755, %c3_756, %c0_757] : memref<6x32x256xf32, #tpu.memory_space<vmem>>, vector<1x1x256xf32>
    %1349 = vector.shape_cast %1348 : vector<1x1x256xf32> to vector<1x256xf32>
    %1350 = vector.shape_cast %1349 : vector<1x256xf32> to vector<1x1x256xf32>
    %1351 = vector.extract_strided_slice %1347 {offsets = [0, 0, 0], sizes = [2, 2, 256], strides = [1, 1, 1]} : vector<2x4x256xf32> to vector<2x2x256xf32>
    %1352 = vector.broadcast %1350 : vector<1x1x256xf32> to vector<2x2x256xf32>
    %1353 = arith.mulf %1351, %1352 : vector<2x2x256xf32>
    %1354 = arith.addf %1346, %1353 : vector<2x2x256xf32>
    %c5_758 = arith.constant 5 : index
    %c4_759 = arith.constant 4 : index
    %c0_760 = arith.constant 0 : index
    %1355 = vector.load %arg3[%c5_758, %c4_759, %c0_760] : memref<6x32x256xf32, #tpu.memory_space<vmem>>, vector<1x1x256xf32>
    %1356 = vector.shape_cast %1355 : vector<1x1x256xf32> to vector<1x256xf32>
    %1357 = vector.shape_cast %1356 : vector<1x256xf32> to vector<1x1x256xf32>
    %1358 = vector.extract_strided_slice %1347 {offsets = [0, 1, 0], sizes = [2, 2, 256], strides = [1, 1, 1]} : vector<2x4x256xf32> to vector<2x2x256xf32>
    %1359 = vector.broadcast %1357 : vector<1x1x256xf32> to vector<2x2x256xf32>
    %1360 = arith.mulf %1358, %1359 : vector<2x2x256xf32>
    %1361 = arith.addf %1354, %1360 : vector<2x2x256xf32>
    %c5_761 = arith.constant 5 : index
    %c5_762 = arith.constant 5 : index
    %c0_763 = arith.constant 0 : index
    %1362 = vector.load %arg3[%c5_761, %c5_762, %c0_763] : memref<6x32x256xf32, #tpu.memory_space<vmem>>, vector<1x1x256xf32>
    %1363 = vector.shape_cast %1362 : vector<1x1x256xf32> to vector<1x256xf32>
    %1364 = vector.shape_cast %1363 : vector<1x256xf32> to vector<1x1x256xf32>
    %1365 = vector.extract_strided_slice %1347 {offsets = [0, 2, 0], sizes = [2, 2, 256], strides = [1, 1, 1]} : vector<2x4x256xf32> to vector<2x2x256xf32>
    %1366 = vector.broadcast %1364 : vector<1x1x256xf32> to vector<2x2x256xf32>
    %1367 = arith.mulf %1365, %1366 : vector<2x2x256xf32>
    %1368 = arith.addf %1361, %1367 : vector<2x2x256xf32>
    %c2_764 = arith.constant 2 : index
    %c0_765 = arith.constant 0 : index
    %c0_766 = arith.constant 0 : index
    %1369 = vector.load %arg6[%c2_764, %c0_765, %c0_766] : memref<10x10x256xf32, #tpu.memory_space<vmem>>, vector<2x4x256xf32>
    %c5_767 = arith.constant 5 : index
    %c6_768 = arith.constant 6 : index
    %c0_769 = arith.constant 0 : index
    %1370 = vector.load %arg3[%c5_767, %c6_768, %c0_769] : memref<6x32x256xf32, #tpu.memory_space<vmem>>, vector<1x1x256xf32>
    %1371 = vector.shape_cast %1370 : vector<1x1x256xf32> to vector<1x256xf32>
    %1372 = vector.shape_cast %1371 : vector<1x256xf32> to vector<1x1x256xf32>
    %1373 = vector.extract_strided_slice %1369 {offsets = [0, 0, 0], sizes = [2, 2, 256], strides = [1, 1, 1]} : vector<2x4x256xf32> to vector<2x2x256xf32>
    %1374 = vector.broadcast %1372 : vector<1x1x256xf32> to vector<2x2x256xf32>
    %1375 = arith.mulf %1373, %1374 : vector<2x2x256xf32>
    %1376 = arith.addf %1368, %1375 : vector<2x2x256xf32>
    %c5_770 = arith.constant 5 : index
    %c7_771 = arith.constant 7 : index
    %c0_772 = arith.constant 0 : index
    %1377 = vector.load %arg3[%c5_770, %c7_771, %c0_772] : memref<6x32x256xf32, #tpu.memory_space<vmem>>, vector<1x1x256xf32>
    %1378 = vector.shape_cast %1377 : vector<1x1x256xf32> to vector<1x256xf32>
    %1379 = vector.shape_cast %1378 : vector<1x256xf32> to vector<1x1x256xf32>
    %1380 = vector.extract_strided_slice %1369 {offsets = [0, 1, 0], sizes = [2, 2, 256], strides = [1, 1, 1]} : vector<2x4x256xf32> to vector<2x2x256xf32>
    %1381 = vector.broadcast %1379 : vector<1x1x256xf32> to vector<2x2x256xf32>
    %1382 = arith.mulf %1380, %1381 : vector<2x2x256xf32>
    %1383 = arith.addf %1376, %1382 : vector<2x2x256xf32>
    %c5_773 = arith.constant 5 : index
    %c8_774 = arith.constant 8 : index
    %c0_775 = arith.constant 0 : index
    %1384 = vector.load %arg3[%c5_773, %c8_774, %c0_775] : memref<6x32x256xf32, #tpu.memory_space<vmem>>, vector<1x1x256xf32>
    %1385 = vector.shape_cast %1384 : vector<1x1x256xf32> to vector<1x256xf32>
    %1386 = vector.shape_cast %1385 : vector<1x256xf32> to vector<1x1x256xf32>
    %1387 = vector.extract_strided_slice %1369 {offsets = [0, 2, 0], sizes = [2, 2, 256], strides = [1, 1, 1]} : vector<2x4x256xf32> to vector<2x2x256xf32>
    %1388 = vector.broadcast %1386 : vector<1x1x256xf32> to vector<2x2x256xf32>
    %1389 = arith.mulf %1387, %1388 : vector<2x2x256xf32>
    %1390 = arith.addf %1383, %1389 : vector<2x2x256xf32>
    %1391 = vector.shape_cast %1322 : vector<1x256xf32> to vector<1x1x256xf32>
    %1392 = vector.broadcast %1391 : vector<1x1x256xf32> to vector<2x2x256xf32>
    %1393 = arith.mulf %1390, %1392 : vector<2x2x256xf32>
    %1394 = vector.shape_cast %1323 : vector<1x256xf32> to vector<1x1x256xf32>
    %1395 = vector.broadcast %1394 : vector<1x1x256xf32> to vector<2x2x256xf32>
    %1396 = arith.addf %1393, %1395 : vector<2x2x256xf32>
    %1397 = arith.negf %1396 : vector<2x2x256xf32>
    %1398 = math.exp %1397 : vector<2x2x256xf32>
    %cst_776 = arith.constant 1.000000e+00 : f32
    %1399 = vector.broadcast %cst_776 : f32 to vector<2x2x256xf32>
    %1400 = arith.addf %1399, %1398 : vector<2x2x256xf32>
    %1401 = arith.divf %1399, %1400 : vector<2x2x256xf32>
    %1402 = arith.mulf %1396, %1401 : vector<2x2x256xf32>
    %1403 = vector.extract_strided_slice %1402 {offsets = [0, 0, 0], sizes = [1, 2, 256], strides = [1, 1, 1]} : vector<2x2x256xf32> to vector<1x2x256xf32>
    %1404 = vector.shape_cast %1403 : vector<1x2x256xf32> to vector<2x256xf32>
    %1405 = vector.extract_strided_slice %1402 {offsets = [1, 0, 0], sizes = [1, 2, 256], strides = [1, 1, 1]} : vector<2x2x256xf32> to vector<1x2x256xf32>
    %1406 = vector.shape_cast %1405 : vector<1x2x256xf32> to vector<2x256xf32>
    %1407 = tpu.concatenate %1404, %1406 in 0 : vector<2x256xf32>, vector<2x256xf32> -> vector<4x256xf32>
    %cst_777 = arith.constant dense<0.000000e+00> : vector<256xf32>
    %1408 = vector.multi_reduction <add>, %1407, %cst_777 [0] : vector<4x256xf32> to vector<256xf32>
    %1409 = vector.shape_cast %1408 : vector<256xf32> to vector<1x256xf32>
    %cst_778 = arith.constant 4.000000e+00 : f32
    %1410 = vector.broadcast %cst_778 : f32 to vector<1x256xf32>
    %1411 = arith.divf %1409, %1410 : vector<1x256xf32>
    %1412 = arith.truncf %1411 : vector<1x256xf32> to vector<1x256xbf16>
    %c21_779 = arith.constant 21 : index
    %c0_780 = arith.constant 0 : index
    %c0_781 = arith.constant 0 : index
    %1413 = vector.load %arg2[%c21_779, %c0_780, %c0_781] : memref<26x256x256xbf16, #tpu.memory_space<vmem>>, vector<1x256x128xbf16>
    %1414 = vector.shape_cast %1413 : vector<1x256x128xbf16> to vector<256x128xbf16>
    %cst_782 = arith.constant dense<0.000000e+00> : vector<1x128xf32>
    %1415 = tpu.matmul %1412, %1414, %cst_782 {dimension_numbers = #tpu.dot_dimension_numbers<[1], [0], [0], [1], [0, 0, 1, 1], [], []>} : vector<1x256xbf16>, vector<256x128xbf16>, vector<1x128xf32> -> vector<1x128xf32>
    %c44 = arith.constant 44 : index
    %c0_783 = arith.constant 0 : index
    %1416 = vector.load %arg4[%c44, %c0_783] : memref<51x256xf32, #tpu.memory_space<vmem>>, vector<1x128xf32>
    %1417 = arith.addf %1415, %1416 : vector<1x128xf32>
    %1418 = arith.negf %1417 : vector<1x128xf32>
    %1419 = math.exp %1418 : vector<1x128xf32>
    %cst_784 = arith.constant 1.000000e+00 : f32
    %1420 = vector.broadcast %cst_784 : f32 to vector<1x128xf32>
    %1421 = arith.addf %1420, %1419 : vector<1x128xf32>
    %1422 = arith.divf %1420, %1421 : vector<1x128xf32>
    %1423 = arith.mulf %1417, %1422 : vector<1x128xf32>
    %1424 = arith.truncf %1423 : vector<1x128xf32> to vector<1x128xbf16>
    %c22_785 = arith.constant 22 : index
    %c0_786 = arith.constant 0 : index
    %c0_787 = arith.constant 0 : index
    %1425 = vector.load %arg2[%c22_785, %c0_786, %c0_787] : memref<26x256x256xbf16, #tpu.memory_space<vmem>>, vector<1x128x256xbf16>
    %1426 = vector.shape_cast %1425 : vector<1x128x256xbf16> to vector<128x256xbf16>
    %cst_788 = arith.constant dense<0.000000e+00> : vector<1x256xf32>
    %1427 = tpu.matmul %1424, %1426, %cst_788 {dimension_numbers = #tpu.dot_dimension_numbers<[1], [0], [0], [1], [0, 0, 1, 1], [], []>} : vector<1x128xbf16>, vector<128x256xbf16>, vector<1x256xf32> -> vector<1x256xf32>
    %c45 = arith.constant 45 : index
    %c0_789 = arith.constant 0 : index
    %1428 = vector.load %arg4[%c45, %c0_789] : memref<51x256xf32, #tpu.memory_space<vmem>>, vector<1x256xf32>
    %1429 = arith.addf %1427, %1428 : vector<1x256xf32>
    %1430 = arith.negf %1429 : vector<1x256xf32>
    %1431 = math.exp %1430 : vector<1x256xf32>
    %cst_790 = arith.constant 1.000000e+00 : f32
    %1432 = vector.broadcast %cst_790 : f32 to vector<1x256xf32>
    %1433 = arith.addf %1432, %1431 : vector<1x256xf32>
    %1434 = arith.divf %1432, %1433 : vector<1x256xf32>
    %1435 = vector.broadcast %1434 : vector<1x256xf32> to vector<4x256xf32>
    %1436 = arith.mulf %1407, %1435 : vector<4x256xf32>
    %1437 = arith.truncf %1436 : vector<4x256xf32> to vector<4x256xbf16>
    %c23_791 = arith.constant 23 : index
    %c0_792 = arith.constant 0 : index
    %c0_793 = arith.constant 0 : index
    %1438 = vector.load %arg2[%c23_791, %c0_792, %c0_793] : memref<26x256x256xbf16, #tpu.memory_space<vmem>>, vector<1x256x128xbf16>
    %1439 = vector.shape_cast %1438 : vector<1x256x128xbf16> to vector<256x128xbf16>
    %cst_794 = arith.constant dense<0.000000e+00> : vector<4x128xf32>
    %1440 = tpu.matmul %1437, %1439, %cst_794 {dimension_numbers = #tpu.dot_dimension_numbers<[1], [0], [0], [1], [0, 0, 1, 1], [], []>} : vector<4x256xbf16>, vector<256x128xbf16>, vector<4x128xf32> -> vector<4x128xf32>
    %c46 = arith.constant 46 : index
    %c0_795 = arith.constant 0 : index
    %1441 = vector.load %arg4[%c46, %c0_795] : memref<51x256xf32, #tpu.memory_space<vmem>>, vector<1x128xf32>
    %1442 = vector.broadcast %1441 : vector<1x128xf32> to vector<4x128xf32>
    %1443 = arith.mulf %1440, %1442 : vector<4x128xf32>
    %c47 = arith.constant 47 : index
    %c0_796 = arith.constant 0 : index
    %1444 = vector.load %arg4[%c47, %c0_796] : memref<51x256xf32, #tpu.memory_space<vmem>>, vector<1x128xf32>
    %1445 = vector.broadcast %1444 : vector<1x128xf32> to vector<4x128xf32>
    %1446 = arith.addf %1443, %1445 : vector<4x128xf32>
    %1447 = arith.truncf %1446 : vector<4x128xf32> to vector<4x128xbf16>
    %c24_797 = arith.constant 24 : index
    %c0_798 = arith.constant 0 : index
    %c0_799 = arith.constant 0 : index
    %1448 = vector.load %arg2[%c24_797, %c0_798, %c0_799] : memref<26x256x256xbf16, #tpu.memory_space<vmem>>, vector<1x128x128xbf16>
    %1449 = vector.shape_cast %1448 : vector<1x128x128xbf16> to vector<128x128xbf16>
    %cst_800 = arith.constant dense<0.000000e+00> : vector<4x128xf32>
    %1450 = tpu.matmul %1447, %1449, %cst_800 {dimension_numbers = #tpu.dot_dimension_numbers<[1], [0], [0], [1], [0, 0, 1, 1], [], []>} : vector<4x128xbf16>, vector<128x128xbf16>, vector<4x128xf32> -> vector<4x128xf32>
    %c48 = arith.constant 48 : index
    %c0_801 = arith.constant 0 : index
    %1451 = vector.load %arg4[%c48, %c0_801] : memref<51x256xf32, #tpu.memory_space<vmem>>, vector<1x128xf32>
    %1452 = vector.broadcast %1451 : vector<1x128xf32> to vector<4x128xf32>
    %1453 = arith.mulf %1450, %1452 : vector<4x128xf32>
    %c49 = arith.constant 49 : index
    %c0_802 = arith.constant 0 : index
    %1454 = vector.load %arg4[%c49, %c0_802] : memref<51x256xf32, #tpu.memory_space<vmem>>, vector<1x128xf32>
    %1455 = vector.broadcast %1454 : vector<1x128xf32> to vector<4x128xf32>
    %1456 = arith.addf %1453, %1455 : vector<4x128xf32>
    %1457 = arith.negf %1456 : vector<4x128xf32>
    %1458 = math.exp %1457 : vector<4x128xf32>
    %cst_803 = arith.constant 1.000000e+00 : f32
    %1459 = vector.broadcast %cst_803 : f32 to vector<4x128xf32>
    %1460 = arith.addf %1459, %1458 : vector<4x128xf32>
    %1461 = arith.divf %1459, %1460 : vector<4x128xf32>
    %1462 = arith.mulf %1456, %1461 : vector<4x128xf32>
    %cst_804 = arith.constant dense<0.000000e+00> : vector<128xf32>
    %1463 = vector.multi_reduction <add>, %1462, %cst_804 [0] : vector<4x128xf32> to vector<128xf32>
    %1464 = vector.shape_cast %1463 : vector<128xf32> to vector<1x128xf32>
    %cst_805 = arith.constant 4.000000e+00 : f32
    %1465 = vector.broadcast %cst_805 : f32 to vector<1x128xf32>
    %1466 = arith.divf %1464, %1465 : vector<1x128xf32>
    %1467 = arith.truncf %1466 : vector<1x128xf32> to vector<1x128xbf16>
    %c25_806 = arith.constant 25 : index
    %c0_807 = arith.constant 0 : index
    %c0_808 = arith.constant 0 : index
    %1468 = vector.load %arg2[%c25_806, %c0_807, %c0_808] : memref<26x256x256xbf16, #tpu.memory_space<vmem>>, vector<1x128x128xbf16>
    %1469 = vector.shape_cast %1468 : vector<1x128x128xbf16> to vector<128x128xbf16>
    %cst_809 = arith.constant dense<0.000000e+00> : vector<1x128xf32>
    %1470 = tpu.matmul %1467, %1469, %cst_809 {dimension_numbers = #tpu.dot_dimension_numbers<[1], [0], [0], [1], [0, 0, 1, 1], [], []>} : vector<1x128xbf16>, vector<128x128xbf16>, vector<1x128xf32> -> vector<1x128xf32>
    %c50 = arith.constant 50 : index
    %c0_810 = arith.constant 0 : index
    %1471 = vector.load %arg4[%c50, %c0_810] : memref<51x256xf32, #tpu.memory_space<vmem>>, vector<1x128xf32>
    %1472 = arith.addf %1470, %1471 : vector<1x128xf32>
    %c0_811 = arith.constant 0 : index
    %c0_812 = arith.constant 0 : index
    %c0_813 = arith.constant 0 : index
    %1473 = vector.load %arg5[%c0_811, %c0_812, %c0_813] : memref<1x1x128xf32, #tpu.memory_space<vmem>>, vector<1x1x128xf32>
    %1474 = vector.shape_cast %1473 : vector<1x1x128xf32> to vector<1x128xf32>
    %1475 = vector.shape_cast %1472 : vector<1x128xf32> to vector<1x1x128xf32>
    tpu.vector_store %arg5[%c0_811, %c0_812, %c0_813], %1475 {strides = array<i32>} : memref<1x1x128xf32, #tpu.memory_space<vmem>>, vector<1x1x128xf32>,
    return
  }
  func.func @transform_0(%arg0: i32) -> (i32, i32, i32) {
    %c0_i32 = arith.constant 0 : i32
    %c0_i32_0 = arith.constant 0 : i32
    %c0_i32_1 = arith.constant 0 : i32
    return %arg0, %c0_i32, %c0_i32_0 : i32, i32, i32
  }
  func.func @transform_1(%arg0: i32) -> (i32, i32, i32) {
    %c0_i32 = arith.constant 0 : i32
    %c0_i32_0 = arith.constant 0 : i32
    %c0_i32_1 = arith.constant 0 : i32
    %c0_i32_2 = arith.constant 0 : i32
    return %c0_i32, %c0_i32_0, %c0_i32_1 : i32, i32, i32
  }
  func.func @transform_2(%arg0: i32) -> (i32, i32, i32) {
    %c0_i32 = arith.constant 0 : i32
    %c0_i32_0 = arith.constant 0 : i32
    %c0_i32_1 = arith.constant 0 : i32
    %c0_i32_2 = arith.constant 0 : i32
    return %c0_i32, %c0_i32_0, %c0_i32_1 : i32, i32, i32
  }
  func.func @transform_3(%arg0: i32) -> (i32, i32) {
    %c0_i32 = arith.constant 0 : i32
    %c0_i32_0 = arith.constant 0 : i32
    %c0_i32_1 = arith.constant 0 : i32
    return %c0_i32, %c0_i32_0 : i32, i32
  }
  func.func @transform_4(%arg0: i32) -> (i32, i32, i32) {
    %c0_i32 = arith.constant 0 : i32
    %c0_i32_0 = arith.constant 0 : i32
    %c0_i32_1 = arith.constant 0 : i32
    return %arg0, %c0_i32, %c0_i32_0 : i32, i32, i32
  }
}

</mosaic_0001>

<bundles_post_ra>
// kernel: supernet_forward.1
= control target key start
LH: loop header
LB: loop body
LE: loop exit
PB: predicated region body
PF: predicated region fallthrough
CT: control target
= control target key end

     0   :  { %9 = vsyncpa [#allocation4], 0  ;;  %s11483_s0 = inlined_call_operand.vmem [shape: f32[2,64,128], index: 0, kind: input, shape index: {}]   ;;  %s11484_s1 = inlined_call_operand.hbm [shape: bf16[26,256,256], index: 1, kind: input, shape index: {}]   ;;  %s11485_s2 = inlined_call_operand.hbm [shape: f32[6,32,256], index: 2, kind: input, shape index: {}]   ;;  %s11486_s3 = inlined_call_operand.hbm [shape: f32[51,256], index: 3, kind: input, shape index: {}]   ;;  %s11487_s4 = inlined_call_operand.hbm [shape: f32[2,1,128], index: 4, kind: output, shape index: {}]  }
   0x1   :  { %10 = vsyncpa [#allocation7], 0 }
   0x2   :  { %11 = vsyncpa [#allocation5], 0 }
   0x3   :  { %13 = vsyncpa [#allocation5 + $0x1], 0  ;;  %s9529_s15 = smov 0   ;;  %s9531_s16 = smov 0  }
   0x4   :  { %s9533_s17 = smov 0   ;;  %s9535_s18 = smov 0  }
   0x5 LB: > { %s9550_s19 = sadd.s32 4294967295, %s9491_s18   ;;  %s7664_s20 = sadd.s32 4294967294, %s9491_s18   ;;  %s9491_s18 = sphi %s9535_s18, %s11647_s18   ;;  %s9487_s17 = sphi %s9533_s17, %s11646_s17   ;;  %s9483_s16 = sphi %s9531_s16, %s11645_s16   ;;  %s9479_s15 = sphi %s9529_s15, %s11644_s15  }
   0x6   : > { %s9554_s21 = sadd.s32 1, %s9491_s18   ;;  %s115_s22 = sadd.s32 1, %s9487_s17 }
   0x7   : > { %s112_s23 = ssub.s32 %s9491_s18, %s9554_s21  ;;  %p125_p0 = scmp.ne.s32.totalorder %s9487_s17, %s9483_s16 }
   0x8   : > { %p113_p1 = scmp.eq.s32.totalorder %s112_s23, 0  ;;  %p126_p2 = scmp.eq.s32.totalorder %s9550_s19, 1 }
   0x9   : > { %p131_p3 = scmp.ne.s32.totalorder %s9483_s16, %s9479_s15  ;;  %p132_p4 = scmp.eq.s32.totalorder %s7664_s20, 1 }
   0xa   : > { %s9565_s24 = scalar_select %p113_p1, %s9487_s17, %s115_s22  }
   0xb   : > { %p9567_p5 = por %p126_p2, %p125_p0  ;;  %p9571_p6 = por %p132_p4, %p131_p3 }
   0xc   : > { %p7665_p7 = scmp.ge.s32.totalorder %s9491_s18, 1  ;;  %p139_p8 = scmp.lt.s32.totalorder %s9491_s18, 3 }
   0xd   : > { %p8727_p9 = scmp.eq.s32.totalorder %s9550_s19, 0  ;;  %s9493_s28 = smov [#allocation6]  }
   0xe   : > { %p9578_p10 = pnand %p7665_p7, %p139_p8  ;;  %s164_s29 = sshll.u32 %s9493_s28, 4  ;;  %s165_s29 = int_to_ptr.vmem [resolvable:$true] %s164_s29 }
   0xf   : > { %s9494_s5 = smov [#allocation3]   ;;  %s9356_s7 = scalar_lea.vmem %s165_s29, 6144 }
  0x10   : > { %p8713_p11 = pneg %p9578_p10  ;;  %s151_s6 = sshll.u32 %s9494_s5, 4  ;;  %s152_s6 = int_to_ptr.vmem [resolvable:$true] %s151_s6 }
  0x11   : > { %p9357_p0 = scmp.ne.s32.totalorder %s165_s29, %s9356_s7  ;;  %p9364_p3 = scmp.lt.s32.totalorder %s165_s29, %s165_s29 }
  0x12   : > { %p9586_p12 = pnand %p8727_p9, %p8713_p11  ;;  %p9365_p4 = scmp.lt.s32.totalorder %s9356_s7, %s9356_s7 }
  0x14   : > { %p9347_p13 = pneg %p9586_p12  ;;  %p9366_p7 = por %p9365_p4, %p9364_p3 }
  0x16   : > { %p9359_p1 = pnand %p9357_p0, %p9347_p13 }
  0x18   : > { %p9360_p2 = pneg %p9359_p1 }
  0x1a   : > { %p9367_p8 = pnand %p9366_p7, %p9360_p2 }
  0x1c   : > { %9370 = shalt.err (!%p9367_p8)
}
  0x1d   : > { %s9495_s8 = smov 256   ;;  %s9496_s9 = smov 16  }
  0x1e   : > { %8719 = dma.hbm_to_vmem [thread:$0]  (!%p9586_p12), %s11485_s2, 6144, %s165_s29, [#allocation7], %s9495_s8, %s9495_s8, %s9496_s9  }
  0x1f   : > { %s9382_s12 = scalar_lea.vmem %s152_s6, 106496  ;;  %p9390_p2 = scmp.lt.s32.totalorder %s152_s6, %s152_s6 }
  0x20   : > { %p9383_p11 = scmp.ne.s32.totalorder %s152_s6, %s9382_s12  ;;  %p9391_p3 = scmp.lt.s32.totalorder %s9382_s12, %s9382_s12 }
  0x22   : > { %p9385_p0 = pnand %p9383_p11, %p9347_p13  ;;  %p9392_p4 = por %p9391_p3, %p9390_p2 }
  0x24   : > { %p9386_p1 = pneg %p9385_p0 }
  0x26   : > { %p9393_p7 = pnand %p9392_p4, %p9386_p1 }
  0x28   : > { %9396 = shalt.err (!%p9393_p7)
}
  0x29   : > { %s9497_s13 = smov 128   ;;  %s9498_s14 = smov 8  }
  0x2a   : > { %8716 = dma.hbm_to_vmem [thread:$0]  (!%p9586_p12), %s11484_s1, 106496, %s152_s6, [#allocation4], %s9497_s13, %s9497_s13, %s9498_s14  }
  0x2b   : > { %s9499_s23 = smov [#allocation8]  }
  0x2c   : > { %s177_s28 = sshll.u32 %s9499_s23, 4  ;;  %s178_s28 = int_to_ptr.vmem [resolvable:$true] %s177_s28 }
  0x2d   : > { %s9408_s29 = scalar_lea.vmem %s178_s28, 1792  ;;  %p9416_p1 = scmp.lt.s32.totalorder %s178_s28, %s178_s28 }
  0x2e   : > { %p9409_p8 = scmp.ne.s32.totalorder %s178_s28, %s9408_s29  ;;  %p9417_p2 = scmp.lt.s32.totalorder %s9408_s29, %s9408_s29 }
  0x30   : > { %p9411_p11 = pnand %p9409_p8, %p9347_p13  ;;  %p9418_p3 = por %p9417_p2, %p9416_p1 }
  0x32   : > { %p9412_p0 = pneg %p9411_p11 }
  0x34   : > { %p9419_p4 = pnand %p9418_p3, %p9412_p0 }
  0x36   : > { %9422 = shalt.err (!%p9419_p4)
}
  0x37   : > { %8722 = dma.hbm_to_vmem [thread:$0]  (!%p9586_p12), %s11486_s3, 1792, %s178_s28, [#allocation7], %s9495_s8, %s9495_s8, %s9496_s9  }
  0x38   : > { %201 = sbr.rel (%p9578_p10) target bundleno = 7055 (0x1b8f), region = 36 }
  0x3d   : > { %9466 = dma.done.wait (%p8727_p9), [#allocation4], 106496  }
  0x3e   : > { %9468 = vsyncadd (%p8727_p9), [#allocation4], 4294860800 }
  0x3f   : > { %9470 = dma.done.wait (%p8727_p9), [#allocation7], 7936  }
  0x40   : > { %9472 = vsyncadd (%p8727_p9), [#allocation7], 4294959360  ;;  %p234_p13 = scmp.lt.s32.totalorder %s9550_s19, 1  ;;  %v8776_v0 = vld [vmem:[#allocation3 + $0x70] ss:$8 sps:$4 sm:$0xff]   ;;  %v9500_v20 = vmov 0.0  }
  0x41   : > { %v8777_v1 = vld [vmem:[#allocation3 + $0x60] ss:$8 sps:$4 sm:$0xff]   ;;  %8297 = vmatprep.subr.bf16.mxu0 %v8776_v0  ;;  %v8778_v2 = vld [vmem:[#allocation3 + $0x50] ss:$8 sps:$4 sm:$0xff]   ;;  %463 = vst [vmem:[#allocation2 + $0x60] sm:$0x1] %v9500_v20  ;;  %8321 = vmatprep.subr.bf16.mxu1 %v9500_v20 }
  0x42   : > { %s235_s30 = scalar_select %p234_p13, %s9550_s19, 1  ;;  %8298 = vmatpush3.bf16.msra.mxu0 %v8776_v0  ;;  %v8779_v3 = vld [vmem:[#allocation3 + $0x40] ss:$8 sps:$4 sm:$0xff]   ;;  %v8780_v7 = vld [vmem:[#allocation3 + $0x30] ss:$8 sps:$4 sm:$0xff]   ;;  %1755 = vst [vmem:[#allocation2 + $0x120] sm:$0xff] %v9500_v20 }
  0x43   : > { %8299 = vmatprep.subr.bf16.mxu0 %v8777_v1  ;;  %v8781_v8 = vld [vmem:[#allocation3 + $0x20] ss:$8 sps:$4 sm:$0xff]   ;;  %v8782_v9 = vld [vmem:[#allocation3 + $0x10] ss:$8 sps:$4 sm:$0xff]   ;;  %471 = vst [vmem:[#allocation2 + $0x71] sm:$0x1] %v9500_v20 }
  0x44   : > { %s8025_s27 = sshll.u32 %s235_s30, 6  ;;  %v8783_v10 = vld [vmem:[#allocation3] ss:$8 sps:$4 sm:$0xff]   ;;  %456 = vst [vmem:[#allocation2 + $0x10] sm:$0x3] %v9500_v20  ;;  %2908 = vst [vmem:[#allocation2] sm:$0xff] %v9500_v20 }
  0x45   : > { %s238_s9 = scalar_lea.vmem %s11483_s0, %s8025_s27  ;;  %459 = vst [vmem:[#allocation2 + $0x130] sm:$0x3] %v9500_v20  ;;  %461 = vst [vmem:[#allocation2 + $0x20] sm:$0x1] %v9500_v20  ;;  %v8784_v22 = vld [vmem:[#allocation3 + $0x170] ss:$8 sps:$4 sm:$0xff]  }
  0x46   : > { %8300 = vmatpush3.bf16.msra.mxu0 %v8777_v1  ;;  %v240_v4 = vld [vmem:[%s238_s9] sm:$0xff]  ;;  %v241_v5 = vld [vmem:[%s238_s9 + $0x8] sm:$0xff]  ;;  %v242_v11 = vld [vmem:[%s238_s9 + $0x10] sm:$0xff]  ;;  %462 = vst [vmem:[#allocation2 + $0x40] sm:$0x1] %v9500_v20  ;;  %8322 = vmatpush3.bf16.msra.mxu1 %v8784_v22  ;;  %vm9501_vm0 = vmmov 0  }
  0x47   : > { %8301 = vmatprep.subr.bf16.mxu0 %v8778_v2  ;;  %v248_v6 = vpack.c.bf16 %v241_v5, %v240_v4  ;;  %v243_v12 = vld [vmem:[%s238_s9 + $0x18] sm:$0xff]  ;;  %v244_v13 = vld [vmem:[%s238_s9 + $0x20] sm:$0xff]  ;;  %v245_v14 = vld [vmem:[%s238_s9 + $0x28] sm:$0xff]  ;;  %464 = vst [vmem:[#allocation2 + $0x80] sm:$0x1] %v9500_v20  ;;  %8323 = vmatprep.subr.bf16.mxu1 %v9500_v20  ;;  %vm585_vm1 = vcmask 1046528  }
  0x48   : > { %v249_v15 = vpack.c.bf16 %v243_v12, %v242_v11  ;;  %v250_v16 = vpack.c.bf16 %v245_v14, %v244_v13  ;;  %v246_v17 = vld [vmem:[%s238_s9 + $0x30] sm:$0xff]  ;;  %v247_v18 = vld [vmem:[%s238_s9 + $0x38] sm:$0xff]  ;;  %465 = vst [vmem:[#allocation2 + $0xa0] sm:$0x1] %v9500_v20  ;;  %466 = vst [vmem:[#allocation2 + $0xc0] sm:$0x1] %v9500_v20  ;;  %8337 = vmatprep.mubr.msk.bf16.mxu1 %vm9501_vm0, %v9500_v20 }
  0x49   : > { %8313 = vmatprep.mubr.bf16.mxu0 %v248_v6  ;;  %v251_v19 = vpack.c.bf16 %v247_v18, %v246_v17  ;;  %467 = vst [vmem:[#allocation2 + $0xe0] sm:$0x1] %v9500_v20  ;;  %468 = vst [vmem:[#allocation2 + $0x100] sm:$0x1] %v9500_v20  ;;  %v8785_v23 = vld [vmem:[#allocation3 + $0x160] ss:$8 sps:$4 sm:$0xff]  }
  0x4a   : > { %8302 = vmatpush3.bf16.msra.mxu0 %v8778_v2  ;;  %469 = vst [vmem:[#allocation2 + $0x31] sm:$0x1] %v9500_v20  ;;  %470 = vst [vmem:[#allocation2 + $0x51] sm:$0x1] %v9500_v20  ;;  %v8786_v24 = vld [vmem:[#allocation3 + $0x150] ss:$8 sps:$4 sm:$0xff]   ;;  %8324 = vmatpush3.bf16.msra.mxu1 %v8785_v23 }
  0x4b   : > { %8303 = vmatprep.subr.bf16.mxu0 %v8779_v3  ;;  %472 = vst [vmem:[#allocation2 + $0x91] sm:$0x1] %v9500_v20  ;;  %473 = vst [vmem:[#allocation2 + $0xb1] sm:$0x1] %v9500_v20  ;;  %v9668_v21 = vld [vmem:[#allocation2 + $0x10] sm:$0x3]  ;;  %8325 = vmatprep.subr.bf16.mxu1 %v9500_v20 }
  0x4c   : > { %474 = vst [vmem:[#allocation2 + $0xd1] sm:$0x1] %v9500_v20  ;;  %475 = vst [vmem:[#allocation2 + $0xf1] sm:$0x1] %v9500_v20  ;;  %v8787_v25 = vld [vmem:[#allocation3 + $0x140] ss:$8 sps:$4 sm:$0xff]  }
  0x4d   : > { %476 = vst [vmem:[#allocation2 + $0x111] sm:$0x1] %v9500_v20  ;;  %4769 = vst [vmem:[#allocation2 + $0x8] sm:$0x3f] %v9500_v20  ;;  %v8788_v26 = vld [vmem:[#allocation3 + $0x130] ss:$8 sps:$4 sm:$0xff]  }
  0x4e   : > { %8304 = vmatpush3.bf16.msra.mxu0 %v8779_v3  ;;  %4771 = vst [vmem:[#allocation2 + $0x28] sm:$0x3f] %v9500_v20  ;;  %4773 = vst [vmem:[#allocation2 + $0x88] sm:$0x3f] %v9500_v20  ;;  %8326 = vmatpush3.bf16.msra.mxu1 %v8786_v24  ;;  %v8789_v27 = vld [vmem:[#allocation3 + $0x120] ss:$8 sps:$4 sm:$0xff]  }
  0x4f   : > { %8305 = vmatprep.subr.bf16.mxu0 %v8780_v7  ;;  %4775 = vst [vmem:[#allocation2 + $0xa8] sm:$0x3f] %v9500_v20  ;;  %4777 = vst [vmem:[#allocation2 + $0x48] sm:$0x3] %v9500_v20  ;;  %8327 = vmatprep.subr.bf16.mxu1 %v9500_v20  ;;  %v8790_v28 = vld [vmem:[#allocation3 + $0x110] ss:$8 sps:$4 sm:$0xff]  }
  0x50   : > { %4779 = vst [vmem:[#allocation2 + $0x68] sm:$0x3] %v9500_v20  ;;  %4781 = vst [vmem:[#allocation2 + $0x48] sm:$0x30] %v9500_v20  ;;  %v8791_v29 = vld [vmem:[#allocation3 + $0x100] ss:$8 sps:$4 sm:$0xff]  }
  0x51   : > { %4783 = vst [vmem:[#allocation2 + $0x68] sm:$0x30] %v9500_v20  ;;  %3949 = vst [vmem:[#allocation2] sm:$0x3f] %v9500_v20  ;;  %v9682_v30 = vld [vmem:[#allocation2 + $0x130] sm:$0x3] }
  0x52   : > { %8306 = vmatpush3.bf16.msra.mxu0 %v8780_v7  ;;  %1754 = vst [vmem:[#allocation2 + $0x10] sm:$0x3] %v9500_v20  ;;  %8328 = vmatpush3.bf16.msra.mxu1 %v8787_v25  ;;  %1756 = vst [vmem:[#allocation2 + $0x130] sm:$0x3] %v9500_v20  ;;  %v381_v31 = vld [vmem:[#allocation8] ss:$0 sm:$0xff] }
  0x53   : > { %8307 = vmatprep.subr.bf16.mxu0 %v8781_v8  ;;  %8329 = vmatprep.subr.bf16.mxu1 %v9500_v20  ;;  %v390_v33 = vld [vmem:[#allocation8 + $0x1] ss:$0 sm:$0xff]  ;;  %vm659_vm2 = vcmask 1045504   ;;  %vm1899_vm4 = vcmask 64512   ;;  %vm2423_vm5 = vcmask 1043456   ;;  %vm4024_vm6 = vcmask 31744  }
  0x54   : > { %vm4232_vm7 = vcmask 1041408   ;;  %s232_s10 = sand.u32 1, %s9483_s16   ;;  %s8022_s11 = sshll.u32 %s9550_s19, 4 }
  0x55   : > { %s233_s12 = scalar_lea.vmem [#allocation9], %s232_s10  ;;  %s11442_s22 = scalar_lea.hbm %s11487_s4, %s8022_s11 }
  0x56   : > { %8308 = vmatpush3.bf16.msra.mxu0 %v8781_v8  ;;  %8330 = vmatpush3.bf16.msra.mxu1 %v8788_v26  ;;  %v9716_v26 = vld [vmem:[#allocation6] ss:$0 sm:$0xff]  ;;  %s7543_s13 = sshll.u32 %s233_s12, 4  ;;  %s7531_s23 = scalar_lea.sflag [#allocation5], %s232_s10  ;;  %s11444_s13 = int_to_ptr.vmem [resolvable:$true] %s7543_s13 }
  0x57   : > { %8309 = vmatprep.subr.bf16.mxu0 %v8782_v9  ;;  %8331 = vmatprep.subr.bf16.mxu1 %v9500_v20  ;;  %s9423_s28 = scalar_lea.vmem %s11444_s13, 16  ;;  %s9503_s19 = smov [#allocation9]  }
  0x58   : > { %p9424_p9 = scmp.ne.s32.totalorder %s11444_s13, %s9423_s28  ;;  %s9427_s29 = sshll.u32 %s9503_s19, 4  ;;  %s9428_s29 = int_to_ptr.vmem [resolvable:$false] %s9427_s29 }
  0x59   : > { %s9429_s5 = scalar_lea.vmem %s9428_s29, 32  ;;  %p9430_p7 = scmp.lt.s32.totalorder %s11444_s13, %s9428_s29 }
  0x5a   : > { %8310 = vmatpush3.bf16.msra.mxu0 %v8782_v9  ;;  %8332 = vmatpush3.bf16.msra.mxu1 %v8789_v27  ;;  %p9425_p10 = pnand %p9424_p9, %p9567_p5  ;;  %p9431_p8 = scmp.lt.s32.totalorder %s9429_s5, %s9423_s28 }
  0x5b   : > { %8311 = vmatprep.subr.bf16.mxu0 %v8783_v10  ;;  %8333 = vmatprep.subr.bf16.mxu1 %v9500_v20 }
  0x5c   : > { %p9426_p12 = pneg %p9425_p10  ;;  %p9432_p11 = por %p9431_p8, %p9430_p7 }
  0x5e   : > { %8312 = vmatpush3.bf16.msra.mxu0 %v8783_v10  ;;  %8334 = vmatpush3.bf16.msra.mxu1 %v8790_v28  ;;  %v9709_v10 = vld [vmem:[#allocation6 + $0x1] ss:$0 sm:$0xff]  ;;  %p9433_p0 = pnand %p9432_p11, %p9426_p12 }
  0x5f   : > { %8341 = vmatprep.subr.bf16.mxu0 %v9500_v20  ;;  %8335 = vmatprep.subr.bf16.mxu1 %v9500_v20  ;;  %v553_v14 = vmul.f32 0.0, %v9709_v10 }
  0x61   : > { %8314 = vmatmul.mubr.bf16.vlgmr.msra.gmra.mxu0 %v249_v15  ;;  %v554_v15 = vmul.f32 %v9709_v10, %v9668_v21  ;;  %v586_v23 = vrot.slane %v553_v14, 1 }
  0x62   : > { %8317 = vmatprep.mubr.bf16.mxu0 %v250_v16  ;;  %8336 = vmatpush3.bf16.msra.mxu1 %v8791_v29 }
  0x63   : > { %v587_v24 = vrot.slane %v554_v15, 1 }
  0x69   : > { %8318 = vmatmul.mubr.bf16.gmra.mxu0 %v251_v19  ;;  %v9714_v19 = vld [vmem:[#allocation6 + $0x2] ss:$0 sm:$0xff] }
  0x6a   : > { %8357 = vmatprep.mubr.msk.bf16.mxu0 %vm9501_vm0, %v9500_v20  ;;  %v627_v28 = vmul.f32 0.0, %v9714_v19  ;;  %v628_v29 = vmul.f32 %v9714_v19, %v9668_v21 }
 0x121   : > { %v8315_v32 = vpop.f32.mrf.mxu0 }
 0x122   : > { %v384_v34 = vmul.f32 %v8315_v32, %v381_v31 }
 0x123   : > { %v350_v35 = vpop.f32.mrf.mxu0 }
 0x124   : > { %v9685_v36 = vadd.f32 %v390_v33, %v384_v34  ;;  %v382_v37 = vmul.f32 %v381_v31, %v350_v35  ;;  %v536_v34 = vmul.f32 0.0, %v9716_v26  ;;  %v588_v35 = vsel %vm585_vm1, %v586_v23, %v587_v24 }
 0x125   : > { %v8316_v38 = vpop.f32.mrf.mxu0 }
 0x126   : > { %v7686_v39 = vmul.f32 -1.442695, %v9685_v36  ;;  %v9688_v40 = vadd.f32 %v390_v33, %v382_v37  ;;  %v385_v41 = vmul.f32 %v8316_v38, %v381_v31  ;;  %v9730_v37 = vld [vmem:[#allocation6 + $0x7] ss:$0 sm:$0xff] }
 0x127   : > { %v353_v42 = vpop.f32.mrf.mxu0  ;;  %v929_v21 = vmul.f32 %v9730_v37, %v9682_v30 }
 0x128   : > { %9080 = vpow2.f32 %v7686_v39  ;;  %v7684_v43 = vmul.f32 -1.442695, %v9688_v40  ;;  %v9691_v44 = vadd.f32 %v390_v33, %v385_v41  ;;  %v383_v45 = vmul.f32 %v381_v31, %v353_v42 }
 0x129   : > { %v8319_v46 = vpop.f32.mrf.mxu0  ;;  %v928_v39 = vmul.f32 0.0, %v9730_v37 }
 0x12a   : > { %9082 = vpow2.f32 %v7684_v43  ;;  %v7687_v47 = vmul.f32 -1.442695, %v9691_v44  ;;  %v9694_v48 = vadd.f32 %v390_v33, %v383_v45  ;;  %v388_v49 = vmul.f32 %v8319_v46, %v381_v31 }
 0x12b   : > { %v366_v50 = vpop.f32.mrf.mxu0  ;;  %v660_v45 = vrot.slane %v627_v28, 2  ;;  %v661_v46 = vrot.slane %v628_v29, 2 }
 0x12c   : > { %9084 = vpow2.f32 %v7687_v47  ;;  %v7685_v51 = vmul.f32 -1.442695, %v9694_v48  ;;  %v9697_v52 = vadd.f32 %v390_v33, %v388_v49  ;;  %v386_v53 = vmul.f32 %v381_v31, %v366_v50 }
 0x12d   : > { %v8320_v54 = vpop.f32.mrf.mxu0 }
 0x12e   : > { %9086 = vpow2.f32 %v7685_v51  ;;  %v7690_v55 = vmul.f32 -1.442695, %v9697_v52  ;;  %v9700_v56 = vadd.f32 %v390_v33, %v386_v53  ;;  %v389_v57 = vmul.f32 %v8320_v54, %v381_v31 }
 0x12f   : > { %v369_v58 = vpop.f32.mrf.mxu0  ;;  %v618_v51 = vadd.f32 %v588_v35, %v536_v34  ;;  %v967_v53 = vrot.slane %v928_v39, 1  ;;  %v968_v54 = vrot.slane %v929_v21, 1 }
 0x130   : > { %9088 = vpow2.f32 %v7690_v55  ;;  %v7688_v59 = vmul.f32 -1.442695, %v9700_v56  ;;  %v9703_v60 = vadd.f32 %v390_v33, %v389_v57  ;;  %v387_v61 = vmul.f32 %v381_v31, %v369_v58 }
 0x132   : > { %9090 = vpow2.f32 %v7688_v59  ;;  %v7691_v62 = vmul.f32 -1.442695, %v9703_v60  ;;  %v9706_v63 = vadd.f32 %v390_v33, %v387_v61  ;;  %v662_v59 = vsel %vm659_vm2, %v660_v45, %v661_v46 }
 0x134   : > { %9092 = vpow2.f32 %v7691_v62  ;;  %v7689_v0 = vmul.f32 -1.442695, %v9706_v63 }
 0x135   : > { %v9081_v1 = vpop.eup %9080 }
 0x136   : > { %v425_v2 = vadd.f32 1.0, %v9081_v1  ;;  %9094 = vpow2.f32 %v7689_v0  ;;  %v9757_v0 = vld [vmem:[#allocation6 + $0x3] ss:$0 sm:$0xff]  ;;  %v9759_v1 = vld [vmem:[#allocation6 + $0x6] ss:$0 sm:$0xff] }
 0x137   : > { %v9083_v3 = vpop.eup %9082 }
 0x138   : > { %9096 = vrcp.f32 %v425_v2  ;;  %v423_v4 = vadd.f32 1.0, %v9083_v3 }
 0x139   : > { %v9085_v5 = vpop.eup %9084 }
 0x13a   : > { %9098 = vrcp.f32 %v423_v4  ;;  %v426_v6 = vadd.f32 1.0, %v9085_v5  ;;  %v9766_v5 = vmul.f32 0.0, %v9759_v1 }
 0x13b   : > { %v9087_v7 = vpop.eup %9086 }
 0x13c   : > { %9100 = vrcp.f32 %v426_v6  ;;  %v424_v8 = vadd.f32 1.0, %v9087_v7  ;;  %v9769_v6 = vsel %vm585_vm1, %v967_v53, %v968_v54 }
 0x13d   : > { %v9089_v9 = vpop.eup %9088  ;;  %11540 = vst [vmem:[#allocation20_spill] sm:$0xff] %v9769_v6 }
 0x13e   : > { %9102 = vrcp.f32 %v424_v8  ;;  %v429_v11 = vadd.f32 1.0, %v9089_v9 }
 0x13f   : > { %v9091_v12 = vpop.eup %9090 }
 0x140   : > { %9104 = vrcp.f32 %v429_v11  ;;  %v427_v13 = vadd.f32 1.0, %v9091_v12 }
 0x141   : > { %v9093_v16 = vpop.eup %9092 }
 0x142   : > { %9106 = vrcp.f32 %v427_v13  ;;  %v430_v17 = vadd.f32 1.0, %v9093_v16 }
 0x143   : > { %v9095_v18 = vpop.eup %9094 }
 0x144   : > { %9108 = vrcp.f32 %v430_v17  ;;  %v428_v22 = vadd.f32 1.0, %v9095_v18 }
 0x145   : > { %v9097_v25 = vpop.eup %9096 }
 0x146   : > { %v9719_v27 = vmul.f32 %v9097_v25, %v9685_v36  ;;  %9110 = vrcp.f32 %v428_v22  ;;  %v9732_v36 = vld [vmem:[#allocation6 + $0x10] ss:$0 sm:$0xff] }
 0x147   : > { %v9099_v31 = vpop.eup %9098  ;;  %11535 = vst [vmem:[#allocation15_spill] sm:$0xff] %v9732_v36  ;;  %v1001_v41 = vmul.f32 0.0, %v9732_v36 }
 0x148   : > { %11533 = vst [vmem:[#allocation13_spill] sm:$0xff] %v9719_v27  ;;  %v487_v32 = vrot.slane %v9719_v27, 7  ;;  %v9726_v33 = vmul.f32 %v9099_v31, %v9688_v40  ;;  %v1002_v40 = vmul.f32 %v9732_v36, %v9682_v30  ;;  %v9817_v31 = vld [vmem:[#allocation6 + $0x4] ss:$0 sm:$0xff] }
 0x149   : > { %v9101_v38 = vpop.eup %9100  ;;  %v1040_v55 = vrot.slane %v1001_v41, 2 }
 0x14a   : > { %11534 = vst [vmem:[#allocation14_spill] sm:$0xff] %v9726_v33  ;;  %505 = vst [vmem:[#allocation2 + $0x60] sm:$0xfe] %v487_v32  ;;  %v485_v42 = vrot.slane %v9726_v33, 7  ;;  %v9742_v43 = vmul.f32 %v9101_v38, %v9691_v44  ;;  %v1041_v57 = vrot.slane %v1002_v40, 2 }
 0x14b   : > { %506 = vst [vmem:[#allocation2 + $0x70] sm:$0x1] %v487_v32  ;;  %v9103_v47 = vpop.eup %9102 }
 0x14c   : > { %11536 = vst [vmem:[#allocation16_spill] sm:$0xff] %v9742_v43  ;;  %501 = vst [vmem:[#allocation2 + $0x20] sm:$0xfe] %v485_v42  ;;  %v488_v49 = vrot.slane %v9742_v43, 7  ;;  %v9746_v50 = vmul.f32 %v9103_v47, %v9694_v48  ;;  %v9772_v7 = vsel %vm659_vm2, %v1040_v55, %v1041_v57 }
 0x14d   : > { %502 = vst [vmem:[#allocation2 + $0x30] sm:$0x1] %v485_v42  ;;  %v9105_v30 = vpop.eup %9104  ;;  %11541 = vst [vmem:[#allocation21_spill] sm:$0xff] %v9772_v7 }
 0x14e   : > { %11537 = vst [vmem:[#allocation17_spill] sm:$0xff] %v9746_v50  ;;  %507 = vst [vmem:[#allocation2 + $0x80] sm:$0xfe] %v488_v49  ;;  %v486_v44 = vrot.slane %v9746_v50, 7  ;;  %v9750_v58 = vmul.f32 %v9105_v30, %v9697_v52  ;;  %v9763_v52 = vadd.f32 %v662_v59, %v618_v51 }
 0x14f   : > { %508 = vst [vmem:[#allocation2 + $0x90] sm:$0x1] %v488_v49  ;;  %v9107_v61 = vpop.eup %9106 }
 0x150   : > { %11538 = vst [vmem:[#allocation18_spill] sm:$0xff] %v9750_v58  ;;  %503 = vst [vmem:[#allocation2 + $0x40] sm:$0xfe] %v486_v44  ;;  %v491_v48 = vrot.slane %v9750_v58, 7  ;;  %v9755_v62 = vmul.f32 %v9107_v61, %v9700_v56 }
 0x151   : > { %504 = vst [vmem:[#allocation2 + $0x50] sm:$0x1] %v486_v44  ;;  %v9109_v2 = vpop.eup %9108  ;;  %v9761_v3 = vld [vmem:[#allocation2 + $0x60] sm:$0xff] }
 0x152   : > { %11539 = vst [vmem:[#allocation19_spill] sm:$0xff] %v9755_v62  ;;  %v526_v4 = vld [vmem:[#allocation2 + $0x70] sm:$0x3]  ;;  %1759 = vst [vmem:[#allocation2 + $0x60] sm:$0x1] %v9500_v20  ;;  %v489_v12 = vrot.slane %v9755_v62, 7  ;;  %v9787_v13 = vmul.f32 %v9109_v2, %v9703_v60  ;;  %v9796_v18 = vmul.f32 %v9716_v26, %v9761_v3  ;;  %v9800_v22 = vmul.f32 %v9709_v10, %v9761_v3 }
 0x153   : > { %v9775_v56 = vmul.f32 %v9709_v10, %v526_v4  ;;  %v9778_v8 = vmul.f32 %v9714_v19, %v526_v4  ;;  %v9780_v9 = vld [vmem:[#allocation2 + $0x70] sm:$0x3]  ;;  %513 = vst [vmem:[#allocation2 + $0xe0] sm:$0xfe] %v491_v48  ;;  %514 = vst [vmem:[#allocation2 + $0xf0] sm:$0x1] %v491_v48  ;;  %v9111_v14 = vpop.eup %9110  ;;  %v9804_v60 = vmul.f32 %v9714_v19, %v9761_v3 }
 0x154   : > { %v9782_v11 = vld [vmem:[#allocation2 + $0x70] sm:$0x3]  ;;  %11542 = vst [vmem:[#allocation22_spill] sm:$0xff] %v9787_v13  ;;  %v9790_v15 = vld [vmem:[#allocation2 + $0x20] sm:$0xff]  ;;  %v9808_v23 = vmul.f32 %v9757_v0, %v9761_v3  ;;  %509 = vst [vmem:[#allocation2 + $0xa0] sm:$0xfe] %v489_v12  ;;  %v9833_v21 = vmul.f32 %v9111_v14, %v9706_v63 }
 0x155   : > { %1767 = vst [vmem:[#allocation2 + $0x71] sm:$0x1] %v9500_v20  ;;  %v522_v16 = vld [vmem:[#allocation2 + $0x30] sm:$0x3]  ;;  %v596_v24 = vrot.slane %v9775_v56, 1  ;;  %v555_v25 = vmul.f32 %v9709_v10, %v9790_v15  ;;  %v9825_v34 = vld [vmem:[#allocation2 + $0x80] sm:$0xff]  ;;  %v537_v41 = vmul.f32 %v9716_v26, %v9790_v15  ;;  %v9854_v55 = vmul.f32 %v9714_v19, %v9790_v15 }
 0x156   : > { %v9792_v17 = vld [vmem:[#allocation2 + $0x30] sm:$0x3]  ;;  %v556_v28 = vmul.f32 %v9709_v10, %v522_v16  ;;  %v9815_v29 = vmul.f32 %v9714_v19, %v522_v16  ;;  %1757 = vst [vmem:[#allocation2 + $0x20] sm:$0x1] %v9500_v20  ;;  %510 = vst [vmem:[#allocation2 + $0xb0] sm:$0x1] %v489_v12  ;;  %v540_v53 = vmul.f32 %v9716_v26, %v9825_v34 }
 0x157   : > { %1765 = vst [vmem:[#allocation2 + $0x31] sm:$0x1] %v9500_v20  ;;  %v9823_v32 = vmul.f32 %v9817_v31, %v9792_v17  ;;  %v9827_v35 = vld [vmem:[#allocation2 + $0x90] sm:$0x3]  ;;  %v492_v39 = vrot.slane %v9787_v13, 7  ;;  %11543 = vst [vmem:[#allocation23_spill] sm:$0xff] %v9833_v21  ;;  %v561_v54 = vmul.f32 %v9709_v10, %v9825_v34 }
 0x158   : > { %v9829_v38 = vld [vmem:[#allocation2 + $0x90] sm:$0x3]  ;;  %v589_v40 = vrot.slane %v555_v25, 1  ;;  %v590_v42 = vrot.slane %v556_v28, 1  ;;  %v562_v46 = vmul.f32 %v9709_v10, %v9827_v35  ;;  %1760 = vst [vmem:[#allocation2 + $0x80] sm:$0x1] %v9500_v20 }
 0x159   : > { %v9841_v47 = vld [vmem:[#allocation2 + $0x90] sm:$0x3]  ;;  %v9843_v49 = vld [vmem:[#allocation2 + $0x40] sm:$0xff]  ;;  %515 = vst [vmem:[#allocation2 + $0x100] sm:$0xfe] %v492_v39  ;;  %v490_v63 = vrot.slane %v9833_v21, 7 }
 0x15a   : > { %11544 = vst [vmem:[#allocation24_spill] sm:$0xff] %v9841_v47  ;;  %v524_v51 = vld [vmem:[#allocation2 + $0x50] sm:$0x3]  ;;  %516 = vst [vmem:[#allocation2 + $0x110] sm:$0x1] %v492_v39  ;;  %v538_v48 = vmul.f32 %v9716_v26, %v9843_v49  ;;  %v9871_v2 = vld [vmem:[#allocation2 + $0xe0] sm:$0xff]  ;;  %v557_v56 = vmul.f32 %v9709_v10, %v9843_v49  ;;  %v591_v12 = vsel %vm585_vm1, %v589_v40, %v590_v42 }
 0x15b   : > { %v9845_v30 = vld [vmem:[#allocation2 + $0x50] sm:$0x3]  ;;  %1768 = vst [vmem:[#allocation2 + $0x91] sm:$0x1] %v9500_v20  ;;  %v558_v57 = vmul.f32 %v9709_v10, %v524_v51  ;;  %v9859_v44 = vmul.f32 %v9714_v19, %v524_v51  ;;  %1758 = vst [vmem:[#allocation2 + $0x40] sm:$0x1] %v9500_v20  ;;  %v543_v39 = vmul.f32 %v9716_v26, %v9871_v2 }
 0x15c   : > { %v9863_v59 = vmul.f32 %v9817_v31, %v9845_v30  ;;  %v9865_v61 = vld [vmem:[#allocation2 + $0x50] sm:$0x3]  ;;  %511 = vst [vmem:[#allocation2 + $0xc0] sm:$0xfe] %v490_v63  ;;  %512 = vst [vmem:[#allocation2 + $0xd0] sm:$0x1] %v490_v63  ;;  %v567_v51 = vmul.f32 %v9709_v10, %v9871_v2 }
 0x15d   : > { %1766 = vst [vmem:[#allocation2 + $0x51] sm:$0x1] %v9500_v20  ;;  %v9873_v4 = vld [vmem:[#allocation2 + $0xf0] sm:$0x3]  ;;  %v595_v14 = vrot.slane %v9800_v22, 1  ;;  %v598_v16 = vrot.slane %v561_v54, 1 }
 0x15e   : > { %v593_v25 = vrot.slane %v558_v57, 1  ;;  %v9884_v45 = vld [vmem:[#allocation2 + $0xf0] sm:$0x3]  ;;  %1763 = vst [vmem:[#allocation2 + $0xe0] sm:$0x1] %v9500_v20  ;;  %v9889_v58 = vld [vmem:[#allocation2 + $0xa0] sm:$0xff]  ;;  %v568_v22 = vmul.f32 %v9709_v10, %v9873_v4  ;;  %v9894_v57 = vadd.f32 %v591_v12, %v537_v41 }
 0x15f   : > { %v9886_v63 = vld [vmem:[#allocation2 + $0xf0] sm:$0x3]  ;;  %v592_v42 = vrot.slane %v557_v56, 1  ;;  %v597_v54 = vsel %vm585_vm1, %v595_v14, %v596_v24  ;;  %1761 = vst [vmem:[#allocation2 + $0xa0] sm:$0x1] %v9500_v20  ;;  %v541_v21 = vmul.f32 %v9716_v26, %v9889_v58  ;;  %v563_v62 = vmul.f32 %v9709_v10, %v9889_v58 }
 0x160   : > { %11545 = vst [vmem:[#allocation25_spill] sm:$0xff] %v9886_v63  ;;  %v530_v40 = vld [vmem:[#allocation2 + $0xb0] sm:$0x3]  ;;  %1771 = vst [vmem:[#allocation2 + $0xf1] sm:$0x1] %v9500_v20  ;;  %v599_v27 = vrot.slane %v562_v46, 1  ;;  %v621_v14 = vadd.f32 %v597_v54, %v9796_v18  ;;  %v631_v63 = vmul.f32 %v9714_v19, %v9843_v49 }
 0x161   : > { %v9897_v28 = vld [vmem:[#allocation2 + $0xb0] sm:$0x3]  ;;  %v564_v13 = vmul.f32 %v9709_v10, %v530_v40  ;;  %v594_v24 = vsel %vm585_vm1, %v592_v42, %v593_v25  ;;  %v607_v41 = vrot.slane %v567_v51, 1  ;;  %v608_v12 = vrot.slane %v568_v22, 1  ;;  %v9911_v36 = vld [vmem:[#allocation2 + $0x100] sm:$0xff] }
 0x162   : > { %v9905_v56 = vld [vmem:[#allocation2 + $0xb0] sm:$0x3]  ;;  %v600_v50 = vsel %vm585_vm1, %v598_v16, %v599_v27  ;;  %v601_v33 = vrot.slane %v563_v62, 1  ;;  %v620_v7 = vadd.f32 %v594_v24, %v538_v48  ;;  %v635_v25 = vmul.f32 %v9714_v19, %v9825_v34  ;;  %1764 = vst [vmem:[#allocation2 + $0x100] sm:$0x1] %v9500_v20 }
 0x163   : > { %11546 = vst [vmem:[#allocation26_spill] sm:$0xff] %v9905_v56  ;;  %1769 = vst [vmem:[#allocation2 + $0xb1] sm:$0x1] %v9500_v20  ;;  %v602_v43 = vrot.slane %v564_v13, 1  ;;  %v609_v6 = vsel %vm585_vm1, %v607_v41, %v608_v12  ;;  %v622_v46 = vadd.f32 %v600_v50, %v540_v53  ;;  %v9918_v51 = vld [vmem:[#allocation2 + $0x110] sm:$0x3]  ;;  %v636_v50 = vmul.f32 %v9714_v19, %v9827_v35 }
 0x164   : > { %v9920_v18 = vld [vmem:[#allocation2 + $0x110] sm:$0x3]  ;;  %v9923_v27 = vld [vmem:[#allocation2 + $0xc0] sm:$0xff]  ;;  %v625_v48 = vadd.f32 %v609_v6, %v543_v39  ;;  %v637_v53 = vmul.f32 %v9714_v19, %v9889_v58  ;;  %v642_v39 = vmul.f32 %v9714_v19, %v9873_v4  ;;  %v663_v41 = vrot.slane %v9854_v55, 2 }
 0x165   : > { %11547 = vst [vmem:[#allocation27_spill] sm:$0xff] %v9920_v18  ;;  %v532_v62 = vld [vmem:[#allocation2 + $0xd0] sm:$0x3]  ;;  %v603_v13 = vsel %vm585_vm1, %v601_v33, %v602_v43  ;;  %1772 = vst [vmem:[#allocation2 + $0x111] sm:$0x1] %v9500_v20  ;;  %v542_v16 = vmul.f32 %v9716_v26, %v9923_v27  ;;  %v565_v22 = vmul.f32 %v9709_v10, %v9923_v27  ;;  %v666_v12 = vrot.slane %v631_v63, 2 }
 0x166   : > { %v566_v42 = vmul.f32 %v9709_v10, %v532_v62  ;;  %v623_v54 = vadd.f32 %v603_v13, %v541_v21  ;;  %v9936_v24 = vld [vmem:[#allocation2 + $0xd0] sm:$0x3]  ;;  %1762 = vst [vmem:[#allocation2 + $0xc0] sm:$0x1] %v9500_v20  ;;  %v638_v43 = vmul.f32 %v9714_v19, %v530_v40  ;;  %v639_v6 = vmul.f32 %v9714_v19, %v9923_v27 }
 0x167   : > { %v9938_v33 = vld [vmem:[#allocation2 + $0xd0] sm:$0x3]  ;;  %v640_v35 = vmul.f32 %v9714_v19, %v532_v62  ;;  %v641_v26 = vmul.f32 %v9714_v19, %v9871_v2  ;;  %v604_v10 = vrot.slane %v565_v22, 1  ;;  %v669_v40 = vrot.slane %v9804_v60, 2 }
 0x168   : > { %11548 = vst [vmem:[#allocation28_spill] sm:$0xff] %v9938_v33  ;;  %1770 = vst [vmem:[#allocation2 + $0xd1] sm:$0x1] %v9500_v20  ;;  %v605_v21 = vrot.slane %v566_v42, 1  ;;  %v670_v13 = vrot.slane %v9778_v8, 2  ;;  %v672_v18 = vrot.slane %v635_v25, 2 }
 0x169   : > { %v11549_v33 = vrot.slane %v9815_v29, 2  ;;  %v673_v20 = vrot.slane %v636_v50, 2  ;;  %v675_v22 = vrot.slane %v637_v53, 2  ;;  %v11550_v47 = vrot.slane %v9859_v44, 2 }
 0x16a   : > { %v606_v62 = vsel %vm585_vm1, %v604_v10, %v605_v21  ;;  %v671_v55 = vsel %vm659_vm2, %v669_v40, %v670_v13  ;;  %v676_v4 = vrot.slane %v638_v43, 2  ;;  %v678_v8 = vrot.slane %v639_v6, 2 }
 0x16b   : > { %v665_v56 = vsel %vm659_vm2, %v663_v41, %v11549_v33  ;;  %v624_v42 = vadd.f32 %v606_v62, %v542_v16  ;;  %v668_v19 = vsel %vm659_vm2, %v666_v12, %v11550_v47  ;;  %v674_v60 = vsel %vm659_vm2, %v672_v18, %v673_v20 }
 0x16c   : > { %v679_v63 = vrot.slane %v640_v35, 2  ;;  %v681_v25 = vrot.slane %v641_v26, 2  ;;  %v677_v10 = vsel %vm659_vm2, %v675_v22, %v676_v4  ;;  %v682_v29 = vrot.slane %v642_v39, 2 }
 0x16d   : > { %v693_v33 = vadd.f32 %v665_v56, %v9894_v57  ;;  %v694_v50 = vadd.f32 %v668_v19, %v620_v7  ;;  %v695_v16 = vadd.f32 %v671_v55, %v621_v14  ;;  %v696_v44 = vadd.f32 %v674_v60, %v622_v46 }
 0x16e   : > { %v680_v53 = vsel %vm659_vm2, %v678_v8, %v679_v63  ;;  %v697_v21 = vadd.f32 %v677_v10, %v623_v54  ;;  %v683_v47 = vsel %vm659_vm2, %v681_v25, %v682_v29  ;;  %v717_v18 = vmul.f32 %v9757_v0, %v9790_v15 }
 0x16f   : > { %v698_v41 = vadd.f32 %v680_v53, %v624_v42  ;;  %v718_v43 = vmul.f32 %v9757_v0, %v9843_v49  ;;  %v699_v6 = vadd.f32 %v683_v47, %v625_v48  ;;  %v720_v35 = vmul.f32 %v9757_v0, %v9825_v34 }
 0x170   : > { %v721_v7 = vmul.f32 %v9757_v0, %v9889_v58  ;;  %v722_v57 = vmul.f32 %v9757_v0, %v9923_v27  ;;  %v723_v56 = vmul.f32 %v9757_v0, %v9871_v2  ;;  %v724_v14 = vmul.f32 %v9757_v0, %v9911_v36 }
 0x171   : > { %v725_v46 = vadd.f32 %v717_v18, %v9763_v52  ;;  %v726_v54 = vadd.f32 %v718_v43, %v693_v33  ;;  %v727_v48 = vadd.f32 %v9808_v23, %v694_v50  ;;  %v728_v26 = vadd.f32 %v720_v35, %v695_v16 }
 0x172   : > { %v729_v39 = vadd.f32 %v721_v7, %v696_v44  ;;  %v730_v12 = vadd.f32 %v722_v57, %v697_v21  ;;  %v731_v40 = vadd.f32 %v723_v56, %v698_v41  ;;  %v732_v13 = vadd.f32 %v724_v14, %v699_v6 }
 0x173   : > { %v734_v62 = vmul.f32 %v9817_v31, %v9790_v15  ;;  %v736_v20 = vmul.f32 %v9817_v31, %v9843_v49  ;;  %v738_v22 = vmul.f32 %v9817_v31, %v9761_v3  ;;  %v739_v0 = vmul.f32 %v9817_v31, %v9780_v9 }
 0x174   : > { %v740_v52 = vmul.f32 %v9817_v31, %v9825_v34  ;;  %v741_v23 = vmul.f32 %v9817_v31, %v9829_v38  ;;  %v742_v42 = vmul.f32 %v9817_v31, %v9889_v58  ;;  %v743_v19 = vmul.f32 %v9817_v31, %v9897_v28 }
 0x175   : > { %v744_v55 = vmul.f32 %v9817_v31, %v9923_v27  ;;  %v745_v4 = vmul.f32 %v9817_v31, %v9936_v24  ;;  %v746_v60 = vmul.f32 %v9817_v31, %v9871_v2  ;;  %v747_v8 = vmul.f32 %v9817_v31, %v9884_v45 }
 0x176   : > { %v748_v63 = vmul.f32 %v9817_v31, %v9911_v36  ;;  %v749_v25 = vmul.f32 %v9817_v31, %v9918_v51  ;;  %v766_v10 = vrot.slane %v734_v62, 1  ;;  %v767_v29 = vrot.slane %v9823_v32, 1 }
 0x177   : > { %v769_v33 = vrot.slane %v736_v20, 1  ;;  %v770_v50 = vrot.slane %v9863_v59, 1  ;;  %v772_v53 = vrot.slane %v738_v22, 1  ;;  %v773_v16 = vrot.slane %v739_v0, 1 }
 0x178   : > { %v775_v44 = vrot.slane %v740_v52, 1  ;;  %v776_v21 = vrot.slane %v741_v23, 1  ;;  %v768_v47 = vsel %vm585_vm1, %v766_v10, %v767_v29  ;;  %v778_v18 = vrot.slane %v742_v42, 1 }
 0x179   : > { %v771_v41 = vsel %vm585_vm1, %v769_v33, %v770_v50  ;;  %v779_v43 = vrot.slane %v743_v19, 1  ;;  %v774_v6 = vsel %vm585_vm1, %v772_v53, %v773_v16  ;;  %v781_v35 = vrot.slane %v744_v55, 1  ;;  %v806_v19 = vld [vmem:[#allocation6 + $0x5] ss:$0 sm:$0xff] }
 0x17a   : > { %v777_v31 = vsel %vm585_vm1, %v775_v44, %v776_v21  ;;  %v782_v7 = vrot.slane %v745_v4, 1  ;;  %v784_v57 = vrot.slane %v746_v60, 1  ;;  %v785_v59 = vrot.slane %v747_v8, 1 }
 0x17b   : > { %v780_v32 = vsel %vm585_vm1, %v778_v18, %v779_v43  ;;  %v787_v56 = vrot.slane %v748_v63, 1  ;;  %v788_v62 = vrot.slane %v749_v25, 1  ;;  %v798_v20 = vadd.f32 %v768_v47, %v725_v46 }
 0x17c   : > { %v783_v14 = vsel %vm585_vm1, %v781_v35, %v782_v7  ;;  %v799_v22 = vadd.f32 %v771_v41, %v726_v54  ;;  %v786_v0 = vsel %vm585_vm1, %v784_v57, %v785_v59  ;;  %v800_v52 = vadd.f32 %v774_v6, %v727_v48 }
 0x17d   : > { %v801_v23 = vadd.f32 %v777_v31, %v728_v26  ;;  %v802_v42 = vadd.f32 %v780_v32, %v729_v39  ;;  %v789_v10 = vsel %vm585_vm1, %v787_v56, %v788_v62  ;;  %v803_v55 = vadd.f32 %v783_v14, %v730_v12 }
 0x17e   : > { %v804_v4 = vadd.f32 %v786_v0, %v731_v40  ;;  %v807_v29 = vmul.f32 %v806_v19, %v9790_v15  ;;  %v805_v60 = vadd.f32 %v789_v10, %v732_v13  ;;  %v808_v8 = vmul.f32 %v806_v19, %v9792_v17 }
 0x17f   : > { %v809_v63 = vmul.f32 %v806_v19, %v9843_v49  ;;  %v810_v46 = vmul.f32 %v806_v19, %v9845_v30  ;;  %v811_v54 = vmul.f32 %v806_v19, %v9761_v3  ;;  %v812_v48 = vmul.f32 %v806_v19, %v9780_v9 }
 0x180   : > { %v813_v26 = vmul.f32 %v806_v19, %v9825_v34  ;;  %v814_v39 = vmul.f32 %v806_v19, %v9829_v38  ;;  %v815_v12 = vmul.f32 %v806_v19, %v9889_v58  ;;  %v816_v40 = vmul.f32 %v806_v19, %v9897_v28 }
 0x181   : > { %v817_v15 = vmul.f32 %v806_v19, %v9923_v27  ;;  %v818_v17 = vmul.f32 %v806_v19, %v9936_v24  ;;  %v819_v13 = vmul.f32 %v806_v19, %v9871_v2  ;;  %v820_v30 = vmul.f32 %v806_v19, %v9884_v45 }
 0x182   : > { %v821_v25 = vmul.f32 %v806_v19, %v9911_v36  ;;  %v822_v9 = vmul.f32 %v806_v19, %v9918_v51  ;;  %v839_v33 = vrot.slane %v807_v29, 2  ;;  %v840_v50 = vrot.slane %v808_v8, 2 }
 0x183   : > { %v842_v53 = vrot.slane %v809_v63, 2  ;;  %v843_v38 = vrot.slane %v810_v46, 2  ;;  %v845_v16 = vrot.slane %v811_v54, 2  ;;  %v846_v44 = vrot.slane %v812_v48, 2 }
 0x184   : > { %v848_v21 = vrot.slane %v813_v26, 2  ;;  %v849_v28 = vrot.slane %v814_v39, 2  ;;  %v841_v47 = vsel %vm659_vm2, %v839_v33, %v840_v50  ;;  %v851_v41 = vrot.slane %v815_v12, 2  ;;  %v11552_v50 = vld [vmem:[#allocation26_spill] sm:$0xff] }
 0x185   : > { %v844_v24 = vsel %vm659_vm2, %v842_v53, %v843_v38  ;;  %v852_v18 = vrot.slane %v816_v40, 2  ;;  %v847_v45 = vsel %vm659_vm2, %v845_v16, %v846_v44  ;;  %v854_v6 = vrot.slane %v817_v15, 2  ;;  %v11553_v16 = vld [vmem:[#allocation28_spill] sm:$0xff] }
 0x186   : > { %v850_v43 = vsel %vm659_vm2, %v848_v21, %v849_v28  ;;  %v855_v51 = vrot.slane %v818_v17, 2  ;;  %v857_v35 = vrot.slane %v819_v13, 2  ;;  %v858_v7 = vrot.slane %v820_v30, 2  ;;  %v11554_v28 = vld [vmem:[#allocation25_spill] sm:$0xff] }
 0x187   : > { %v853_v31 = vsel %vm659_vm2, %v851_v41, %v852_v18  ;;  %v860_v32 = vrot.slane %v821_v25, 2  ;;  %v861_v59 = vrot.slane %v822_v9, 2  ;;  %v871_v56 = vadd.f32 %v841_v47, %v798_v20  ;;  %v11551_v9 = vld [vmem:[#allocation24_spill] sm:$0xff]  ;;  %v11555_v41 = vld [vmem:[#allocation27_spill] sm:$0xff] }
 0x188   : > { %v856_v57 = vsel %vm659_vm2, %v854_v6, %v855_v51  ;;  %v872_v14 = vadd.f32 %v844_v24, %v799_v22  ;;  %v859_v62 = vsel %vm659_vm2, %v857_v35, %v858_v7  ;;  %v873_v0 = vadd.f32 %v847_v45, %v800_v52 }
 0x189   : > { %v874_v19 = vadd.f32 %v850_v43, %v801_v23  ;;  %v875_v10 = vadd.f32 %v853_v31, %v802_v42  ;;  %v862_v29 = vsel %vm659_vm2, %v860_v32, %v861_v59  ;;  %v876_v8 = vadd.f32 %v856_v57, %v803_v55 }
 0x18a   : > { %v877_v63 = vadd.f32 %v859_v62, %v804_v4  ;;  %v897_v46 = vmul.f32 %v9759_v1, %v9843_v49  ;;  %v878_v54 = vadd.f32 %v862_v29, %v805_v60  ;;  %v898_v48 = vmul.f32 %v9759_v1, %v9761_v3 }
 0x18b   : > { %v899_v20 = vmul.f32 %v9759_v1, %v9825_v34  ;;  %v900_v22 = vmul.f32 %v9759_v1, %v9889_v58  ;;  %v901_v52 = vmul.f32 %v9759_v1, %v9923_v27  ;;  %v902_v23 = vmul.f32 %v9759_v1, %v9871_v2 }
 0x18c   : > { %v903_v42 = vmul.f32 %v9759_v1, %v9911_v36  ;;  %v905_v55 = vadd.f32 %v897_v46, %v871_v56  ;;  %v906_v4 = vadd.f32 %v898_v48, %v872_v14  ;;  %v912_v39 = vadd.f32 %v9766_v5, %v878_v54 }
 0x18d   : > { %v907_v60 = vadd.f32 %v899_v20, %v873_v0  ;;  %v908_v26 = vadd.f32 %v900_v22, %v874_v19  ;;  %v909_v12 = vadd.f32 %v901_v52, %v875_v10  ;;  %v910_v40 = vadd.f32 %v902_v23, %v876_v8 }
 0x18e   : > { %v911_v15 = vadd.f32 %v903_v42, %v877_v63  ;;  %v914_v17 = vmul.f32 %v9730_v37, %v9843_v49  ;;  %v915_v13 = vmul.f32 %v9730_v37, %v9865_v61  ;;  %v916_v30 = vmul.f32 %v9730_v37, %v9761_v3 }
 0x18f   : > { %v917_v1 = vmul.f32 %v9730_v37, %v9782_v11  ;;  %v918_v25 = vmul.f32 %v9730_v37, %v9825_v34  ;;  %v919_v5 = vmul.f32 %v9730_v37, %v11551_v9  ;;  %v920_v33 = vmul.f32 %v9730_v37, %v9889_v58 }
 0x190   : > { %v921_v53 = vmul.f32 %v9730_v37, %v11552_v50  ;;  %v922_v38 = vmul.f32 %v9730_v37, %v9923_v27  ;;  %v923_v44 = vmul.f32 %v9730_v37, %v11553_v16  ;;  %v924_v21 = vmul.f32 %v9730_v37, %v9871_v2 }
 0x191   : > { %v925_v47 = vmul.f32 %v9730_v37, %v11554_v28  ;;  %v926_v24 = vmul.f32 %v9730_v37, %v9911_v36  ;;  %v927_v18 = vmul.f32 %v9730_v37, %v11555_v41  ;;  %v946_v45 = vrot.slane %v914_v17, 1  ;;  %v11556_v17 = vld [vmem:[#allocation20_spill] sm:$0xff] }
 0x192   : > { %v947_v43 = vrot.slane %v915_v13, 1  ;;  %v949_v6 = vrot.slane %v916_v30, 1  ;;  %v950_v51 = vrot.slane %v917_v1, 1  ;;  %v952_v31 = vrot.slane %v918_v25, 1  ;;  %v11557_v30 = vld [vmem:[#allocation15_spill] sm:$0xff] }
 0x193   : > { %v953_v35 = vrot.slane %v919_v5, 1  ;;  %v955_v7 = vrot.slane %v920_v33, 1  ;;  %v956_v57 = vrot.slane %v921_v53, 1  ;;  %v958_v59 = vrot.slane %v922_v38, 1 }
 0x194   : > { %v948_v32 = vsel %vm585_vm1, %v946_v45, %v947_v43  ;;  %v959_v56 = vrot.slane %v923_v44, 1  ;;  %v951_v14 = vsel %vm585_vm1, %v949_v6, %v950_v51  ;;  %v961_v0 = vrot.slane %v924_v21, 1 }
 0x195   : > { %v954_v62 = vsel %vm585_vm1, %v952_v31, %v953_v35  ;;  %v962_v19 = vrot.slane %v925_v47, 1  ;;  %v957_v37 = vsel %vm585_vm1, %v955_v7, %v956_v57  ;;  %v964_v29 = vrot.slane %v926_v24, 1  ;;  %v517_v24 = vld [vmem:[#allocation8 + $0x2] ss:$0 sm:$0xff]  ;;  %v518_v7 = vld [vmem:[#allocation8 + $0x3] ss:$0 sm:$0xff] }
 0x196   : > { %v960_v10 = vsel %vm585_vm1, %v958_v59, %v959_v56  ;;  %v965_v8 = vrot.slane %v927_v18, 1  ;;  %v978_v46 = vadd.f32 %v948_v32, %v905_v55  ;;  %v979_v54 = vadd.f32 %v951_v14, %v906_v4  ;;  %v11558_v56 = vld [vmem:[#allocation21_spill] sm:$0xff] }
 0x197   : > { %v963_v63 = vsel %vm585_vm1, %v961_v0, %v962_v19  ;;  %v980_v48 = vadd.f32 %v954_v62, %v907_v60  ;;  %v981_v22 = vadd.f32 %v957_v37, %v908_v26  ;;  %v982_v52 = vadd.f32 %v960_v10, %v909_v12 }
 0x198   : > { %v966_v20 = vsel %vm585_vm1, %v964_v29, %v965_v8  ;;  %v983_v23 = vadd.f32 %v963_v63, %v910_v40  ;;  %v985_v13 = vadd.f32 %v11556_v17, %v912_v39  ;;  %v987_v1 = vmul.f32 %v11557_v30, %v9843_v49 }
 0x199   : > { %v984_v42 = vadd.f32 %v966_v20, %v911_v15  ;;  %v988_v25 = vmul.f32 %v11557_v30, %v9865_v61  ;;  %v989_v5 = vmul.f32 %v11557_v30, %v9761_v3  ;;  %v990_v55 = vmul.f32 %v11557_v30, %v9782_v11 }
 0x19a   : > { %v991_v4 = vmul.f32 %v11557_v30, %v9825_v34  ;;  %v992_v60 = vmul.f32 %v11557_v30, %v11551_v9  ;;  %v993_v26 = vmul.f32 %v11557_v30, %v9889_v58  ;;  %v994_v49 = vmul.f32 %v11557_v30, %v11552_v50 }
 0x19b   : > { %v995_v61 = vmul.f32 %v11557_v30, %v9923_v27  ;;  %v996_v3 = vmul.f32 %v11557_v30, %v11553_v16  ;;  %v997_v11 = vmul.f32 %v11557_v30, %v9871_v2  ;;  %v998_v34 = vmul.f32 %v11557_v30, %v11554_v28 }
 0x19c   : > { %v999_v39 = vmul.f32 %v11557_v30, %v9911_v36  ;;  %v1000_v58 = vmul.f32 %v11557_v30, %v11555_v41  ;;  %v1019_v12 = vrot.slane %v987_v1, 2  ;;  %v1020_v40 = vrot.slane %v988_v25, 2 }
 0x19d   : > { %v1022_v15 = vrot.slane %v989_v5, 2  ;;  %v1023_v9 = vrot.slane %v990_v55, 2  ;;  %v1025_v27 = vrot.slane %v991_v4, 2  ;;  %v1026_v33 = vrot.slane %v992_v60, 2 }
 0x19e   : > { %v1028_v50 = vrot.slane %v993_v26, 2  ;;  %v1029_v53 = vrot.slane %v994_v49, 2  ;;  %v1021_v38 = vsel %vm659_vm2, %v1019_v12, %v1020_v40  ;;  %v1031_v16 = vrot.slane %v995_v61, 2 }
 0x19f   : > { %v1024_v2 = vsel %vm659_vm2, %v1022_v15, %v1023_v9  ;;  %v1032_v44 = vrot.slane %v996_v3, 2  ;;  %v1027_v21 = vsel %vm659_vm2, %v1025_v27, %v1026_v33  ;;  %v1034_v28 = vrot.slane %v997_v11, 2 }
 0x1a0   : > { %v1030_v36 = vsel %vm659_vm2, %v1028_v50, %v1029_v53  ;;  %v1035_v47 = vrot.slane %v998_v34, 2  ;;  %v1037_v18 = vrot.slane %v999_v39, 2  ;;  %v1038_v45 = vrot.slane %v1000_v58, 2 }
 0x1a1   : > { %v1033_v41 = vsel %vm659_vm2, %v1031_v16, %v1032_v44  ;;  %v1051_v43 = vadd.f32 %v1021_v38, %v978_v46  ;;  %v1052_v51 = vadd.f32 %v1024_v2, %v979_v54  ;;  %v1053_v31 = vadd.f32 %v1027_v21, %v980_v48 }
 0x1a2   : > { %v1036_v6 = vsel %vm659_vm2, %v1034_v28, %v1035_v47  ;;  %v1054_v35 = vadd.f32 %v1030_v36, %v981_v22  ;;  %v1039_v32 = vsel %vm659_vm2, %v1037_v18, %v1038_v45  ;;  %v1055_v57 = vadd.f32 %v1033_v41, %v982_v52 }
 0x1a3   : > { %v1056_v59 = vadd.f32 %v1036_v6, %v983_v23  ;;  %v1058_v14 = vadd.f32 %v11558_v56, %v985_v13  ;;  %v1057_v62 = vadd.f32 %v1039_v32, %v984_v42  ;;  %v1059_v0 = vmul.f32 %v1051_v43, %v517_v24 }
 0x1a4   : > { %v1060_v19 = vmul.f32 %v1052_v51, %v517_v24  ;;  %v1061_v37 = vmul.f32 %v1053_v31, %v517_v24  ;;  %v1062_v10 = vmul.f32 %v1054_v35, %v517_v24  ;;  %v1063_v29 = vmul.f32 %v1055_v57, %v517_v24 }
 0x1a5   : > { %v1064_v8 = vmul.f32 %v1056_v59, %v517_v24  ;;  %v1066_v63 = vmul.f32 %v1058_v14, %v517_v24  ;;  %v1065_v46 = vmul.f32 %v1057_v62, %v517_v24  ;;  %v1067_v20 = vadd.f32 %v1059_v0, %v518_v7 }
 0x1a6   : > { %v1068_v54 = vadd.f32 %v1060_v19, %v518_v7  ;;  %v1069_v48 = vadd.f32 %v1061_v37, %v518_v7  ;;  %v1070_v22 = vadd.f32 %v1062_v10, %v518_v7  ;;  %v1071_v17 = vadd.f32 %v1063_v29, %v518_v7 }
 0x1a7   : > { %v1072_v30 = vadd.f32 %v1064_v8, %v518_v7  ;;  %v1073_v1 = vadd.f32 %v1065_v46, %v518_v7  ;;  %v7692_v52 = vmul.f32 -1.442695, %v1067_v20  ;;  %v1074_v13 = vadd.f32 %v1066_v63, %v518_v7  ;;  %v8792_v46 = vld [vmem:[#allocation3 + $0x270] ss:$8 sps:$4 sm:$0xff]  }
 0x1a8   : > { %v7693_v23 = vmul.f32 -1.442695, %v1068_v54  ;;  %v7694_v25 = vmul.f32 -1.442695, %v1069_v48  ;;  %v7695_v42 = vmul.f32 -1.442695, %v1070_v22  ;;  %8342 = vmatpush3.bf16.msra.mxu0 %v8792_v46 }
 0x1a9   : > { %9112 = vpow2.f32 %v7692_v52  ;;  %v7696_v5 = vmul.f32 -1.442695, %v1071_v17  ;;  %v7697_v55 = vmul.f32 -1.442695, %v1072_v30  ;;  %v7698_v4 = vmul.f32 -1.442695, %v1073_v1 }
 0x1aa   : > { %9114 = vpow2.f32 %v7693_v23  ;;  %v7699_v60 = vmul.f32 -1.442695, %v1074_v13  ;;  %v8799_v52 = vld [vmem:[#allocation3 + $0x200] ss:$8 sps:$4 sm:$0xff]   ;;  %v1164_v23 = vld [vmem:[#allocation8 + $0x4] ss:$0 sm:$0xff] }
 0x1ab   : > { %9116 = vpow2.f32 %v7694_v25 }
 0x1ac   : > { %9118 = vpow2.f32 %v7695_v42 }
 0x1ad   : > { %9120 = vpow2.f32 %v7696_v5 }
 0x1ae   : > { %9122 = vpow2.f32 %v7697_v55 }
 0x1af   : > { %9124 = vpow2.f32 %v7698_v4 }
 0x1b0   : > { %9126 = vpow2.f32 %v7699_v60 }
 0x1b6   : > { %v9113_v26 = vpop.eup %9112 }
 0x1b7   : > { %v9115_v49 = vpop.eup %9114  ;;  %v1099_v61 = vadd.f32 1.0, %v9113_v26 }
 0x1b8   : > { %v9117_v3 = vpop.eup %9116  ;;  %v1100_v11 = vadd.f32 1.0, %v9115_v49 }
 0x1b9   : > { %v9119_v34 = vpop.eup %9118  ;;  %v1101_v39 = vadd.f32 1.0, %v9117_v3  ;;  %9128 = vrcp.f32 %v1099_v61 }
 0x1ba   : > { %v9121_v58 = vpop.eup %9120  ;;  %v1102_v12 = vadd.f32 1.0, %v9119_v34  ;;  %9130 = vrcp.f32 %v1100_v11  ;;  %v8800_v11 = vld [vmem:[#allocation3 + $0x370] ss:$8 sps:$4 sm:$0xff]   ;;  %v8801_v34 = vld [vmem:[#allocation3 + $0x360] ss:$8 sps:$4 sm:$0xff]  }
 0x1bb   : > { %v9123_v40 = vpop.eup %9122  ;;  %v1103_v15 = vadd.f32 1.0, %v9121_v58  ;;  %9132 = vrcp.f32 %v1101_v39  ;;  %8361 = vmatprep.subr.bf16.mxu1 %v8800_v11  ;;  %v8802_v39 = vld [vmem:[#allocation3 + $0x350] ss:$8 sps:$4 sm:$0xff]   ;;  %v8803_v58 = vld [vmem:[#allocation3 + $0x340] ss:$8 sps:$4 sm:$0xff]  }
 0x1bc   : > { %v9125_v9 = vpop.eup %9124  ;;  %v1104_v27 = vadd.f32 1.0, %v9123_v40  ;;  %9134 = vrcp.f32 %v1102_v12  ;;  %v8804_v12 = vld [vmem:[#allocation3 + $0x330] ss:$8 sps:$4 sm:$0xff]   ;;  %v8805_v40 = vld [vmem:[#allocation3 + $0x320] ss:$8 sps:$4 sm:$0xff]  }
 0x1bd   : > { %v9127_v33 = vpop.eup %9126  ;;  %v1105_v50 = vadd.f32 1.0, %v9125_v9  ;;  %9136 = vrcp.f32 %v1103_v15  ;;  %v8806_v15 = vld [vmem:[#allocation3 + $0x310] ss:$8 sps:$4 sm:$0xff]   ;;  %v8807_v9 = vld [vmem:[#allocation3 + $0x300] ss:$8 sps:$4 sm:$0xff]  }
 0x1be   : > { %9138 = vrcp.f32 %v1104_v27  ;;  %v1106_v53 = vadd.f32 1.0, %v9127_v33  ;;  %v8808_v27 = vld [vmem:[#allocation3 + $0x470] ss:$8 sps:$4 sm:$0xff]   ;;  %v8809_v33 = vld [vmem:[#allocation3 + $0x460] ss:$8 sps:$4 sm:$0xff]  }
 0x1bf   : > { %9140 = vrcp.f32 %v1105_v50  ;;  %v8810_v50 = vld [vmem:[#allocation3 + $0x450] ss:$8 sps:$4 sm:$0xff]  }
 0x1c0   : > { %9142 = vrcp.f32 %v1106_v53  ;;  %v8811_v53 = vld [vmem:[#allocation3 + $0x440] ss:$8 sps:$4 sm:$0xff]  }
 0x1c6   : > { %v9129_v38 = vpop.eup %9128 }
 0x1c7   : > { %v9131_v2 = vpop.eup %9130  ;;  %v10131_v44 = vmul.f32 %v9129_v38, %v1067_v20  ;;  %v10155_v20 = vld [vmem:[#allocation2 + $0x120] sm:$0xff] }
 0x1c8   : > { %v9133_v16 = vpop.eup %9132  ;;  %v10133_v21 = vmul.f32 %v9131_v2, %v1068_v54  ;;  %8343 = vmatprep.subr.bf16.mxu0 %v10155_v20  ;;  %v8793_v54 = vld [vmem:[#allocation3 + $0x260] ss:$8 sps:$4 sm:$0xff]   ;;  %v1278_v38 = vld [vmem:[#allocation8 + $0x5] ss:$0 sm:$0xff] }
 0x1c9   : > { %v9135_v36 = vpop.eup %9134  ;;  %v10135_v28 = vmul.f32 %v9133_v16, %v1069_v48  ;;  %8344 = vmatpush3.bf16.msra.mxu0 %v8793_v54  ;;  %v8794_v48 = vld [vmem:[#allocation3 + $0x250] ss:$8 sps:$4 sm:$0xff]  }
 0x1ca   : > { %v1131_v47 = vadd.f32 %v10133_v21, %v10131_v44  ;;  %v9137_v24 = vpop.eup %9136  ;;  %v10139_v18 = vmul.f32 %v9135_v36, %v1070_v22  ;;  %8345 = vmatprep.subr.bf16.mxu0 %v10155_v20  ;;  %v8795_v22 = vld [vmem:[#allocation3 + $0x240] ss:$8 sps:$4 sm:$0xff]  }
 0x1cb   : > { %v9139_v41 = vpop.eup %9138  ;;  %v10142_v6 = vmul.f32 %v9137_v24, %v1071_v17  ;;  %v8796_v17 = vld [vmem:[#allocation3 + $0x230] ss:$8 sps:$4 sm:$0xff]  }
 0x1cc   : > { %v1132_v45 = vadd.f32 %v1131_v47, %v10135_v28  ;;  %v9141_v43 = vpop.eup %9140  ;;  %v10145_v31 = vmul.f32 %v9139_v41, %v1072_v30  ;;  %v8797_v30 = vld [vmem:[#allocation3 + $0x220] ss:$8 sps:$4 sm:$0xff]  }
 0x1cd   : > { %v10147_v35 = vmul.f32 %v9141_v43, %v1073_v1  ;;  %v9143_v32 = vpop.eup %9142  ;;  %8346 = vmatpush3.bf16.msra.mxu0 %v8794_v48  ;;  %v8798_v1 = vld [vmem:[#allocation3 + $0x210] ss:$8 sps:$4 sm:$0xff]  }
 0x1ce   : > { %v1133_v51 = vadd.f32 %v1132_v45, %v10139_v18  ;;  %v10151_v59 = vmul.f32 %v9143_v32, %v1074_v13  ;;  %8347 = vmatprep.subr.bf16.mxu0 %v10155_v20 }
 0x1d0   : > { %v1134_v7 = vadd.f32 %v1133_v51, %v10142_v6  ;;  %v11503_v51 = vlaneseq }
 0x1d1   : > { %8348 = vmatpush3.bf16.msra.mxu0 %v8795_v22 }
 0x1d2   : > { %v1135_v57 = vadd.f32 %v1134_v7, %v10145_v31  ;;  %8349 = vmatprep.subr.bf16.mxu0 %v10155_v20  ;;  %v10166_v7 = vshrl.u32 %v11503_v51, 7 }
 0x1d4   : > { %v1136_v56 = vadd.f32 %v1135_v57, %v10147_v35  ;;  %v10169_v32 = vsub.s32 0, %v10166_v7 }
 0x1d5   : > { %8350 = vmatpush3.bf16.msra.mxu0 %v8796_v17 }
 0x1d6   : > { %v1137_v14 = vadd.f32 %v1136_v56, %v10151_v59  ;;  %8351 = vmatprep.subr.bf16.mxu0 %v10155_v20  ;;  %11559 = vst [vmem:[#allocation24_spill] sm:$0xff] %v10169_v32 }
 0x1d8   : > { %v1138_v62 = vrot.slane %v1137_v14, 4 }
 0x1d9   : > { %8352 = vmatpush3.bf16.msra.mxu0 %v8797_v30  ;;  %v1528_v30 = vld [vmem:[#allocation8 + $0x7] ss:$0 sm:$0xff] }
 0x1da   : > { %v1139_v0 = vadd.f32 %v1138_v62, %v1137_v14  ;;  %8353 = vmatprep.subr.bf16.mxu0 %v10155_v20 }
 0x1dc   : > { %v1140_v19 = vrot.slane %v1139_v0, 2 }
 0x1dd   : > { %8354 = vmatpush3.bf16.msra.mxu0 %v8798_v1 }
 0x1de   : > { %v1141_v37 = vadd.f32 %v1140_v19, %v1139_v0  ;;  %8355 = vmatprep.subr.bf16.mxu0 %v10155_v20 }
 0x1e0   : > { %v1142_v10 = vrot.slane %v1141_v37, 1 }
 0x1e1   : > { %8356 = vmatpush3.bf16.msra.mxu0 %v8799_v52 }
 0x1e2   : > { %v1143_v29 = vadd.f32 %v1142_v10, %v1141_v37  ;;  %8385 = vmatprep.subr.bf16.mxu0 %v8808_v27 }
 0x1e4   : > { %v1145_v8 = vmul.f32 0.015625, %v1143_v29 }
 0x1e6   : > { %v1146_v63 = vpack.c.bf16 %v1145_v8, %v1145_v8 }
 0x1e8   : > { %8338 = vmatmul.mubr.bf16.vlgmr.msra.gmra.mxu1 %v1146_v63 }
 0x1e9   : > { %8362 = vmatpush3.bf16.msra.mxu1 %v8800_v11 }
 0x1ea   : > { %8363 = vmatprep.subr.bf16.mxu1 %v8801_v34 }
 0x1ed   : > { %8364 = vmatpush3.bf16.msra.mxu1 %v8801_v34 }
 0x1ee   : > { %8365 = vmatprep.subr.bf16.mxu1 %v8802_v39 }
 0x1f1   : > { %8366 = vmatpush3.bf16.msra.mxu1 %v8802_v39  ;;  %v11563_v39 = vld [vmem:[#allocation13_spill] sm:$0xff] }
 0x1f2   : > { %8367 = vmatprep.subr.bf16.mxu1 %v8803_v58 }
 0x1f5   : > { %8368 = vmatpush3.bf16.msra.mxu1 %v8803_v58 }
 0x1f6   : > { %8369 = vmatprep.subr.bf16.mxu1 %v8804_v12 }
 0x1f9   : > { %8370 = vmatpush3.bf16.msra.mxu1 %v8804_v12 }
 0x1fa   : > { %8371 = vmatprep.subr.bf16.mxu1 %v8805_v40 }
 0x1fd   : > { %8372 = vmatpush3.bf16.msra.mxu1 %v8805_v40 }
 0x1fe   : > { %8373 = vmatprep.subr.bf16.mxu1 %v8806_v15 }
 0x201   : > { %8374 = vmatpush3.bf16.msra.mxu1 %v8806_v15 }
 0x202   : > { %8375 = vmatprep.subr.bf16.mxu1 %v8807_v9 }
 0x205   : > { %8376 = vmatpush3.bf16.msra.mxu1 %v8807_v9 }
 0x206   : > { %8409 = vmatprep.subr.mxu1 %v10155_v20 }
 0x2a8   : > { %v1247_v25 = vpop.f32.mrf.mxu1 }
 0x2a9   : > { %v1248_v13 = vadd.f32 %v1247_v25, %v1164_v23 }
 0x2aa   : > { %v8339_v42 = vpop.f32.mrf.mxu1 }
 0x2ab   : > { %v7708_v5 = vmul.f32 -1.442695, %v1248_v13 }
 0x2ac   : > { %v1250_v55 = vpop.f32.mrf.mxu1 }
 0x2ad   : > { %9144 = vpow2.f32 %v7708_v5 }
 0x2ae   : > { %v8340_v4 = vpop.f32.mrf.mxu1 }
 0x2af   : > { %v11560_v4 = vld [vmem:[#allocation16_spill] sm:$0xff] }
 0x2ba   : > { %v9145_v60 = vpop.eup %9144 }
 0x2bb   : > { %v1256_v26 = vadd.f32 1.0, %v9145_v60 }
 0x2bd   : > { %9146 = vrcp.f32 %v1256_v26 }
 0x2ca   : > { %v9147_v49 = vpop.eup %9146 }
 0x2cb   : > { %v1259_v61 = vmul.f32 %v9147_v49, %v1248_v13  ;;  %v11561_v49 = vld [vmem:[#allocation14_spill] sm:$0xff] }
 0x2cd   : > { %v1260_v3 = vpack.c.bf16 %v1259_v61, %v1259_v61 }
 0x2cf   : > { %8358 = vmatmul.mubr.bf16.vlgmr.msra.gmra.mxu0 %v1260_v3  ;;  %v11562_v3 = vld [vmem:[#allocation17_spill] sm:$0xff] }
 0x2d0   : > { %8386 = vmatpush3.bf16.msra.mxu0 %v8808_v27 }
 0x2d1   : > { %8387 = vmatprep.subr.bf16.mxu0 %v8809_v33 }
 0x2d4   : > { %8388 = vmatpush3.bf16.msra.mxu0 %v8809_v33 }
 0x2d5   : > { %8389 = vmatprep.subr.bf16.mxu0 %v8810_v50 }
 0x2d8   : > { %8390 = vmatpush3.bf16.msra.mxu0 %v8810_v50 }
 0x2d9   : > { %8391 = vmatprep.subr.bf16.mxu0 %v8811_v53 }
 0x2dc   : > { %8392 = vmatpush3.bf16.msra.mxu0 %v8811_v53 }
 0x38f   : > { %v1361_v2 = vpop.f32.mrf.mxu0 }
 0x390   : > { %v1362_v16 = vadd.f32 %v1361_v2, %v1278_v38 }
 0x391   : > { %v8359_v36 = vpop.f32.mrf.mxu0 }
 0x392   : > { %v7717_v47 = vmul.f32 -1.442695, %v1362_v16  ;;  %v11564_v36 = vld [vmem:[#allocation22_spill] sm:$0xff] }
 0x393   : > { %v1364_v24 = vpop.f32.mrf.mxu0 }
 0x394   : > { %9148 = vpow2.f32 %v7717_v47  ;;  %v11565_v24 = vld [vmem:[#allocation19_spill] sm:$0xff] }
 0x395   : > { %v8360_v41 = vpop.f32.mrf.mxu0 }
 0x3a1   : > { %v9149_v45 = vpop.eup %9148 }
 0x3a2   : > { %v1370_v43 = vadd.f32 1.0, %v9149_v45  ;;  %v11566_v45 = vld [vmem:[#allocation23_spill] sm:$0xff] }
 0x3a4   : > { %9150 = vrcp.f32 %v1370_v43 }
 0x3b1   : > { %v9151_v57 = vpop.eup %9150 }
 0x3b2   : > { %v1376_v56 = vrot.slane %v9151_v57, %v10169_v32  ;;  %v11567_v57 = vld [vmem:[#allocation18_spill] sm:$0xff] }
 0x3b4   : > { %v1377_v14 = vmul.f32 %v1376_v56, %v10131_v44  ;;  %v1378_v62 = vmul.f32 %v1376_v56, %v10133_v21  ;;  %v1379_v0 = vmul.f32 %v1376_v56, %v10135_v28  ;;  %v1380_v19 = vmul.f32 %v1376_v56, %v10139_v18  ;;  %v8812_v21 = vld [vmem:[#allocation3 + $0x430] ss:$8 sps:$4 sm:$0xff]   ;;  %v8813_v28 = vld [vmem:[#allocation3 + $0x420] ss:$8 sps:$4 sm:$0xff]  }
 0x3b5   : > { %v1381_v37 = vmul.f32 %v1376_v56, %v10142_v6  ;;  %v1382_v10 = vmul.f32 %v1376_v56, %v10145_v31  ;;  %v1383_v46 = vmul.f32 %v1376_v56, %v10147_v35  ;;  %v1384_v44 = vmul.f32 %v1376_v56, %v10151_v59  ;;  %8393 = vmatprep.subr.bf16.mxu0 %v8812_v21  ;;  %v8814_v18 = vld [vmem:[#allocation3 + $0x410] ss:$8 sps:$4 sm:$0xff]   ;;  %v8815_v6 = vld [vmem:[#allocation3 + $0x400] ss:$8 sps:$4 sm:$0xff]   ;;  %v1519_v35 = vld [vmem:[#allocation8 + $0x6] ss:$0 sm:$0xff] }
 0x3b6   : > { %v1385_v29 = vpack.c.bf16 %v1378_v62, %v1377_v14  ;;  %v1386_v8 = vpack.c.bf16 %v1380_v19, %v1379_v0  ;;  %8394 = vmatpush3.bf16.msra.mxu0 %v8812_v21  ;;  %v1679_v0 = vld [vmem:[#allocation8 + $0x10] ss:$0 sm:$0xff] }
 0x3b7   : > { %v1387_v63 = vpack.c.bf16 %v1382_v10, %v1381_v37  ;;  %v1388_v54 = vpack.c.bf16 %v1384_v44, %v1383_v46  ;;  %8395 = vmatprep.subr.bf16.mxu0 %v8813_v28  ;;  %v1688_v37 = vld [vmem:[#allocation8 + $0x11] ss:$0 sm:$0xff] }
 0x3b8   : > { %8377 = vmatprep.mubr.bf16.mxu1 %v1385_v29 }
 0x3b9   : > { %8378 = vmatmul.mubr.bf16.vlgmr.msra.gmra.mxu1 %v1386_v8 }
 0x3ba   : > { %8381 = vmatprep.mubr.bf16.mxu1 %v1387_v63  ;;  %8396 = vmatpush3.bf16.msra.mxu0 %v8813_v28 }
 0x3bb   : > { %8397 = vmatprep.subr.bf16.mxu0 %v8814_v18 }
 0x3be   : > { %8398 = vmatpush3.bf16.msra.mxu0 %v8814_v18 }
 0x3bf   : > { %8399 = vmatprep.subr.bf16.mxu0 %v8815_v6 }
 0x3c1   : > { %8382 = vmatmul.mubr.bf16.gmra.mxu1 %v1388_v54 }
 0x3c2   : > { %8411 = vmatprep.mubr.msk.f32.mxu1 %vm9501_vm0, %v10155_v20  ;;  %8400 = vmatpush3.bf16.msra.mxu0 %v8815_v6 }
 0x3c3   : > { %8449 = vmatprep.subr.bf16.mxu0 %v10155_v20 }
 0x479   : > { %v8379_v31 = vpop.f32.mrf.mxu1 }
 0x47a   : > { %v1522_v22 = vmul.f32 %v8379_v31, %v1519_v35 }
 0x47b   : > { %v1488_v59 = vpop.f32.mrf.mxu1 }
 0x47c   : > { %v1520_v48 = vmul.f32 %v1519_v35, %v1488_v59  ;;  %v1531_v42 = vadd.f32 %v1528_v30, %v1522_v22 }
 0x47d   : > { %v8380_v17 = vpop.f32.mrf.mxu1 }
 0x47e   : > { %v1523_v1 = vmul.f32 %v8380_v17, %v1519_v35  ;;  %v1529_v23 = vadd.f32 %v1528_v30, %v1520_v48  ;;  %v1539_v58 = vadd.f32 %v1531_v42, %v11563_v39 }
 0x47f   : > { %v1491_v52 = vpop.f32.mrf.mxu1 }
 0x480   : > { %v1532_v25 = vadd.f32 %v1528_v30, %v1523_v1  ;;  %v1521_v13 = vmul.f32 %v1519_v35, %v1491_v52  ;;  %v1537_v61 = vadd.f32 %v1529_v23, %v11561_v49 }
 0x481   : > { %v8383_v5 = vpop.f32.mrf.mxu1 }
 0x482   : > { %v1530_v55 = vadd.f32 %v1528_v30, %v1521_v13  ;;  %v1540_v60 = vadd.f32 %v1532_v25, %v11560_v4  ;;  %v1526_v12 = vmul.f32 %v8383_v5, %v1519_v35 }
 0x483   : > { %v1504_v26 = vpop.f32.mrf.mxu1 }
 0x484   : > { %v1538_v11 = vadd.f32 %v1530_v55, %v11562_v3  ;;  %v1524_v34 = vmul.f32 %v1519_v35, %v1504_v26  ;;  %v1546_v27 = vpack.c.bf16 %v1540_v60, %v1539_v58  ;;  %v1535_v2 = vadd.f32 %v1528_v30, %v1526_v12 }
 0x485   : > { %v8384_v40 = vpop.f32.mrf.mxu1 }
 0x486   : > { %v1527_v15 = vmul.f32 %v8384_v40, %v1519_v35  ;;  %v1545_v9 = vpack.c.bf16 %v1538_v11, %v1537_v61  ;;  %v1533_v50 = vadd.f32 %v1528_v30, %v1524_v34  ;;  %v1543_v56 = vadd.f32 %v1535_v2, %v11567_v57 }
 0x487   : > { %v1507_v33 = vpop.f32.mrf.mxu1 }
 0x488   : > { %v1536_v53 = vadd.f32 %v1528_v30, %v1527_v15  ;;  %v1525_v38 = vmul.f32 %v1519_v35, %v1507_v33  ;;  %8401 = vmatprep.mubr.bf16.mxu0 %v1545_v9  ;;  %v1541_v41 = vadd.f32 %v1533_v50, %v11565_v24 }
 0x489   : > { %8402 = vmatmul.mubr.bf16.vlgmr.msra.gmra.mxu0 %v1546_v27 }
 0x48a   : > { %v1534_v16 = vadd.f32 %v1528_v30, %v1525_v38  ;;  %v1544_v47 = vadd.f32 %v1536_v53, %v11564_v36  ;;  %v1824_v53 = vld [vmem:[#allocation2 + $0x10] sm:$0x3]  ;;  %v10217_v38 = vld [vmem:[#allocation6 + $0x41] ss:$0 sm:$0xff] }
 0x48b   : > { %v1831_v24 = vmul.f32 %v10217_v38, %v1824_v53 }
 0x48c   : > { %v1542_v43 = vadd.f32 %v1534_v16, %v11566_v45  ;;  %v1548_v62 = vpack.c.bf16 %v1544_v47, %v1543_v56  ;;  %v1830_v47 = vmul.f32 %v10155_v20, %v10217_v38  ;;  %v10222_v45 = vld [vmem:[#allocation6 + $0x42] ss:$0 sm:$0xff] }
 0x48e   : > { %v1547_v14 = vpack.c.bf16 %v1542_v43, %v1541_v41 }
 0x490   : > { %8405 = vmatprep.mubr.bf16.mxu0 %v1547_v14  ;;  %v10225_v14 = vld [vmem:[#allocation6 + $0x40] ss:$0 sm:$0xff] }
 0x491   : > { %8406 = vmatmul.mubr.bf16.gmra.mxu0 %v1548_v62  ;;  %v1834_v62 = vrot.slane %v1830_v47, 1 }
 0x492   : > { %8465 = vmatprep.mubr.msk.bf16.mxu0 %vm9501_vm0, %v10155_v20 }
 0x549   : > { %v8403_v19 = vpop.f32.mrf.mxu0 }
 0x54a   : > { %v1682_v10 = vmul.f32 %v8403_v19, %v1679_v0  ;;  %v1840_v19 = vmul.f32 %v10155_v20, %v10222_v45 }
 0x54b   : > { %v1648_v29 = vpop.f32.mrf.mxu0 }
 0x54c   : > { %v10193_v8 = vadd.f32 %v1688_v37, %v1682_v10  ;;  %v1680_v63 = vmul.f32 %v1679_v0, %v1648_v29 }
 0x54d   : > { %v8404_v46 = vpop.f32.mrf.mxu0 }
 0x54e   : > { %v7736_v44 = vmul.f32 -1.442695, %v10193_v8  ;;  %v10196_v54 = vadd.f32 %v1688_v37, %v1680_v63  ;;  %v1683_v21 = vmul.f32 %v8404_v46, %v1679_v0 }
 0x54f   : > { %v1651_v28 = vpop.f32.mrf.mxu0 }
 0x550   : > { %9152 = vpow2.f32 %v7736_v44  ;;  %v7734_v18 = vmul.f32 -1.442695, %v10196_v54  ;;  %v10199_v6 = vadd.f32 %v1688_v37, %v1683_v21  ;;  %v1681_v31 = vmul.f32 %v1679_v0, %v1651_v28 }
 0x551   : > { %v8407_v35 = vpop.f32.mrf.mxu0  ;;  %v1827_v44 = vmul.f32 %v10155_v20, %v10225_v14 }
 0x552   : > { %9154 = vpow2.f32 %v7734_v18  ;;  %v7737_v59 = vmul.f32 -1.442695, %v10199_v6  ;;  %v10202_v48 = vadd.f32 %v1688_v37, %v1681_v31  ;;  %v1686_v22 = vmul.f32 %v8407_v35, %v1679_v0 }
 0x553   : > { %v1664_v17 = vpop.f32.mrf.mxu0  ;;  %v1844_v18 = vrot.slane %v1840_v19, 2 }
 0x554   : > { %9156 = vpow2.f32 %v7737_v59  ;;  %v7735_v30 = vmul.f32 -1.442695, %v10202_v48  ;;  %v10205_v1 = vadd.f32 %v1688_v37, %v1686_v22  ;;  %v1684_v52 = vmul.f32 %v1679_v0, %v1664_v17 }
 0x555   : > { %v8408_v23 = vpop.f32.mrf.mxu0  ;;  %v1819_v22 = vmul.u32 2, %v10166_v7 }
 0x556   : > { %9158 = vpow2.f32 %v7735_v30  ;;  %v7740_v25 = vmul.f32 -1.442695, %v10205_v1  ;;  %v10208_v13 = vadd.f32 %v1688_v37, %v1684_v52  ;;  %v1687_v42 = vmul.f32 %v8408_v23, %v1679_v0 }
 0x557   : > { %v1667_v5 = vpop.f32.mrf.mxu0 }
 0x558   : > { %9160 = vpow2.f32 %v7740_v25  ;;  %v7738_v55 = vmul.f32 -1.442695, %v10208_v13  ;;  %v10211_v4 = vadd.f32 %v1688_v37, %v1687_v42  ;;  %v1685_v60 = vmul.f32 %v1679_v0, %v1667_v5 }
 0x559   : > { %v1835_v0 = vrot.slane %v1831_v24, 1  ;;  %v10272_v24 = vld [vmem:[#allocation6 + $0x47] ss:$0 sm:$0xff] }
 0x55a   : > { %9162 = vpow2.f32 %v7738_v55  ;;  %v7741_v26 = vmul.f32 -1.442695, %v10211_v4  ;;  %v10214_v49 = vadd.f32 %v1688_v37, %v1685_v60  ;;  %v1841_v37 = vmul.f32 %v10222_v45, %v1824_v53 }
 0x55b   : > { %v1836_v28 = vsel %vm585_vm1, %v1834_v62, %v1835_v0 }
 0x55c   : > { %9164 = vpow2.f32 %v7741_v26  ;;  %v7739_v61 = vmul.f32 -1.442695, %v10214_v49  ;;  %v1845_v31 = vrot.slane %v1841_v37, 2  ;;  %v1838_v52 = vadd.f32 %v1836_v28, %v1827_v44  ;;  %v10285_v44 = vld [vmem:[#allocation6 + $0x46] ss:$0 sm:$0xff] }
 0x55d   : > { %v9153_v3 = vpop.eup %9152 }
 0x55e   : > { %v1723_v11 = vadd.f32 1.0, %v9153_v3  ;;  %9166 = vpow2.f32 %v7739_v61  ;;  %v1846_v25 = vsel %vm659_vm2, %v1844_v18, %v1845_v31  ;;  %v10246_v3 = vld [vmem:[#allocation6 + $0x44] ss:$0 sm:$0xff] }
 0x55f   : > { %v9155_v34 = vpop.eup %9154  ;;  %v1848_v61 = vadd.f32 %v1846_v25, %v1838_v52 }
 0x560   : > { %9168 = vrcp.f32 %v1723_v11  ;;  %v1721_v39 = vadd.f32 1.0, %v9155_v34 }
 0x561   : > { %v9157_v58 = vpop.eup %9156 }
 0x562   : > { %9170 = vrcp.f32 %v1721_v39  ;;  %v1724_v12 = vadd.f32 1.0, %v9157_v58 }
 0x563   : > { %v9159_v40 = vpop.eup %9158 }
 0x564   : > { %9172 = vrcp.f32 %v1724_v12  ;;  %v1722_v15 = vadd.f32 1.0, %v9159_v40 }
 0x565   : > { %v9161_v9 = vpop.eup %9160 }
 0x566   : > { %9174 = vrcp.f32 %v1722_v15  ;;  %v1727_v27 = vadd.f32 1.0, %v9161_v9 }
 0x567   : > { %v9163_v33 = vpop.eup %9162 }
 0x568   : > { %9176 = vrcp.f32 %v1727_v27  ;;  %v1725_v50 = vadd.f32 1.0, %v9163_v33  ;;  %v10257_v27 = vld [vmem:[#allocation6 + $0x45] ss:$0 sm:$0xff] }
 0x569   : > { %v9165_v2 = vpop.eup %9164 }
 0x56a   : > { %9178 = vrcp.f32 %v1725_v50  ;;  %v1728_v16 = vadd.f32 1.0, %v9165_v2 }
 0x56b   : > { %v9167_v36 = vpop.eup %9166 }
 0x56c   : > { %9180 = vrcp.f32 %v1728_v16  ;;  %v1726_v41 = vadd.f32 1.0, %v9167_v36 }
 0x56d   : > { %v9169_v43 = vpop.eup %9168 }
 0x56e   : > { %v1747_v57 = vmul.f32 %v9169_v43, %v10193_v8  ;;  %9182 = vrcp.f32 %v1726_v41  ;;  %v10274_v41 = vld [vmem:[#allocation6 + $0x50] ss:$0 sm:$0xff] }
 0x56f   : > { %v9171_v56 = vpop.eup %9170 }
 0x570   : > { %v1783_v10 = vrot.slane %v1747_v57, 7  ;;  %v1745_v29 = vmul.f32 %v9171_v56, %v10196_v54  ;;  %v1818_v54 = vand.u32 127, %v11503_v51 }
 0x571   : > { %v9173_v63 = vpop.eup %9172 }
 0x572   : > { %1801 = vst [vmem:[#allocation2 + $0x60] sm:$0xfe] %v1783_v10  ;;  %1802 = vst [vmem:[#allocation2 + $0x70] sm:$0x1] %v1783_v10  ;;  %v1781_v46 = vrot.slane %v1745_v29, 7  ;;  %v1748_v8 = vmul.f32 %v9173_v63, %v10199_v6  ;;  %vm1820_vm3 = vcmp.eq.s32.totalorder %v1818_v54, %v1819_v22 }
 0x573   : > { %v9175_v21 = vpop.eup %9174  ;;  %v10249_v39 = vsel %vm1820_vm3, 1.0, %v10155_v20 }
 0x574   : > { %1797 = vst [vmem:[#allocation2 + $0x20] sm:$0xfe] %v1781_v46  ;;  %1798 = vst [vmem:[#allocation2 + $0x30] sm:$0x1] %v1781_v46  ;;  %v1784_v35 = vrot.slane %v1748_v8, 7  ;;  %v1746_v59 = vmul.f32 %v9175_v21, %v10202_v48 }
 0x575   : > { %v9177_v17 = vpop.eup %9176  ;;  %v10241_v48 = vld [vmem:[#allocation6 + $0x43] ss:$0 sm:$0xff] }
 0x576   : > { %1803 = vst [vmem:[#allocation2 + $0x80] sm:$0xfe] %v1784_v35  ;;  %1804 = vst [vmem:[#allocation2 + $0x90] sm:$0x1] %v1784_v35  ;;  %v1782_v6 = vrot.slane %v1746_v59, 7  ;;  %v1751_v30 = vmul.f32 %v9177_v17, %v10205_v1 }
 0x577   : > { %v9179_v23 = vpop.eup %9178 }
 0x578   : > { %1799 = vst [vmem:[#allocation2 + $0x40] sm:$0xfe] %v1782_v6  ;;  %1800 = vst [vmem:[#allocation2 + $0x50] sm:$0x1] %v1782_v6  ;;  %v1787_v42 = vrot.slane %v1751_v30, 7  ;;  %v1749_v5 = vmul.f32 %v9179_v23, %v10208_v13 }
 0x579   : > { %v9181_v55 = vpop.eup %9180  ;;  %v2003_v60 = vld [vmem:[#allocation2 + $0x60] sm:$0xff]  ;;  %v2004_v58 = vld [vmem:[#allocation2 + $0x70] sm:$0x3] }
 0x57a   : > { %2913 = vst [vmem:[#allocation2 + $0x60] sm:$0x3] %v10155_v20  ;;  %2917 = vst [vmem:[#allocation2 + $0x60] sm:$0xc0] %v10155_v20  ;;  %v1785_v1 = vrot.slane %v1749_v5, 7  ;;  %v1752_v26 = vmul.f32 %v9181_v55, %v10211_v4  ;;  %v10252_v12 = vmul.f32 %v2003_v60, %v10241_v48  ;;  %v2008_v43 = vmul.f32 %v2004_v58, %v10246_v3 }
 0x57b   : > { %1809 = vst [vmem:[#allocation2 + $0xe0] sm:$0xfe] %v1787_v42  ;;  %1810 = vst [vmem:[#allocation2 + $0xf0] sm:$0x1] %v1787_v42  ;;  %v9183_v11 = vpop.eup %9182  ;;  %v1849_v34 = vld [vmem:[#allocation2 + $0x20] sm:$0xff]  ;;  %v2016_v37 = vmul.f32 %v2003_v60, %v10257_v27  ;;  %v2017_v46 = vmul.f32 %v2004_v58, %v10257_v27 }
 0x57c   : > { %v1850_v13 = vld [vmem:[#allocation2 + $0x30] sm:$0x3]  ;;  %1805 = vst [vmem:[#allocation2 + $0xa0] sm:$0xfe] %v1785_v1  ;;  %1806 = vst [vmem:[#allocation2 + $0xb0] sm:$0x1] %v1785_v1  ;;  %v1750_v15 = vmul.f32 %v9183_v11, %v10214_v49  ;;  %v1852_v4 = vmul.f32 %v10241_v48, %v1849_v34  ;;  %v1855_v9 = vmul.f32 %v10246_v3, %v1849_v34 }
 0x57d   : > { %v1788_v40 = vrot.slane %v1752_v26, 7  ;;  %2909 = vst [vmem:[#allocation2 + $0x20] sm:$0xff] %v10155_v20  ;;  %v10260_v33 = vld [vmem:[#allocation2 + $0x80] sm:$0xff]  ;;  %v1856_v50 = vmul.f32 %v10246_v3, %v1850_v13  ;;  %v1865_v53 = vmul.f32 %v10257_v27, %v1849_v34  ;;  %v1866_v2 = vmul.f32 %v10257_v27, %v1850_v13 }
 0x57e   : > { %3951 = vst [vmem:[#allocation2 + $0x20] sm:$0x1] %v10155_v20  ;;  %3955 = vst [vmem:[#allocation2 + $0x25] sm:$0x1] %v10155_v20  ;;  %v10268_v49 = vmul.f32 %v2003_v60, %v10246_v3  ;;  %v1786_v16 = vrot.slane %v1750_v15, 7  ;;  %v1853_v36 = vadd.f32 %v1852_v4, %v1848_v61  ;;  %v1859_v47 = vrot.slane %v1855_v9, 1 }
 0x57f   : > { %2914 = vst [vmem:[#allocation2 + $0x80] sm:$0x3] %v10155_v20  ;;  %2918 = vst [vmem:[#allocation2 + $0x80] sm:$0xc0] %v10155_v20  ;;  %v1874_v57 = vld [vmem:[#allocation2 + $0x40] sm:$0xff]  ;;  %v1860_v56 = vrot.slane %v1856_v50, 1  ;;  %v2028_v11 = vmul.f32 %v10260_v33, %v10285_v44  ;;  %v2030_v9 = vmul.f32 %v10260_v33, %v10272_v24 }
 0x580   : > { %1811 = vst [vmem:[#allocation2 + $0x100] sm:$0xfe] %v1788_v40  ;;  %1812 = vst [vmem:[#allocation2 + $0x110] sm:$0x1] %v1788_v40  ;;  %v1869_v62 = vrot.slane %v1865_v53, 2  ;;  %v1870_v0 = vrot.slane %v1866_v2, 2  ;;  %v1880_v10 = vmul.f32 %v10272_v24, %v1874_v57  ;;  %v1890_v63 = vmul.f32 %v10274_v41, %v1874_v57 }
 0x581   : > { %v1875_v19 = vld [vmem:[#allocation2 + $0x50] sm:$0x3]  ;;  %2912 = vst [vmem:[#allocation2 + $0x40] sm:$0x3] %v10155_v20  ;;  %2916 = vst [vmem:[#allocation2 + $0x40] sm:$0xc0] %v10155_v20  ;;  %v1861_v8 = vsel %vm585_vm1, %v1859_v47, %v1860_v56  ;;  %v1877_v54 = vmul.f32 %v10285_v44, %v1874_v57  ;;  %v1984_v5 = vmul.f32 %v1874_v57, %v10217_v38 }
 0x582   : > { %1807 = vst [vmem:[#allocation2 + $0xc0] sm:$0xfe] %v1786_v16  ;;  %1808 = vst [vmem:[#allocation2 + $0xd0] sm:$0x1] %v1786_v16  ;;  %v1881_v29 = vmul.f32 %v10272_v24, %v1875_v19  ;;  %v1891_v21 = vmul.f32 %v10274_v41, %v1875_v19  ;;  %v1985_v28 = vmul.f32 %v1875_v19, %v10217_v38  ;;  %v2011_v18 = vrot.slane %v10268_v49, 1  ;;  %v10290_v31 = vld [vmem:[#allocation2 + $0xe0] sm:$0xff] }
 0x583   : > { %v1863_v35 = vadd.f32 %v1861_v8, %v1853_v36  ;;  %v1871_v59 = vsel %vm659_vm2, %v1869_v62, %v1870_v0  ;;  %v1884_v22 = vrot.slane %v1880_v10, 1  ;;  %2911 = vst [vmem:[#allocation2 + $0xe0] sm:$0xff] %v10155_v20  ;;  %v10295_v17 = vld [vmem:[#allocation2 + $0xa0] sm:$0xff]  ;;  %v1894_v30 = vrot.slane %v1890_v63, 2  ;;  %v2027_v60 = vld [vmem:[#allocation2 + $0x90] sm:$0x3] }
 0x584   : > { %v1885_v6 = vrot.slane %v1881_v29, 1  ;;  %v1895_v52 = vrot.slane %v1891_v21, 2  ;;  %v1994_v23 = vmul.f32 %v1875_v19, %v10222_v45  ;;  %2915 = vst [vmem:[#allocation2 + $0xa0] sm:$0x3] %v10155_v20  ;;  %2919 = vst [vmem:[#allocation2 + $0xa0] sm:$0xc0] %v10155_v20  ;;  %v1993_v55 = vmul.f32 %v1874_v57, %v10222_v45 }
 0x585   : > { %v1873_v25 = vadd.f32 %v1871_v59, %v1863_v35  ;;  %v1989_v42 = vrot.slane %v1985_v28, 1  ;;  %v2012_v26 = vrot.slane %v2008_v43, 1  ;;  %v2020_v61 = vrot.slane %v2016_v37, 2  ;;  %v2149_v8 = vld [vmem:[#allocation2 + $0xb0] sm:$0x3] }
 0x586   : > { %v1998_v1 = vrot.slane %v1994_v23, 2  ;;  %v1988_v13 = vrot.slane %v1984_v5, 1  ;;  %v1997_v58 = vrot.slane %v1993_v55, 2  ;;  %v2021_v40 = vrot.slane %v2017_v46, 2 }
 0x587   : > { %v1878_v34 = vadd.f32 %v1877_v54, %v1873_v25  ;;  %v1886_v15 = vsel %vm585_vm1, %v1884_v22, %v1885_v6  ;;  %v1982_v4 = vmul.f32 %v1874_v57, %v10225_v14  ;;  %v2031_v50 = vmul.f32 %v2027_v60, %v10272_v24 }
 0x588   : > { %v1896_v49 = vsel %vm659_vm2, %v1894_v30, %v1895_v52  ;;  %v1990_v16 = vsel %vm585_vm1, %v1988_v13, %v1989_v42  ;;  %v2039_v36 = vmul.f32 %v10260_v33, %v10274_v41  ;;  %v1999_v43 = vsel %vm659_vm2, %v1997_v58, %v1998_v1 }
 0x589   : > { %v10309_v53 = vld [vmem:[#allocation2 + $0xc0] sm:$0xff]  ;;  %v1888_v2 = vadd.f32 %v1886_v15, %v1878_v34  ;;  %v1992_v47 = vadd.f32 %v1990_v16, %v1982_v4  ;;  %v2013_v57 = vsel %vm585_vm1, %v2011_v18, %v2012_v26  ;;  %v2040_v56 = vmul.f32 %v2027_v60, %v10274_v41  ;;  %v2172_v55 = vld [vmem:[#allocation2 + $0xd0] sm:$0x3] }
 0x58a   : > { %2910 = vst [vmem:[#allocation2 + $0xc0] sm:$0xff] %v10155_v20  ;;  %v2022_v0 = vsel %vm659_vm2, %v2020_v61, %v2021_v40  ;;  %v2130_v19 = vmul.f32 %v2027_v60, %v10217_v38  ;;  %v2139_v37 = vmul.f32 %v2027_v60, %v10222_v45  ;;  %v2034_v29 = vrot.slane %v2030_v9, 1 }
 0x58b   : > { %v1898_v62 = vadd.f32 %v1896_v49, %v1888_v2  ;;  %v2001_v10 = vadd.f32 %v1999_v43, %v1992_v47  ;;  %v2035_v63 = vrot.slane %v2031_v50, 1  ;;  %v2129_v46 = vmul.f32 %v10260_v33, %v10217_v38 }
 0x58c   : > { %v2043_v21 = vrot.slane %v2039_v36, 2  ;;  %v2134_v28 = vrot.slane %v2130_v19, 1  ;;  %v2143_v18 = vrot.slane %v2139_v37, 2  ;;  %v2138_v35 = vmul.f32 %v10260_v33, %v10222_v45 }
 0x58d   : > { %8410 = vmatpush3.msra.mxu1 %v1898_v62  ;;  %v2006_v59 = vadd.f32 %v10252_v12, %v2001_v10  ;;  %v2127_v54 = vmul.f32 %v10260_v33, %v10225_v14  ;;  %v2133_v22 = vrot.slane %v2129_v46, 1  ;;  %v2152_v6 = vmul.f32 %v10295_v17, %v10246_v3 }
 0x58e   : > { %8412 = vmatmul.mubr.msk.f32.vlgmr.msra.gmra.mxu1 %vm1899_vm4, %v10249_v39  ;;  %8414 = vmatprep.subr.mxu1 %v10155_v20  ;;  %v2142_v30 = vrot.slane %v2138_v35, 2  ;;  %v2153_v52 = vmul.f32 %v2149_v8, %v10246_v3  ;;  %v2161_v23 = vmul.f32 %v10295_v17, %v10257_v27  ;;  %v2162_v25 = vmul.f32 %v2149_v8, %v10257_v27 }
 0x58f   : > { %8416 = vmatprep.mubr.msk.f32.mxu1 %vm9501_vm0, %v10155_v20  ;;  %v2015_v42 = vadd.f32 %v2013_v57, %v2006_v59  ;;  %v2044_v12 = vrot.slane %v2040_v56, 2  ;;  %v2135_v5 = vsel %vm585_vm1, %v2133_v22, %v2134_v28  ;;  %v2156_v33 = vrot.slane %v2152_v6, 1 }
 0x590   : > { %v2137_v60 = vadd.f32 %v2135_v5, %v2127_v54  ;;  %v2144_v1 = vsel %vm659_vm2, %v2142_v30, %v2143_v18  ;;  %v2150_v26 = vmul.f32 %v10295_v17, %v10241_v48  ;;  %v2157_v61 = vrot.slane %v2153_v52, 1 }
 0x591   : > { %v2024_v34 = vadd.f32 %v2022_v0, %v2015_v42  ;;  %v2165_v13 = vrot.slane %v2161_v23, 2  ;;  %v2166_v58 = vrot.slane %v2162_v25, 2  ;;  %v2175_v40 = vmul.f32 %v10309_v53, %v10272_v24  ;;  %v2294_v0 = vld [vmem:[#allocation2 + $0xf0] sm:$0x3] }
 0x592   : > { %v2036_v15 = vsel %vm585_vm1, %v2034_v29, %v2035_v63  ;;  %v2146_v4 = vadd.f32 %v2144_v1, %v2137_v60  ;;  %v2176_v9 = vmul.f32 %v2172_v55, %v10272_v24  ;;  %v2045_v2 = vsel %vm659_vm2, %v2043_v21, %v2044_v12  ;;  %v2317_v23 = vld [vmem:[#allocation2 + $0x110] sm:$0x3] }
 0x593   : > { %v2029_v50 = vadd.f32 %v2028_v11, %v2024_v34  ;;  %v2158_v49 = vsel %vm585_vm1, %v2156_v33, %v2157_v61  ;;  %v2184_v17 = vmul.f32 %v10309_v53, %v10274_v41  ;;  %v2173_v36 = vmul.f32 %v10309_v53, %v10285_v44 }
 0x594   : > { %v2151_v16 = vadd.f32 %v2150_v26, %v2146_v4  ;;  %v2185_v47 = vmul.f32 %v2172_v55, %v10274_v41  ;;  %v2275_v43 = vmul.f32 %v2172_v55, %v10217_v38  ;;  %v2167_v56 = vsel %vm659_vm2, %v2165_v13, %v2166_v58 }
 0x595   : > { %v2038_v57 = vadd.f32 %v2036_v15, %v2029_v50  ;;  %v2179_v62 = vrot.slane %v2175_v40, 1  ;;  %v2284_v11 = vmul.f32 %v2172_v55, %v10222_v45  ;;  %v2180_v37 = vrot.slane %v2176_v9, 1 }
 0x596   : > { %v2160_v19 = vadd.f32 %v2158_v49, %v2151_v16  ;;  %v2279_v10 = vrot.slane %v2275_v43, 1  ;;  %v2274_v29 = vmul.f32 %v10309_v53, %v10217_v38  ;;  %v2188_v46 = vrot.slane %v2184_v17, 2  ;;  %v8816_v43 = vld [vmem:[#allocation3 + $0x570] ss:$8 sps:$4 sm:$0xff]  }
 0x597   : > { %v2047_v63 = vadd.f32 %v2045_v2, %v2038_v57  ;;  %v2288_v8 = vrot.slane %v2284_v11, 2  ;;  %v2283_v21 = vmul.f32 %v10309_v53, %v10222_v45  ;;  %v2297_v35 = vmul.f32 %v10290_v31, %v10246_v3  ;;  %v8818_v57 = vld [vmem:[#allocation3 + $0x550] ss:$8 sps:$4 sm:$0xff]   ;;  %v8821_v11 = vld [vmem:[#allocation3 + $0x520] ss:$8 sps:$4 sm:$0xff]  }
 0x598   : > { %v2169_v28 = vadd.f32 %v2167_v56, %v2160_v19  ;;  %v2278_v18 = vrot.slane %v2274_v29, 1  ;;  %v2298_v59 = vmul.f32 %v2294_v0, %v10246_v3  ;;  %v2189_v54 = vrot.slane %v2185_v47, 2  ;;  %v8819_v56 = vld [vmem:[#allocation3 + $0x540] ss:$8 sps:$4 sm:$0xff]  }
 0x599   : > { %8415 = vmatpush3.msra.mxu1 %v2047_v63  ;;  %v2272_v22 = vmul.f32 %v10309_v53, %v10225_v14  ;;  %v2287_v6 = vrot.slane %v2283_v21, 2  ;;  %v2306_v38 = vmul.f32 %v10290_v31, %v10257_v27  ;;  %v2307_v52 = vmul.f32 %v2294_v0, %v10257_v27  ;;  %v2316_v53 = vld [vmem:[#allocation2 + $0x100] sm:$0xff]  ;;  %v8822_v0 = vld [vmem:[#allocation3 + $0x510] ss:$8 sps:$4 sm:$0xff]  }
 0x59a   : > { %8417 = vmatmul.mubr.msk.f32.vlgmr.msra.gmra.mxu1 %vm1899_vm4, %v10249_v39  ;;  %8419 = vmatprep.subr.mxu1 %v10155_v20  ;;  %v2174_v45 = vadd.f32 %v2173_v36, %v2169_v28  ;;  %v2280_v30 = vsel %vm585_vm1, %v2278_v18, %v2279_v10  ;;  %v2181_v3 = vsel %vm585_vm1, %v2179_v62, %v2180_v37  ;;  %v2301_v12 = vrot.slane %v2297_v35, 1  ;;  %v8820_v62 = vld [vmem:[#allocation3 + $0x530] ss:$8 sps:$4 sm:$0xff]   ;;  %v8823_v19 = vld [vmem:[#allocation3 + $0x500] ss:$8 sps:$4 sm:$0xff]  }
 0x59b   : > { %8421 = vmatprep.mubr.msk.f32.mxu1 %vm9501_vm0, %v10155_v20  ;;  %v2282_v14 = vadd.f32 %v2280_v30, %v2272_v22  ;;  %v2289_v42 = vsel %vm659_vm2, %v2287_v6, %v2288_v8  ;;  %v2302_v5 = vrot.slane %v2298_v59, 1  ;;  %v2190_v33 = vsel %vm659_vm2, %v2188_v46, %v2189_v54  ;;  %v10406_v37 = vld [vmem:[#allocation2 + $0x120] sm:$0xff]  ;;  %v1813_v46 = vld [vmem:[#allocation8 + $0x12] ss:$0 sm:$0xff]  ;;  %v1814_v28 = vld [vmem:[#allocation8 + $0x13] ss:$0 sm:$0xff] }
 0x59c   : > { %v2183_v25 = vadd.f32 %v2181_v3, %v2174_v45  ;;  %v2295_v60 = vmul.f32 %v10290_v31, %v10241_v48  ;;  %v2310_v27 = vrot.slane %v2306_v38, 2  ;;  %v2311_v26 = vrot.slane %v2307_v52, 2 }
 0x59d   : > { %v2291_v55 = vadd.f32 %v2289_v42, %v2282_v14  ;;  %v2320_v61 = vmul.f32 %v2316_v53, %v10272_v24  ;;  %v2321_v34 = vmul.f32 %v2317_v23, %v10272_v24  ;;  %v2303_v58 = vsel %vm585_vm1, %v2301_v12, %v2302_v5 }
 0x59e   : > { %v2192_v1 = vadd.f32 %v2190_v33, %v2183_v25  ;;  %v2329_v40 = vmul.f32 %v2316_v53, %v10274_v41  ;;  %v2330_v15 = vmul.f32 %v2317_v23, %v10274_v41  ;;  %v2312_v31 = vsel %vm659_vm2, %v2310_v27, %v2311_v26 }
 0x59f   : > { %v2296_v13 = vadd.f32 %v2295_v60, %v2291_v55  ;;  %v2324_v4 = vrot.slane %v2320_v61, 1  ;;  %v2325_v9 = vrot.slane %v2321_v34, 1  ;;  %v2318_v50 = vmul.f32 %v2316_v53, %v10285_v44  ;;  %v8817_v44 = vld [vmem:[#allocation3 + $0x560] ss:$8 sps:$4 sm:$0xff]  }
 0x5a0   : > { %8420 = vmatpush3.msra.mxu1 %v2192_v1  ;;  %v2333_v2 = vrot.slane %v2329_v40, 2  ;;  %v2334_v49 = vrot.slane %v2330_v15, 2 }
 0x5a1   : > { %8422 = vmatmul.mubr.msk.f32.vlgmr.msra.gmra.mxu1 %vm1899_vm4, %v10249_v39  ;;  %8424 = vmatprep.subr.mxu1 %v10155_v20  ;;  %v2305_v48 = vadd.f32 %v2303_v58, %v2296_v13  ;;  %v2326_v41 = vsel %vm585_vm1, %v2324_v4, %v2325_v9 }
 0x5a2   : > { %8426 = vmatprep.mubr.msk.f32.mxu1 %vm9501_vm0, %v10155_v20  ;;  %v2335_v36 = vsel %vm659_vm2, %v2333_v2, %v2334_v49 }
 0x5a3   : > { %v2314_v24 = vadd.f32 %v2312_v31, %v2305_v48 }
 0x5a5   : > { %v2319_v17 = vadd.f32 %v2318_v50, %v2314_v24 }
 0x5a7   : > { %v2328_v16 = vadd.f32 %v2326_v41, %v2319_v17 }
 0x5a9   : > { %v2337_v47 = vadd.f32 %v2335_v36, %v2328_v16 }
 0x5ab   : > { %8425 = vmatpush3.msra.mxu1 %v2337_v47 }
 0x5ac   : > { %8427 = vmatmul.mubr.msk.f32.vlgmr.msra.gmra.mxu1 %vm1899_vm4, %v10249_v39  ;;  %8429 = vmatprep.subr.bf16.mxu1 %v10155_v20 }
 0x5ad   : > { %8445 = vmatprep.mubr.msk.bf16.mxu1 %vm9501_vm0, %v10155_v20  ;;  %8430 = vmatpush3.bf16.msra.mxu1 %v8816_v43  ;;  %v8824_v43 = vld [vmem:[#allocation3 + $0x670] ss:$8 sps:$4 sm:$0xff]  }
 0x5ae   : > { %8431 = vmatprep.subr.bf16.mxu1 %v10155_v20  ;;  %8450 = vmatpush3.bf16.msra.mxu0 %v8824_v43 }
 0x5af   : > { %8451 = vmatprep.subr.bf16.mxu0 %v10406_v37 }
 0x5b1   : > { %8432 = vmatpush3.bf16.msra.mxu1 %v8817_v44  ;;  %v8825_v44 = vld [vmem:[#allocation3 + $0x660] ss:$8 sps:$4 sm:$0xff]  }
 0x5b2   : > { %8433 = vmatprep.subr.bf16.mxu1 %v10155_v20  ;;  %8452 = vmatpush3.bf16.msra.mxu0 %v8825_v44 }
 0x5b3   : > { %8453 = vmatprep.subr.bf16.mxu0 %v10406_v37 }
 0x5b5   : > { %8434 = vmatpush3.bf16.msra.mxu1 %v8818_v57  ;;  %v8826_v57 = vld [vmem:[#allocation3 + $0x650] ss:$8 sps:$4 sm:$0xff]  }
 0x5b6   : > { %8435 = vmatprep.subr.bf16.mxu1 %v10155_v20  ;;  %8454 = vmatpush3.bf16.msra.mxu0 %v8826_v57  ;;  %v8848_v57 = vld [vmem:[#allocation3 + $0x970] ss:$8 sps:$4 sm:$0xff]  }
 0x5b7   : > { %8455 = vmatprep.subr.bf16.mxu0 %v10406_v37 }
 0x5b9   : > { %8436 = vmatpush3.bf16.msra.mxu1 %v8819_v56  ;;  %v8827_v56 = vld [vmem:[#allocation3 + $0x640] ss:$8 sps:$4 sm:$0xff]  }
 0x5ba   : > { %8437 = vmatprep.subr.bf16.mxu1 %v10155_v20  ;;  %8456 = vmatpush3.bf16.msra.mxu0 %v8827_v56  ;;  %v8849_v56 = vld [vmem:[#allocation3 + $0x960] ss:$8 sps:$4 sm:$0xff]  }
 0x5bb   : > { %8457 = vmatprep.subr.bf16.mxu0 %v10406_v37 }
 0x5bd   : > { %8438 = vmatpush3.bf16.msra.mxu1 %v8820_v62  ;;  %v8828_v62 = vld [vmem:[#allocation3 + $0x630] ss:$8 sps:$4 sm:$0xff]  }
 0x5be   : > { %8439 = vmatprep.subr.bf16.mxu1 %v10155_v20  ;;  %8458 = vmatpush3.bf16.msra.mxu0 %v8828_v62  ;;  %v8850_v62 = vld [vmem:[#allocation3 + $0x950] ss:$8 sps:$4 sm:$0xff]  }
 0x5bf   : > { %8459 = vmatprep.subr.bf16.mxu0 %v10406_v37 }
 0x5c1   : > { %8440 = vmatpush3.bf16.msra.mxu1 %v8821_v11  ;;  %v8829_v11 = vld [vmem:[#allocation3 + $0x620] ss:$8 sps:$4 sm:$0xff]  }
 0x5c2   : > { %8441 = vmatprep.subr.bf16.mxu1 %v10155_v20  ;;  %8460 = vmatpush3.bf16.msra.mxu0 %v8829_v11  ;;  %v8851_v11 = vld [vmem:[#allocation3 + $0x940] ss:$8 sps:$4 sm:$0xff]  }
 0x5c3   : > { %8461 = vmatprep.subr.bf16.mxu0 %v10406_v37 }
 0x5c5   : > { %8442 = vmatpush3.bf16.msra.mxu1 %v8822_v0  ;;  %v8830_v0 = vld [vmem:[#allocation3 + $0x610] ss:$8 sps:$4 sm:$0xff]  }
 0x5c6   : > { %8443 = vmatprep.subr.bf16.mxu1 %v10406_v37  ;;  %8462 = vmatpush3.bf16.msra.mxu0 %v8830_v0  ;;  %v8852_v0 = vld [vmem:[#allocation3 + $0x930] ss:$8 sps:$4 sm:$0xff]  }
 0x5c7   : > { %8463 = vmatprep.subr.bf16.mxu0 %v10406_v37 }
 0x5c9   : > { %8444 = vmatpush3.bf16.msra.mxu1 %v8823_v19  ;;  %v8831_v19 = vld [vmem:[#allocation3 + $0x600] ss:$8 sps:$4 sm:$0xff]  }
 0x5ca   : > { %8469 = vmatprep.subr.bf16.mxu1 %v10406_v37  ;;  %8464 = vmatpush3.bf16.msra.mxu0 %v8831_v19  ;;  %v8853_v19 = vld [vmem:[#allocation3 + $0x920] ss:$8 sps:$4 sm:$0xff]  }
 0x5cb   : > { %8489 = vmatprep.subr.bf16.mxu0 %v10406_v37 }
 0x64e   : > { %v1969_v10 = vpop.f32.mrf.mxu1 }
 0x64f   : > { %v1973_v18 = vmul.f32 %v1969_v10, %v1813_v46  ;;  %v2453_v10 = vld [vmem:[#allocation8 + $0x14] ss:$0 sm:$0xff] }
 0x650   : > { %v8413_v29 = vpop.f32.mrf.mxu1 }
 0x651   : > { %v1974_v22 = vadd.f32 %v1973_v18, %v1814_v28 }
 0x653   : > { %v7744_v45 = vmul.f32 -1.442695, %v1974_v22 }
 0x65a   : > { %v2114_v63 = vpop.f32.mrf.mxu1 }
 0x65b   : > { %v2118_v21 = vmul.f32 %v2114_v63, %v1813_v46 }
 0x65c   : > { %v8418_v8 = vpop.f32.mrf.mxu1 }
 0x65d   : > { %v2119_v35 = vadd.f32 %v2118_v21, %v1814_v28 }
 0x65f   : > { %v7746_v6 = vmul.f32 -1.442695, %v2119_v35 }
 0x661   : > { %v2259_v59 = vpop.f32.mrf.mxu1  ;;  %9184 = vpow2.f32 %v7746_v6  ;;  %v8833_v6 = vld [vmem:[#allocation3 + $0x760] ss:$8 sps:$4 sm:$0xff]  }
 0x662   : > { %v2263_v20 = vmul.f32 %v2259_v59, %v1813_v46  ;;  %9186 = vpow2.f32 %v7744_v45  ;;  %v8835_v45 = vld [vmem:[#allocation3 + $0x740] ss:$8 sps:$4 sm:$0xff]  }
 0x663   : > { %v8423_v54 = vpop.f32.mrf.mxu1 }
 0x664   : > { %v2264_v38 = vadd.f32 %v2263_v20, %v1814_v28 }
 0x666   : > { %v7748_v30 = vmul.f32 -1.442695, %v2264_v38 }
 0x668   : > { %9188 = vpow2.f32 %v7748_v30  ;;  %v8836_v30 = vld [vmem:[#allocation3 + $0x730] ss:$8 sps:$4 sm:$0xff]  }
 0x66c   : > { %v2404_v52 = vpop.f32.mrf.mxu1 }
 0x66d   : > { %v2408_v3 = vmul.f32 %v2404_v52, %v1813_v46  ;;  %v8837_v52 = vld [vmem:[#allocation3 + $0x720] ss:$8 sps:$4 sm:$0xff]  }
 0x66e   : > { %v8428_v14 = vpop.f32.mrf.mxu1  ;;  %v9185_v25 = vpop.eup %9184 }
 0x66f   : > { %v2409_v53 = vadd.f32 %v2408_v3, %v1814_v28  ;;  %v2123_v42 = vadd.f32 1.0, %v9185_v25  ;;  %v9187_v12 = vpop.eup %9186  ;;  %v8838_v3 = vld [vmem:[#allocation3 + $0x710] ss:$8 sps:$4 sm:$0xff]  }
 0x670   : > { %v1978_v33 = vadd.f32 1.0, %v9187_v12  ;;  %v8840_v14 = vld [vmem:[#allocation3 + $0x870] ss:$8 sps:$4 sm:$0xff]  }
 0x671   : > { %v7750_v23 = vmul.f32 -1.442695, %v2409_v53  ;;  %v8842_v25 = vld [vmem:[#allocation3 + $0x850] ss:$8 sps:$4 sm:$0xff]  }
 0x672   : > { %v8844_v12 = vld [vmem:[#allocation3 + $0x830] ss:$8 sps:$4 sm:$0xff]  }
 0x673   : > { %9190 = vpow2.f32 %v7750_v23  ;;  %v8841_v23 = vld [vmem:[#allocation3 + $0x860] ss:$8 sps:$4 sm:$0xff]  }
 0x674   : > { %9192 = vrcp.f32 %v2123_v42  ;;  %v8843_v42 = vld [vmem:[#allocation3 + $0x840] ss:$8 sps:$4 sm:$0xff]  }
 0x675   : > { %v9189_v5 = vpop.eup %9188  ;;  %9194 = vrcp.f32 %v1978_v33 }
 0x676   : > { %v2268_v55 = vadd.f32 1.0, %v9189_v5  ;;  %v2567_v5 = vld [vmem:[#allocation8 + $0x15] ss:$0 sm:$0xff] }
 0x678   : > { %9196 = vrcp.f32 %v2268_v55 }
 0x680   : > { %v9191_v60 = vpop.eup %9190 }
 0x681   : > { %v2413_v27 = vadd.f32 1.0, %v9191_v60  ;;  %v9193_v1 = vpop.eup %9192 }
 0x682   : > { %v2126_v26 = vmul.f32 %v9193_v1, %v2119_v35  ;;  %v9195_v61 = vpop.eup %9194 }
 0x683   : > { %9198 = vrcp.f32 %v2413_v27  ;;  %v1981_v15 = vmul.f32 %v9195_v61, %v1974_v22  ;;  %v8832_v22 = vld [vmem:[#allocation3 + $0x770] ss:$8 sps:$4 sm:$0xff]  }
 0x684   : > { %v2418_v58 = vrot.slane %v2126_v26, 4 }
 0x685   : > { %v9197_v34 = vpop.eup %9196 }
 0x686   : > { %v2271_v48 = vmul.f32 %v9197_v34, %v2264_v38  ;;  %v10411_v4 = vsel %vm2423_vm5, %v1981_v15, %v2418_v58  ;;  %v8834_v38 = vld [vmem:[#allocation3 + $0x750] ss:$8 sps:$4 sm:$0xff]  }
 0x690   : > { %v9199_v13 = vpop.eup %9198 }
 0x691   : > { %v2416_v40 = vmul.f32 %v9199_v13, %v2409_v53  ;;  %v8839_v53 = vld [vmem:[#allocation3 + $0x700] ss:$8 sps:$4 sm:$0xff]  }
 0x693   : > { %v2421_v31 = vrot.slane %v2416_v40, 4 }
 0x695   : > { %v10414_v9 = vsel %vm2423_vm5, %v2271_v48, %v2421_v31  ;;  %v8845_v31 = vld [vmem:[#allocation3 + $0x820] ss:$8 sps:$4 sm:$0xff]  }
 0x696   : > { %v2426_v24 = vadd.f32 %v10414_v9, %v10411_v4 }
 0x698   : > { %v2427_v50 = vrot.slane %v2426_v24, 4 }
 0x69a   : > { %v2428_v2 = vadd.f32 %v2427_v50, %v2426_v24  ;;  %v8846_v24 = vld [vmem:[#allocation3 + $0x810] ss:$8 sps:$4 sm:$0xff]   ;;  %v8847_v50 = vld [vmem:[#allocation3 + $0x800] ss:$8 sps:$4 sm:$0xff]  }
 0x69c   : > { %v2429_v49 = vrot.slane %v2428_v2, 2 }
 0x69e   : > { %v2430_v17 = vadd.f32 %v2429_v49, %v2428_v2  ;;  %v2775_v2 = vld [vmem:[#allocation8 + $0x16] ss:$0 sm:$0xff] }
 0x6a0   : > { %v2431_v41 = vrot.slane %v2430_v17, 1 }
 0x6a2   : > { %v2432_v16 = vadd.f32 %v2431_v41, %v2430_v17  ;;  %v2778_v17 = vld [vmem:[#allocation8 + $0x17] ss:$0 sm:$0xff] }
 0x6a4   : > { %v2434_v36 = vmul.f32 0.0625, %v2432_v16 }
 0x6a6   : > { %v2435_v47 = vpack.c.bf16 %v2434_v36, %v2434_v36 }
 0x6a8   : > { %8446 = vmatmul.mubr.bf16.vlgmr.msra.gmra.mxu1 %v2435_v47 }
 0x6a9   : > { %8485 = vmatprep.mubr.msk.bf16.mxu1 %vm9501_vm0, %v10406_v37  ;;  %8470 = vmatpush3.bf16.msra.mxu1 %v8832_v22 }
 0x6aa   : > { %8471 = vmatprep.subr.bf16.mxu1 %v10406_v37 }
 0x6ad   : > { %8472 = vmatpush3.bf16.msra.mxu1 %v8833_v6 }
 0x6ae   : > { %8473 = vmatprep.subr.bf16.mxu1 %v10406_v37 }
 0x6b1   : > { %8474 = vmatpush3.bf16.msra.mxu1 %v8834_v38  ;;  %v10471_v38 = vld [vmem:[#allocation6 + $0x80] ss:$0 sm:$0xff] }
 0x6b2   : > { %8475 = vmatprep.subr.bf16.mxu1 %v10406_v37 }
 0x6b5   : > { %8476 = vmatpush3.bf16.msra.mxu1 %v8835_v45  ;;  %v10473_v45 = vld [vmem:[#allocation6 + $0x82] ss:$0 sm:$0xff] }
 0x6b6   : > { %8477 = vmatprep.subr.bf16.mxu1 %v10406_v37 }
 0x6b9   : > { %8478 = vmatpush3.bf16.msra.mxu1 %v8836_v30 }
 0x6ba   : > { %8479 = vmatprep.subr.bf16.mxu1 %v10406_v37 }
 0x6bd   : > { %8480 = vmatpush3.bf16.msra.mxu1 %v8837_v52 }
 0x6be   : > { %8481 = vmatprep.subr.bf16.mxu1 %v10406_v37 }
 0x6c1   : > { %8482 = vmatpush3.bf16.msra.mxu1 %v8838_v3  ;;  %v2942_v3 = vmul.f32 %v10406_v37, %v10471_v38 }
 0x6c2   : > { %8483 = vmatprep.subr.bf16.mxu1 %v10406_v37 }
 0x6c5   : > { %8484 = vmatpush3.bf16.msra.mxu1 %v8839_v53  ;;  %v2972_v53 = vmul.f32 %v10406_v37, %v10473_v45 }
 0x6c6   : > { %8509 = vmatprep.subr.bf16.mxu1 %v10406_v37 }
 0x768   : > { %v2536_v29 = vpop.f32.mrf.mxu1 }
 0x769   : > { %v2537_v63 = vadd.f32 %v2536_v29, %v2453_v10  ;;  %v8854_v10 = vld [vmem:[#allocation3 + $0x910] ss:$8 sps:$4 sm:$0xff]   ;;  %v8855_v29 = vld [vmem:[#allocation3 + $0x900] ss:$8 sps:$4 sm:$0xff]  }
 0x76a   : > { %v8447_v46 = vpop.f32.mrf.mxu1 }
 0x76b   : > { %v7759_v8 = vmul.f32 -1.442695, %v2537_v63 }
 0x76c   : > { %v2539_v21 = vpop.f32.mrf.mxu1 }
 0x76d   : > { %9200 = vpow2.f32 %v7759_v8  ;;  %v2891_v8 = vld [vmem:[#allocation8 + $0x21] ss:$0 sm:$0xff] }
 0x76e   : > { %v8448_v28 = vpop.f32.mrf.mxu1 }
 0x77a   : > { %v9201_v18 = vpop.eup %9200 }
 0x77b   : > { %v2545_v35 = vadd.f32 1.0, %v9201_v18  ;;  %v10467_v18 = vld [vmem:[#allocation6 + $0x81] ss:$0 sm:$0xff] }
 0x77c   : > { %v2951_v22 = vmul.f32 %v10406_v37, %v10467_v18 }
 0x77d   : > { %9202 = vrcp.f32 %v2545_v35 }
 0x78a   : > { %v9203_v59 = vpop.eup %9202 }
 0x78b   : > { %v2548_v20 = vmul.f32 %v9203_v59, %v2537_v63  ;;  %v2888_v63 = vld [vmem:[#allocation8 + $0x20] ss:$0 sm:$0xff] }
 0x78d   : > { %v2549_v54 = vpack.c.bf16 %v2548_v20, %v2548_v20 }
 0x78f   : > { %8466 = vmatmul.mubr.bf16.vlgmr.msra.gmra.mxu0 %v2549_v54 }
 0x790   : > { %8505 = vmatprep.mubr.msk.bf16.mxu0 %vm9501_vm0, %v10406_v37  ;;  %8490 = vmatpush3.bf16.msra.mxu0 %v8840_v14  ;;  %v2959_v14 = vrot.slane %v2951_v22, 1 }
 0x791   : > { %8491 = vmatprep.subr.bf16.mxu0 %v10406_v37 }
 0x794   : > { %8492 = vmatpush3.bf16.msra.mxu0 %v8841_v23  ;;  %v10479_v23 = vld [vmem:[#allocation6 + $0x83] ss:$0 sm:$0xff] }
 0x795   : > { %8493 = vmatprep.subr.bf16.mxu0 %v10406_v37 }
 0x798   : > { %8494 = vmatpush3.bf16.msra.mxu0 %v8842_v25  ;;  %v2967_v25 = vadd.f32 %v2959_v14, %v2942_v3  ;;  %v10538_v3 = vld [vmem:[#allocation6 + $0xa7] ss:$0 sm:$0xff]  ;;  %v10540_v14 = vld [vmem:[#allocation6 + $0xb0] ss:$0 sm:$0xff] }
 0x799   : > { %8495 = vmatprep.subr.bf16.mxu0 %v10406_v37 }
 0x79c   : > { %8496 = vmatpush3.bf16.msra.mxu0 %v8843_v42  ;;  %v2980_v42 = vrot.slane %v2972_v53, 2 }
 0x79d   : > { %8497 = vmatprep.subr.bf16.mxu0 %v10406_v37 }
 0x7a0   : > { %8498 = vmatpush3.bf16.msra.mxu0 %v8844_v12  ;;  %v2993_v12 = vmul.f32 %v10406_v37, %v10479_v23 }
 0x7a1   : > { %8499 = vmatprep.subr.bf16.mxu0 %v10406_v37 }
 0x7a4   : > { %8500 = vmatpush3.bf16.msra.mxu0 %v8845_v31 }
 0x7a5   : > { %8501 = vmatprep.subr.bf16.mxu0 %v10406_v37 }
 0x7a8   : > { %8502 = vmatpush3.bf16.msra.mxu0 %v8846_v24  ;;  %v10497_v24 = vld [vmem:[#allocation6 + $0x87] ss:$0 sm:$0xff] }
 0x7a9   : > { %8503 = vmatprep.subr.bf16.mxu0 %v10406_v37 }
 0x7ac   : > { %8504 = vmatpush3.bf16.msra.mxu0 %v8847_v50 }
 0x7ad   : > { %8529 = vmatprep.subr.bf16.mxu0 %v10406_v37 }
 0x84f   : > { %v2650_v33 = vpop.f32.mrf.mxu0 }
 0x850   : > { %v2651_v55 = vadd.f32 %v2650_v33, %v2567_v5  ;;  %v10483_v5 = vld [vmem:[#allocation6 + $0x84] ss:$0 sm:$0xff]  ;;  %v3001_v33 = vrot.slane %v2993_v12, 3  ;;  %v10556_v12 = vmul.f32 %v10406_v37, %v10540_v14 }
 0x851   : > { %v8467_v60 = vpop.f32.mrf.mxu0 }
 0x852   : > { %v7768_v27 = vmul.f32 -1.442695, %v2651_v55  ;;  %v3014_v55 = vmul.f32 %v10406_v37, %v10483_v5  ;;  %v2988_v60 = vadd.f32 %v2980_v42, %v2967_v25  ;;  %v10552_v42 = vmul.f32 %v10406_v37, %v10538_v3 }
 0x853   : > { %v2653_v1 = vpop.f32.mrf.mxu0 }
 0x854   : > { %9204 = vpow2.f32 %v7768_v27 }
 0x855   : > { %v8468_v26 = vpop.f32.mrf.mxu0 }
 0x856   : > { %v3009_v26 = vadd.f32 %v3001_v33, %v2988_v60  ;;  %v10558_v33 = vld [vmem:[#allocation6 + $0x97] ss:$0 sm:$0xff] }
 0x857   : > { %v10564_v60 = vmul.f32 %v10406_v37, %v10558_v33 }
 0x861   : > { %v9205_v61 = vpop.eup %9204 }
 0x862   : > { %v2659_v34 = vadd.f32 1.0, %v9205_v61  ;;  %v3022_v61 = vrot.slane %v3014_v55, 4 }
 0x864   : > { %9206 = vrcp.f32 %v2659_v34  ;;  %v10487_v34 = vld [vmem:[#allocation6 + $0x85] ss:$0 sm:$0xff] }
 0x871   : > { %v9207_v13 = vpop.eup %9206 }
 0x872   : > { %v2665_v58 = vrot.slane %v9207_v13, %v10169_v32  ;;  %v10489_v13 = vld [vmem:[#allocation6 + $0x86] ss:$0 sm:$0xff] }
 0x873   : > { %v3048_v31 = vmul.f32 %v10406_v37, %v10489_v13 }
 0x874   : > { %v2666_v40 = vmul.f32 %v2665_v58, %v10411_v4  ;;  %v2667_v15 = vmul.f32 %v2665_v58, %v10414_v9 }
 0x876   : > { %v2668_v48 = vpack.c.bf16 %v2667_v15, %v2666_v40  ;;  %v10491_v15 = vadd.f32 %v3022_v61, %v3009_v26 }
 0x878   : > { %8486 = vmatmul.mubr.bf16.vlgmr.msra.gmra.mxu1 %v2668_v48  ;;  %v3039_v48 = vmul.f32 %v10406_v37, %v10487_v34 }
 0x879   : > { %8525 = vmatprep.mubr.msk.bf16.mxu1 %vm9501_vm0, %v10406_v37  ;;  %8510 = vmatpush3.bf16.msra.mxu1 %v8848_v57 }
 0x87a   : > { %8511 = vmatprep.subr.bf16.mxu1 %v10406_v37  ;;  %v3043_v50 = vadd.f32 %v3039_v48, %v10491_v15 }
 0x87d   : > { %8512 = vmatpush3.bf16.msra.mxu1 %v8849_v56 }
 0x87e   : > { %8513 = vmatprep.subr.bf16.mxu1 %v10406_v37 }
 0x881   : > { %8514 = vmatpush3.bf16.msra.mxu1 %v8850_v62 }
 0x882   : > { %8515 = vmatprep.subr.bf16.mxu1 %v10406_v37 }
 0x885   : > { %8516 = vmatpush3.bf16.msra.mxu1 %v8851_v11 }
 0x886   : > { %8517 = vmatprep.subr.bf16.mxu1 %v10406_v37 }
 0x889   : > { %8518 = vmatpush3.bf16.msra.mxu1 %v8852_v0 }
 0x88a   : > { %8519 = vmatprep.subr.bf16.mxu1 %v10406_v37 }
 0x88d   : > { %8520 = vmatpush3.bf16.msra.mxu1 %v8853_v19 }
 0x88e   : > { %8521 = vmatprep.subr.bf16.mxu1 %v10406_v37 }
 0x891   : > { %8522 = vmatpush3.bf16.msra.mxu1 %v8854_v10 }
 0x892   : > { %8523 = vmatprep.subr.bf16.mxu1 %v10406_v37 }
 0x895   : > { %8524 = vmatpush3.bf16.msra.mxu1 %v8855_v29 }
 0x896   : > { %8549 = vmatprep.subr.bf16.mxu1 %v10406_v37 }
 0x938   : > { %v2768_v4 = vpop.f32.mrf.mxu1 }
 0x939   : > { %v2776_v49 = vmul.f32 %v2775_v2, %v2768_v4  ;;  %v3056_v4 = vrot.slane %v3048_v31, 1 }
 0x93a   : > { %v8487_v9 = vpop.f32.mrf.mxu1 }
 0x93b   : > { %v10451_v47 = vadd.f32 %v2778_v17, %v2776_v49  ;;  %v10502_v9 = vld [vmem:[#allocation6 + $0x90] ss:$0 sm:$0xff]  ;;  %v10504_v49 = vld [vmem:[#allocation6 + $0x91] ss:$0 sm:$0xff] }
 0x93c   : > { %v2771_v41 = vpop.f32.mrf.mxu1 }
 0x93d   : > { %v2777_v16 = vmul.f32 %v2775_v2, %v2771_v41  ;;  %v3069_v2 = vmul.f32 %v10406_v37, %v10497_v24 }
 0x93e   : > { %v8488_v36 = vpop.f32.mrf.mxu1 }
 0x93f   : > { %v10453_v43 = vadd.f32 %v2778_v17, %v2777_v16  ;;  %v3064_v17 = vadd.f32 %v3056_v4, %v3043_v50  ;;  %v3077_v41 = vrot.slane %v3069_v2, 2  ;;  %v3090_v16 = vmul.f32 %v10406_v37, %v10502_v9 }
 0x941   : > { %v2781_v44 = vpack.c.bf16 %v10453_v43, %v10451_v47  ;;  %v3085_v56 = vadd.f32 %v3077_v41, %v3064_v17  ;;  %v3098_v62 = vrot.slane %v3090_v16, 3 }
 0x943   : > { %8506 = vmatmul.mubr.bf16.vlgmr.msra.gmra.mxu0 %v2781_v44  ;;  %v3111_v44 = vmul.f32 %v10406_v37, %v10504_v49 }
 0x944   : > { %8545 = vmatprep.mubr.msk.bf16.mxu0 %vm9501_vm0, %v10406_v37 }
 0x945   : > { %v3119_v10 = vrot.slane %v3111_v44, 4 }
 0xa03   : > { %v2881_v46 = vpop.f32.mrf.mxu0 }
 0xa04   : > { %v2889_v21 = vmul.f32 %v2888_v63, %v2881_v46  ;;  %v10512_v46 = vld [vmem:[#allocation6 + $0xa1] ss:$0 sm:$0xff] }
 0xa05   : > { %v8507_v28 = vpop.f32.mrf.mxu0 }
 0xa06   : > { %v2892_v35 = vadd.f32 %v2891_v8, %v2889_v21  ;;  %v3106_v21 = vadd.f32 %v3098_v62, %v3085_v56 }
 0xa07   : > { %v2884_v59 = vpop.f32.mrf.mxu0 }
 0xa08   : > { %v7785_v20 = vmul.f32 -1.442695, %v2892_v35  ;;  %v2890_v54 = vmul.f32 %v2888_v63, %v2884_v59  ;;  %v10510_v63 = vld [vmem:[#allocation6 + $0xa0] ss:$0 sm:$0xff]  ;;  %v10524_v59 = vld [vmem:[#allocation6 + $0xa3] ss:$0 sm:$0xff]  ;;  %v10560_v55 = vadd.f32 %v3119_v10, %v3106_v21 }
 0xa09   : > { %v8508_v6 = vpop.f32.mrf.mxu0  ;;  %v10518_v28 = vmul.f32 %v10406_v37, %v10510_v63 }
 0xa0a   : > { %9208 = vpow2.f32 %v7785_v20  ;;  %v2893_v30 = vadd.f32 %v2891_v8, %v2890_v54  ;;  %v10514_v8 = vld [vmem:[#allocation6 + $0xa2] ss:$0 sm:$0xff]  ;;  %v10526_v20 = vld [vmem:[#allocation6 + $0xa5] ss:$0 sm:$0xff]  ;;  %v10528_v54 = vld [vmem:[#allocation6 + $0xa6] ss:$0 sm:$0xff] }
 0xa0b   : > { %v10544_v53 = vmul.f32 %v10406_v37, %v10526_v20  ;;  %v10548_v25 = vmul.f32 %v10406_v37, %v10528_v54 }
 0xa0c   : > { %v7786_v52 = vmul.f32 -1.442695, %v2893_v30 }
 0xa0e   : > { %9210 = vpow2.f32 %v7786_v52  ;;  %v10536_v52 = vmul.f32 %v10406_v37, %v10524_v59 }
 0xa17   : > { %v9209_v27 = vpop.eup %9208 }
 0xa18   : > { %v2900_v1 = vadd.f32 1.0, %v9209_v27  ;;  %v3253_v27 = vrot.slane %v10518_v28, 1 }
 0xa1a   : > { %9212 = vrcp.f32 %v2900_v1  ;;  %v10567_v1 = vld [vmem:[#allocation6 + $0xa4] ss:$0 sm:$0xff] }
 0xa1b   : > { %v9211_v58 = vpop.eup %9210 }
 0xa1c   : > { %v2901_v40 = vadd.f32 1.0, %v9211_v58 }
 0xa1e   : > { %9214 = vrcp.f32 %v2901_v40  ;;  %v10574_v40 = vmul.f32 %v10406_v37, %v10567_v1 }
 0xa27   : > { %v9213_v36 = vpop.eup %9212 }
 0xa28   : > { %v2906_v57 = vmul.f32 %v9213_v36, %v2892_v35  ;;  %v10522_v35 = vmul.f32 %v10406_v37, %v10512_v46 }
 0xa2a   : > { %v2921_v11 = vrot.slane %v2906_v57, 6  ;;  %v2924_v0 = vrot.slane %v2906_v57, 2  ;;  %v3274_v26 = vrot.slane %v10522_v35, 2 }
 0xa2b   : > { %v9215_v19 = vpop.eup %9214 }
 0xa2c   : > { %2923 = vst [vmem:[#allocation2 + $0x40] sm:$0x3c] %v2921_v11  ;;  %2926 = vst [vmem:[#allocation2 + $0x60] sm:$0x3c] %v2924_v0  ;;  %v2907_v29 = vmul.f32 %v9215_v19, %v2893_v30  ;;  %v10532_v30 = vmul.f32 %v10406_v37, %v10514_v8 }
 0xa2e   : > { %v2928_v22 = vrot.slane %v2907_v29, 6  ;;  %v2931_v6 = vrot.slane %v2907_v29, 2  ;;  %v3295_v61 = vrot.slane %v10532_v30, 3 }
 0xa30   : > { %2930 = vst [vmem:[#allocation2 + $0x80] sm:$0x3c] %v2928_v22  ;;  %2933 = vst [vmem:[#allocation2 + $0xa0] sm:$0x3c] %v2931_v6 }
 0xa33   : > { %v10576_v48 = vld [vmem:[#allocation2 + $0x40] sm:$0xff] }
 0xa34   : > { %v10578_v31 = vld [vmem:[#allocation2 + $0x60] sm:$0xff]  ;;  %3956 = vst [vmem:[#allocation2 + $0x45] sm:$0x1] %v10406_v37  ;;  %3952 = vst [vmem:[#allocation2 + $0x40] sm:$0x1] %v10406_v37  ;;  %v2944_v41 = vmul.f32 %v10471_v38, %v10576_v48  ;;  %v2953_v36 = vmul.f32 %v10467_v18, %v10576_v48  ;;  %v2974_v57 = vmul.f32 %v10473_v45, %v10576_v48 }
 0xa35   : > { %3957 = vst [vmem:[#allocation2 + $0x65] sm:$0x1] %v10406_v37  ;;  %3953 = vst [vmem:[#allocation2 + $0x60] sm:$0x1] %v10406_v37  ;;  %v2945_v16 = vmul.f32 %v10471_v38, %v10578_v31  ;;  %v2954_v44 = vmul.f32 %v10467_v18, %v10578_v31  ;;  %v2975_v56 = vmul.f32 %v10473_v45, %v10578_v31 }
 0xa36   : > { %v2995_v62 = vmul.f32 %v10479_v23, %v10576_v48  ;;  %v2996_v11 = vmul.f32 %v10479_v23, %v10578_v31  ;;  %v2961_v0 = vrot.slane %v2953_v36, 1  ;;  %v3016_v19 = vmul.f32 %v10483_v5, %v10576_v48 }
 0xa37   : > { %v2962_v38 = vrot.slane %v2954_v44, 1  ;;  %v3017_v18 = vmul.f32 %v10483_v5, %v10578_v31  ;;  %v10608_v10 = vld [vmem:[#allocation2 + $0x80] sm:$0xff]  ;;  %v2982_v29 = vrot.slane %v2974_v57, 2  ;;  %v2983_v21 = vrot.slane %v2975_v56, 2 }
 0xa38   : > { %v3003_v22 = vrot.slane %v2995_v62, 3  ;;  %v3004_v45 = vrot.slane %v2996_v11, 3  ;;  %v10610_v6 = vld [vmem:[#allocation2 + $0xa0] sm:$0xff]  ;;  %v2969_v51 = vadd.f32 %v2961_v0, %v2944_v41  ;;  %v3024_v2 = vrot.slane %v3016_v19, 4  ;;  %3954 = vst [vmem:[#allocation2 + $0x80] sm:$0x1] %v10406_v37 }
 0xa39   : > { %v2970_v17 = vadd.f32 %v2962_v38, %v2945_v16  ;;  %v3025_v23 = vrot.slane %v3017_v18, 4  ;;  %3950 = vst [vmem:[#allocation2 + $0xa0] sm:$0x3f] %v10406_v37  ;;  %3958 = vst [vmem:[#allocation2 + $0x85] sm:$0x1] %v10406_v37  ;;  %v3040_v5 = vmul.f32 %v10487_v34, %v10576_v48  ;;  %v3041_v36 = vmul.f32 %v10487_v34, %v10578_v31 }
 0xa3a   : > { %v3042_v44 = vmul.f32 %v10487_v34, %v10608_v10  ;;  %v3049_v41 = vmul.f32 %v10489_v13, %v10576_v48  ;;  %4774 = vst [vmem:[#allocation2 + $0xa0] sm:$0x3f] %v10406_v37  ;;  %v2990_v16 = vadd.f32 %v2982_v29, %v2969_v51  ;;  %v3050_v56 = vmul.f32 %v10489_v13, %v10578_v31 }
 0xa3b   : > { %v2991_v57 = vadd.f32 %v2983_v21, %v2970_v17  ;;  %v3051_v62 = vmul.f32 %v10489_v13, %v10608_v10  ;;  %v3044_v11 = vadd.f32 %v3040_v5, %v10491_v15  ;;  %v3070_v38 = vmul.f32 %v10497_v24, %v10576_v48 }
 0xa3c   : > { %v3057_v0 = vrot.slane %v3049_v41, 1  ;;  %v3071_v34 = vmul.f32 %v10497_v24, %v10578_v31  ;;  %v3011_v19 = vadd.f32 %v3003_v22, %v2990_v16  ;;  %v3058_v37 = vrot.slane %v3050_v56, 1  ;;  %v3135_v16 = vld [vmem:[#allocation6 + $0x92] ss:$0 sm:$0xff] }
 0xa3d   : > { %v3012_v18 = vadd.f32 %v3004_v45, %v2991_v57  ;;  %v3059_v51 = vrot.slane %v3051_v62, 1  ;;  %v3072_v29 = vmul.f32 %v10497_v24, %v10608_v10  ;;  %v3078_v21 = vrot.slane %v3070_v38, 2 }
 0xa3e   : > { %v3065_v17 = vadd.f32 %v3057_v0, %v3044_v11  ;;  %v3079_v4 = vrot.slane %v3071_v34, 2  ;;  %v3032_v13 = vadd.f32 %v3024_v2, %v3011_v19  ;;  %v3091_v15 = vmul.f32 %v10502_v9, %v10576_v48 }
 0xa3f   : > { %v3033_v50 = vadd.f32 %v3025_v23, %v3012_v18  ;;  %v3092_v5 = vmul.f32 %v10502_v9, %v10578_v31  ;;  %v3080_v41 = vrot.slane %v3072_v29, 2  ;;  %v3093_v22 = vmul.f32 %v10502_v9, %v10608_v10  ;;  %v3144_v18 = vld [vmem:[#allocation6 + $0x93] ss:$0 sm:$0xff] }
 0xa40   : > { %v3086_v58 = vadd.f32 %v3078_v21, %v3065_v17  ;;  %v3112_v45 = vmul.f32 %v10504_v49, %v10576_v48  ;;  %v3045_v24 = vadd.f32 %v3041_v36, %v3032_v13  ;;  %v3099_v56 = vrot.slane %v3091_v15, 3 }
 0xa41   : > { %v3046_v57 = vadd.f32 %v3042_v44, %v3033_v50  ;;  %v3100_v2 = vrot.slane %v3092_v5, 3  ;;  %v3101_v23 = vrot.slane %v3093_v22, 3  ;;  %v3113_v62 = vmul.f32 %v10504_v49, %v10578_v31  ;;  %v3165_v5 = vld [vmem:[#allocation6 + $0x94] ss:$0 sm:$0xff] }
 0xa42   : > { %v3114_v11 = vmul.f32 %v10504_v49, %v10608_v10  ;;  %v3120_v0 = vrot.slane %v3112_v45, 4  ;;  %v3066_v38 = vadd.f32 %v3058_v37, %v3045_v24  ;;  %v3107_v19 = vadd.f32 %v3099_v56, %v3086_v58 }
 0xa43   : > { %v3067_v34 = vadd.f32 %v3059_v51, %v3046_v57  ;;  %v3136_v9 = vmul.f32 %v3135_v16, %v10576_v48  ;;  %v3121_v17 = vrot.slane %v3113_v62, 4  ;;  %v3137_v50 = vmul.f32 %v3135_v16, %v10578_v31 }
 0xa44   : > { %v3122_v29 = vrot.slane %v3114_v11, 4  ;;  %v3138_v36 = vmul.f32 %v3135_v16, %v10608_v10  ;;  %v3087_v44 = vadd.f32 %v3079_v4, %v3066_v38  ;;  %v3128_v13 = vadd.f32 %v3120_v0, %v3107_v19  ;;  %v3186_v38 = vld [vmem:[#allocation6 + $0x95] ss:$0 sm:$0xff] }
 0xa45   : > { %v3088_v21 = vadd.f32 %v3080_v41, %v3067_v34  ;;  %v3139_v15 = vmul.f32 %v3135_v16, %v10610_v6  ;;  %v3140_v49 = vadd.f32 %v3136_v9, %v10560_v55  ;;  %v3145_v37 = vmul.f32 %v3144_v18, %v10576_v48 }
 0xa46   : > { %v3146_v58 = vmul.f32 %v3144_v18, %v10578_v31  ;;  %v3147_v51 = vmul.f32 %v3144_v18, %v10608_v10  ;;  %v3108_v22 = vadd.f32 %v3100_v2, %v3087_v44  ;;  %v3141_v24 = vadd.f32 %v3137_v50, %v3128_v13 }
 0xa47   : > { %v3109_v45 = vadd.f32 %v3101_v23, %v3088_v21  ;;  %v3148_v57 = vmul.f32 %v3144_v18, %v10610_v6  ;;  %v3153_v56 = vrot.slane %v3145_v37, 1  ;;  %v3166_v62 = vmul.f32 %v3165_v5, %v10576_v48 }
 0xa48   : > { %v3154_v4 = vrot.slane %v3146_v58, 1  ;;  %v3155_v41 = vrot.slane %v3147_v51, 1  ;;  %v3129_v16 = vadd.f32 %v3121_v17, %v3108_v22  ;;  %v3167_v55 = vmul.f32 %v3165_v5, %v10578_v31 }
 0xa49   : > { %v3130_v11 = vadd.f32 %v3122_v29, %v3109_v45  ;;  %v3156_v0 = vrot.slane %v3148_v57, 1  ;;  %v3161_v34 = vadd.f32 %v3153_v56, %v3140_v49  ;;  %v3168_v9 = vmul.f32 %v3165_v5, %v10608_v10  ;;  %v3207_v29 = vld [vmem:[#allocation6 + $0x96] ss:$0 sm:$0xff] }
 0xa4a   : > { %v3162_v19 = vadd.f32 %v3154_v4, %v3141_v24  ;;  %v3169_v2 = vmul.f32 %v3165_v5, %v10610_v6  ;;  %v3142_v23 = vadd.f32 %v3138_v36, %v3129_v16  ;;  %v3174_v18 = vrot.slane %v3166_v62, 2 }
 0xa4b   : > { %v3143_v50 = vadd.f32 %v3139_v15, %v3130_v11  ;;  %v3175_v44 = vrot.slane %v3167_v55, 2  ;;  %v3176_v21 = vrot.slane %v3168_v9, 2  ;;  %v3187_v37 = vmul.f32 %v3186_v38, %v10576_v48 }
 0xa4c   : > { %v3177_v13 = vrot.slane %v3169_v2, 2  ;;  %v3188_v17 = vmul.f32 %v3186_v38, %v10578_v31  ;;  %v3163_v58 = vadd.f32 %v3155_v41, %v3142_v23  ;;  %v3182_v22 = vadd.f32 %v3174_v18, %v3161_v34 }
 0xa4d   : > { %v3164_v51 = vadd.f32 %v3156_v0, %v3143_v50  ;;  %v3183_v49 = vadd.f32 %v3175_v44, %v3162_v19  ;;  %v3189_v45 = vmul.f32 %v3186_v38, %v10608_v10  ;;  %v3190_v24 = vmul.f32 %v3186_v38, %v10610_v6 }
 0xa4e   : > { %v3195_v5 = vrot.slane %v3187_v37, 3  ;;  %v3196_v36 = vrot.slane %v3188_v17, 3  ;;  %v3184_v15 = vadd.f32 %v3176_v21, %v3163_v58  ;;  %v3208_v56 = vmul.f32 %v3207_v29, %v10576_v48 }
 0xa4f   : > { %v3185_v57 = vadd.f32 %v3177_v13, %v3164_v51  ;;  %v3209_v4 = vmul.f32 %v3207_v29, %v10578_v31  ;;  %v3197_v62 = vrot.slane %v3189_v45, 3  ;;  %v3198_v16 = vrot.slane %v3190_v24, 3 }
 0xa50   : > { %v3203_v11 = vadd.f32 %v3195_v5, %v3182_v22  ;;  %v3204_v55 = vadd.f32 %v3196_v36, %v3183_v49  ;;  %v3210_v41 = vmul.f32 %v3207_v29, %v10608_v10  ;;  %v3211_v0 = vmul.f32 %v3207_v29, %v10610_v6 }
 0xa51   : > { %v3216_v34 = vrot.slane %v3208_v56, 4  ;;  %v3217_v19 = vrot.slane %v3209_v4, 4  ;;  %v3205_v9 = vadd.f32 %v3197_v62, %v3184_v15  ;;  %v3206_v38 = vadd.f32 %v3198_v16, %v3185_v57 }
 0xa52   : > { %v3233_v2 = vmul.f32 %v10558_v33, %v10578_v31  ;;  %v3234_v48 = vmul.f32 %v10558_v33, %v10608_v10  ;;  %v3218_v23 = vrot.slane %v3210_v41, 4  ;;  %v3219_v50 = vrot.slane %v3211_v0, 4 }
 0xa53   : > { %v3224_v18 = vadd.f32 %v3216_v34, %v3203_v11  ;;  %v3225_v44 = vadd.f32 %v3217_v19, %v3204_v55  ;;  %v3235_v21 = vmul.f32 %v10558_v33, %v10610_v6  ;;  %v3242_v13 = vmul.f32 %v10510_v63, %v10578_v31 }
 0xa54   : > { %v3243_v37 = vmul.f32 %v10510_v63, %v10608_v10  ;;  %v3244_v17 = vmul.f32 %v10510_v63, %v10610_v6  ;;  %v3226_v29 = vadd.f32 %v3218_v23, %v3205_v9  ;;  %v3227_v58 = vadd.f32 %v3219_v50, %v3206_v38 }
 0xa55   : > { %v3237_v51 = vadd.f32 %v3233_v2, %v3224_v18  ;;  %v3238_v22 = vadd.f32 %v3234_v48, %v3225_v44  ;;  %v3250_v49 = vrot.slane %v3242_v13, 1  ;;  %v3263_v5 = vmul.f32 %v10512_v46, %v10578_v31 }
 0xa56   : > { %v3251_v45 = vrot.slane %v3243_v37, 1  ;;  %v3252_v24 = vrot.slane %v3244_v17, 1  ;;  %v3239_v33 = vadd.f32 %v3235_v21, %v3226_v29  ;;  %v3240_v36 = vadd.f32 %v10564_v60, %v3227_v58 }
 0xa57   : > { %v3264_v15 = vmul.f32 %v10512_v46, %v10608_v10  ;;  %v3265_v57 = vmul.f32 %v10512_v46, %v10610_v6  ;;  %v3258_v63 = vadd.f32 %v3250_v49, %v3237_v51  ;;  %v3271_v4 = vrot.slane %v3263_v5, 2 }
 0xa58   : > { %v3259_v56 = vadd.f32 %v3251_v45, %v3238_v22  ;;  %v3284_v62 = vmul.f32 %v10514_v8, %v10578_v31  ;;  %v3260_v16 = vadd.f32 %v3252_v24, %v3239_v33  ;;  %v3261_v11 = vadd.f32 %v3253_v27, %v3240_v36 }
 0xa59   : > { %v3272_v55 = vrot.slane %v3264_v15, 2  ;;  %v3273_v41 = vrot.slane %v3265_v57, 2  ;;  %v3279_v0 = vadd.f32 %v3271_v4, %v3258_v63  ;;  %v3285_v60 = vmul.f32 %v10514_v8, %v10608_v10 }
 0xa5a   : > { %v3286_v34 = vmul.f32 %v10514_v8, %v10610_v6  ;;  %v3292_v46 = vrot.slane %v3284_v62, 3  ;;  %v3282_v38 = vadd.f32 %v3274_v26, %v3261_v11  ;;  %v3305_v2 = vmul.f32 %v10524_v59, %v10578_v31 }
 0xa5b   : > { %v3280_v19 = vadd.f32 %v3272_v55, %v3259_v56  ;;  %v3281_v9 = vadd.f32 %v3273_v41, %v3260_v16  ;;  %v3293_v28 = vrot.slane %v3285_v60, 3  ;;  %v3306_v23 = vmul.f32 %v10524_v59, %v10608_v10 }
 0xa5c   : > { %v3294_v27 = vrot.slane %v3286_v34, 3  ;;  %v3300_v48 = vadd.f32 %v3292_v46, %v3279_v0  ;;  %v3303_v50 = vadd.f32 %v3295_v61, %v3282_v38  ;;  %v3307_v8 = vmul.f32 %v10524_v59, %v10610_v6 }
 0xa5d   : > { %v3313_v18 = vrot.slane %v3305_v2, 4  ;;  %v3330_v35 = vmul.f32 %v10567_v1, %v10608_v10  ;;  %v3301_v26 = vadd.f32 %v3293_v28, %v3280_v19  ;;  %v3314_v21 = vrot.slane %v3306_v23, 4  ;;  %v2934_v2 = vld [vmem:[#allocation8 + $0x22] ss:$0 sm:$0xff] }
 0xa5e   : > { %v3302_v44 = vadd.f32 %v3294_v27, %v3281_v9  ;;  %v3331_v31 = vmul.f32 %v10567_v1, %v10610_v6  ;;  %v3315_v13 = vrot.slane %v3307_v8, 4  ;;  %v11568_v17 = vrot.slane %v10536_v52, 4 }
 0xa5f   : > { %v3321_v37 = vadd.f32 %v3313_v18, %v3300_v48  ;;  %v3339_v30 = vmul.f32 %v10526_v20, %v10608_v10  ;;  %v3322_v61 = vadd.f32 %v3314_v21, %v3301_v26  ;;  %v3340_v59 = vmul.f32 %v10526_v20, %v10610_v6 }
 0xa60   : > { %v3324_v29 = vadd.f32 %v11568_v17, %v3303_v50  ;;  %v3360_v58 = vmul.f32 %v10528_v54, %v10608_v10  ;;  %v3361_v51 = vmul.f32 %v10528_v54, %v10610_v6  ;;  %v3323_v22 = vadd.f32 %v3315_v13, %v3302_v44  ;;  %v2935_v50 = vld [vmem:[#allocation8 + $0x23] ss:$0 sm:$0xff] }
 0xa61   : > { %v3334_v1 = vadd.f32 %v3330_v35, %v3321_v37  ;;  %v3347_v45 = vrot.slane %v3339_v30, 1  ;;  %v3335_v52 = vadd.f32 %v3331_v31, %v3322_v61  ;;  %v3348_v24 = vrot.slane %v3340_v59, 1 }
 0xa62   : > { %v3337_v49 = vadd.f32 %v10574_v40, %v3324_v29  ;;  %v3368_v5 = vrot.slane %v3360_v58, 2  ;;  %v3369_v33 = vrot.slane %v3361_v51, 2  ;;  %v3336_v36 = vadd.f32 %v10574_v40, %v3323_v22 }
 0xa63   : > { %v3355_v15 = vadd.f32 %v3347_v45, %v3334_v1  ;;  %v11569_v20 = vrot.slane %v10544_v53, 1  ;;  %v3381_v63 = vmul.f32 %v10538_v3, %v10608_v10  ;;  %v3356_v56 = vadd.f32 %v3348_v24, %v3335_v52 }
 0xa64   : > { %v3382_v54 = vmul.f32 %v10538_v3, %v10610_v6  ;;  %v3402_v4 = vmul.f32 %v10540_v14, %v10608_v10  ;;  %v3403_v62 = vmul.f32 %v10540_v14, %v10610_v6  ;;  %v11571_v55 = vrot.slane %v10548_v25, 2 }
 0xa65   : > { %v3358_v57 = vadd.f32 %v11569_v20, %v3337_v49  ;;  %v11570_v16 = vmov %v11569_v20  ;;  %v3376_v11 = vadd.f32 %v3368_v5, %v3355_v15  ;;  %v3389_v0 = vrot.slane %v3381_v63, 3 }
 0xa66   : > { %v3357_v40 = vadd.f32 %v11570_v16, %v3336_v36  ;;  %v3377_v60 = vadd.f32 %v3369_v33, %v3356_v56  ;;  %v3390_v34 = vrot.slane %v3382_v54, 3  ;;  %v11572_v46 = vmov %v11571_v55 }
 0xa67   : > { %v3379_v41 = vadd.f32 %v11571_v55, %v3358_v57  ;;  %v3397_v3 = vadd.f32 %v3389_v0, %v3376_v11  ;;  %v11573_v9 = vrot.slane %v10552_v42, 3  ;;  %v3410_v38 = vrot.slane %v3402_v4, 4 }
 0xa68   : > { %v3378_v19 = vadd.f32 %v11572_v46, %v3357_v40  ;;  %v3398_v14 = vadd.f32 %v3390_v34, %v3377_v60  ;;  %v3411_v6 = vrot.slane %v3403_v62, 4  ;;  %v11575_v48 = vrot.slane %v10556_v12, 4  ;;  %v10753_v46 = vld [vmem:[#allocation2 + $0x120] sm:$0xff] }
 0xa69   : > { %v3400_v10 = vadd.f32 %v11573_v9, %v3379_v41  ;;  %v11574_v53 = vmov %v11573_v9  ;;  %v3418_v27 = vadd.f32 %v3410_v38, %v3397_v3  ;;  %v8857_v3 = vld [vmem:[#allocation3 + $0xa60] ss:$8 sps:$4 sm:$0xff]   ;;  %v8858_v9 = vld [vmem:[#allocation3 + $0xa50] ss:$8 sps:$4 sm:$0xff]  }
 0xa6a   : > { %v3399_v28 = vadd.f32 %v11574_v53, %v3378_v19  ;;  %v3419_v8 = vadd.f32 %v3411_v6, %v3398_v14  ;;  %v11576_v25 = vmov %v11575_v48  ;;  %v8856_v19 = vld [vmem:[#allocation3 + $0xa70] ss:$8 sps:$4 sm:$0xff]   ;;  %v8863_v6 = vld [vmem:[#allocation3 + $0xa00] ss:$8 sps:$4 sm:$0xff]   ;;  %v3492_v53 = vld [vmem:[#allocation8 + $0x24] ss:$0 sm:$0xff] }
 0xa6b   : > { %v3421_v23 = vadd.f32 %v11575_v48, %v3400_v10  ;;  %v3422_v35 = vmul.f32 %v3418_v27, %v2934_v2  ;;  %8530 = vmatpush3.bf16.msra.mxu0 %v8856_v19  ;;  %v8859_v10 = vld [vmem:[#allocation3 + $0xa40] ss:$8 sps:$4 sm:$0xff]   ;;  %v8860_v38 = vld [vmem:[#allocation3 + $0xa30] ss:$8 sps:$4 sm:$0xff]  }
 0xa6c   : > { %v3420_v18 = vadd.f32 %v11576_v25, %v3399_v28  ;;  %v3423_v44 = vmul.f32 %v3419_v8, %v2934_v2  ;;  %8531 = vmatprep.subr.bf16.mxu0 %v10753_v46  ;;  %v8862_v14 = vld [vmem:[#allocation3 + $0xa10] ss:$8 sps:$4 sm:$0xff]  }
 0xa6d   : > { %v3425_v26 = vmul.f32 %v3421_v23, %v2934_v2  ;;  %v3426_v31 = vadd.f32 %v3422_v35, %v2935_v50 }
 0xa6e   : > { %v3424_v21 = vmul.f32 %v3420_v18, %v2934_v2  ;;  %v3427_v37 = vadd.f32 %v3423_v44, %v2935_v50  ;;  %v8861_v2 = vld [vmem:[#allocation3 + $0xa20] ss:$8 sps:$4 sm:$0xff]  }
 0xa6f   : > { %v3429_v13 = vadd.f32 %v3425_v26, %v2935_v50  ;;  %v7787_v29 = vmul.f32 -1.442695, %v3426_v31  ;;  %8532 = vmatpush3.bf16.msra.mxu0 %v8857_v3 }
 0xa70   : > { %v3428_v17 = vadd.f32 %v3424_v21, %v2935_v50  ;;  %v7788_v42 = vmul.f32 -1.442695, %v3427_v37  ;;  %8533 = vmatprep.subr.bf16.mxu0 %v10753_v46  ;;  %v8864_v21 = vld [vmem:[#allocation3 + $0xb70] ss:$8 sps:$4 sm:$0xff]  }
 0xa71   : > { %v7790_v30 = vmul.f32 -1.442695, %v3429_v13  ;;  %9216 = vpow2.f32 %v7787_v29  ;;  %v8869_v29 = vld [vmem:[#allocation3 + $0xb20] ss:$8 sps:$4 sm:$0xff]  }
 0xa72   : > { %v7789_v61 = vmul.f32 -1.442695, %v3428_v17  ;;  %9218 = vpow2.f32 %v7788_v42  ;;  %v8872_v42 = vld [vmem:[#allocation3 + $0xc70] ss:$8 sps:$4 sm:$0xff]  }
 0xa73   : > { %8534 = vmatpush3.bf16.msra.mxu0 %v8858_v9 }
 0xa74   : > { %9220 = vpow2.f32 %v7789_v61  ;;  %8535 = vmatprep.subr.bf16.mxu0 %v10753_v46  ;;  %v8873_v61 = vld [vmem:[#allocation3 + $0xc60] ss:$8 sps:$4 sm:$0xff]  }
 0xa75   : > { %9222 = vpow2.f32 %v7790_v30  ;;  %v8870_v30 = vld [vmem:[#allocation3 + $0xb10] ss:$8 sps:$4 sm:$0xff]  }
 0xa77   : > { %8536 = vmatpush3.bf16.msra.mxu0 %v8859_v10 }
 0xa78   : > { %8537 = vmatprep.subr.bf16.mxu0 %v10753_v46 }
 0xa7b   : > { %8538 = vmatpush3.bf16.msra.mxu0 %v8860_v38 }
 0xa7c   : > { %8539 = vmatprep.subr.bf16.mxu0 %v10753_v46 }
 0xa7e   : > { %v9217_v59 = vpop.eup %9216 }
 0xa7f   : > { %v9219_v58 = vpop.eup %9218  ;;  %v3442_v12 = vadd.f32 1.0, %v9217_v59  ;;  %8540 = vmatpush3.bf16.msra.mxu0 %v8861_v2  ;;  %v8871_v59 = vld [vmem:[#allocation3 + $0xb00] ss:$8 sps:$4 sm:$0xff]  }
 0xa80   : > { %v3443_v22 = vadd.f32 1.0, %v9219_v58  ;;  %8541 = vmatprep.subr.bf16.mxu0 %v10753_v46  ;;  %v8874_v58 = vld [vmem:[#allocation3 + $0xc50] ss:$8 sps:$4 sm:$0xff]   ;;  %v3975_v2 = vld [vmem:[#allocation2] sm:$0x3f] }
 0xa81   : > { %v9221_v51 = vpop.eup %9220  ;;  %9224 = vrcp.f32 %v3442_v12  ;;  %v8875_v12 = vld [vmem:[#allocation3 + $0xc40] ss:$8 sps:$4 sm:$0xff]   ;;  %4768 = vst [vmem:[#allocation2] sm:$0x3f] %v10753_v46 }
 0xa82   : > { %v9223_v1 = vpop.eup %9222  ;;  %v3444_v49 = vadd.f32 1.0, %v9221_v51  ;;  %9226 = vrcp.f32 %v3443_v22  ;;  %v8876_v51 = vld [vmem:[#allocation3 + $0xc30] ss:$8 sps:$4 sm:$0xff]   ;;  %v3606_v22 = vld [vmem:[#allocation8 + $0x25] ss:$0 sm:$0xff] }
 0xa83   : > { %v3445_v45 = vadd.f32 1.0, %v9223_v1  ;;  %8542 = vmatpush3.bf16.msra.mxu0 %v8862_v14 }
 0xa84   : > { %9228 = vrcp.f32 %v3444_v49  ;;  %8543 = vmatprep.subr.bf16.mxu0 %v10753_v46 }
 0xa85   : > { %9230 = vrcp.f32 %v3445_v45 }
 0xa87   : > { %8544 = vmatpush3.bf16.msra.mxu0 %v8863_v6  ;;  %v3929_v6 = vld [vmem:[#allocation8 + $0x30] ss:$0 sm:$0xff] }
 0xa88   : > { %8569 = vmatprep.subr.bf16.mxu0 %v10753_v46  ;;  %v10793_v14 = vld [vmem:[#allocation2] sm:$0x3f] }
 0xa89   : > { %6377 = vst [vmem:[#allocation2] sm:$0xf] %v10753_v46 }
 0xa8e   : > { %v9225_v52 = vpop.eup %9224 }
 0xa8f   : > { %v9227_v24 = vpop.eup %9226  ;;  %v3454_v57 = vmul.f32 %v9225_v52, %v3426_v31  ;;  %v8865_v31 = vld [vmem:[#allocation3 + $0xb60] ss:$8 sps:$4 sm:$0xff]  }
 0xa90   : > { %v3455_v33 = vmul.f32 %v9227_v24, %v3427_v37  ;;  %v8867_v37 = vld [vmem:[#allocation3 + $0xb40] ss:$8 sps:$4 sm:$0xff]  }
 0xa91   : > { %v9229_v5 = vpop.eup %9228 }
 0xa92   : > { %v9231_v36 = vpop.eup %9230  ;;  %v3459_v20 = vrot.slane %v3455_v33, 4  ;;  %v3456_v63 = vmul.f32 %v9229_v5, %v3428_v17  ;;  %v8868_v17 = vld [vmem:[#allocation3 + $0xb30] ss:$8 sps:$4 sm:$0xff]  }
 0xa93   : > { %v3457_v15 = vmul.f32 %v9231_v36, %v3429_v13  ;;  %v8866_v13 = vld [vmem:[#allocation3 + $0xb50] ss:$8 sps:$4 sm:$0xff]  }
 0xa94   : > { %v10746_v54 = vsel %vm2423_vm5, %v3454_v57, %v3459_v20 }
 0xa95   : > { %v3462_v56 = vrot.slane %v3457_v15, 4 }
 0xa97   : > { %v10749_v4 = vsel %vm2423_vm5, %v3456_v63, %v3462_v56 }
 0xa98   : > { %v3466_v62 = vadd.f32 %v10749_v4, %v10746_v54 }
 0xa9a   : > { %v3467_v16 = vrot.slane %v3466_v62, 4 }
 0xa9c   : > { %v3468_v40 = vadd.f32 %v3467_v16, %v3466_v62  ;;  %v8877_v62 = vld [vmem:[#allocation3 + $0xc20] ss:$8 sps:$4 sm:$0xff]   ;;  %v8878_v16 = vld [vmem:[#allocation3 + $0xc10] ss:$8 sps:$4 sm:$0xff]  }
 0xa9e   : > { %v3469_v11 = vrot.slane %v3468_v40, 2 }
 0xaa0   : > { %v3470_v55 = vadd.f32 %v3469_v11, %v3468_v40  ;;  %v8879_v40 = vld [vmem:[#allocation3 + $0xc00] ss:$8 sps:$4 sm:$0xff]  }
 0xaa2   : > { %v3471_v41 = vrot.slane %v3470_v55, 1 }
 0xaa4   : > { %v3472_v0 = vadd.f32 %v3471_v41, %v3470_v55  ;;  %v3817_v55 = vld [vmem:[#allocation8 + $0x27] ss:$0 sm:$0xff] }
 0xaa6   : > { %v3473_v60 = vmul.f32 0.0625, %v3472_v0 }
 0xaa8   : > { %v3474_v34 = vpack.c.bf16 %v3473_v60, %v3473_v60 }
 0xaaa   : > { %8526 = vmatmul.mubr.bf16.vlgmr.msra.gmra.mxu1 %v3474_v34 }
 0xaab   : > { %8565 = vmatprep.mubr.msk.bf16.mxu1 %vm9501_vm0, %v10753_v46  ;;  %8550 = vmatpush3.bf16.msra.mxu1 %v8864_v21 }
 0xaac   : > { %8551 = vmatprep.subr.bf16.mxu1 %v10753_v46 }
 0xaaf   : > { %8552 = vmatpush3.bf16.msra.mxu1 %v8865_v31  ;;  %v3980_v31 = vld [vmem:[#allocation6 + $0xc1] ss:$0 sm:$0xff] }
 0xab0   : > { %8553 = vmatprep.subr.bf16.mxu1 %v10753_v46 }
 0xab3   : > { %8554 = vmatpush3.bf16.msra.mxu1 %v8866_v13  ;;  %v3977_v13 = vld [vmem:[#allocation6 + $0xc0] ss:$0 sm:$0xff] }
 0xab4   : > { %8555 = vmatprep.subr.bf16.mxu1 %v10753_v46 }
 0xab7   : > { %8556 = vmatpush3.bf16.msra.mxu1 %v8867_v37  ;;  %v3981_v37 = vmul.f32 %v3980_v31, %v3975_v2 }
 0xab8   : > { %8557 = vmatprep.subr.bf16.mxu1 %v10753_v46 }
 0xabb   : > { %8558 = vmatpush3.bf16.msra.mxu1 %v8868_v17 }
 0xabc   : > { %8559 = vmatprep.subr.bf16.mxu1 %v10753_v46 }
 0xabf   : > { %8560 = vmatpush3.bf16.msra.mxu1 %v8869_v29  ;;  %v3986_v29 = vld [vmem:[#allocation6 + $0xc2] ss:$0 sm:$0xff] }
 0xac0   : > { %8561 = vmatprep.subr.bf16.mxu1 %v10753_v46 }
 0xac3   : > { %8562 = vmatpush3.bf16.msra.mxu1 %v8870_v30  ;;  %v3978_v30 = vmul.f32 %v3977_v13, %v3975_v2 }
 0xac4   : > { %8563 = vmatprep.subr.bf16.mxu1 %v10753_v46 }
 0xac7   : > { %8564 = vmatpush3.bf16.msra.mxu1 %v8871_v59 }
 0xac8   : > { %8599 = vmatprep.subr.bf16.mxu1 %v10753_v46 }
 0xb6a   : > { %v3575_v28 = vpop.f32.mrf.mxu1 }
 0xb6b   : > { %v3576_v27 = vadd.f32 %v3575_v28, %v3492_v53  ;;  %v3932_v28 = vld [vmem:[#allocation8 + $0x31] ss:$0 sm:$0xff] }
 0xb6c   : > { %v8527_v48 = vpop.f32.mrf.mxu1 }
 0xb6d   : > { %v7799_v23 = vmul.f32 -1.442695, %v3576_v27 }
 0xb6e   : > { %v3578_v50 = vpop.f32.mrf.mxu1 }
 0xb6f   : > { %9232 = vpow2.f32 %v7799_v23 }
 0xb70   : > { %v8528_v8 = vpop.f32.mrf.mxu1 }
 0xb7c   : > { %v9233_v25 = vpop.eup %9232 }
 0xb7d   : > { %v3584_v18 = vadd.f32 1.0, %v9233_v25 }
 0xb7f   : > { %9234 = vrcp.f32 %v3584_v18 }
 0xb8c   : > { %v9235_v35 = vpop.eup %9234 }
 0xb8d   : > { %v3587_v26 = vmul.f32 %v9235_v35, %v3576_v27 }
 0xb8f   : > { %v3588_v44 = vpack.c.bf16 %v3587_v26, %v3587_v26 }
 0xb91   : > { %8546 = vmatmul.mubr.bf16.vlgmr.msra.gmra.mxu0 %v3588_v44 }
 0xb92   : > { %8585 = vmatprep.mubr.msk.bf16.mxu0 %vm9501_vm0, %v10753_v46  ;;  %8570 = vmatpush3.bf16.msra.mxu0 %v8872_v42 }
 0xb93   : > { %8571 = vmatprep.subr.bf16.mxu0 %v10753_v46 }
 0xb96   : > { %8572 = vmatpush3.bf16.msra.mxu0 %v8873_v61 }
 0xb97   : > { %8573 = vmatprep.subr.bf16.mxu0 %v10753_v46 }
 0xb9a   : > { %8574 = vmatpush3.bf16.msra.mxu0 %v8874_v58  ;;  %v3983_v58 = vrot.slane %v3981_v37, 1 }
 0xb9b   : > { %8575 = vmatprep.subr.bf16.mxu0 %v10753_v46 }
 0xb9e   : > { %8576 = vmatpush3.bf16.msra.mxu0 %v8875_v12  ;;  %v3987_v12 = vmul.f32 %v3986_v29, %v3975_v2 }
 0xb9f   : > { %8577 = vmatprep.subr.bf16.mxu0 %v10753_v46 }
 0xba2   : > { %8578 = vmatpush3.bf16.msra.mxu0 %v8876_v51 }
 0xba3   : > { %8579 = vmatprep.subr.bf16.mxu0 %v10753_v46 }
 0xba6   : > { %8580 = vmatpush3.bf16.msra.mxu0 %v8877_v62  ;;  %v4012_v62 = vld [vmem:[#allocation6 + $0xc7] ss:$0 sm:$0xff] }
 0xba7   : > { %8581 = vmatprep.subr.bf16.mxu0 %v10753_v46 }
 0xbaa   : > { %8582 = vmatpush3.bf16.msra.mxu0 %v8878_v16 }
 0xbab   : > { %8583 = vmatprep.subr.bf16.mxu0 %v10753_v46 }
 0xbae   : > { %8584 = vmatpush3.bf16.msra.mxu0 %v8879_v40 }
 0xbaf   : > { %8589 = vmatprep.subr.mxu0 %v10753_v46 }
 0xc51   : > { %v3689_v1 = vpop.f32.mrf.mxu0 }
 0xc52   : > { %v3690_v49 = vadd.f32 %v3689_v1, %v3606_v22 }
 0xc53   : > { %v8547_v45 = vpop.f32.mrf.mxu0 }
 0xc54   : > { %v7808_v52 = vmul.f32 -1.442695, %v3690_v49  ;;  %v3985_v45 = vadd.f32 %v3983_v58, %v3978_v30  ;;  %v8881_v58 = vld [vmem:[#allocation3 + $0xd60] ss:$8 sps:$4 sm:$0xff]  }
 0xc55   : > { %v3692_v24 = vpop.f32.mrf.mxu0 }
 0xc56   : > { %9236 = vpow2.f32 %v7808_v52  ;;  %v3989_v52 = vrot.slane %v3987_v12, 2  ;;  %v3993_v24 = vld [vmem:[#allocation6 + $0xc3] ss:$0 sm:$0xff]  ;;  %v8882_v12 = vld [vmem:[#allocation3 + $0xd50] ss:$8 sps:$4 sm:$0xff]  }
 0xc57   : > { %v8548_v5 = vpop.f32.mrf.mxu0 }
 0xc58   : > { %v3996_v5 = vld [vmem:[#allocation6 + $0xc4] ss:$0 sm:$0xff] }
 0xc63   : > { %v9237_v33 = vpop.eup %9236 }
 0xc64   : > { %v3698_v36 = vadd.f32 1.0, %v9237_v33  ;;  %v4002_v33 = vld [vmem:[#allocation6 + $0xc5] ss:$0 sm:$0xff] }
 0xc66   : > { %9238 = vrcp.f32 %v3698_v36  ;;  %v3991_v36 = vadd.f32 %v3989_v52, %v3985_v45  ;;  %v3973_v45 = vld [vmem:[#allocation8 + $0x32] ss:$0 sm:$0xff]  ;;  %v3974_v52 = vld [vmem:[#allocation8 + $0x33] ss:$0 sm:$0xff] }
 0xc73   : > { %v9239_v15 = vpop.eup %9238 }
 0xc74   : > { %v3704_v20 = vrot.slane %v9239_v15, %v10169_v32 }
 0xc76   : > { %v3705_v57 = vmul.f32 %v3704_v20, %v10746_v54  ;;  %v3706_v63 = vmul.f32 %v3704_v20, %v10749_v4  ;;  %v3814_v54 = vld [vmem:[#allocation8 + $0x26] ss:$0 sm:$0xff] }
 0xc78   : > { %v3707_v56 = vpack.c.bf16 %v3706_v63, %v3705_v57 }
 0xc7a   : > { %8566 = vmatmul.mubr.bf16.vlgmr.msra.gmra.mxu1 %v3707_v56 }
 0xc7b   : > { %8615 = vmatprep.mubr.msk.bf16.mxu1 %vm9501_vm0, %v10753_v46 }
 0xd3a   : > { %v3807_v11 = vpop.f32.mrf.mxu1 }
 0xd3b   : > { %v3815_v4 = vmul.f32 %v3814_v54, %v3807_v11  ;;  %v4009_v11 = vld [vmem:[#allocation6 + $0xc6] ss:$0 sm:$0xff] }
 0xd3c   : > { %v8567_v41 = vpop.f32.mrf.mxu1 }
 0xd3d   : > { %v3818_v60 = vadd.f32 %v3817_v55, %v3815_v4 }
 0xd3e   : > { %v3810_v0 = vpop.f32.mrf.mxu1 }
 0xd3f   : > { %v3816_v34 = vmul.f32 %v3814_v54, %v3810_v0  ;;  %v3820_v9 = vadd.f32 %v3818_v60, %v10451_v47 }
 0xd40   : > { %v8568_v19 = vpop.f32.mrf.mxu1 }
 0xd41   : > { %v3819_v3 = vadd.f32 %v3817_v55, %v3816_v34  ;;  %v4018_v55 = vld [vmem:[#allocation6 + $0xd0] ss:$0 sm:$0xff] }
 0xd43   : > { %v3821_v10 = vadd.f32 %v3819_v3, %v10453_v43 }
 0xd45   : > { %v3822_v38 = vpack.c.bf16 %v3821_v10, %v3820_v9 }
 0xd47   : > { %8586 = vmatmul.mubr.bf16.vlgmr.msra.gmra.mxu0 %v3822_v38 }
 0xd48   : > { %8591 = vmatprep.mubr.msk.f32.mxu0 %vm9501_vm0, %v10753_v46 }
 0xe07   : > { %v3922_v53 = vpop.f32.mrf.mxu0 }
 0xe08   : > { %v3930_v27 = vmul.f32 %v3929_v6, %v3922_v53 }
 0xe09   : > { %v8587_v48 = vpop.f32.mrf.mxu0 }
 0xe0a   : > { %v3933_v47 = vadd.f32 %v3932_v28, %v3930_v27 }
 0xe0b   : > { %v3925_v23 = vpop.f32.mrf.mxu0 }
 0xe0c   : > { %v7825_v43 = vmul.f32 -1.442695, %v3933_v47  ;;  %v3931_v50 = vmul.f32 %v3929_v6, %v3925_v23 }
 0xe0d   : > { %v8588_v8 = vpop.f32.mrf.mxu0 }
 0xe0e   : > { %9240 = vpow2.f32 %v7825_v43  ;;  %v3934_v25 = vadd.f32 %v3932_v28, %v3931_v50 }
 0xe10   : > { %v7826_v18 = vmul.f32 -1.442695, %v3934_v25 }
 0xe12   : > { %9242 = vpow2.f32 %v7826_v18 }
 0xe1b   : > { %v9241_v35 = vpop.eup %9240 }
 0xe1c   : > { %v3941_v26 = vadd.f32 1.0, %v9241_v35 }
 0xe1e   : > { %9244 = vrcp.f32 %v3941_v26 }
 0xe1f   : > { %v9243_v44 = vpop.eup %9242 }
 0xe20   : > { %v3942_v21 = vadd.f32 1.0, %v9243_v44 }
 0xe22   : > { %9246 = vrcp.f32 %v3942_v21 }
 0xe2b   : > { %v9245_v17 = vpop.eup %9244 }
 0xe2c   : > { %v3947_v42 = vmul.f32 %v9245_v17, %v3933_v47 }
 0xe2e   : > { %v3960_v61 = vrot.slane %v3947_v42, 7  ;;  %v3963_v59 = vrot.slane %v3947_v42, 3 }
 0xe2f   : > { %v9247_v51 = vpop.eup %9246 }
 0xe30   : > { %3962 = vst [vmem:[#allocation2 + $0x20] sm:$0x1e] %v3960_v61  ;;  %3965 = vst [vmem:[#allocation2 + $0x40] sm:$0x1e] %v3963_v59  ;;  %v3948_v22 = vmul.f32 %v9247_v51, %v3934_v25  ;;  %v8880_v59 = vld [vmem:[#allocation3 + $0xd70] ss:$8 sps:$4 sm:$0xff]  }
 0xe31   : > { %8600 = vmatpush3.bf16.msra.mxu1 %v8880_v59  ;;  %v8883_v51 = vld [vmem:[#allocation3 + $0xd40] ss:$8 sps:$4 sm:$0xff]  }
 0xe32   : > { %v3967_v1 = vrot.slane %v3948_v22, 7  ;;  %v3970_v49 = vrot.slane %v3948_v22, 3  ;;  %8601 = vmatprep.subr.bf16.mxu1 %v10753_v46  ;;  %v8885_v22 = vld [vmem:[#allocation3 + $0xd20] ss:$8 sps:$4 sm:$0xff]  }
 0xe33   : > { %v8897_v59 = vld [vmem:[#allocation3 + $0xf60] ss:$8 sps:$4 sm:$0xff]  }
 0xe34   : > { %3969 = vst [vmem:[#allocation2 + $0x60] sm:$0x1e] %v3967_v1  ;;  %3972 = vst [vmem:[#allocation2 + $0x80] sm:$0x1e] %v3970_v49  ;;  %v8886_v1 = vld [vmem:[#allocation3 + $0xd10] ss:$8 sps:$4 sm:$0xff]  }
 0xe35   : > { %8602 = vmatpush3.bf16.msra.mxu1 %v8881_v58  ;;  %v8887_v49 = vld [vmem:[#allocation3 + $0xd00] ss:$8 sps:$4 sm:$0xff]   ;;  %v8898_v58 = vld [vmem:[#allocation3 + $0xf50] ss:$8 sps:$4 sm:$0xff]  }
 0xe36   : > { %8603 = vmatprep.subr.bf16.mxu1 %v10753_v46 }
 0xe37   : > { %v3992_v15 = vld [vmem:[#allocation2 + $0x20] sm:$0x3f] }
 0xe38   : > { %v4008_v20 = vld [vmem:[#allocation2 + $0x40] sm:$0x3f]  ;;  %v3994_v57 = vmul.f32 %v3993_v24, %v3992_v15  ;;  %v3997_v63 = vmul.f32 %v3996_v5, %v3992_v15  ;;  %v4003_v56 = vmul.f32 %v4002_v33, %v3992_v15  ;;  %4770 = vst [vmem:[#allocation2 + $0x20] sm:$0x3f] %v10753_v46 }
 0xe39   : > { %4776 = vst [vmem:[#allocation2 + $0x40] sm:$0x3] %v10753_v46  ;;  %4780 = vst [vmem:[#allocation2 + $0x40] sm:$0x30] %v10753_v46  ;;  %v4111_v16 = vmul.f32 %v4008_v20, %v3980_v31  ;;  %v4116_v4 = vmul.f32 %v4008_v20, %v3986_v29  ;;  %v4109_v41 = vmul.f32 %v4008_v20, %v3977_v13  ;;  %8604 = vmatpush3.bf16.msra.mxu1 %v8882_v12  ;;  %v8899_v12 = vld [vmem:[#allocation3 + $0xf40] ss:$8 sps:$4 sm:$0xff]  }
 0xe3a   : > { %v3995_v40 = vadd.f32 %v3994_v57, %v3991_v36  ;;  %v3999_v54 = vrot.slane %v3997_v63, 1  ;;  %v4005_v19 = vrot.slane %v4003_v56, 2  ;;  %v4013_v3 = vmul.f32 %v4012_v62, %v4008_v20  ;;  %8605 = vmatprep.subr.bf16.mxu1 %v10753_v46 }
 0xe3b   : > { %v4113_v0 = vrot.slane %v4111_v16, 1  ;;  %v4121_v60 = vld [vmem:[#allocation2 + $0x60] sm:$0x3f]  ;;  %v4118_v38 = vrot.slane %v4116_v4, 2  ;;  %v4010_v53 = vmul.f32 %v4009_v11, %v4008_v20  ;;  %v4019_v28 = vmul.f32 %v4018_v55, %v4008_v20 }
 0xe3c   : > { %v4001_v34 = vadd.f32 %v3999_v54, %v3995_v40  ;;  %v4134_v9 = vld [vmem:[#allocation2 + $0x80] sm:$0x3f]  ;;  %4778 = vst [vmem:[#allocation2 + $0x60] sm:$0x3] %v10753_v46  ;;  %4782 = vst [vmem:[#allocation2 + $0x60] sm:$0x30] %v10753_v46  ;;  %v4124_v2 = vmul.f32 %v4121_v60, %v3996_v5  ;;  %v4122_v48 = vmul.f32 %v4121_v60, %v3993_v24 }
 0xe3d   : > { %v4115_v10 = vadd.f32 %v4113_v0, %v4109_v41  ;;  %4772 = vst [vmem:[#allocation2 + $0x80] sm:$0x3f] %v10753_v46  ;;  %v4129_v47 = vmul.f32 %v4121_v60, %v4002_v33  ;;  %v4015_v43 = vrot.slane %v4013_v3, 1  ;;  %v4021_v18 = vrot.slane %v4019_v28, 2  ;;  %8606 = vmatpush3.bf16.msra.mxu1 %v8883_v51  ;;  %v8900_v51 = vld [vmem:[#allocation3 + $0xf30] ss:$8 sps:$4 sm:$0xff]  }
 0xe3e   : > { %v4007_v6 = vadd.f32 %v4005_v19, %v4001_v34  ;;  %v4126_v8 = vrot.slane %v4124_v2, 1  ;;  %v4137_v44 = vmul.f32 %v4134_v9, %v4012_v62  ;;  %v4135_v13 = vmul.f32 %v4134_v9, %v4009_v11  ;;  %8607 = vmatprep.subr.bf16.mxu1 %v10753_v46 }
 0xe3f   : > { %v4120_v27 = vadd.f32 %v4118_v38, %v4115_v10  ;;  %v4131_v26 = vrot.slane %v4129_v47, 2  ;;  %v4142_v37 = vmul.f32 %v4134_v9, %v4018_v55  ;;  %v8890_v47 = vld [vmem:[#allocation3 + $0xe50] ss:$8 sps:$4 sm:$0xff]  }
 0xe40   : > { %v4011_v23 = vadd.f32 %v4010_v53, %v4007_v6  ;;  %v4139_v29 = vrot.slane %v4137_v44, 1 }
 0xe41   : > { %v4123_v50 = vadd.f32 %v4122_v48, %v4120_v27  ;;  %v4144_v30 = vrot.slane %v4142_v37, 2  ;;  %v8888_v27 = vld [vmem:[#allocation3 + $0xe70] ss:$8 sps:$4 sm:$0xff]   ;;  %v8889_v48 = vld [vmem:[#allocation3 + $0xe60] ss:$8 sps:$4 sm:$0xff]  }
 0xe42   : > { %v4017_v25 = vadd.f32 %v4015_v43, %v4011_v23  ;;  %v8891_v23 = vld [vmem:[#allocation3 + $0xe40] ss:$8 sps:$4 sm:$0xff]   ;;  %v8892_v43 = vld [vmem:[#allocation3 + $0xe30] ss:$8 sps:$4 sm:$0xff]  }
 0xe43   : > { %v4128_v35 = vadd.f32 %v4126_v8, %v4123_v50  ;;  %v8893_v50 = vld [vmem:[#allocation3 + $0xe20] ss:$8 sps:$4 sm:$0xff]   ;;  %v8894_v8 = vld [vmem:[#allocation3 + $0xe10] ss:$8 sps:$4 sm:$0xff]  }
 0xe44   : > { %v4023_v21 = vadd.f32 %v4021_v18, %v4017_v25  ;;  %v8895_v25 = vld [vmem:[#allocation3 + $0xe00] ss:$8 sps:$4 sm:$0xff]   ;;  %v4261_v18 = vld [vmem:[#allocation8 + $0x34] ss:$0 sm:$0xff] }
 0xe45   : > { %v4133_v31 = vadd.f32 %v4131_v26, %v4128_v35 }
 0xe46   : > { %8590 = vmatpush3.msk.msra.mxu0 %vm2423_vm5, %v4023_v21 }
 0xe47   : > { %8592 = vmatmul.mubr.msk.f32.vlgmr.msra.gmra.mxu0 %vm4024_vm6, %v10249_v39  ;;  %8594 = vmatprep.subr.mxu0 %v10753_v46  ;;  %v4136_v17 = vadd.f32 %v4135_v13, %v4133_v31 }
 0xe48   : > { %8596 = vmatprep.mubr.msk.f32.mxu0 %vm9501_vm0, %v10753_v46 }
 0xe49   : > { %v4141_v42 = vadd.f32 %v4139_v29, %v4136_v17 }
 0xe4b   : > { %v4146_v61 = vadd.f32 %v4144_v30, %v4141_v42 }
 0xe4d   : > { %8595 = vmatpush3.msk.msra.mxu0 %vm2423_vm5, %v4146_v61  ;;  %v8896_v61 = vld [vmem:[#allocation3 + $0xf70] ss:$8 sps:$4 sm:$0xff]  }
 0xe4e   : > { %8597 = vmatmul.mubr.msk.f32.vlgmr.msra.gmra.mxu0 %vm4024_vm6, %v10249_v39  ;;  %8619 = vmatprep.subr.bf16.mxu0 %v10753_v46  ;;  %v8884_v39 = vld [vmem:[#allocation3 + $0xd30] ss:$8 sps:$4 sm:$0xff]  }
 0xe4f   : > { %8635 = vmatprep.mubr.msk.bf16.mxu0 %vm9501_vm0, %v10753_v46  ;;  %8608 = vmatpush3.bf16.msra.mxu1 %v8884_v39  ;;  %v8901_v39 = vld [vmem:[#allocation3 + $0xf20] ss:$8 sps:$4 sm:$0xff]  }
 0xe50   : > { %8609 = vmatprep.subr.bf16.mxu1 %v10753_v46  ;;  %8620 = vmatpush3.bf16.msra.mxu0 %v8888_v27 }
 0xe51   : > { %8621 = vmatprep.subr.bf16.mxu0 %v10753_v46 }
 0xe53   : > { %8610 = vmatpush3.bf16.msra.mxu1 %v8885_v22  ;;  %v8904_v22 = vld [vmem:[#allocation3 + $0x1070] ss:$8 sps:$4 sm:$0xff]  }
 0xe54   : > { %8611 = vmatprep.subr.bf16.mxu1 %v10753_v46  ;;  %8622 = vmatpush3.bf16.msra.mxu0 %v8889_v48  ;;  %v4583_v48 = vld [vmem:[#allocation8 + $0x37] ss:$0 sm:$0xff] }
 0xe55   : > { %8623 = vmatprep.subr.bf16.mxu0 %v10753_v46 }
 0xe57   : > { %8612 = vmatpush3.bf16.msra.mxu1 %v8886_v1  ;;  %v8906_v1 = vld [vmem:[#allocation3 + $0x1074] ss:$8 sps:$4 sm:$0xff]  }
 0xe58   : > { %8613 = vmatprep.subr.bf16.mxu1 %v10753_v46  ;;  %8624 = vmatpush3.bf16.msra.mxu0 %v8890_v47 }
 0xe59   : > { %8625 = vmatprep.subr.bf16.mxu0 %v10753_v46 }
 0xe5b   : > { %8614 = vmatpush3.bf16.msra.mxu1 %v8887_v49  ;;  %v8909_v49 = vld [vmem:[#allocation3 + $0x1064] ss:$8 sps:$4 sm:$0xff]  }
 0xe5c   : > { %8639 = vmatprep.subr.bf16.mxu1 %v10753_v46  ;;  %8626 = vmatpush3.bf16.msra.mxu0 %v8891_v23 }
 0xe5d   : > { %8627 = vmatprep.subr.bf16.mxu0 %v10753_v46 }
 0xe60   : > { %8628 = vmatpush3.bf16.msra.mxu0 %v8892_v43 }
 0xe61   : > { %8629 = vmatprep.subr.bf16.mxu0 %v10753_v46 }
 0xe64   : > { %8630 = vmatpush3.bf16.msra.mxu0 %v8893_v50 }
 0xe65   : > { %8631 = vmatprep.subr.bf16.mxu0 %v10753_v46 }
 0xe68   : > { %8632 = vmatpush3.bf16.msra.mxu0 %v8894_v8 }
 0xe69   : > { %8633 = vmatprep.subr.bf16.mxu0 %v10753_v46 }
 0xe6c   : > { %8634 = vmatpush3.bf16.msra.mxu0 %v8895_v25  ;;  %v10849_v25 = vld [vmem:[#allocation2 + $0x8] sm:$0x3f] }
 0xe6d   : > { %4683 = vmatprep.subr.bf16.mxu0 %v8906_v1  ;;  %6378 = vst [vmem:[#allocation2 + $0x8] sm:$0xf] %v10753_v46  ;;  %v4857_v1 = vld [vmem:[#allocation6 + $0x102] ss:$8 sm:$0x3] }
 0xf07   : > { %v4096_v24 = vpop.f32.mrf.mxu0 }
 0xf08   : > { %v4100_v5 = vmul.f32 %v4096_v24, %v3973_v45  ;;  %v8912_v24 = vld [vmem:[#allocation3 + $0x1054] ss:$8 sps:$4 sm:$0xff]  }
 0xf09   : > { %v8593_v33 = vpop.f32.mrf.mxu0 }
 0xf0a   : > { %v4101_v36 = vadd.f32 %v4100_v5, %v3974_v52  ;;  %v8903_v5 = vld [vmem:[#allocation3 + $0xf00] ss:$8 sps:$4 sm:$0xff]   ;;  %v8910_v33 = vld [vmem:[#allocation3 + $0x1050] ss:$8 sps:$4 sm:$0xff]  }
 0xf0c   : > { %v7829_v15 = vmul.f32 -1.442695, %v4101_v36 }
 0xf0e   : > { %v4216_v20 = vpop.f32.mrf.mxu0  ;;  %9248 = vpow2.f32 %v7829_v15  ;;  %v8913_v15 = vld [vmem:[#allocation3 + $0x1040] ss:$8 sps:$4 sm:$0xff]  }
 0xf0f   : > { %v4220_v57 = vmul.f32 %v4216_v20, %v3973_v45  ;;  %v8902_v45 = vld [vmem:[#allocation3 + $0xf10] ss:$8 sps:$4 sm:$0xff]   ;;  %v8918_v20 = vld [vmem:[#allocation3 + $0x1034] ss:$8 sps:$4 sm:$0xff]  }
 0xf10   : > { %v8598_v63 = vpop.f32.mrf.mxu0 }
 0xf11   : > { %v4221_v56 = vadd.f32 %v4220_v57, %v3974_v52  ;;  %v8907_v52 = vld [vmem:[#allocation3 + $0x1060] ss:$8 sps:$4 sm:$0xff]   ;;  %v8916_v57 = vld [vmem:[#allocation3 + $0x1030] ss:$8 sps:$4 sm:$0xff]   ;;  %v8921_v63 = vld [vmem:[#allocation3 + $0x1024] ss:$8 sps:$4 sm:$0xff]  }
 0xf13   : > { %v7832_v62 = vmul.f32 -1.442695, %v4221_v56 }
 0xf15   : > { %9250 = vpow2.f32 %v7832_v62  ;;  %v8924_v62 = vld [vmem:[#allocation3 + $0x1014] ss:$8 sps:$4 sm:$0xff]  }
 0xf1b   : > { %v9249_v16 = vpop.eup %9248 }
 0xf1c   : > { %v4105_v40 = vadd.f32 1.0, %v9249_v16  ;;  %v8922_v16 = vld [vmem:[#allocation3 + $0x1010] ss:$8 sps:$4 sm:$0xff]  }
 0xf1e   : > { %9252 = vrcp.f32 %v4105_v40  ;;  %v4375_v40 = vld [vmem:[#allocation8 + $0x35] ss:$0 sm:$0xff] }
 0xf22   : > { %v9251_v54 = vpop.eup %9250 }
 0xf23   : > { %v4225_v11 = vadd.f32 1.0, %v9251_v54 }
 0xf25   : > { %9254 = vrcp.f32 %v4225_v11 }
 0xf2b   : > { %v9253_v4 = vpop.eup %9252 }
 0xf2c   : > { %v4108_v0 = vmul.f32 %v9253_v4, %v4101_v36  ;;  %v8915_v36 = vld [vmem:[#allocation3 + $0x1044] ss:$8 sps:$4 sm:$0xff]  }
 0xf32   : > { %v9255_v55 = vpop.eup %9254 }
 0xf33   : > { %v4228_v41 = vmul.f32 %v9255_v55, %v4221_v56  ;;  %v8919_v56 = vld [vmem:[#allocation3 + $0x1020] ss:$8 sps:$4 sm:$0xff]  }
 0xf35   : > { %v4230_v60 = vrot.slane %v4228_v41, 6 }
 0xf37   : > { %v10821_v34 = vsel %vm4232_vm7, %v4108_v0, %v4230_v60 }
 0xf38   : > { %v4234_v19 = vsel %vm2423_vm5, %v10821_v34, 0.0 }
 0xf39   : > { %v4235_v3 = vrot.slane %v4234_v19, 4 }
 0xf3b   : > { %v4236_v9 = vadd.f32 %v4235_v3, %v4234_v19 }
 0xf3d   : > { %v4237_v10 = vrot.slane %v4236_v9, 2 }
 0xf3f   : > { %v4238_v38 = vadd.f32 %v4237_v10, %v4236_v9 }
 0xf41   : > { %v4239_v2 = vrot.slane %v4238_v38, 1 }
 0xf43   : > { %v4240_v6 = vadd.f32 %v4239_v2, %v4238_v38  ;;  %v8925_v2 = vld [vmem:[#allocation3 + $0x1000] ss:$8 sps:$4 sm:$0xff]  }
 0xf45   : > { %v4242_v53 = vmul.f32 0.25, %v4240_v6  ;;  %v8927_v6 = vld [vmem:[#allocation3 + $0x1004] ss:$8 sps:$4 sm:$0xff]  }
 0xf47   : > { %v4243_v28 = vpack.c.bf16 %v4242_v53, %v4242_v53  ;;  %v11504_v53 = vmov 0  }
 0xf49   : > { %8616 = vmatmul.mubr.bf16.vlgmr.msra.gmra.mxu1 %v4243_v28  ;;  %v4581_v28 = vld [vmem:[#allocation8 + $0x36] ss:$0 sm:$0xff] }
 0xf4a   : > { %8655 = vmatprep.mubr.msk.bf16.mxu1 %vm9501_vm0, %v10753_v46  ;;  %8640 = vmatpush3.bf16.msra.mxu1 %v8896_v61  ;;  %v8941_v61 = vld [vmem:[#allocation3 + $0x1110] ss:$8 sps:$4 sm:$0xff]  }
 0xf4b   : > { %8641 = vmatprep.subr.bf16.mxu1 %v10753_v46 }
 0xf4e   : > { %8642 = vmatpush3.bf16.msra.mxu1 %v8897_v59  ;;  %v8942_v59 = vld [vmem:[#allocation3 + $0x1180] ss:$8 sps:$4 sm:$0xff]  }
 0xf4f   : > { %8643 = vmatprep.subr.bf16.mxu1 %v10753_v46 }
 0xf52   : > { %8644 = vmatpush3.bf16.msra.mxu1 %v8898_v58  ;;  %v8943_v58 = vld [vmem:[#allocation3 + $0x1100] ss:$8 sps:$4 sm:$0xff]  }
 0xf53   : > { %8645 = vmatprep.subr.bf16.mxu1 %v10753_v46 }
 0xf56   : > { %8646 = vmatpush3.bf16.msra.mxu1 %v8899_v12  ;;  %v4824_v12 = vld [vmem:[#allocation6 + $0x101] ss:$8 sm:$0x3] }
 0xf57   : > { %8647 = vmatprep.subr.bf16.mxu1 %v10753_v46 }
 0xf5a   : > { %8648 = vmatpush3.bf16.msra.mxu1 %v8900_v51  ;;  %v10853_v51 = vsub.s32 1, %v10166_v7 }
 0xf5b   : > { %8649 = vmatprep.subr.bf16.mxu1 %v10753_v46 }
 0xf5c   : > { %11578 = vst [vmem:[#allocation28_spill] sm:$0xff] %v10853_v51  ;;  %v10863_v7 = vrot.slane %v4857_v1, %v10853_v51 }
 0xf5e   : > { %8650 = vmatpush3.bf16.msra.mxu1 %v8901_v39  ;;  %v4829_v39 = vrot.slane %v4824_v12, %v10169_v32 }
 0xf5f   : > { %8651 = vmatprep.subr.bf16.mxu1 %v10753_v46 }
 0xf62   : > { %8652 = vmatpush3.bf16.msra.mxu1 %v8902_v45 }
 0xf63   : > { %8653 = vmatprep.subr.bf16.mxu1 %v10753_v46  ;;  %v8938_v46 = vld [vmem:[#allocation3 + $0x11a0] ss:$8 sps:$4 sm:$0xff]  }
 0xf66   : > { %8654 = vmatpush3.bf16.msra.mxu1 %v8903_v5  ;;  %v4725_v5 = vld [vmem:[#allocation8 + $0x40] ss:$8 sm:$0x3] }
0x1009   : > { %v4344_v35 = vpop.f32.mrf.mxu1 }
0x100a   : > { %v4345_v26 = vadd.f32 %v4344_v35, %v4261_v18  ;;  %v8928_v18 = vld [vmem:[#allocation3 + $0x11f0] ss:$8 sps:$4 sm:$0xff]  }
0x100b   : > { %v8617_v44 = vpop.f32.mrf.mxu1  ;;  %v8929_v35 = vld [vmem:[#allocation3 + $0x1170] ss:$8 sps:$4 sm:$0xff]   ;;  %8191 = vmatprep.subr.bf16.mxu1 %v8928_v18 }
0x100c   : > { %v7841_v21 = vmul.f32 -1.442695, %v4345_v26  ;;  %v8931_v44 = vld [vmem:[#allocation3 + $0x1160] ss:$8 sps:$4 sm:$0xff]  }
0x100d   : > { %v4347_v31 = vpop.f32.mrf.mxu1 }
0x100e   : > { %9256 = vpow2.f32 %v7841_v21  ;;  %v8932_v21 = vld [vmem:[#allocation3 + $0x11d0] ss:$8 sps:$4 sm:$0xff]  }
0x100f   : > { %v8618_v13 = vpop.f32.mrf.mxu1  ;;  %v8933_v31 = vld [vmem:[#allocation3 + $0x1150] ss:$8 sps:$4 sm:$0xff]  }
0x1010   : > { %v8934_v13 = vld [vmem:[#allocation3 + $0x11c0] ss:$8 sps:$4 sm:$0xff]  }
0x101b   : > { %v9257_v37 = vpop.eup %9256 }
0x101c   : > { %v4353_v17 = vadd.f32 1.0, %v9257_v37  ;;  %v8935_v37 = vld [vmem:[#allocation3 + $0x1140] ss:$8 sps:$4 sm:$0xff]  }
0x101e   : > { %9258 = vrcp.f32 %v4353_v17  ;;  %v8936_v17 = vld [vmem:[#allocation3 + $0x11b0] ss:$8 sps:$4 sm:$0xff]  }
0x102b   : > { %v9259_v29 = vpop.eup %9258 }
0x102c   : > { %v4356_v42 = vmul.f32 %v9259_v29, %v4345_v26  ;;  %v8930_v26 = vld [vmem:[#allocation3 + $0x11e0] ss:$8 sps:$4 sm:$0xff]   ;;  %v8937_v29 = vld [vmem:[#allocation3 + $0x1130] ss:$8 sps:$4 sm:$0xff]  }
0x102e   : > { %v4357_v30 = vpack.c.bf16 %v4356_v42, %v4356_v42  ;;  %v8939_v42 = vld [vmem:[#allocation3 + $0x1120] ss:$8 sps:$4 sm:$0xff]  }
0x1030   : > { %8636 = vmatmul.mubr.bf16.vlgmr.msra.gmra.mxu0 %v4357_v30  ;;  %v8940_v30 = vld [vmem:[#allocation3 + $0x1190] ss:$8 sps:$4 sm:$0xff]  }
0x1031   : > { %4684 = vmatpush1.bf16.msra.mxu0 %v8904_v22  ;;  %4715 = vmatprep.mubr.bf16.mxu0 %v11504_v53  ;;  %v4803_v22 = vld [vmem:[#allocation6 + $0x100] ss:$8 sm:$0x3] }
0x1032   : > { %4685 = vmatprep.subr.bf16.mxu0 %v8909_v49  ;;  %v4833_v49 = vrot.slane %v4824_v12, %v10853_v51  ;;  %v4808_v45 = vrot.slane %v4803_v22, %v10169_v32 }
0x1035   : > { %4686 = vmatpush1.bf16.msra.mxu0 %v8907_v52  ;;  %v4836_v52 = vmul.f32 %v4829_v39, %v10793_v14 }
0x1036   : > { %4687 = vmatprep.subr.bf16.mxu0 %v8912_v24  ;;  %v4862_v24 = vrot.slane %v4857_v1, %v10169_v32 }
0x1039   : > { %4688 = vmatpush1.bf16.msra.mxu0 %v8910_v33  ;;  %v4812_v33 = vrot.slane %v4803_v22, %v10853_v51 }
0x103a   : > { %4689 = vmatprep.subr.bf16.mxu0 %v8915_v36  ;;  %v4837_v36 = vmul.f32 %v4833_v49, %v10849_v25 }
0x103d   : > { %4690 = vmatpush1.bf16.msra.mxu0 %v8913_v15  ;;  %v4890_v15 = vld [vmem:[#allocation6 + $0x103] ss:$8 sm:$0x3] }
0x103e   : > { %4691 = vmatprep.subr.bf16.mxu0 %v8918_v20  ;;  %v4740_v20 = vld [vmem:[#allocation8 + $0x41] ss:$8 sm:$0x3] }
0x1041   : > { %4692 = vmatpush1.bf16.msra.mxu0 %v8916_v57  ;;  %v4815_v57 = vmul.f32 %v4808_v45, %v10793_v14 }
0x1042   : > { %4693 = vmatprep.subr.bf16.mxu0 %v8921_v63  ;;  %v4844_v63 = vrot.slane %v4836_v52, 1 }
0x1045   : > { %4694 = vmatpush1.bf16.msra.mxu0 %v8919_v56  ;;  %v4869_v56 = vmul.f32 %v4862_v24, %v10793_v14 }
0x1046   : > { %4695 = vmatprep.subr.bf16.mxu0 %v8924_v62  ;;  %v4730_v62 = vrot.slane %v4725_v5, %v10169_v32 }
0x1049   : > { %4696 = vmatpush1.bf16.msra.mxu0 %v8922_v16  ;;  %v10869_v16 = vrot.slane %v4890_v15, %v10169_v32 }
0x104a   : > { %4697 = vmatprep.subr.bf16.mxu0 %v8927_v6 }
0x104d   : > { %4698 = vmatpush1.bf16.msra.mxu0 %v8925_v2 }
0x10f0   : > { %v4458_v54 = vpop.f32.mrf.mxu0 }
0x10f1   : > { %v4459_v11 = vadd.f32 %v4458_v54, %v4375_v40  ;;  %v4816_v40 = vmul.f32 %v4812_v33, %v10849_v25  ;;  %v4845_v54 = vrot.slane %v4837_v36, 1  ;;  %v4955_v36 = vld [vmem:[#allocation2 + $0x20] sm:$0x3f] }
0x10f2   : > { %v8637_v4 = vpop.f32.mrf.mxu0 }
0x10f3   : > { %v7850_v55 = vmul.f32 -1.442695, %v4459_v11  ;;  %v4870_v11 = vmul.f32 %v10863_v7, %v10849_v25  ;;  %v10875_v4 = vrot.slane %v4890_v15, %v10853_v51 }
0x10f4   : > { %v4461_v41 = vpop.f32.mrf.mxu0 }
0x10f5   : > { %9260 = vpow2.f32 %v7850_v55  ;;  %v4923_v55 = vld [vmem:[#allocation6 + $0x104] ss:$8 sm:$0x3]  ;;  %v4745_v41 = vrot.slane %v4740_v20, %v10169_v32 }
0x10f6   : > { %v8638_v0 = vpop.f32.mrf.mxu0  ;;  %v10883_v2 = vrot.slane %v4923_v55, %v10169_v32 }
0x10f7   : > { %v4734_v0 = vrot.slane %v4725_v5, %v10853_v51 }
0x1102   : > { %v9261_v60 = vpop.eup %9260 }
0x1103   : > { %v4467_v19 = vadd.f32 1.0, %v9261_v60 }
0x1105   : > { %9262 = vrcp.f32 %v4467_v19  ;;  %v4852_v19 = vadd.f32 %v4844_v63, %v4815_v57  ;;  %v4956_v63 = vld [vmem:[#allocation2 + $0x28] sm:$0x3f] }
0x1112   : > { %v9263_v3 = vpop.eup %9262 }
0x1113   : > { %v4473_v9 = vrot.slane %v9263_v3, %v10169_v32  ;;  %v4877_v3 = vrot.slane %v4869_v56, 2 }
0x1115   : > { %v4474_v10 = vmul.f32 %v4473_v9, %v10821_v34  ;;  %v4885_v18 = vadd.f32 %v4877_v3, %v4852_v19 }
0x1117   : > { %v4475_v38 = vpack.c.bf16 %v4474_v10, %v4474_v10  ;;  %v4749_v10 = vrot.slane %v4740_v20, %v10853_v51 }
0x1119   : > { %8656 = vmatmul.mubr.bf16.vlgmr.msra.gmra.mxu1 %v4475_v38  ;;  %v4902_v38 = vmul.f32 %v10869_v16, %v10793_v14 }
0x111a   : > { %8192 = vmatpush3.bf16.msra.mxu1 %v8929_v35 }
0x111b   : > { %8193 = vmatprep.subr.bf16.mxu1 %v8930_v26 }
0x111e   : > { %8194 = vmatpush3.bf16.msra.mxu1 %v8931_v44 }
0x111f   : > { %8195 = vmatprep.subr.bf16.mxu1 %v8932_v21  ;;  %v4910_v21 = vrot.slane %v4902_v38, 3 }
0x1121   : > { %v4918_v22 = vadd.f32 %v4910_v21, %v4885_v18 }
0x1122   : > { %8196 = vmatpush3.bf16.msra.mxu1 %v8933_v31  ;;  %v4935_v31 = vmul.f32 %v10883_v2, %v10793_v14 }
0x1123   : > { %8197 = vmatprep.subr.bf16.mxu1 %v8934_v13  ;;  %v4960_v13 = vld [vmem:[#allocation6 + $0x105] ss:$8 sm:$0x3] }
0x1124   : > { %v10909_v14 = vrot.slane %v4960_v13, %v10169_v32  ;;  %v4943_v1 = vrot.slane %v4935_v31, 4 }
0x1126   : > { %8198 = vmatpush3.bf16.msra.mxu1 %v8935_v37 }
0x1127   : > { %8199 = vmatprep.subr.bf16.mxu1 %v8936_v17 }
0x112a   : > { %8200 = vmatpush3.bf16.msra.mxu1 %v8937_v29 }
0x112b   : > { %8201 = vmatprep.subr.bf16.mxu1 %v8938_v46  ;;  %v4981_v46 = vld [vmem:[#allocation6 + $0x106] ss:$8 sm:$0x3] }
0x112e   : > { %8202 = vmatpush3.bf16.msra.mxu1 %v8939_v42 }
0x112f   : > { %8203 = vmatprep.subr.bf16.mxu1 %v8940_v30 }
0x1132   : > { %8204 = vmatpush3.bf16.msra.mxu1 %v8941_v61 }
0x1133   : > { %8205 = vmatprep.subr.bf16.mxu1 %v8942_v59 }
0x1136   : > { %8206 = vmatpush3.bf16.msra.mxu1 %v8943_v58 }
0x11d9   : > { %v4575_v27 = vpop.f32.mrf.mxu1 }
0x11da   : > { %v4582_v47 = vmul.f32 %v4581_v28, %v4575_v27  ;;  %v4853_v28 = vadd.f32 %v4845_v54, %v4816_v40  ;;  %v4878_v27 = vrot.slane %v4870_v11, 2  ;;  %v4972_v40 = vmul.f32 %v10909_v14, %v4955_v36 }
0x11db   : > { %v8657_v23 = vpop.f32.mrf.mxu1 }
0x11dc   : > { %v10844_v43 = vadd.f32 %v4583_v48, %v4582_v47  ;;  %v4903_v48 = vmul.f32 %v10875_v4, %v10849_v25  ;;  %v10888_v47 = vrot.slane %v4923_v55, %v10853_v51  ;;  %v4886_v37 = vadd.f32 %v4878_v27, %v4853_v28 }
0x11dd   : > { %v4578_v50 = vpop.f32.mrf.mxu1 }
0x11de   : > { %11577 = vst [vmem:[#allocation26_spill] sm:$0xff] %v10844_v43  ;;  %v4585_v34 = vpack.c.bf16 %v10844_v43, %v10844_v43  ;;  %v4911_v17 = vrot.slane %v4903_v48, 3  ;;  %v4936_v29 = vmul.f32 %v10888_v47, %v10849_v25  ;;  %v10912_v25 = vrot.slane %v4981_v46, %v10169_v32  ;;  %v5080_v48 = vld [vmem:[#allocation6 + $0x111] ss:$8 sm:$0x3] }
0x11df   : > { %v8658_v8 = vpop.f32.mrf.mxu1 }
0x11e0   : > { %4716 = vmatmul.mubr.bf16.vlgmr.msra.gmra.mxu0 %v4585_v34  ;;  %v10892_v34 = vld [vmem:[#allocation2 + $0x20] sm:$0x3f]  ;;  %v10894_v8 = vld [vmem:[#allocation2 + $0x28] sm:$0x3f]  ;;  %v4919_v52 = vadd.f32 %v4911_v17, %v4886_v37  ;;  %v4944_v5 = vrot.slane %v4936_v29, 4  ;;  %v4993_v54 = vmul.f32 %v10912_v25, %v4955_v36  ;;  %v10950_v29 = vrot.slane %v5080_v48, %v10169_v32 }
0x11e1   : > { %5987 = vmatprep.mubr.bf16.mxu0 %v11504_v53  ;;  %v4838_v61 = vmul.f32 %v4829_v39, %v10892_v34  ;;  %v4839_v59 = vmul.f32 %v4833_v49, %v10894_v8  ;;  %v4817_v58 = vmul.f32 %v4808_v45, %v10892_v34  ;;  %v4871_v12 = vmul.f32 %v4862_v24, %v10892_v34  ;;  %v5014_v45 = vld [vmem:[#allocation6 + $0x107] ss:$8 sm:$0x3] }
0x11e2   : > { %v10915_v39 = vrot.slane %v4960_v13, %v10853_v51  ;;  %v10918_v49 = vrot.slane %v4981_v46, %v10853_v51  ;;  %v4818_v24 = vmul.f32 %v4812_v33, %v10894_v8  ;;  %v4872_v57 = vmul.f32 %v10863_v7, %v10894_v8 }
0x11e3   : > { %v4846_v15 = vrot.slane %v4838_v61, 1  ;;  %v4847_v20 = vrot.slane %v4839_v59, 1  ;;  %v4879_v56 = vrot.slane %v4871_v12, 2  ;;  %v10926_v11 = vrot.slane %v5014_v45, %v10169_v32 }
0x11e4   : > { %v4952_v55 = vadd.f32 %v4944_v5, %v4919_v52  ;;  %v4994_v33 = vmul.f32 %v10918_v49, %v4956_v63  ;;  %v4880_v3 = vrot.slane %v4872_v57, 2  ;;  %v4937_v37 = vmul.f32 %v10883_v2, %v10892_v34 }
0x11e5   : > { %v4854_v7 = vadd.f32 %v4846_v15, %v4817_v58  ;;  %v4855_v19 = vadd.f32 %v4847_v20, %v4818_v24  ;;  %v5026_v28 = vmul.f32 %v10926_v11, %v4955_v36  ;;  %v4938_v17 = vmul.f32 %v10888_v47, %v10894_v8 }
0x11e6   : > { %v5002_v18 = vrot.slane %v4994_v33, 1  ;;  %v5092_v52 = vmul.f32 %v10950_v29, %v4955_v36 }
0x11e7   : > { %v4887_v21 = vadd.f32 %v4879_v56, %v4854_v7  ;;  %v4946_v5 = vrot.slane %v4938_v17, 4  ;;  %v5117_v56 = vld [vmem:[#allocation6 + $0x112] ss:$8 sm:$0x3] }
0x11e8   : > { %v5237_v7 = vld [vmem:[#allocation6 + $0x116] ss:$8 sm:$0x3] }
0x11e9   : > { %v10998_v17 = vrot.slane %v5237_v7, %v10853_v51 }
0x12a0   : > { %v4717_v60 = vpop.f32.mrf.mxu0 }
0x12a1   : > { %v4737_v9 = vmul.f32 %v4730_v62, %v4717_v60  ;;  %v4951_v62 = vadd.f32 %v4943_v1, %v4918_v22  ;;  %v5047_v60 = vld [vmem:[#allocation6 + $0x110] ss:$8 sm:$0x3]  ;;  %v10955_v1 = vrot.slane %v5080_v48, %v10853_v51 }
0x12a2   : > { %v4719_v6 = vpop.f32.mrf.mxu0  ;;  %v10939_v27 = vrot.slane %v5047_v60, %v10169_v32 }
0x12a3   : > { %v10890_v23 = vadd.f32 %v4745_v41, %v4737_v9  ;;  %v4738_v50 = vmul.f32 %v4734_v0, %v4719_v6  ;;  %v4973_v41 = vmul.f32 %v10915_v39, %v4956_v63  ;;  %v10931_v0 = vrot.slane %v5014_v45, %v10853_v51 }
0x12a4   : > { %v4721_v35 = vpop.f32.mrf.mxu0  ;;  %v4904_v9 = vmul.f32 %v10869_v16, %v10892_v34  ;;  %v4976_v38 = vadd.f32 %v4972_v40, %v4951_v62  ;;  %v5001_v6 = vrot.slane %v4993_v54, 1  ;;  %v4888_v16 = vadd.f32 %v4880_v3, %v4855_v19  ;;  %v5138_v62 = vld [vmem:[#allocation6 + $0x113] ss:$8 sm:$0x3] }
0x12a5   : > { %v7875_v26 = vmul.f32 -1.442695, %v10890_v23  ;;  %v10897_v44 = vadd.f32 %v4749_v10, %v4738_v50  ;;  %v4905_v10 = vmul.f32 %v10875_v4, %v10894_v8  ;;  %v4977_v50 = vadd.f32 %v4973_v41, %v4952_v55  ;;  %v5171_v40 = vld [vmem:[#allocation6 + $0x114] ss:$8 sm:$0x3] }
0x12a6   : > { %v4722_v42 = vpop.f32.mrf.mxu0  ;;  %v5027_v35 = vmul.f32 %v10931_v0, %v4956_v63  ;;  %v4912_v31 = vrot.slane %v4904_v9, 3  ;;  %v5059_v61 = vmul.f32 %v10939_v27, %v4955_v36  ;;  %v4945_v8 = vrot.slane %v4937_v37, 4  ;;  %v5204_v55 = vld [vmem:[#allocation6 + $0x115] ss:$8 sm:$0x3] }
0x12a7   : > { %9264 = vpow2.f32 %v7875_v26  ;;  %v7876_v30 = vmul.f32 -1.442695, %v10897_v44  ;;  %v10943_v26 = vrot.slane %v5047_v60, %v10853_v51  ;;  %v4913_v4 = vrot.slane %v4905_v10, 3  ;;  %v5295_v36 = vld [vmem:[#allocation6 + $0x120] ss:$8 sm:$0x3] }
0x12a8   : > { %v5009_v42 = vadd.f32 %v5001_v6, %v4976_v38  ;;  %v5010_v58 = vadd.f32 %v5002_v18, %v4977_v50  ;;  %v5035_v12 = vrot.slane %v5027_v35, 2  ;;  %v4920_v34 = vadd.f32 %v4912_v31, %v4887_v21  ;;  %v10981_v50 = vld [vmem:[#allocation2 + $0x80] sm:$0x3f]  ;;  %v5272_v31 = vld [vmem:[#allocation2 + $0x88] sm:$0x3f] }
0x12a9   : > { %9266 = vpow2.f32 %v7876_v30  ;;  %v5034_v30 = vrot.slane %v5026_v28, 2  ;;  %v5060_v22 = vmul.f32 %v10943_v26, %v4956_v63  ;;  %v4921_v47 = vadd.f32 %v4913_v4, %v4888_v16  ;;  %v5328_v18 = vld [vmem:[#allocation6 + $0x121] ss:$8 sm:$0x3] }
0x12aa   : > { %v5067_v24 = vrot.slane %v5059_v61, 3  ;;  %v5043_v15 = vadd.f32 %v5035_v12, %v5010_v58  ;;  %v5093_v57 = vmul.f32 %v10955_v1, %v4956_v63  ;;  %v5100_v54 = vrot.slane %v5092_v52, 4  ;;  %v5274_v63 = vld [vmem:[#allocation6 + $0x117] ss:$8 sm:$0x3] }
0x12ab   : > { %v5042_v45 = vadd.f32 %v5034_v30, %v5009_v42  ;;  %v5068_v20 = vrot.slane %v5060_v22, 3  ;;  %v10959_v41 = vadd.f32 %v4945_v8, %v4920_v34  ;;  %v10961_v33 = vadd.f32 %v4946_v5, %v4921_v47  ;;  %v5361_v4 = vld [vmem:[#allocation6 + $0x122] ss:$8 sm:$0x3] }
0x12ac   : > { %v5101_v3 = vrot.slane %v5093_v57, 4  ;;  %v10964_v9 = vrot.slane %v5117_v56, %v10169_v32  ;;  %v10967_v10 = vrot.slane %v5117_v56, %v10853_v51  ;;  %v10970_v38 = vrot.slane %v5138_v62, %v10169_v32  ;;  %v5394_v47 = vld [vmem:[#allocation6 + $0x123] ss:$8 sm:$0x3] }
0x12ad   : > { %v5075_v60 = vadd.f32 %v5067_v24, %v5042_v45  ;;  %v5076_v19 = vadd.f32 %v5068_v20, %v5043_v15  ;;  %v10973_v6 = vrot.slane %v5138_v62, %v10853_v51  ;;  %v10976_v28 = vrot.slane %v5171_v40, %v10169_v32  ;;  %v5452_v8 = vld [vmem:[#allocation6 + $0x125] ss:$8 sm:$0x3]  ;;  %v5485_v20 = vld [vmem:[#allocation6 + $0x126] ss:$8 sm:$0x3] }
0x12ae   : > { %v10979_v48 = vrot.slane %v5171_v40, %v10853_v51  ;;  %v10984_v35 = vrot.slane %v5204_v55, %v10169_v32  ;;  %v10987_v21 = vrot.slane %v5204_v55, %v10853_v51  ;;  %v10990_v16 = vrot.slane %v5237_v7, %v10169_v32  ;;  %v5427_v40 = vld [vmem:[#allocation2 + $0x88] sm:$0x3f] }
0x12af   : > { %v10995_v37 = vadd.f32 %v5100_v54, %v5075_v60  ;;  %v11004_v42 = vrot.slane %v5274_v63, %v10853_v51  ;;  %v11006_v30 = vadd.f32 %v5101_v3, %v5076_v19  ;;  %v11009_v61 = vrot.slane %v5295_v36, %v10853_v51  ;;  %v11049_v54 = vld [vmem:[#allocation2 + $0xa8] sm:$0x3f] }
0x12b0   : > { %v11016_v58 = vrot.slane %v5328_v18, %v10169_v32  ;;  %v11029_v34 = vrot.slane %v5361_v4, %v10169_v32  ;;  %v11039_v24 = vrot.slane %v5361_v4, %v10853_v51  ;;  %v5461_v15 = vrot.slane %v5452_v8, %v10853_v51  ;;  %11583 = vst [vmem:[#allocation21_spill] sm:$0xff] %v11049_v54  ;;  %v5431_v3 = vld [vmem:[#allocation6 + $0x124] ss:$8 sm:$0x3] }
0x12b1   : > { %v11023_v22 = vmul.f32 %v11004_v42, %v5272_v31  ;;  %v11032_v5 = vmul.f32 %v11009_v61, %v5272_v31  ;;  %v11047_v62 = vrot.slane %v5394_v47, %v10853_v51  ;;  %v5494_v55 = vrot.slane %v5485_v20, %v10853_v51 }
0x12b2   : > { %v11036_v45 = vmul.f32 %v11016_v58, %v10981_v50  ;;  %v11061_v19 = vmul.f32 %v11039_v24, %v5272_v31  ;;  %v11070_v43 = vmul.f32 %v5461_v15, %v5427_v40  ;;  %v11080_v53 = vrot.slane %v5431_v3, %v10169_v32 }
0x12b3   : > { %11580 = vst [vmem:[#allocation27_spill] sm:$0xff] %v11032_v5  ;;  %v11065_v4 = vmul.f32 %v11047_v62, %v5272_v31  ;;  %v11083_v7 = vrot.slane %v5452_v8, %v10169_v32  ;;  %v11103_v5 = vrot.slane %v5485_v20, %v10169_v32 }
0x12b4   : > { %v9265_v13 = vpop.eup %9264  ;;  %11581 = vst [vmem:[#allocation20_spill] sm:$0xff] %v11036_v45  ;;  %11585 = vst [vmem:[#allocation14_spill] sm:$0xff] %v11061_v19 }
0x12b5   : > { %v4760_v46 = vadd.f32 1.0, %v9265_v13  ;;  %v10993_v13 = vrot.slane %v5295_v36, %v10169_v32  ;;  %v11055_v36 = vmul.f32 %v11029_v34, %v10981_v50  ;;  %11586 = vst [vmem:[#allocation17_spill] sm:$0xff] %v11065_v4  ;;  %11587 = vst [vmem:[#allocation13_spill] sm:$0xff] %v11070_v43 }
0x12b6   : > { %v9267_v59 = vpop.eup %9266  ;;  %11590 = vst [vmem:[#allocation23_spill] sm:$0xff] %v11080_v53  ;;  %11591 = vst [vmem:[#allocation18_spill] sm:$0xff] %v11083_v7 }
0x12b7   : > { %9268 = vrcp.f32 %v4760_v46  ;;  %v4761_v2 = vadd.f32 1.0, %v9267_v59  ;;  %v11001_v46 = vrot.slane %v5274_v63, %v10169_v32  ;;  %v11013_v59 = vmul.f32 %v10993_v13, %v10981_v50  ;;  %11584 = vst [vmem:[#allocation16_spill] sm:$0xff] %v11055_v36  ;;  %v5518_v36 = vld [vmem:[#allocation6 + $0x127] ss:$8 sm:$0x3] }
0x12b9   : > { %9270 = vrcp.f32 %v4761_v2  ;;  %11579 = vst [vmem:[#allocation25_spill] sm:$0xff] %v11013_v59  ;;  %v11020_v12 = vmul.f32 %v11001_v46, %v10981_v50  ;;  %v11026_v2 = vrot.slane %v5328_v18, %v10853_v51 }
0x12bb   : > { %v11044_v56 = vmul.f32 %v11026_v2, %v5272_v31  ;;  %v5527_v31 = vrot.slane %v5518_v36, %v10853_v51 }
0x12bd   : > { %11582 = vst [vmem:[#allocation15_spill] sm:$0xff] %v11044_v56 }
0x12c4   : > { %v9269_v52 = vpop.eup %9268 }
0x12c5   : > { %v4766_v57 = vmul.f32 %v9269_v52, %v10890_v23  ;;  %v11058_v23 = vrot.slane %v5394_v47, %v10169_v32  ;;  %v5440_v52 = vrot.slane %v5431_v3, %v10853_v51  ;;  %v11073_v47 = vmul.f32 %v5461_v15, %v11049_v54  ;;  %v11098_v3 = vld [vmem:[#allocation2 + $0x80] sm:$0x3f] }
0x12c6   : > { %v9271_v60 = vpop.eup %9270  ;;  %v11086_v15 = vmul.f32 %v5494_v55, %v11049_v54 }
0x12c7   : > { %v4786_v63 = vrot.slane %v4766_v57, 6  ;;  %4792 = vst [vmem:[#allocation2 + $0x60] sm:$0xc] %v4766_v57  ;;  %v4767_v18 = vmul.f32 %v9271_v60, %v10897_v44  ;;  %11588 = vst [vmem:[#allocation22_spill] sm:$0xff] %v11073_v47  ;;  %v11076_v57 = vmul.f32 %v5494_v55, %v5427_v40  ;;  %v11093_v56 = vmul.f32 %v5440_v52, %v5427_v40  ;;  %v11140_v55 = vld [vmem:[#allocation2 + $0x120] sm:$0xff] }
0x12c8   : > { %v5551_v60 = vld [vmem:[#allocation6 + $0x130] ss:$8 sm:$0x3]  ;;  %11592 = vst [vmem:[#allocation29_spill] sm:$0xff] %v11086_v15  ;;  %v11096_v45 = vmul.f32 %v5440_v52, %v11049_v54  ;;  %v11109_v44 = vmul.f32 %v5527_v31, %v5427_v40  ;;  %11603 = vst [vmem:[#allocation40_spill] sm:$0xff] %v11140_v55 }
0x12c9   : > { %4790 = vst [vmem:[#allocation2 + $0x40] sm:$0xc] %v4786_v63  ;;  %v4787_v59 = vrot.slane %v4767_v18, 6  ;;  %4793 = vst [vmem:[#allocation2 + $0x68] sm:$0xc] %v4767_v18  ;;  %v11089_v63 = vrot.slane %v5551_v60, %v10853_v51  ;;  %v11112_v51 = vmul.f32 %v5527_v31, %v11049_v54  ;;  %v11115_v52 = vrot.slane %v5551_v60, %v10169_v32 }
0x12ca   : > { %11589 = vst [vmem:[#allocation19_spill] sm:$0xff] %v11076_v57  ;;  %11594 = vst [vmem:[#allocation31_spill] sm:$0xff] %v11093_v56  ;;  %v11129_v18 = vmul.f32 %v11083_v7, %v11098_v3 }
0x12cb   : > { %11593 = vst [vmem:[#allocation30_spill] sm:$0xff] %v11089_v63  ;;  %4791 = vst [vmem:[#allocation2 + $0x48] sm:$0xc] %v4787_v59  ;;  %v11106_v59 = vrot.slane %v5518_v36, %v10169_v32  ;;  %v11121_v20 = vmul.f32 %v11089_v63, %v5427_v40  ;;  %v11125_v36 = vmul.f32 %v11080_v53, %v11098_v3 }
0x12cc   : > { %11595 = vst [vmem:[#allocation32_spill] sm:$0xff] %v11096_v45  ;;  %11597 = vst [vmem:[#allocation34_spill] sm:$0xff] %v11109_v44  ;;  %v11145_v40 = vmul.f32 %v11058_v23, %v10981_v50 }
0x12cd   : > { %11596 = vst [vmem:[#allocation33_spill] sm:$0xff] %v11106_v59  ;;  %11598 = vst [vmem:[#allocation35_spill] sm:$0xff] %v11112_v51 }
0x12ce   : > { %11599 = vst [vmem:[#allocation36_spill] sm:$0xff] %v11115_v52  ;;  %v5114_v45 = vld [vmem:[#allocation2 + $0x60] sm:$0x3f]  ;;  %11600 = vst [vmem:[#allocation37_spill] sm:$0xff] %v11121_v20 }
0x12cf   : > { %v11117_v8 = vld [vmem:[#allocation2 + $0x60] sm:$0x3f]  ;;  %11601 = vst [vmem:[#allocation38_spill] sm:$0xff] %v11125_v36  ;;  %11602 = vst [vmem:[#allocation39_spill] sm:$0xff] %v11129_v18  ;;  %v11132_v31 = vmul.f32 %v10964_v9, %v5114_v45  ;;  %v11135_v60 = vmul.f32 %v10970_v38, %v5114_v45  ;;  %v11138_v32 = vmul.f32 %v10976_v28, %v5114_v45 }
0x12d0   : > { %6379 = vst [vmem:[#allocation2 + $0x60] sm:$0xf] %v11140_v55  ;;  %v4957_v15 = vld [vmem:[#allocation2 + $0x40] sm:$0x3f]  ;;  %v11149_v47 = vld [vmem:[#allocation2 + $0x68] sm:$0x3f]  ;;  %v11152_v20 = vmul.f32 %v10984_v35, %v5114_v45  ;;  %v11155_v57 = vmul.f32 %v10990_v16, %v5114_v45  ;;  %v11159_v63 = vmul.f32 %v11001_v46, %v11117_v8  ;;  %v11163_v54 = vmul.f32 %v10993_v13, %v11117_v8 }
0x12d1   : > { %v11147_v51 = vld [vmem:[#allocation2 + $0x40] sm:$0x3f]  ;;  %v4974_v50 = vmul.f32 %v10909_v14, %v4957_v15  ;;  %v4995_v44 = vmul.f32 %v10912_v25, %v4957_v15  ;;  %v5028_v43 = vmul.f32 %v10926_v11, %v4957_v15  ;;  %v11168_v4 = vld [vmem:[#allocation2 + $0x68] sm:$0x3f]  ;;  %v11172_v45 = vmul.f32 %v11016_v58, %v11117_v8 }
0x12d2   : > { %v4958_v52 = vld [vmem:[#allocation2 + $0x48] sm:$0x3f]  ;;  %v5061_v46 = vmul.f32 %v10939_v27, %v4957_v15  ;;  %v5094_v36 = vmul.f32 %v10950_v29, %v4957_v15  ;;  %v5129_v13 = vmul.f32 %v10964_v9, %v11147_v51  ;;  %v5132_v14 = vmul.f32 %v10967_v10, %v11149_v47  ;;  %6380 = vst [vmem:[#allocation2 + $0x68] sm:$0xf] %v11140_v55 }
0x12d3   : > { %v4975_v25 = vmul.f32 %v10915_v39, %v4958_v52  ;;  %v4978_v11 = vadd.f32 %v4974_v50, %v10959_v41  ;;  %v4996_v58 = vmul.f32 %v10918_v49, %v4958_v52  ;;  %v5003_v56 = vrot.slane %v4995_v44, 1  ;;  %v5113_v19 = vld [vmem:[#allocation2 + $0x48] sm:$0x3f] }
0x12d4   : > { %v5029_v27 = vmul.f32 %v10931_v0, %v4958_v52  ;;  %v5036_v59 = vrot.slane %v5028_v43, 2  ;;  %v5062_v29 = vmul.f32 %v10943_v26, %v4958_v52  ;;  %v5150_v9 = vmul.f32 %v10970_v38, %v11147_v51 }
0x12d5   : > { %v4979_v15 = vadd.f32 %v4975_v25, %v10961_v33  ;;  %v5004_v18 = vrot.slane %v4996_v58, 1  ;;  %v5011_v55 = vadd.f32 %v5003_v56, %v4978_v11  ;;  %v5095_v39 = vmul.f32 %v10955_v1, %v4958_v52 }
0x12d6   : > { %v5037_v53 = vrot.slane %v5029_v27, 2  ;;  %v5069_v41 = vrot.slane %v5061_v46, 3  ;;  %v5070_v50 = vrot.slane %v5062_v29, 3  ;;  %v5130_v49 = vmul.f32 %v10967_v10, %v5113_v19 }
0x12d7   : > { %v5012_v44 = vadd.f32 %v5004_v18, %v4979_v15  ;;  %v5044_v7 = vadd.f32 %v5036_v59, %v5011_v55  ;;  %v5102_v0 = vrot.slane %v5094_v36, 4  ;;  %v5133_v43 = vadd.f32 %v5129_v13, %v10995_v37 }
0x12d8   : > { %v5134_v26 = vadd.f32 %v5130_v49, %v11006_v30  ;;  %v5151_v38 = vmul.f32 %v10973_v6, %v5113_v19  ;;  %v5153_v33 = vmul.f32 %v10973_v6, %v11149_v47  ;;  %v5158_v56 = vrot.slane %v5150_v9, 1 }
0x12d9   : > { %v5045_v25 = vadd.f32 %v5037_v53, %v5012_v44  ;;  %v5077_v1 = vadd.f32 %v5069_v41, %v5044_v7  ;;  %v5103_v52 = vrot.slane %v5095_v39, 4  ;;  %v5183_v46 = vmul.f32 %v10976_v28, %v11147_v51 }
0x12da   : > { %v5159_v10 = vrot.slane %v5151_v38, 1  ;;  %v5160_v18 = vrot.slane %v11135_v60, 1  ;;  %v5166_v55 = vadd.f32 %v5158_v56, %v5133_v43  ;;  %v5184_v37 = vmul.f32 %v10979_v48, %v5113_v19 }
0x12db   : > { %v5078_v59 = vadd.f32 %v5070_v50, %v5045_v25  ;;  %v5110_v30 = vadd.f32 %v5102_v0, %v5077_v1  ;;  %v5186_v36 = vmul.f32 %v10979_v48, %v11149_v47  ;;  %v5191_v13 = vrot.slane %v5183_v46, 2 }
0x12dc   : > { %v5161_v6 = vrot.slane %v5153_v33, 1  ;;  %v5167_v11 = vadd.f32 %v5159_v10, %v5134_v26  ;;  %v5192_v53 = vrot.slane %v5184_v37, 2  ;;  %v5216_v7 = vmul.f32 %v10984_v35, %v11147_v51 }
0x12dd   : > { %v5111_v58 = vadd.f32 %v5103_v52, %v5078_v59  ;;  %v5135_v28 = vadd.f32 %v11132_v31, %v5110_v30  ;;  %v5193_v60 = vrot.slane %v11138_v32, 2  ;;  %v5199_v27 = vadd.f32 %v5191_v13, %v5166_v55 }
0x12de   : > { %v5200_v29 = vadd.f32 %v5192_v53, %v5167_v11  ;;  %v5217_v9 = vmul.f32 %v10987_v21, %v5113_v19  ;;  %v5219_v15 = vmul.f32 %v10987_v21, %v11149_v47  ;;  %v5224_v48 = vrot.slane %v5216_v7, 3  ;;  %v11604_v11 = vld [vmem:[#allocation25_spill] sm:$0xff] }
0x12df   : > { %v5136_v39 = vadd.f32 %v5132_v14, %v5111_v58  ;;  %v5168_v41 = vadd.f32 %v5160_v18, %v5135_v28  ;;  %v5194_v50 = vrot.slane %v5186_v36, 2  ;;  %v5249_v49 = vmul.f32 %v10990_v16, %v11147_v51 }
0x12e0   : > { %v5225_v35 = vrot.slane %v5217_v9, 3  ;;  %v5226_v44 = vrot.slane %v11152_v20, 3  ;;  %v5232_v31 = vadd.f32 %v5224_v48, %v5199_v27  ;;  %v5250_v32 = vmul.f32 %v10998_v17, %v5113_v19  ;;  %v11609_v9 = vld [vmem:[#allocation20_spill] sm:$0xff] }
0x12e1   : > { %v5169_v0 = vadd.f32 %v5161_v6, %v5136_v39  ;;  %v5201_v43 = vadd.f32 %v5193_v60, %v5168_v41  ;;  %v5252_v26 = vmul.f32 %v10998_v17, %v11149_v47  ;;  %v5257_v38 = vrot.slane %v5249_v49, 4  ;;  %v5428_v6 = vld [vmem:[#allocation2 + $0xa0] sm:$0x3f] }
0x12e2   : > { %v5227_v21 = vrot.slane %v5219_v15, 3  ;;  %v5233_v33 = vadd.f32 %v5225_v35, %v5200_v29  ;;  %v5258_v14 = vrot.slane %v5250_v32, 4  ;;  %v5259_v56 = vrot.slane %v11155_v57, 4  ;;  %v11611_v15 = vld [vmem:[#allocation18_spill] sm:$0xff]  ;;  %v11612_v35 = vld [vmem:[#allocation15_spill] sm:$0xff] }
0x12e3   : > { %v5202_v25 = vadd.f32 %v5194_v50, %v5169_v0  ;;  %v5234_v1 = vadd.f32 %v5226_v44, %v5201_v43  ;;  %v5265_v51 = vadd.f32 %v5257_v38, %v5232_v31  ;;  %v5287_v16 = vmul.f32 %v11004_v42, %v11168_v4  ;;  %v11614_v0 = vld [vmem:[#allocation23_spill] sm:$0xff] }
0x12e4   : > { %v5260_v20 = vrot.slane %v5252_v26, 4  ;;  %v5266_v52 = vadd.f32 %v5258_v14, %v5233_v33  ;;  %v5308_v19 = vmul.f32 %v11009_v61, %v11168_v4  ;;  %v5341_v17 = vmul.f32 %v11026_v2, %v11168_v4  ;;  %v11615_v33 = vld [vmem:[#allocation39_spill] sm:$0xff] }
0x12e5   : > { %v5235_v47 = vadd.f32 %v5227_v21, %v5202_v25  ;;  %v5267_v46 = vadd.f32 %v5259_v56, %v5234_v1  ;;  %v5290_v10 = vadd.f32 %v11159_v63, %v5265_v51  ;;  %v5315_v57 = vrot.slane %v11163_v54, 1  ;;  %v11617_v25 = vld [vmem:[#allocation14_spill] sm:$0xff] }
0x12e6   : > { %v5291_v18 = vadd.f32 %v5287_v16, %v5266_v52  ;;  %v5316_v55 = vrot.slane %v5308_v19, 1  ;;  %v5348_v37 = vrot.slane %v11172_v45, 2  ;;  %v5374_v42 = vmul.f32 %v11039_v24, %v11168_v4  ;;  %v11619_v19 = vld [vmem:[#allocation31_spill] sm:$0xff] }
0x12e7   : > { %v5268_v59 = vadd.f32 %v5260_v20, %v5235_v47  ;;  %v5292_v30 = vadd.f32 %v11020_v12, %v5267_v46  ;;  %v5349_v61 = vrot.slane %v5341_v17, 2  ;;  %v5323_v36 = vadd.f32 %v5315_v57, %v5290_v10  ;;  %v11606_v12 = vld [vmem:[#allocation16_spill] sm:$0xff]  ;;  %v11620_v47 = vld [vmem:[#allocation38_spill] sm:$0xff] }
0x12e8   : > { %v5324_v13 = vadd.f32 %v5316_v55, %v5291_v18  ;;  %v5407_v2 = vmul.f32 %v11047_v62, %v11168_v4  ;;  %v5373_v63 = vmul.f32 %v11029_v34, %v11117_v8  ;;  %v5406_v54 = vmul.f32 %v11058_v23, %v11117_v8  ;;  %v11607_v4 = vld [vmem:[#allocation27_spill] sm:$0xff]  ;;  %v11622_v18 = vld [vmem:[#allocation17_spill] sm:$0xff] }
0x12e9   : > { %v5293_v45 = vadd.f32 %v11023_v22, %v5268_v59  ;;  %v11605_v24 = vrot.slane %v11604_v11, 1  ;;  %v5356_v7 = vadd.f32 %v5348_v37, %v5323_v36  ;;  %v5383_v58 = vrot.slane %v11606_v12, 3  ;;  %v4795_v11 = vld [vmem:[#allocation8 + $0x42] ss:$8 sm:$0x3]  ;;  %v11629_v12 = vld [vmem:[#allocation30_spill] sm:$0xff] }
0x12ea   : > { %v5382_v28 = vrot.slane %v5374_v42, 3  ;;  %v5357_v60 = vadd.f32 %v5349_v61, %v5324_v13  ;;  %v5381_v27 = vrot.slane %v5373_v63, 3  ;;  %v5497_v62 = vmul.f32 %v11103_v5, %v11098_v3  ;;  %v11624_v61 = vld [vmem:[#allocation13_spill] sm:$0xff] }
0x12eb   : > { %v5325_v53 = vadd.f32 %v11605_v24, %v5292_v30  ;;  %v11608_v34 = vrot.slane %v11607_v4, 1  ;;  %v11610_v23 = vrot.slane %v11609_v9, 2  ;;  %v5416_v22 = vrot.slane %v11145_v40, 4  ;;  %v11616_v40 = vld [vmem:[#allocation33_spill] sm:$0xff]  ;;  %v11627_v24 = vld [vmem:[#allocation32_spill] sm:$0xff] }
0x12ec   : > { %v5466_v48 = vmul.f32 %v11611_v15, %v5428_v6  ;;  %v5390_v39 = vadd.f32 %v5382_v28, %v5357_v60  ;;  %v5415_v41 = vrot.slane %v5407_v2, 4  ;;  %v5389_v50 = vadd.f32 %v5381_v27, %v5356_v7  ;;  %v11626_v2 = vld [vmem:[#allocation34_spill] sm:$0xff]  ;;  %v11628_v7 = vld [vmem:[#allocation21_spill] sm:$0xff]  ;;  %v11630_v60 = vld [vmem:[#allocation19_spill] sm:$0xff] }
0x12ed   : > { %v5326_v29 = vadd.f32 %v11608_v34, %v5293_v45  ;;  %v5358_v8 = vadd.f32 %v11610_v23, %v5325_v53  ;;  %v5414_v49 = vrot.slane %v5406_v54, 4  ;;  %v11613_v44 = vrot.slane %v11612_v35, 2  ;;  %v11632_v4 = vld [vmem:[#allocation37_spill] sm:$0xff]  ;;  %v4797_v9 = vld [vmem:[#allocation8 + $0x43] ss:$8 sm:$0x3] }
0x12ee   : > { %v5445_v43 = vmul.f32 %v11614_v0, %v5428_v6  ;;  %v5499_v26 = vmul.f32 %v11103_v5, %v5428_v6  ;;  %v5423_v38 = vadd.f32 %v5415_v41, %v5390_v39  ;;  %v5472_v14 = vrot.slane %v11615_v33, 1  ;;  %v11621_v5 = vld [vmem:[#allocation36_spill] sm:$0xff]  ;;  %v11633_v23 = vld [vmem:[#allocation22_spill] sm:$0xff]  ;;  %v11635_v15 = vld [vmem:[#allocation35_spill] sm:$0xff] }
0x12ef   : > { %v5359_v31 = vadd.f32 %v11613_v44, %v5326_v29  ;;  %v5391_v32 = vadd.f32 %v5383_v58, %v5358_v8  ;;  %v5422_v21 = vadd.f32 %v5414_v49, %v5389_v50  ;;  %v5530_v56 = vmul.f32 %v11616_v40, %v11098_v3  ;;  %v11636_v49 = vld [vmem:[#allocation24_spill] sm:$0xff]  ;;  %v11638_v0 = vld [vmem:[#allocation29_spill] sm:$0xff] }
0x12f0   : > { %v11618_v1 = vrot.slane %v11617_v25, 3  ;;  %v5474_v20 = vrot.slane %v5466_v48, 1  ;;  %v5532_v52 = vmul.f32 %v11616_v40, %v5428_v6  ;;  %v5448_v17 = vadd.f32 %v11619_v19, %v5423_v38  ;;  %v11637_v44 = vld [vmem:[#allocation28_spill] sm:$0xff] }
0x12f1   : > { %v5424_v16 = vadd.f32 %v5416_v22, %v5391_v32  ;;  %v5447_v46 = vadd.f32 %v11620_v47, %v5422_v21  ;;  %v5505_v10 = vrot.slane %v5497_v62, 2  ;;  %v5563_v57 = vmul.f32 %v11621_v5, %v11098_v3 }
0x12f2   : > { %v5392_v51 = vadd.f32 %v11618_v1, %v5359_v31  ;;  %v11623_v55 = vrot.slane %v11622_v18, 4  ;;  %v5507_v59 = vrot.slane %v5499_v26, 2  ;;  %v5565_v30 = vmul.f32 %v11621_v5, %v5428_v6 }
0x12f3   : > { %v5449_v42 = vadd.f32 %v5445_v43, %v5424_v16  ;;  %v11625_v36 = vrot.slane %v11624_v61, 1  ;;  %v5539_v63 = vrot.slane %v11626_v2, 3  ;;  %v5480_v54 = vadd.f32 %v5472_v14, %v5447_v46 }
0x12f4   : > { %v5425_v37 = vadd.f32 %v11623_v55, %v5392_v51  ;;  %v5538_v45 = vrot.slane %v5530_v56, 3  ;;  %v5566_v3 = vmul.f32 %v11629_v12, %v11628_v7  ;;  %v5540_v28 = vrot.slane %v5532_v52, 3 }
0x12f5   : > { %v5481_v13 = vadd.f32 %v11625_v36, %v5448_v17  ;;  %v5482_v58 = vadd.f32 %v5474_v20, %v5449_v42  ;;  %v11631_v27 = vrot.slane %v11630_v60, 2  ;;  %v5572_v6 = vrot.slane %v11632_v4, 4 }
0x12f6   : > { %v5450_v53 = vadd.f32 %v11627_v24, %v5425_v37  ;;  %v5513_v34 = vadd.f32 %v5505_v10, %v5480_v54  ;;  %v5571_v29 = vrot.slane %v5563_v57, 4  ;;  %v11634_v8 = vrot.slane %v11633_v23, 1 }
0x12f7   : > { %v5514_v62 = vadd.f32 %v11631_v27, %v5481_v13  ;;  %v5541_v48 = vrot.slane %v11635_v15, 3  ;;  %v5515_v39 = vadd.f32 %v5507_v59, %v5482_v58  ;;  %v5573_v41 = vrot.slane %v5565_v30, 4 }
0x12f8   : > { %v5483_v22 = vadd.f32 %v11634_v8, %v5450_v53  ;;  %v5587_v35 = vrot.slane %v4795_v11, %v11636_v49  ;;  %v5591_v31 = vrot.slane %v4795_v11, %v11637_v44  ;;  %v5546_v32 = vadd.f32 %v5538_v45, %v5513_v34 }
0x12f9   : > { %v5547_v50 = vadd.f32 %v5539_v63, %v5514_v62  ;;  %v11639_v43 = vrot.slane %v11638_v0, 2  ;;  %v5574_v38 = vrot.slane %v5566_v3, 4  ;;  %v5548_v21 = vadd.f32 %v5540_v28, %v5515_v39  ;;  %v8944_v0 = vld [vmem:[#allocation3 + $0x1270] ss:$8 sps:$4 sm:$0xff]  }
0x12fa   : > { %v5602_v14 = vrot.slane %v4797_v9, %v11636_v49  ;;  %v5606_v40 = vrot.slane %v4797_v9, %v11637_v44  ;;  %v5579_v56 = vadd.f32 %v5571_v29, %v5546_v32 }
0x12fb   : > { %v5516_v26 = vadd.f32 %v11639_v43, %v5483_v22  ;;  %v5580_v33 = vadd.f32 %v5572_v6, %v5547_v50  ;;  %v5581_v1 = vadd.f32 %v5573_v41, %v5548_v21  ;;  %v8946_v43 = vld [vmem:[#allocation3 + $0x1274] ss:$8 sps:$4 sm:$0xff]  }
0x12fc   : > { %v5594_v16 = vmul.f32 %v5587_v35, %v5579_v56  ;;  %5955 = vmatprep.subr.bf16.mxu0 %v8946_v43  ;;  %v8952_v21 = vld [vmem:[#allocation3 + $0x1254] ss:$8 sps:$4 sm:$0xff]  }
0x12fd   : > { %v5549_v25 = vadd.f32 %v5541_v48, %v5516_v26  ;;  %v5595_v51 = vmul.f32 %v5591_v31, %v5580_v33  ;;  %v5596_v52 = vmul.f32 %v5587_v35, %v5581_v1  ;;  %v8949_v26 = vld [vmem:[#allocation3 + $0x1264] ss:$8 sps:$4 sm:$0xff]   ;;  %5956 = vmatpush1.bf16.msra.mxu0 %v8944_v0  ;;  %v8950_v33 = vld [vmem:[#allocation3 + $0x1250] ss:$8 sps:$4 sm:$0xff]   ;;  %v8958_v56 = vld [vmem:[#allocation3 + $0x1234] ss:$8 sps:$4 sm:$0xff]  }
0x12fe   : > { %v5609_v17 = vadd.f32 %v5602_v14, %v5594_v16  ;;  %5957 = vmatprep.subr.bf16.mxu0 %v8949_v26  ;;  %v8961_v1 = vld [vmem:[#allocation3 + $0x1224] ss:$8 sps:$4 sm:$0xff]   ;;  %v8964_v16 = vld [vmem:[#allocation3 + $0x1214] ss:$8 sps:$4 sm:$0xff]  }
0x12ff   : > { %v5582_v20 = vadd.f32 %v5574_v38, %v5549_v25  ;;  %v5610_v19 = vadd.f32 %v5606_v40, %v5595_v51  ;;  %v5611_v46 = vadd.f32 %v5602_v14, %v5596_v52  ;;  %v8947_v38 = vld [vmem:[#allocation3 + $0x1260] ss:$8 sps:$4 sm:$0xff]   ;;  %v8955_v14 = vld [vmem:[#allocation3 + $0x1244] ss:$8 sps:$4 sm:$0xff]   ;;  %v8956_v25 = vld [vmem:[#allocation3 + $0x1230] ss:$8 sps:$4 sm:$0xff]  }
0x1300   : > { %v7877_v5 = vmul.f32 -1.442695, %v5609_v17  ;;  %v8959_v51 = vld [vmem:[#allocation3 + $0x1220] ss:$8 sps:$4 sm:$0xff]   ;;  %v8967_v52 = vld [vmem:[#allocation3 + $0x1204] ss:$8 sps:$4 sm:$0xff]  }
0x1301   : > { %v5597_v47 = vmul.f32 %v5591_v31, %v5582_v20  ;;  %v7878_v10 = vmul.f32 -1.442695, %v5610_v19  ;;  %v7879_v18 = vmul.f32 -1.442695, %v5611_v46  ;;  %5958 = vmatpush1.bf16.msra.mxu0 %v8947_v38  ;;  %v8962_v20 = vld [vmem:[#allocation3 + $0x1210] ss:$8 sps:$4 sm:$0xff]  }
0x1302   : > { %5959 = vmatprep.subr.bf16.mxu0 %v8952_v21 }
0x1303   : > { %v5612_v57 = vadd.f32 %v5606_v40, %v5597_v47  ;;  %9272 = vpow2.f32 %v7878_v10  ;;  %v8953_v40 = vld [vmem:[#allocation3 + $0x1240] ss:$8 sps:$4 sm:$0xff]   ;;  %v5700_v47 = vld [vmem:[#allocation8 + $0x44] ss:$0 sm:$0xff] }
0x1304   : > { %9274 = vpow2.f32 %v7877_v5 }
0x1305   : > { %v7880_v55 = vmul.f32 -1.442695, %v5612_v57  ;;  %9276 = vpow2.f32 %v7879_v18  ;;  %5960 = vmatpush1.bf16.msra.mxu0 %v8950_v33 }
0x1306   : > { %5961 = vmatprep.subr.bf16.mxu0 %v8955_v14 }
0x1307   : > { %9278 = vpow2.f32 %v7880_v55 }
0x1309   : > { %5962 = vmatpush1.bf16.msra.mxu0 %v8953_v40 }
0x130a   : > { %5963 = vmatprep.subr.bf16.mxu0 %v8958_v56 }
0x130d   : > { %5964 = vmatpush1.bf16.msra.mxu0 %v8956_v25 }
0x130e   : > { %5965 = vmatprep.subr.bf16.mxu0 %v8961_v1 }
0x1310   : > { %v9273_v37 = vpop.eup %9272 }
0x1311   : > { %v9275_v42 = vpop.eup %9274  ;;  %v5626_v59 = vadd.f32 1.0, %v9273_v37  ;;  %5966 = vmatpush1.bf16.msra.mxu0 %v8959_v51 }
0x1312   : > { %v9277_v30 = vpop.eup %9276  ;;  %v5625_v61 = vadd.f32 1.0, %v9275_v42  ;;  %5967 = vmatprep.subr.bf16.mxu0 %v8964_v16 }
0x1313   : > { %9280 = vrcp.f32 %v5626_v59  ;;  %v5627_v13 = vadd.f32 1.0, %v9277_v30 }
0x1314   : > { %v9279_v36 = vpop.eup %9278  ;;  %9282 = vrcp.f32 %v5625_v61 }
0x1315   : > { %v5628_v2 = vadd.f32 1.0, %v9279_v36  ;;  %9284 = vrcp.f32 %v5627_v13  ;;  %5968 = vmatpush1.bf16.msra.mxu0 %v8962_v20  ;;  %v11640_v36 = vmov 0   ;;  %v8968_v13 = vld [vmem:[#allocation3 + $0x13f0] ss:$8 sps:$4 sm:$0xff]  }
0x1316   : > { %5969 = vmatprep.subr.bf16.mxu0 %v8967_v52  ;;  %8213 = vmatprep.subr.bf16.mxu1 %v8968_v13 }
0x1317   : > { %9286 = vrcp.f32 %v5628_v2  ;;  %v8969_v2 = vld [vmem:[#allocation3 + $0x1370] ss:$8 sps:$4 sm:$0xff]  }
0x1320   : > { %v9281_v63 = vpop.eup %9280 }
0x1321   : > { %v9283_v54 = vpop.eup %9282  ;;  %v5638_v3 = vmul.f32 %v9281_v63, %v5610_v19  ;;  %v8965_v19 = vld [vmem:[#allocation3 + $0x1200] ss:$8 sps:$4 sm:$0xff]  }
0x1322   : > { %v9285_v45 = vpop.eup %9284  ;;  %v5637_v7 = vmul.f32 %v9283_v54, %v5609_v17  ;;  %5970 = vmatpush1.bf16.msra.mxu0 %v8965_v19  ;;  %v8970_v63 = vld [vmem:[#allocation3 + $0x13e0] ss:$8 sps:$4 sm:$0xff]  }
0x1323   : > { %v5639_v24 = vmul.f32 %v9285_v45, %v5611_v46  ;;  %v8971_v54 = vld [vmem:[#allocation3 + $0x1360] ss:$8 sps:$4 sm:$0xff]   ;;  %v8972_v45 = vld [vmem:[#allocation3 + $0x13d0] ss:$8 sps:$4 sm:$0xff]  }
0x1324   : > { %v9287_v11 = vpop.eup %9286 }
0x1325   : > { %v5640_v53 = vmul.f32 %v9287_v11, %v5612_v57  ;;  %v5643_v12 = vrot.slane %v5639_v24, 6  ;;  %v8973_v11 = vld [vmem:[#allocation3 + $0x1350] ss:$8 sps:$4 sm:$0xff]   ;;  %v8974_v24 = vld [vmem:[#allocation3 + $0x13c0] ss:$8 sps:$4 sm:$0xff]  }
0x1327   : > { %v5644_v58 = vrot.slane %v5640_v53, 6  ;;  %v11282_v28 = vsel %vm4232_vm7, %v5637_v7, %v5643_v12  ;;  %v8975_v53 = vld [vmem:[#allocation3 + $0x1340] ss:$8 sps:$4 sm:$0xff]   ;;  %v8976_v7 = vld [vmem:[#allocation3 + $0x13b0] ss:$8 sps:$4 sm:$0xff]  }
0x1328   : > { %v5649_v27 = vsel %vm2423_vm5, %v11282_v28, 0.0  ;;  %v8977_v12 = vld [vmem:[#allocation3 + $0x1330] ss:$8 sps:$4 sm:$0xff]  }
0x1329   : > { %v11285_v60 = vsel %vm4232_vm7, %v5638_v3, %v5644_v58  ;;  %v5650_v4 = vrot.slane %v5649_v27, 4  ;;  %v8978_v3 = vld [vmem:[#allocation3 + $0x13a0] ss:$8 sps:$4 sm:$0xff]  }
0x132a   : > { %v5656_v62 = vsel %vm2423_vm5, %v11285_v60, 0.0  ;;  %v8979_v58 = vld [vmem:[#allocation3 + $0x1320] ss:$8 sps:$4 sm:$0xff]  }
0x132b   : > { %v5657_v6 = vrot.slane %v5656_v62, 4  ;;  %v5651_v34 = vadd.f32 %v5650_v4, %v5649_v27  ;;  %v8980_v27 = vld [vmem:[#allocation3 + $0x1390] ss:$8 sps:$4 sm:$0xff]   ;;  %v8986_v4 = vld [vmem:[#allocation3 + $0x1474] ss:$8 sps:$4 sm:$0xff]  }
0x132c   : > { %6292 = vmatprep.subr.bf16.mxu0 %v8986_v4  ;;  %v9015_v4 = vld [vmem:[#allocation3 + $0x1540] ss:$8 sps:$4 sm:$0xff]  }
0x132d   : > { %v5658_v29 = vadd.f32 %v5657_v6, %v5656_v62  ;;  %v5652_v9 = vrot.slane %v5651_v34, 2  ;;  %v8984_v62 = vld [vmem:[#allocation3 + $0x1470] ss:$8 sps:$4 sm:$0xff]   ;;  %v8989_v6 = vld [vmem:[#allocation3 + $0x1464] ss:$8 sps:$4 sm:$0xff]  }
0x132f   : > { %v5659_v23 = vrot.slane %v5658_v29, 2  ;;  %v5653_v8 = vadd.f32 %v5652_v9, %v5651_v34  ;;  %v8981_v34 = vld [vmem:[#allocation3 + $0x1310] ss:$8 sps:$4 sm:$0xff]   ;;  %v8987_v9 = vld [vmem:[#allocation3 + $0x1460] ss:$8 sps:$4 sm:$0xff]  }
0x1331   : > { %v5660_v22 = vadd.f32 %v5659_v23, %v5658_v29  ;;  %v5654_v15 = vrot.slane %v5653_v8, 1  ;;  %v8982_v29 = vld [vmem:[#allocation3 + $0x1380] ss:$8 sps:$4 sm:$0xff]   ;;  %v8992_v23 = vld [vmem:[#allocation3 + $0x1454] ss:$8 sps:$4 sm:$0xff]  }
0x1333   : > { %v5661_v48 = vrot.slane %v5660_v22, 1  ;;  %v5655_v39 = vadd.f32 %v5654_v15, %v5653_v8  ;;  %v8983_v8 = vld [vmem:[#allocation3 + $0x1300] ss:$8 sps:$4 sm:$0xff]   ;;  %v8995_v15 = vld [vmem:[#allocation3 + $0x1444] ss:$8 sps:$4 sm:$0xff]  }
0x1335   : > { %v5662_v41 = vadd.f32 %v5661_v48, %v5660_v22  ;;  %v5663_v50 = vmul.f32 0.25, %v5655_v39  ;;  %v8990_v22 = vld [vmem:[#allocation3 + $0x1450] ss:$8 sps:$4 sm:$0xff]   ;;  %v8993_v48 = vld [vmem:[#allocation3 + $0x1440] ss:$8 sps:$4 sm:$0xff]  }
0x1336   : > { %v8998_v39 = vld [vmem:[#allocation3 + $0x1434] ss:$8 sps:$4 sm:$0xff]  }
0x1337   : > { %v5664_v35 = vmul.f32 0.25, %v5662_v41  ;;  %v5665_v32 = vpack.c.bf16 %v5663_v50, %v5663_v50  ;;  %v8996_v41 = vld [vmem:[#allocation3 + $0x1430] ss:$8 sps:$4 sm:$0xff]   ;;  %v5863_v50 = vld [vmem:[#allocation8 + $0x45] ss:$8 sm:$0x3] }
0x1339   : > { %v5666_v31 = vpack.c.bf16 %v5664_v35, %v5664_v35  ;;  %v5948_v35 = vrot.slane %v5863_v50, %v11636_v49 }
0x133b   : > { %5829 = vmatprep.mubr.bf16.mxu1 %v5666_v31  ;;  %v5952_v31 = vrot.slane %v5863_v50, %v11637_v44 }
0x133c   : > { %5830 = vmatmul.mubr.bf16.vlgmr.msra.gmra.mxu1 %v5665_v32 }
0x133d   : > { %8214 = vmatpush3.bf16.msra.mxu1 %v8969_v2 }
0x133e   : > { %8215 = vmatprep.subr.bf16.mxu1 %v8970_v63 }
0x1341   : > { %8216 = vmatpush3.bf16.msra.mxu1 %v8971_v54  ;;  %v11641_v54 = vld [vmem:[#allocation26_spill] sm:$0xff] }
0x1342   : > { %8217 = vmatprep.subr.bf16.mxu1 %v8972_v45 }
0x1345   : > { %8218 = vmatpush3.bf16.msra.mxu1 %v8973_v11 }
0x1346   : > { %8219 = vmatprep.subr.bf16.mxu1 %v8974_v24  ;;  %v9008_v24 = vld [vmem:[#allocation3 + $0x15f0] ss:$8 sps:$4 sm:$0xff]  }
0x1349   : > { %8220 = vmatpush3.bf16.msra.mxu1 %v8975_v53  ;;  %v9009_v53 = vld [vmem:[#allocation3 + $0x1570] ss:$8 sps:$4 sm:$0xff]  }
0x134a   : > { %8221 = vmatprep.subr.bf16.mxu1 %v8976_v7  ;;  %v9010_v7 = vld [vmem:[#allocation3 + $0x15e0] ss:$8 sps:$4 sm:$0xff]  }
0x134d   : > { %8222 = vmatpush3.bf16.msra.mxu1 %v8977_v12  ;;  %v9011_v12 = vld [vmem:[#allocation3 + $0x1560] ss:$8 sps:$4 sm:$0xff]  }
0x134e   : > { %8223 = vmatprep.subr.bf16.mxu1 %v8978_v3  ;;  %v9012_v3 = vld [vmem:[#allocation3 + $0x15d0] ss:$8 sps:$4 sm:$0xff]  }
0x1351   : > { %8224 = vmatpush3.bf16.msra.mxu1 %v8979_v58  ;;  %v11642_v58 = vlaneseq }
0x1352   : > { %8225 = vmatprep.subr.bf16.mxu1 %v8980_v27  ;;  %v11643_v27 = vld [vmem:[#allocation40_spill] sm:$0xff] }
0x1353   : > { %vm6383_vm8 = vcmp.lt.s32.totalorder %v11642_v58, 256 }
0x1354   : > { %6385 = vst.msk [vmem:[#allocation2 + $0x20] ss:$8 sm:$0x3] %vm6383_vm8, %v11643_v27  ;;  %6388 = vst.msk [vmem:[#allocation2 + $0x40] ss:$8 sm:$0x3] %vm6383_vm8, %v11643_v27 }
0x1355   : > { %8226 = vmatpush3.bf16.msra.mxu1 %v8981_v34  ;;  %6391 = vst.msk [vmem:[#allocation2 + $0x23] ss:$8 sm:$0x3] %vm6383_vm8, %v11643_v27  ;;  %6394 = vst.msk [vmem:[#allocation2 + $0x43] ss:$8 sm:$0x3] %vm6383_vm8, %v11643_v27 }
0x1356   : > { %8227 = vmatprep.subr.bf16.mxu1 %v8982_v29  ;;  %v9017_v34 = vld [vmem:[#allocation3 + $0x1530] ss:$8 sps:$4 sm:$0xff]   ;;  %v9018_v29 = vld [vmem:[#allocation3 + $0x15a0] ss:$8 sps:$4 sm:$0xff]  }
0x1359   : > { %8228 = vmatpush3.bf16.msra.mxu1 %v8983_v8  ;;  %v9021_v8 = vld [vmem:[#allocation3 + $0x1510] ss:$8 sps:$4 sm:$0xff]  }
0x135a   : > { %8235 = vmatprep.subr.bf16.mxu1 %v9008_v24 }
0x13fc   : > { %v8207_v17 = vpop.f32.mrf.mxu1 }
0x13fe   : > { %v8208_v46 = vpop.f32.mrf.mxu1 }
0x13ff   : > { %v8209_v10 = vadd.f32 %v8208_v46, %v8207_v17 }
0x1400   : > { %v8210_v5 = vpop.f32.mrf.mxu1 }
0x1401   : > { %v5832_v57 = vadd.f32 %v8209_v10, %v5700_v47  ;;  %v8999_v10 = vld [vmem:[#allocation3 + $0x1420] ss:$8 sps:$4 sm:$0xff]   ;;  %v9001_v5 = vld [vmem:[#allocation3 + $0x1424] ss:$8 sps:$4 sm:$0xff]  }
0x1402   : > { %v8211_v18 = vpop.f32.mrf.mxu1 }
0x1403   : > { %v7897_v55 = vmul.f32 -1.442695, %v5832_v57  ;;  %v9004_v18 = vld [vmem:[#allocation3 + $0x1414] ss:$8 sps:$4 sm:$0xff]  }
0x1405   : > { %9288 = vpow2.f32 %v7897_v55  ;;  %v9007_v55 = vld [vmem:[#allocation3 + $0x1404] ss:$8 sps:$4 sm:$0xff]  }
0x1412   : > { %v9289_v37 = vpop.eup %9288 }
0x1413   : > { %v5840_v42 = vadd.f32 1.0, %v9289_v37  ;;  %v9005_v37 = vld [vmem:[#allocation3 + $0x1400] ss:$8 sps:$4 sm:$0xff]  }
0x1415   : > { %9290 = vrcp.f32 %v5840_v42 }
0x1422   : > { %v9291_v59 = vpop.eup %9290 }
0x1423   : > { %v5843_v30 = vmul.f32 %v9291_v59, %v5832_v57  ;;  %v9002_v57 = vld [vmem:[#allocation3 + $0x1410] ss:$8 sps:$4 sm:$0xff]   ;;  %v6189_v59 = vld [vmem:[#allocation8 + $0x46] ss:$0 sm:$0xff] }
0x1425   : > { %v5844_v61 = vpack.c.bf16 %v5843_v30, %v5843_v30  ;;  %v6191_v30 = vld [vmem:[#allocation8 + $0x47] ss:$0 sm:$0xff] }
0x1427   : > { %5988 = vmatmul.mubr.bf16.vlgmr.msra.gmra.mxu0 %v5844_v61 }
0x1428   : > { %6324 = vmatprep.mubr.bf16.mxu0 %v11640_v36  ;;  %6293 = vmatpush1.bf16.msra.mxu0 %v8984_v62  ;;  %v9014_v62 = vld [vmem:[#allocation3 + $0x15c0] ss:$8 sps:$4 sm:$0xff]  }
0x1429   : > { %6294 = vmatprep.subr.bf16.mxu0 %v8989_v6  ;;  %v9016_v6 = vld [vmem:[#allocation3 + $0x15b0] ss:$8 sps:$4 sm:$0xff]  }
0x142c   : > { %6295 = vmatpush1.bf16.msra.mxu0 %v8987_v9  ;;  %v9019_v9 = vld [vmem:[#allocation3 + $0x1520] ss:$8 sps:$4 sm:$0xff]  }
0x142d   : > { %6296 = vmatprep.subr.bf16.mxu0 %v8992_v23  ;;  %v9020_v23 = vld [vmem:[#allocation3 + $0x1590] ss:$8 sps:$4 sm:$0xff]  }
0x1430   : > { %6297 = vmatpush1.bf16.msra.mxu0 %v8990_v22  ;;  %v9022_v22 = vld [vmem:[#allocation3 + $0x1580] ss:$8 sps:$4 sm:$0xff]  }
0x1431   : > { %6298 = vmatprep.subr.bf16.mxu0 %v8995_v15  ;;  %v9023_v15 = vld [vmem:[#allocation3 + $0x1500] ss:$8 sps:$4 sm:$0xff]  }
0x1434   : > { %6299 = vmatpush1.bf16.msra.mxu0 %v8993_v48  ;;  %v6334_v48 = vld [vmem:[#allocation8 + $0x50] ss:$8 sm:$0x3] }
0x1435   : > { %6300 = vmatprep.subr.bf16.mxu0 %v8998_v39  ;;  %v6349_v39 = vld [vmem:[#allocation8 + $0x51] ss:$8 sm:$0x3] }
0x1436   : > { %v6354_v50 = vrot.slane %v6349_v39, %v11636_v49 }
0x1438   : > { %6301 = vmatpush1.bf16.msra.mxu0 %v8996_v41  ;;  %v6339_v41 = vrot.slane %v6334_v48, %v11636_v49 }
0x1439   : > { %6302 = vmatprep.subr.bf16.mxu0 %v9001_v5 }
0x143c   : > { %6303 = vmatpush1.bf16.msra.mxu0 %v8999_v10 }
0x143d   : > { %6304 = vmatprep.subr.bf16.mxu0 %v9004_v18  ;;  %v6414_v18 = vld [vmem:[#allocation2] sm:$0xf] }
0x1440   : > { %6305 = vmatpush1.bf16.msra.mxu0 %v9002_v57 }
0x1441   : > { %6306 = vmatprep.subr.bf16.mxu0 %v9007_v55 }
0x1444   : > { %6307 = vmatpush1.bf16.msra.mxu0 %v9005_v37 }
0x14e7   : > { %v5989_v32 = vpop.f32.mrf.mxu0 }
0x14e8   : > { %v5990_v0 = vadd.f32 %v5989_v32, %v5948_v35  ;;  %v6343_v35 = vrot.slane %v6334_v48, %v11637_v44  ;;  %v6655_v48 = vld [vmem:[#allocation6 + $0x150] ss:$8 sm:$0x3] }
0x14e9   : > { %v5991_v43 = vpop.f32.mrf.mxu0 }
0x14ea   : > { %v7914_v26 = vmul.f32 -1.442695, %v5990_v0  ;;  %v5992_v38 = vadd.f32 %v5991_v43, %v5952_v31  ;;  %v6358_v0 = vrot.slane %v6349_v39, %v11637_v44 }
0x14eb   : > { %v5993_v21 = vpop.f32.mrf.mxu0 }
0x14ec   : > { %9292 = vpow2.f32 %v7914_v26  ;;  %v7915_v33 = vmul.f32 -1.442695, %v5992_v38 }
0x14ed   : > { %v5994_v14 = vpop.f32.mrf.mxu0 }
0x14ee   : > { %9294 = vpow2.f32 %v7915_v33 }
0x14f9   : > { %v9293_v40 = vpop.eup %9292 }
0x14fa   : > { %v6002_v56 = vadd.f32 1.0, %v9293_v40 }
0x14fb   : > { %v9295_v25 = vpop.eup %9294 }
0x14fc   : > { %9296 = vrcp.f32 %v6002_v56  ;;  %v6003_v1 = vadd.f32 1.0, %v9295_v25 }
0x14fe   : > { %9298 = vrcp.f32 %v6003_v1 }
0x1509   : > { %v9297_v51 = vpop.eup %9296 }
0x150a   : > { %v6011_v16 = vrot.slane %v9297_v51, %v11636_v49 }
0x150b   : > { %v9299_v20 = vpop.eup %9298 }
0x150c   : > { %v6015_v52 = vrot.slane %v9299_v20, %v11636_v49  ;;  %v6016_v19 = vmul.f32 %v6011_v16, %v11282_v28  ;;  %v6440_v20 = vld [vmem:[#allocation6 + $0x141] ss:$8 sm:$0x3] }
0x150e   : > { %v6017_v17 = vmul.f32 %v6015_v52, %v11285_v60  ;;  %v6018_v46 = vpack.c.bf16 %v6016_v19, %v6016_v19  ;;  %v11310_v52 = vrot.slane %v6440_v20, %v11637_v44  ;;  %v6415_v19 = vld [vmem:[#allocation2 + $0x8] sm:$0xf] }
0x1510   : > { %v6019_v47 = vpack.c.bf16 %v6017_v17, %v6017_v17  ;;  %v6419_v17 = vld [vmem:[#allocation6 + $0x140] ss:$8 sm:$0x3]  ;;  %v6453_v5 = vmul.f32 %v11310_v52, %v6415_v19 }
0x1511   : > { %v11316_v10 = vrot.slane %v6419_v17, %v11637_v44  ;;  %v6424_v37 = vrot.slane %v6419_v17, %v11636_v49 }
0x1512   : > { %6181 = vmatprep.mubr.bf16.mxu1 %v6019_v47  ;;  %v11313_v47 = vrot.slane %v6440_v20, %v11636_v49 }
0x1513   : > { %6182 = vmatmul.mubr.bf16.vlgmr.msra.gmra.mxu1 %v6018_v46  ;;  %v6473_v46 = vld [vmem:[#allocation6 + $0x142] ss:$8 sm:$0x3] }
0x1514   : > { %8236 = vmatpush3.bf16.msra.mxu1 %v9009_v53  ;;  %v11320_v57 = vrot.slane %v6473_v46, %v11637_v44  ;;  %v6431_v53 = vmul.f32 %v6424_v37, %v6414_v18 }
0x1515   : > { %8237 = vmatprep.subr.bf16.mxu1 %v9010_v7 }
0x1518   : > { %8238 = vmatpush3.bf16.msra.mxu1 %v9011_v12 }
0x1519   : > { %8239 = vmatprep.subr.bf16.mxu1 %v9012_v3  ;;  %v6510_v3 = vld [vmem:[#allocation6 + $0x143] ss:$8 sm:$0x3] }
0x15d3   : > { %v8229_v42 = vpop.f32.mrf.mxu1 }
0x15d5   : > { %v8230_v28 = vpop.f32.mrf.mxu1 }
0x15d6   : > { %v8231_v60 = vadd.f32 %v8230_v28, %v8229_v42  ;;  %v6478_v28 = vrot.slane %v6473_v46, %v11636_v49 }
0x15d7   : > { %v8232_v61 = vpop.f32.mrf.mxu1 }
0x15d8   : > { %v6190_v13 = vmul.f32 %v8231_v60, %v6189_v59  ;;  %v6452_v59 = vmul.f32 %v11313_v47, %v6414_v18  ;;  %v6461_v61 = vrot.slane %v6453_v5, 1  ;;  %v6485_v27 = vmul.f32 %v6478_v28, %v6414_v18 }
0x15d9   : > { %v8233_v2 = vpop.f32.mrf.mxu1 }
0x15da   : > { %v6192_v63 = vadd.f32 %v6191_v30, %v6190_v13  ;;  %v6432_v30 = vmul.f32 %v11316_v10, %v6415_v19  ;;  %v6486_v13 = vmul.f32 %v11320_v57, %v6415_v19  ;;  %v6460_v58 = vrot.slane %v6452_v59, 1 }
0x15dc   : > { %v6193_v45 = vadd.f32 %v6192_v63, %v11641_v54  ;;  %v6468_v39 = vadd.f32 %v6460_v58, %v6431_v53 }
0x15de   : > { %v6194_v11 = vpack.c.bf16 %v6193_v45, %v6193_v45  ;;  %v6622_v45 = vld [vmem:[#allocation6 + $0x147] ss:$8 sm:$0x3] }
0x15df   : > { %v11328_v24 = vrot.slane %v6622_v45, %v11637_v44 }
0x15e0   : > { %6325 = vmatmul.mubr.bf16.vlgmr.msra.gmra.mxu0 %v6194_v11  ;;  %v6599_v11 = vld [vmem:[#allocation2 + $0x68] sm:$0xf] }
0x15e1   : > { %7091 = vmatprep.mubr.bf16.mxu0 %v11640_v36  ;;  %v9013_v36 = vld [vmem:[#allocation3 + $0x1550] ss:$8 sps:$4 sm:$0xff]  }
0x15e2   : > { %8240 = vmatpush3.bf16.msra.mxu1 %v9013_v36  ;;  %v6469_v36 = vadd.f32 %v6461_v61, %v6432_v30 }
0x15e3   : > { %8241 = vmatprep.subr.bf16.mxu1 %v9014_v62  ;;  %v6494_v62 = vrot.slane %v6486_v13, 2 }
0x15e6   : > { %8242 = vmatpush3.bf16.msra.mxu1 %v9015_v4  ;;  %v6531_v4 = vld [vmem:[#allocation6 + $0x144] ss:$8 sm:$0x3] }
0x15e7   : > { %8243 = vmatprep.subr.bf16.mxu1 %v9016_v6  ;;  %v6564_v6 = vld [vmem:[#allocation6 + $0x145] ss:$8 sm:$0x3] }
0x15ea   : > { %8244 = vmatpush3.bf16.msra.mxu1 %v9017_v34  ;;  %v11331_v34 = vmul.f32 %v11328_v24, %v6599_v11 }
0x15eb   : > { %8245 = vmatprep.subr.bf16.mxu1 %v9018_v29  ;;  %v6411_v29 = vld [vmem:[#allocation8 + $0x52] ss:$8 sm:$0x3] }
0x15ee   : > { %8246 = vmatpush3.bf16.msra.mxu1 %v9019_v9  ;;  %v6515_v9 = vrot.slane %v6510_v3, %v11636_v49 }
0x15ef   : > { %8247 = vmatprep.subr.bf16.mxu1 %v9020_v23  ;;  %v6519_v23 = vrot.slane %v6510_v3, %v11637_v44 }
0x15f2   : > { %8248 = vmatpush3.bf16.msra.mxu1 %v9021_v8  ;;  %v6601_v8 = vld [vmem:[#allocation6 + $0x146] ss:$8 sm:$0x3] }
0x15f3   : > { %8249 = vmatprep.subr.bf16.mxu1 %v9022_v22  ;;  %v6536_v22 = vrot.slane %v6531_v4, %v11636_v49 }
0x15f6   : > { %8250 = vmatpush3.bf16.msra.mxu1 %v9023_v15  ;;  %v6540_v15 = vrot.slane %v6531_v4, %v11637_v44 }
0x16a0   : > { %v6326_v31 = vpop.f32.mrf.mxu0 }
0x16a1   : > { %v6346_v32 = vmul.f32 %v6339_v41, %v6326_v31  ;;  %v6493_v41 = vrot.slane %v6485_v27, 2  ;;  %v6573_v31 = vrot.slane %v6564_v6, %v11637_v44 }
0x16a2   : > { %v6328_v43 = vpop.f32.mrf.mxu0 }
0x16a3   : > { %v6361_v26 = vadd.f32 %v6354_v50, %v6346_v32  ;;  %v6347_v38 = vmul.f32 %v6343_v35, %v6328_v43  ;;  %v6502_v50 = vadd.f32 %v6494_v62, %v6469_v36  ;;  %v11338_v35 = vrot.slane %v6564_v6, %v11636_v49  ;;  %v11344_v43 = vld [vmem:[#allocation8 + $0x53] ss:$8 sm:$0x3] }
0x16a4   : > { %v6330_v21 = vpop.f32.mrf.mxu0  ;;  %v6610_v32 = vrot.slane %v6601_v8, %v11637_v44  ;;  %v11367_v19 = vrot.slane %v11344_v43, %v11637_v44  ;;  %v6501_v17 = vadd.f32 %v6493_v41, %v6468_v39 }
0x16a5   : > { %v7948_v33 = vmul.f32 -1.442695, %v6361_v26  ;;  %v6362_v14 = vadd.f32 %v6358_v0, %v6347_v38  ;;  %v11342_v0 = vld [vmem:[#allocation2 + $0x60] sm:$0xf]  ;;  %v6627_v38 = vrot.slane %v6622_v45, %v11636_v49  ;;  %v6645_v21 = vrot.slane %v11331_v34, 1 }
0x16a6   : > { %v6331_v40 = vpop.f32.mrf.mxu0 }
0x16a7   : > { %9300 = vpow2.f32 %v7948_v33  ;;  %v7949_v56 = vmul.f32 -1.442695, %v6362_v14  ;;  %v6664_v33 = vrot.slane %v6655_v48, %v11637_v44  ;;  %v11355_v40 = vrot.slane %v6655_v48, %v11636_v49 }
0x16a8   : > { %v11370_v46 = vmul.f32 %v6627_v38, %v11342_v0 }
0x16a9   : > { %9302 = vpow2.f32 %v7949_v56  ;;  %v11358_v56 = vrot.slane %v6411_v29, %v11636_v49  ;;  %v11363_v20 = vmul.f32 %v6664_v33, %v6599_v11 }
0x16b4   : > { %v9301_v25 = vpop.eup %9300 }
0x16b5   : > { %v6369_v1 = vadd.f32 1.0, %v9301_v25  ;;  %v11361_v25 = vrot.slane %v6411_v29, %v11637_v44 }
0x16b6   : > { %v9303_v51 = vpop.eup %9302 }
0x16b7   : > { %9304 = vrcp.f32 %v6369_v1  ;;  %v6370_v16 = vadd.f32 1.0, %v9303_v51 }
0x16b9   : > { %9306 = vrcp.f32 %v6370_v16 }
0x16c4   : > { %v9305_v55 = vpop.eup %9304 }
0x16c5   : > { %v6375_v42 = vmul.f32 %v9305_v55, %v6361_v26  ;;  %v11347_v26 = vrot.slane %v6601_v8, %v11636_v49 }
0x16c6   : > { %v9307_v60 = vpop.eup %9306 }
0x16c7   : > { %v6398_v2 = vrot.slane %v6375_v42, 7  ;;  %v6404_v63 = vrot.slane %v6375_v42, 1  ;;  %v6376_v54 = vmul.f32 %v9307_v60, %v6362_v14  ;;  %v11352_v14 = vmul.f32 %v6610_v32, %v6599_v11 }
0x16c9   : > { %6402 = vst [vmem:[#allocation2 + $0x20] sm:$0x6] %v6398_v2  ;;  %6408 = vst [vmem:[#allocation2 + $0x40] sm:$0x6] %v6404_v63  ;;  %v6399_v7 = vrot.slane %v6376_v54, 7  ;;  %v6405_v12 = vrot.slane %v6376_v54, 1 }
0x16cb   : > { %6403 = vst [vmem:[#allocation2 + $0x28] sm:$0x6] %v6399_v7  ;;  %6409 = vst [vmem:[#allocation2 + $0x48] sm:$0x6] %v6405_v12 }
0x16d0   : > { %v6416_v1 = vld [vmem:[#allocation2 + $0x20] sm:$0xf] }
0x16d1   : > { %v6505_v51 = vld [vmem:[#allocation2 + $0x20] sm:$0xf]  ;;  %v6433_v42 = vmul.f32 %v6424_v37, %v6416_v1  ;;  %v6454_v59 = vmul.f32 %v11313_v47, %v6416_v1  ;;  %v6487_v60 = vmul.f32 %v6478_v28, %v6416_v1 }
0x16d2   : > { %v6507_v16 = vld [vmem:[#allocation2 + $0x40] sm:$0xf]  ;;  %v6417_v5 = vld [vmem:[#allocation2 + $0x28] sm:$0xf]  ;;  %v6522_v30 = vmul.f32 %v6515_v9, %v6505_v51  ;;  %v6543_v7 = vmul.f32 %v6536_v22, %v6505_v51  ;;  %v6576_v36 = vmul.f32 %v11338_v35, %v6505_v51 }
0x16d3   : > { %v6506_v18 = vld [vmem:[#allocation2 + $0x28] sm:$0xf]  ;;  %v6455_v61 = vmul.f32 %v11310_v52, %v6417_v5  ;;  %v6488_v13 = vmul.f32 %v11320_v57, %v6417_v5  ;;  %v6524_v63 = vmul.f32 %v6515_v9, %v6507_v16  ;;  %v6434_v12 = vmul.f32 %v11316_v10, %v6417_v5  ;;  %v6596_v41 = vld [vmem:[#allocation2 + $0x40] sm:$0xf] }
0x16d4   : > { %v6508_v55 = vld [vmem:[#allocation2 + $0x48] sm:$0xf]  ;;  %v6523_v2 = vmul.f32 %v6519_v23, %v6506_v18  ;;  %v6544_v54 = vmul.f32 %v6540_v15, %v6506_v18  ;;  %v6577_v11 = vmul.f32 %v6573_v31, %v6506_v18  ;;  %v6545_v28 = vmul.f32 %v6536_v22, %v6507_v16 }
0x16d5   : > { %v6546_v45 = vmul.f32 %v6540_v15, %v6508_v55  ;;  %v6597_v53 = vld [vmem:[#allocation2 + $0x48] sm:$0xf]  ;;  %v6463_v3 = vrot.slane %v6455_v61, 1  ;;  %v6579_v37 = vmul.f32 %v6573_v31, %v6508_v55  ;;  %v6525_v27 = vmul.f32 %v6519_v23, %v6508_v55 }
0x16d6   : > { %v6527_v58 = vadd.f32 %v6523_v2, %v6502_v50  ;;  %v6552_v47 = vrot.slane %v6544_v54, 1  ;;  %v6496_v62 = vrot.slane %v6488_v13, 2  ;;  %v6635_v4 = vmul.f32 %v11328_v24, %v6597_v53 }
0x16d7   : > { %v6471_v52 = vadd.f32 %v6463_v3, %v6434_v12  ;;  %v6554_v57 = vrot.slane %v6546_v45, 1  ;;  %v6585_v29 = vrot.slane %v6577_v11, 2  ;;  %v6462_v9 = vrot.slane %v6454_v59, 1 }
0x16d8   : > { %v6560_v6 = vadd.f32 %v6552_v47, %v6527_v58  ;;  %v6526_v8 = vadd.f32 %v6522_v30, %v6501_v17  ;;  %v6587_v48 = vrot.slane %v6579_v37, 2  ;;  %v6614_v10 = vmul.f32 %v6610_v32, %v6597_v53 }
0x16d9   : > { %v6504_v15 = vadd.f32 %v6496_v62, %v6471_v52  ;;  %v6551_v39 = vrot.slane %v6543_v7, 1  ;;  %v6668_v23 = vmul.f32 %v6664_v33, %v6597_v53  ;;  %v6470_v31 = vadd.f32 %v6462_v9, %v6433_v42 }
0x16da   : > { %v6593_v50 = vadd.f32 %v6585_v29, %v6560_v6  ;;  %v6495_v22 = vrot.slane %v6487_v60, 2  ;;  %v6643_v51 = vrot.slane %v6635_v4, 1  ;;  %v6584_v18 = vrot.slane %v6576_v36, 2 }
0x16db   : > { %v6529_v1 = vadd.f32 %v6525_v27, %v6504_v15  ;;  %v6559_v5 = vadd.f32 %v6551_v39, %v6526_v8  ;;  %v6578_v24 = vmul.f32 %v11338_v35, %v6507_v16  ;;  %v6634_v13 = vmul.f32 %v6627_v38, %v6596_v41 }
0x16dc   : > { %v6618_v55 = vadd.f32 %v6614_v10, %v6593_v50  ;;  %v6503_v61 = vadd.f32 %v6495_v22, %v6470_v31  ;;  %v6613_v30 = vmul.f32 %v11347_v26, %v6596_v41  ;;  %v6667_v32 = vmul.f32 %v11355_v40, %v6596_v41 }
0x16dd   : > { %v6562_v59 = vadd.f32 %v6554_v57, %v6529_v1  ;;  %v6592_v17 = vadd.f32 %v6584_v18, %v6559_v5  ;;  %v6676_v54 = vrot.slane %v6668_v23, 2  ;;  %v6553_v42 = vrot.slane %v6545_v28, 1 }
0x16de   : > { %v6651_v2 = vadd.f32 %v6643_v51, %v6618_v55  ;;  %v6528_v33 = vadd.f32 %v6524_v63, %v6503_v61  ;;  %v6615_v45 = vmul.f32 %v11347_v26, %v11342_v0  ;;  %v6642_v53 = vrot.slane %v6634_v13, 1 }
0x16df   : > { %v6595_v60 = vadd.f32 %v6587_v48, %v6562_v59  ;;  %v6617_v11 = vadd.f32 %v6613_v30, %v6592_v17  ;;  %v6586_v35 = vrot.slane %v6578_v24, 2  ;;  %v6669_v38 = vmul.f32 %v11355_v40, %v11342_v0 }
0x16e0   : > { %v6684_v7 = vadd.f32 %v6676_v54, %v6651_v2  ;;  %v6561_v12 = vadd.f32 %v6553_v42, %v6528_v33  ;;  %v6678_v3 = vrot.slane %v11363_v20, 2  ;;  %v6675_v37 = vrot.slane %v6667_v32, 2 }
0x16e1   : > { %v6620_v16 = vadd.f32 %v11352_v14, %v6595_v60  ;;  %v6650_v58 = vadd.f32 %v6642_v53, %v6617_v11  ;;  %v6644_v47 = vrot.slane %v11370_v46, 1  ;;  %v6706_v28 = vrot.slane %v11344_v43, %v11636_v49 }
0x16e2   : > { %v6699_v63 = vmul.f32 %v11361_v25, %v6684_v7  ;;  %v6594_v27 = vadd.f32 %v6586_v35, %v6561_v12  ;;  %v6677_v14 = vrot.slane %v6669_v38, 2 }
0x16e3   : > { %v6653_v26 = vadd.f32 %v6645_v21, %v6620_v16  ;;  %v6683_v36 = vadd.f32 %v6675_v37, %v6650_v58  ;;  %v9024_v58 = vld [vmem:[#allocation3 + $0x1670] ss:$8 sps:$4 sm:$0xff]   ;;  %v9026_v37 = vld [vmem:[#allocation3 + $0x1674] ss:$8 sps:$4 sm:$0xff]  }
0x16e4   : > { %v6714_v0 = vadd.f32 %v11367_v19, %v6699_v63  ;;  %v6619_v40 = vadd.f32 %v6615_v45, %v6594_v27  ;;  %v9029_v63 = vld [vmem:[#allocation3 + $0x1664] ss:$8 sps:$4 sm:$0xff]   ;;  %7059 = vmatprep.subr.bf16.mxu0 %v9026_v37  ;;  %v9027_v27 = vld [vmem:[#allocation3 + $0x1660] ss:$8 sps:$4 sm:$0xff]  }
0x16e5   : > { %v6686_v52 = vadd.f32 %v6678_v3, %v6653_v26  ;;  %v6698_v20 = vmul.f32 %v11358_v56, %v6683_v36  ;;  %7060 = vmatpush1.bf16.msra.mxu0 %v9024_v58  ;;  %v9030_v26 = vld [vmem:[#allocation3 + $0x1650] ss:$8 sps:$4 sm:$0xff]   ;;  %v9033_v36 = vld [vmem:[#allocation3 + $0x1640] ss:$8 sps:$4 sm:$0xff]  }
0x16e6   : > { %v7951_v62 = vmul.f32 -1.442695, %v6714_v0  ;;  %v6652_v57 = vadd.f32 %v6644_v47, %v6619_v40  ;;  %7061 = vmatprep.subr.bf16.mxu0 %v9029_v63  ;;  %v9032_v47 = vld [vmem:[#allocation3 + $0x1654] ss:$8 sps:$4 sm:$0xff]   ;;  %v9036_v40 = vld [vmem:[#allocation3 + $0x1630] ss:$8 sps:$4 sm:$0xff]  }
0x16e7   : > { %v6701_v4 = vmul.f32 %v11361_v25, %v6686_v52  ;;  %v6713_v6 = vadd.f32 %v6706_v28, %v6698_v20  ;;  %v9039_v52 = vld [vmem:[#allocation3 + $0x1620] ss:$8 sps:$4 sm:$0xff]   ;;  %v9044_v20 = vld [vmem:[#allocation3 + $0x1614] ss:$8 sps:$4 sm:$0xff]  }
0x16e8   : > { %9308 = vpow2.f32 %v7951_v62  ;;  %v6685_v46 = vadd.f32 %v6677_v14, %v6652_v57  ;;  %v9041_v14 = vld [vmem:[#allocation3 + $0x1624] ss:$8 sps:$4 sm:$0xff]   ;;  %v9042_v62 = vld [vmem:[#allocation3 + $0x1610] ss:$8 sps:$4 sm:$0xff]  }
0x16e9   : > { %v6716_v34 = vadd.f32 %v11367_v19, %v6701_v4  ;;  %v7950_v21 = vmul.f32 -1.442695, %v6713_v6  ;;  %7062 = vmatpush1.bf16.msra.mxu0 %v9027_v27  ;;  %v9047_v57 = vld [vmem:[#allocation3 + $0x1604] ss:$8 sps:$4 sm:$0xff]   ;;  %v9045_v4 = vld [vmem:[#allocation3 + $0x1600] ss:$8 sps:$4 sm:$0xff]  }
0x16ea   : > { %v6700_v43 = vmul.f32 %v11358_v56, %v6685_v46  ;;  %7063 = vmatprep.subr.bf16.mxu0 %v9032_v47 }
0x16eb   : > { %v7953_v29 = vmul.f32 -1.442695, %v6716_v34  ;;  %9310 = vpow2.f32 %v7950_v21 }
0x16ec   : > { %v6715_v9 = vadd.f32 %v6706_v28, %v6700_v43  ;;  %v9035_v28 = vld [vmem:[#allocation3 + $0x1644] ss:$8 sps:$4 sm:$0xff]  }
0x16ed   : > { %9312 = vpow2.f32 %v7953_v29  ;;  %7064 = vmatpush1.bf16.msra.mxu0 %v9030_v26 }
0x16ee   : > { %v7952_v8 = vmul.f32 -1.442695, %v6715_v9  ;;  %7065 = vmatprep.subr.bf16.mxu0 %v9035_v28 }
0x16f0   : > { %9314 = vpow2.f32 %v7952_v8 }
0x16f1   : > { %7066 = vmatpush1.bf16.msra.mxu0 %v9033_v36 }
0x16f5   : > { %v9309_v15 = vpop.eup %9308 }
0x16f6   : > { %v6730_v10 = vadd.f32 1.0, %v9309_v15 }
0x16f8   : > { %v9311_v48 = vpop.eup %9310  ;;  %9316 = vrcp.f32 %v6730_v10 }
0x16f9   : > { %v6729_v25 = vadd.f32 1.0, %v9311_v48 }
0x16fa   : > { %v9313_v39 = vpop.eup %9312 }
0x16fb   : > { %v6732_v41 = vadd.f32 1.0, %v9313_v39 }
0x16fd   : > { %v9315_v50 = vpop.eup %9314  ;;  %9318 = vrcp.f32 %v6732_v41 }
0x16fe   : > { %v6731_v23 = vadd.f32 1.0, %v9315_v50  ;;  %9320 = vrcp.f32 %v6729_v25  ;;  %v9048_v50 = vld [vmem:[#allocation3 + $0x17f0] ss:$8 sps:$4 sm:$0xff]  }
0x16ff   : > { %8257 = vmatprep.subr.bf16.mxu1 %v9048_v50  ;;  %v9078_v50 = vld [vmem:[#allocation3 + $0x1910] ss:$8 sps:$4 sm:$0xff]  }
0x1700   : > { %9322 = vrcp.f32 %v6731_v23  ;;  %v9049_v23 = vld [vmem:[#allocation3 + $0x1770] ss:$8 sps:$4 sm:$0xff]  }
0x1705   : > { %v9317_v19 = vpop.eup %9316 }
0x1706   : > { %v6742_v51 = vmul.f32 %v9317_v19, %v6714_v0  ;;  %v9038_v0 = vld [vmem:[#allocation3 + $0x1634] ss:$8 sps:$4 sm:$0xff]   ;;  %v9050_v19 = vld [vmem:[#allocation3 + $0x17e0] ss:$8 sps:$4 sm:$0xff]  }
0x1707   : > { %7067 = vmatprep.subr.bf16.mxu0 %v9038_v0 }
0x1708   : > { %7068 = vmatpush1.bf16.msra.mxu0 %v9036_v40 }
0x1709   : > { %7069 = vmatprep.subr.bf16.mxu0 %v9041_v14 }
0x170a   : > { %v9319_v56 = vpop.eup %9318 }
0x170b   : > { %v6744_v31 = vmul.f32 %v9319_v56, %v6716_v34  ;;  %v9321_v22 = vpop.eup %9320  ;;  %v6804_v34 = vld [vmem:[#allocation8 + $0x54] ss:$0 sm:$0xff]  ;;  %v9051_v56 = vld [vmem:[#allocation3 + $0x1760] ss:$8 sps:$4 sm:$0xff]  }
0x170c   : > { %v6741_v24 = vmul.f32 %v9321_v22, %v6713_v6  ;;  %7070 = vmatpush1.bf16.msra.mxu0 %v9039_v52  ;;  %v11408_v6 = vld [vmem:[#allocation2 + $0x120] sm:$0xff]  ;;  %v9053_v22 = vld [vmem:[#allocation3 + $0x1750] ss:$8 sps:$4 sm:$0xff]  }
0x170d   : > { %v9323_v1 = vpop.eup %9322  ;;  %v6748_v5 = vrot.slane %v6744_v31, 6  ;;  %7071 = vmatprep.subr.bf16.mxu0 %v9044_v20  ;;  %v9052_v31 = vld [vmem:[#allocation3 + $0x17d0] ss:$8 sps:$4 sm:$0xff]  }
0x170e   : > { %v6743_v18 = vmul.f32 %v9323_v1, %v6715_v9  ;;  %v9054_v1 = vld [vmem:[#allocation3 + $0x17c0] ss:$8 sps:$4 sm:$0xff]  }
0x170f   : > { %v11399_v55 = vsel %vm4232_vm7, %v6742_v51, %v6748_v5  ;;  %v9055_v51 = vld [vmem:[#allocation3 + $0x1740] ss:$8 sps:$4 sm:$0xff]   ;;  %v9056_v5 = vld [vmem:[#allocation3 + $0x17b0] ss:$8 sps:$4 sm:$0xff]  }
0x1710   : > { %v6760_v61 = vsel %vm2423_vm5, %v11399_v55, 0.0  ;;  %v6747_v13 = vrot.slane %v6743_v18, 6  ;;  %7072 = vmatpush1.bf16.msra.mxu0 %v9042_v62  ;;  %v9057_v18 = vld [vmem:[#allocation3 + $0x1730] ss:$8 sps:$4 sm:$0xff]   ;;  %v9069_v62 = vld [vmem:[#allocation3 + $0x1820] ss:$8 sps:$4 sm:$0xff]  }
0x1711   : > { %v6761_v59 = vrot.slane %v6760_v61, 4  ;;  %7073 = vmatprep.subr.bf16.mxu0 %v9047_v57  ;;  %v9070_v57 = vld [vmem:[#allocation3 + $0x1810] ss:$8 sps:$4 sm:$0xff]  }
0x1712   : > { %v11404_v17 = vsel %vm4232_vm7, %v6741_v24, %v6747_v13  ;;  %v9059_v24 = vld [vmem:[#allocation3 + $0x1720] ss:$8 sps:$4 sm:$0xff]   ;;  %v9060_v13 = vld [vmem:[#allocation3 + $0x1790] ss:$8 sps:$4 sm:$0xff]  }
0x1713   : > { %v6762_v30 = vadd.f32 %v6761_v59, %v6760_v61  ;;  %v6753_v32 = vsel %vm2423_vm5, %v11404_v17, 0.0  ;;  %v9058_v61 = vld [vmem:[#allocation3 + $0x17a0] ss:$8 sps:$4 sm:$0xff]   ;;  %v9064_v59 = vld [vmem:[#allocation3 + $0x1870] ss:$8 sps:$4 sm:$0xff]  }
0x1714   : > { %v6754_v2 = vrot.slane %v6753_v32, 4  ;;  %7074 = vmatpush1.bf16.msra.mxu0 %v9045_v4  ;;  %v9071_v4 = vld [vmem:[#allocation3 + $0x1800] ss:$8 sps:$4 sm:$0xff]  }
0x1715   : > { %v6763_v54 = vrot.slane %v6762_v30, 2  ;;  %8659 = vmatprep.subr.bf16.mxu0 %v11408_v6 }
0x1716   : > { %v6755_v33 = vadd.f32 %v6754_v2, %v6753_v32  ;;  %v9065_v32 = vld [vmem:[#allocation3 + $0x1860] ss:$8 sps:$4 sm:$0xff]  }
0x1717   : > { %v6764_v42 = vadd.f32 %v6763_v54, %v6762_v30  ;;  %v9061_v30 = vld [vmem:[#allocation3 + $0x1710] ss:$8 sps:$4 sm:$0xff]   ;;  %v9062_v2 = vld [vmem:[#allocation3 + $0x1780] ss:$8 sps:$4 sm:$0xff]  }
0x1718   : > { %v6756_v60 = vrot.slane %v6755_v33, 2  ;;  %v9063_v54 = vld [vmem:[#allocation3 + $0x1700] ss:$8 sps:$4 sm:$0xff]  }
0x1719   : > { %v6765_v45 = vrot.slane %v6764_v42, 1 }
0x171a   : > { %v6757_v11 = vadd.f32 %v6756_v60, %v6755_v33  ;;  %v9066_v33 = vld [vmem:[#allocation3 + $0x1850] ss:$8 sps:$4 sm:$0xff]  }
0x171b   : > { %v6766_v53 = vadd.f32 %v6765_v45, %v6764_v42  ;;  %v9067_v42 = vld [vmem:[#allocation3 + $0x1840] ss:$8 sps:$4 sm:$0xff]   ;;  %v9068_v60 = vld [vmem:[#allocation3 + $0x1830] ss:$8 sps:$4 sm:$0xff]  }
0x171c   : > { %v6758_v7 = vrot.slane %v6757_v11, 1  ;;  %v6967_v45 = vld [vmem:[#allocation8 + $0x55] ss:$8 sm:$0x3] }
0x171d   : > { %v6768_v12 = vmul.f32 0.25, %v6766_v53  ;;  %v7056_v53 = vrot.slane %v6967_v45, %v11637_v44 }
0x171e   : > { %v6759_v35 = vadd.f32 %v6758_v7, %v6757_v11  ;;  %v7052_v11 = vrot.slane %v6967_v45, %v11636_v49 }
0x171f   : > { %v6770_v38 = vpack.c.bf16 %v6768_v12, %v6768_v12 }
0x1720   : > { %v6767_v16 = vmul.f32 0.25, %v6759_v35 }
0x1721   : > { %6933 = vmatprep.mubr.bf16.mxu1 %v6770_v38 }
0x1722   : > { %v6769_v3 = vpack.c.bf16 %v6767_v16, %v6767_v16 }
0x1724   : > { %6934 = vmatmul.mubr.bf16.vlgmr.msra.gmra.mxu1 %v6769_v3 }
0x1725   : > { %8258 = vmatpush3.bf16.msra.mxu1 %v9049_v23  ;;  %v9079_v23 = vld [vmem:[#allocation3 + $0x1900] ss:$8 sps:$4 sm:$0xff]  }
0x1726   : > { %8259 = vmatprep.subr.bf16.mxu1 %v9050_v19  ;;  %v7403_v19 = vld [vmem:[#allocation8 + $0x60] ss:$0 sm:$0xff] }
0x1729   : > { %8260 = vmatpush3.bf16.msra.mxu1 %v9051_v56 }
0x172a   : > { %8261 = vmatprep.subr.bf16.mxu1 %v9052_v31  ;;  %v7405_v31 = vld [vmem:[#allocation8 + $0x61] ss:$0 sm:$0xff] }
0x172d   : > { %8262 = vmatpush3.bf16.msra.mxu1 %v9053_v22 }
0x172e   : > { %8263 = vmatprep.subr.bf16.mxu1 %v9054_v1 }
0x1731   : > { %8264 = vmatpush3.bf16.msra.mxu1 %v9055_v51 }
0x1732   : > { %8265 = vmatprep.subr.bf16.mxu1 %v9056_v5 }
0x1735   : > { %8266 = vmatpush3.bf16.msra.mxu1 %v9057_v18 }
0x1736   : > { %8267 = vmatprep.subr.bf16.mxu1 %v9058_v61 }
0x1739   : > { %8268 = vmatpush3.bf16.msra.mxu1 %v9059_v24 }
0x173a   : > { %8269 = vmatprep.subr.bf16.mxu1 %v9060_v13 }
0x173d   : > { %8270 = vmatpush3.bf16.msra.mxu1 %v9061_v30 }
0x173e   : > { %8271 = vmatprep.subr.bf16.mxu1 %v9062_v2 }
0x1741   : > { %8272 = vmatpush3.bf16.msra.mxu1 %v9063_v54 }
0x1742   : > { %8679 = vmatprep.subr.bf16.mxu1 %v11408_v6 }
0x17e4   : > { %v8251_v46 = vpop.f32.mrf.mxu1 }
0x17e6   : > { %v8252_v21 = vpop.f32.mrf.mxu1 }
0x17e7   : > { %v8253_v43 = vadd.f32 %v8252_v21, %v8251_v46 }
0x17e8   : > { %v8254_v29 = vpop.f32.mrf.mxu1 }
0x17e9   : > { %v6936_v9 = vadd.f32 %v8253_v43, %v6804_v34  ;;  %v7295_v34 = vld [vmem:[#allocation8 + $0x57] ss:$0 sm:$0xff] }
0x17ea   : > { %v8255_v8 = vpop.f32.mrf.mxu1 }
0x17eb   : > { %v7970_v15 = vmul.f32 -1.442695, %v6936_v9 }
0x17ed   : > { %9324 = vpow2.f32 %v7970_v15  ;;  %v9072_v15 = vld [vmem:[#allocation3 + $0x1970] ss:$8 sps:$4 sm:$0xff]  }
0x17fa   : > { %v9325_v48 = vpop.eup %9324 }
0x17fb   : > { %v6944_v10 = vadd.f32 1.0, %v9325_v48  ;;  %v9073_v48 = vld [vmem:[#allocation3 + $0x1960] ss:$8 sps:$4 sm:$0xff]  }
0x17fd   : > { %9326 = vrcp.f32 %v6944_v10  ;;  %v9074_v10 = vld [vmem:[#allocation3 + $0x1950] ss:$8 sps:$4 sm:$0xff]  }
0x180a   : > { %v9327_v39 = vpop.eup %9326 }
0x180b   : > { %v6947_v41 = vmul.f32 %v9327_v39, %v6936_v9  ;;  %v9075_v39 = vld [vmem:[#allocation3 + $0x1940] ss:$8 sps:$4 sm:$0xff]  }
0x180d   : > { %v6948_v25 = vpack.c.bf16 %v6947_v41, %v6947_v41  ;;  %v9076_v41 = vld [vmem:[#allocation3 + $0x1930] ss:$8 sps:$4 sm:$0xff]  }
0x180f   : > { %7092 = vmatmul.mubr.bf16.vlgmr.msra.gmra.mxu0 %v6948_v25  ;;  %v9077_v25 = vld [vmem:[#allocation3 + $0x1920] ss:$8 sps:$4 sm:$0xff]  }
0x1810   : > { %8675 = vmatprep.mubr.msk.bf16.mxu0 %vm9501_vm0, %v11408_v6  ;;  %8660 = vmatpush3.bf16.msra.mxu0 %v9064_v59 }
0x1811   : > { %8661 = vmatprep.subr.bf16.mxu0 %v11408_v6 }
0x1814   : > { %8662 = vmatpush3.bf16.msra.mxu0 %v9065_v32 }
0x1815   : > { %8663 = vmatprep.subr.bf16.mxu0 %v11408_v6 }
0x1818   : > { %8664 = vmatpush3.bf16.msra.mxu0 %v9066_v33 }
0x1819   : > { %8665 = vmatprep.subr.bf16.mxu0 %v11408_v6 }
0x181c   : > { %8666 = vmatpush3.bf16.msra.mxu0 %v9067_v42 }
0x181d   : > { %8667 = vmatprep.subr.bf16.mxu0 %v11408_v6 }
0x1820   : > { %8668 = vmatpush3.bf16.msra.mxu0 %v9068_v60 }
0x1821   : > { %8669 = vmatprep.subr.bf16.mxu0 %v11408_v6 }
0x1824   : > { %8670 = vmatpush3.bf16.msra.mxu0 %v9069_v62 }
0x1825   : > { %8671 = vmatprep.subr.bf16.mxu0 %v11408_v6 }
0x1828   : > { %8672 = vmatpush3.bf16.msra.mxu0 %v9070_v57 }
0x1829   : > { %8673 = vmatprep.subr.bf16.mxu0 %v11408_v6 }
0x182c   : > { %8674 = vmatpush3.bf16.msra.mxu0 %v9071_v4 }
0x18cf   : > { %v7093_v7 = vpop.f32.mrf.mxu0 }
0x18d0   : > { %v7094_v12 = vadd.f32 %v7093_v7, %v7052_v11 }
0x18d1   : > { %v7095_v35 = vpop.f32.mrf.mxu0 }
0x18d2   : > { %v7987_v38 = vmul.f32 -1.442695, %v7094_v12  ;;  %v7096_v16 = vadd.f32 %v7095_v35, %v7056_v53  ;;  %v7440_v53 = vld [vmem:[#allocation8 + $0x62] ss:$0 sm:$0xff] }
0x18d3   : > { %v7097_v3 = vpop.f32.mrf.mxu0 }
0x18d4   : > { %9328 = vpow2.f32 %v7987_v38  ;;  %v7988_v58 = vmul.f32 -1.442695, %v7096_v16 }
0x18d5   : > { %v7098_v37 = vpop.f32.mrf.mxu0 }
0x18d6   : > { %9330 = vpow2.f32 %v7988_v58 }
0x18e1   : > { %v9329_v63 = vpop.eup %9328 }
0x18e2   : > { %v7106_v27 = vadd.f32 1.0, %v9329_v63 }
0x18e3   : > { %v9331_v47 = vpop.eup %9330 }
0x18e4   : > { %9332 = vrcp.f32 %v7106_v27  ;;  %v7107_v26 = vadd.f32 1.0, %v9331_v47 }
0x18e6   : > { %9334 = vrcp.f32 %v7107_v26 }
0x18f1   : > { %v9333_v28 = vpop.eup %9332 }
0x18f2   : > { %v7115_v36 = vrot.slane %v9333_v28, %v11636_v49 }
0x18f3   : > { %v9335_v44 = vpop.eup %9334 }
0x18f4   : > { %v7119_v0 = vrot.slane %v9335_v44, %v11636_v49  ;;  %v7120_v40 = vmul.f32 %v7115_v36, %v11404_v17 }
0x18f6   : > { %v7121_v14 = vmul.f32 %v7119_v0, %v11399_v55  ;;  %v7122_v20 = vpack.c.bf16 %v7120_v40, %v7120_v40  ;;  %v7293_v55 = vld [vmem:[#allocation8 + $0x56] ss:$0 sm:$0xff] }
0x18f8   : > { %v7123_v52 = vpack.c.bf16 %v7121_v14, %v7121_v14 }
0x18fa   : > { %7285 = vmatprep.mubr.bf16.mxu1 %v7123_v52 }
0x18fb   : > { %7286 = vmatmul.mubr.bf16.vlgmr.msra.gmra.mxu1 %v7122_v20 }
0x18fc   : > { %8695 = vmatprep.mubr.msk.bf16.mxu1 %vm9501_vm0, %v11408_v6  ;;  %8680 = vmatpush3.bf16.msra.mxu1 %v9072_v15 }
0x18fd   : > { %8681 = vmatprep.subr.bf16.mxu1 %v11408_v6 }
0x1900   : > { %8682 = vmatpush3.bf16.msra.mxu1 %v9073_v48 }
0x1901   : > { %8683 = vmatprep.subr.bf16.mxu1 %v11408_v6 }
0x1904   : > { %8684 = vmatpush3.bf16.msra.mxu1 %v9074_v10 }
0x1905   : > { %8685 = vmatprep.subr.bf16.mxu1 %v11408_v6 }
0x1908   : > { %8686 = vmatpush3.bf16.msra.mxu1 %v9075_v39 }
0x1909   : > { %8687 = vmatprep.subr.bf16.mxu1 %v11408_v6 }
0x190c   : > { %8688 = vmatpush3.bf16.msra.mxu1 %v9076_v41 }
0x190d   : > { %8689 = vmatprep.subr.bf16.mxu1 %v11408_v6 }
0x1910   : > { %8690 = vmatpush3.bf16.msra.mxu1 %v9077_v25 }
0x1911   : > { %8691 = vmatprep.subr.bf16.mxu1 %v11408_v6 }
0x1914   : > { %8692 = vmatpush3.bf16.msra.mxu1 %v9078_v50 }
0x1915   : > { %8693 = vmatprep.subr.bf16.mxu1 %v11408_v6 }
0x1918   : > { %8694 = vmatpush3.bf16.msra.mxu1 %v9079_v23 }
0x19bb   : > { %v8273_v49 = vpop.f32.mrf.mxu1 }
0x19bd   : > { %v8274_v17 = vpop.f32.mrf.mxu1 }
0x19be   : > { %v8275_v46 = vadd.f32 %v8274_v17, %v8273_v49 }
0x19bf   : > { %v8276_v21 = vpop.f32.mrf.mxu1 }
0x19c0   : > { %v7294_v43 = vmul.f32 %v8275_v46, %v7293_v55 }
0x19c1   : > { %v8277_v29 = vpop.f32.mrf.mxu1 }
0x19c2   : > { %v7296_v9 = vadd.f32 %v7295_v34, %v7294_v43 }
0x19c4   : > { %v7297_v8 = vpack.c.bf16 %v7296_v9, %v7296_v9 }
0x19c6   : > { %8676 = vmatmul.mubr.bf16.vlgmr.msra.gmra.mxu0 %v7297_v8 }
0x1a86   : > { %v7397_v56 = vpop.f32.mrf.mxu0 }
0x1a87   : > { %v7404_v22 = vmul.f32 %v7403_v19, %v7397_v56 }
0x1a88   : > { %v8677_v1 = vpop.f32.mrf.mxu0 }
0x1a89   : > { %v7406_v51 = vadd.f32 %v7405_v31, %v7404_v22 }
0x1a8a   : > { %v7400_v5 = vpop.f32.mrf.mxu0 }
0x1a8b   : > { %v8013_v18 = vmul.f32 -1.442695, %v7406_v51 }
0x1a8c   : > { %v8678_v61 = vpop.f32.mrf.mxu0 }
0x1a8d   : > { %9336 = vpow2.f32 %v8013_v18 }
0x1a9a   : > { %v9337_v24 = vpop.eup %9336 }
0x1a9b   : > { %v7410_v13 = vadd.f32 1.0, %v9337_v24 }
0x1a9d   : > { %9338 = vrcp.f32 %v7410_v13 }
0x1aaa   : > { %v9339_v59 = vpop.eup %9338 }
0x1aab   : > { %v7413_v30 = vmul.f32 %v9339_v59, %v7406_v51 }
0x1aad   : > { %v7414_v6 = vsel %vm2423_vm5, %v7413_v30, 0.0 }
0x1aae   : > { %v7415_v32 = vrot.slane %v7414_v6, 4 }
0x1ab0   : > { %v7416_v2 = vadd.f32 %v7415_v32, %v7414_v6 }
0x1ab2   : > { %v7417_v54 = vrot.slane %v7416_v2, 2 }
0x1ab4   : > { %v7418_v33 = vadd.f32 %v7417_v54, %v7416_v2 }
0x1ab6   : > { %v7419_v42 = vrot.slane %v7418_v33, 1 }
0x1ab8   : > { %v7420_v60 = vadd.f32 %v7419_v42, %v7418_v33 }
0x1aba   : > { %v7421_v45 = vmul.f32 0.25, %v7420_v60 }
0x1abc   : > { %v7422_v11 = vpack.c.bf16 %v7421_v45, %v7421_v45 }
0x1abe   : > { %8696 = vmatmul.mubr.bf16.vlgmr.msra.gmra.mxu1 %v7422_v11 }
0x1b7e   : > { %v7523_v7 = vpop.f32.mrf.mxu1 }
0x1b7f   : > { %v7524_v12 = vadd.f32 %v7523_v7, %v7440_v53 }
0x1b80   : > { %v8697_v35 = vpop.f32.mrf.mxu1 }
0x1b81   : > { %7529 = vst [vmem:[%s233_s12] sm:$0x1] %v7524_v12 }
0x1b82   : > { %v7526_v38 = vpop.f32.mrf.mxu1 }
0x1b83   : > { %9436 = shalt.err (!%p9433_p0)
}
0x1b84   : > { %s9437_s6 = scalar_lea.hbm %s11442_s22, 16  ;;  %s9441_s7 = scalar_lea.hbm %s11487_s4, 32 }
0x1b85   : > { %p9438_p1 = scmp.ne.s32.totalorder %s11442_s22, %s9437_s6  ;;  %p9442_p4 = scmp.lt.s32.totalorder %s11442_s22, %s11487_s4 }
0x1b86   : > { %p9443_p13 = scmp.lt.s32.totalorder %s9441_s7, %s9437_s6 }
0x1b87   : > { %p9439_p2 = pnand %p9438_p1, %p9567_p5 }
0x1b88   : > { %p9444_p9 = por %p9443_p13, %p9442_p4 }
0x1b89   : > { %p9440_p3 = pneg %p9439_p2 }
0x1b8b   : > { %p9445_p10 = pnand %p9444_p9, %p9440_p3 }
0x1b8d   : > { %9448 = shalt.err (!%p9445_p10)
}
0x1b8e   : > { %8711 = dma.vmem_to_hbm [thread:$0]  (%p9567_p5), %s11444_s13, 16, %s11442_s22, %s7531_s23   ;;  %v8698_v16 = vpop.f32.mrf.mxu1 }
0x1b8f PF: > { %p8733_p12 = scmp.ge.s32.totalorder %s9491_s18, 2  ;;  %s7555_s10 = sand.u32 1, %s9479_s15  }
0x1b90   : > { %s7556_s11 = scalar_lea.sflag [#allocation5], %s7555_s10 }
0x1b91   : > { %p8724_p7 = pnand %p8733_p12, %p9571_p6 }
0x1b93   : > { %p8725_p8 = pneg %p8724_p7 }
0x1b95   : > { %9474 = dma.done.wait (%p8725_p8), %s7556_s11, 16  }
0x1b96   : > { %9476 = vsyncadd (%p8725_p8), %s7556_s11, 4294967280  ;;  %p16_p11 = scmp.ge.s32.totalorder %s9554_s21, 4   ;;  %s11644_s15 = smov %s9483_s16 }
0x1b97   : > { %s11645_s16 = smov %s9487_s17  ;;  %s11646_s17 = smov %s9565_s24 }
0x1b98   : > { %s11647_s18 = smov %s9554_s21  ;;  %18 = sbr.rel (!%p16_p11) target bundleno = 5 (0x5), region = 168 }
0x1b9d   :  { %7560 = vsyncpa [#allocation4], 1 }
0x1b9e   :  { %7562 = vsyncpa [#allocation4 + $0x1], 1 }
0x1b9f   :  { %7563 = vsyncpa [#allocation7], 1 }
0x1ba0   :  { %7564 = vsyncpa [#allocation5], 1 }
0x1ba1   :  { %7566 = vsyncpa [#allocation5 + $0x1], 1 }

</bundles_post_ra>
